<compile_context>
chip_gen: v7x
topology: tpu7x:2x2x1
jax: 0.10.0
libtpu: 0.0.40
codegen_flags: <defaults>
</compile_context>

<pallas_src>
import math

import jax
import jax.numpy as jnp
from jax.experimental import pallas as pl
from jax.experimental.pallas import tpu as pltpu

BN_EPS = 1e-5

MS_KERNELS = (6, 12, 24, 48)
MS_KMAX = 48
# (in_channels, out_channels_per_block, stride) for each MultiScaleModule
MS_CFG = ((1, 16, 4), (64, 32, 2), (128, 64, 2), (256, 128, 2), (512, 256, 2))
# Taps per K block for the grouped (fused) MultiScaleModule kernel.  Module 0
# (Cin=1) uses the dense 48-tap packing instead (index 0 unused).
MS_BLOCK_TAPS = (None, 24, 24, 12, 12)
# (in_channels, out_channels, kernel, stride) for each ConvBranch block
CB_CFG = ((1, 16, 6, 4), (16, 32, 5, 2), (32, 64, 4, 2), (64, 128, 3, 2),
          (128, 256, 2, 2))

VMEM_LIMIT = 32 * 1024 * 1024


# ---------------------------------------------------------------------------
# Pallas kernels
# ---------------------------------------------------------------------------
def _mm_bias_relu_kernel(p_ref, w_ref, b_ref, o_ref):
    """Single-step matmul with fused +bias and ReLU (bf16 in, f32 out)."""
    acc = jnp.dot(p_ref[...], w_ref[...], preferred_element_type=jnp.float32)
    o_ref[...] = jnp.maximum(acc + b_ref[...], 0.0).astype(o_ref.dtype)


def _single_matmul(patches, w, bias):
    """patches (M,K) bf16, w (K,N) bf16, bias (1,N) f32 -> (M,N) f32."""
    M, K = patches.shape
    N = w.shape[1]
    return pl.pallas_call(
        _mm_bias_relu_kernel,
        out_shape=jax.ShapeDtypeStruct((M, N), jnp.float32),
        grid=(1,),
        in_specs=[
            pl.BlockSpec((M, K), lambda i: (0, 0)),
            pl.BlockSpec((K, N), lambda i: (0, 0)),
            pl.BlockSpec((1, N), lambda i: (0, 0)),
        ],
        out_specs=pl.BlockSpec((M, N), lambda i: (0, 0)),
        compiler_params=pltpu.CompilerParams(
            dimension_semantics=("arbitrary",),
            vmem_limit_bytes=VMEM_LIMIT),
    )(patches, w, bias)


def _make_grouped_kernel(starts, ends):
    """Fused MultiScaleModule kernel: a flat K grid where each kernel-size
    group owns a contiguous range of K blocks; the output block follows the
    group and an f32 scratch accumulates within each group."""
    starts = tuple(starts)
    ends = tuple(ends)

    def kernel(p_ref, w_ref, b_ref, o_ref, acc_ref):
        j = pl.program_id(0)
        is_first = (j == starts[0])
        for s in starts[1:]:
            is_first = jnp.logical_or(is_first, j == s)
        is_last = (j == ends[0])
        for e in ends[1:]:
            is_last = jnp.logical_or(is_last, j == e)

        @pl.when(is_first)
        def _():
            acc_ref[...] = jnp.zeros_like(acc_ref)

        acc_ref[...] += jnp.dot(p_ref[...], w_ref[...],
                                preferred_element_type=jnp.float32)

        @pl.when(is_last)
        def _():
            o_ref[0] = jnp.maximum(acc_ref[...] + b_ref[0],
                                   0.0).astype(o_ref.dtype)

    return kernel


def _group_of(j, starts):
    """Group index of K-block j (static group boundaries, traced j)."""
    g = (j >= starts[1]).astype(jnp.int32)
    for s in starts[2:]:
        g = g + (j >= s).astype(jnp.int32)
    return g


def _grouped_matmul(patches, w_packed, bias, starts, ends, kblk, cout):
    """patches (M, nk*kblk) bf16, w_packed (nk*kblk, cout) bf16,
    bias (4,1,cout) f32 -> (4, M, cout) f32 (one slab per kernel size)."""
    M = patches.shape[0]
    nk = ends[-1] + 1
    starts_t = tuple(starts)
    return pl.pallas_call(
        _make_grouped_kernel(starts, ends),
        out_shape=jax.ShapeDtypeStruct((len(MS_KERNELS), M, cout), jnp.float32),
        grid=(nk,),
        in_specs=[
            pl.BlockSpec((M, kblk), lambda j: (0, j)),
            pl.BlockSpec((kblk, cout), lambda j: (j, 0)),
            pl.BlockSpec((1, 1, cout),
                         lambda j, s=starts_t: (_group_of(j, s), 0, 0)),
        ],
        out_specs=pl.BlockSpec((1, M, cout),
                               lambda j, s=starts_t: (_group_of(j, s), 0, 0)),
        scratch_shapes=[pltpu.VMEM((M, cout), jnp.float32)],
        compiler_params=pltpu.CompilerParams(
            dimension_semantics=("arbitrary",),
            vmem_limit_bytes=VMEM_LIMIT),
    )(patches, w_packed, bias)


def _head_kernel(f_ref, w_ref, b_ref, o_ref):
    """Global average pool over length + Linear + softmax."""
    f = f_ref[...]                                     # (B, L_f, 1280)
    pooled = jnp.mean(f, axis=1)                       # (B, 1280)
    logits = jnp.dot(pooled, w_ref[...],
                     preferred_element_type=jnp.float32) + b_ref[...]
    m = jnp.max(logits, axis=-1, keepdims=True)
    e = jnp.exp(logits - m)
    o_ref[...] = e / jnp.sum(e, axis=-1, keepdims=True)


def _head(feat_blc, fc_w, fc_b):
    B, Lf, C = feat_blc.shape
    O = fc_w.shape[1]
    return pl.pallas_call(
        _head_kernel,
        out_shape=jax.ShapeDtypeStruct((B, O), jnp.float32),
        grid=(1,),
        in_specs=[
            pl.BlockSpec((B, Lf, C), lambda i: (0, 0, 0)),
            pl.BlockSpec((C, O), lambda i: (0, 0)),
            pl.BlockSpec((1, O), lambda i: (0, 0)),
        ],
        out_specs=pl.BlockSpec((B, O), lambda i: (0, 0)),
        compiler_params=pltpu.CompilerParams(
            dimension_semantics=("arbitrary",),
            vmem_limit_bytes=VMEM_LIMIT),
    )(feat_blc, fc_w, fc_b)


# ---------------------------------------------------------------------------
# JAX glue (im2col, row padding, per-layer wrappers)
# ---------------------------------------------------------------------------
def _round_up(x, m):
    return (x + m - 1) // m * m


def _extract_patches(x_blc, k, stride, pad):
    """(B, L, C) -> ((B, L_out, k, C), L_out) matching PyTorch Conv1d."""
    B, L, C = x_blc.shape
    L_out = (L + 2 * pad - k) // stride + 1
    xp = jnp.pad(x_blc, ((0, 0), (pad, pad), (0, 0)))
    idx = jnp.arange(L_out)[:, None] * stride + jnp.arange(k)[None, :]
    return xp[:, idx, :], L_out


def _pad_rows(mat, mult=8):
    m0 = mat.shape[0]
    m = _round_up(m0, mult)
    if m != m0:
        mat = jnp.pad(mat, ((0, m - m0), (0, 0)))
    return mat, m0


def _cb_block(y_blc, prm, k, stride):
    """Conv1d(k, stride, pad=k//2) + BN(eval) + ReLU for the ConvBranch."""
    B, L, Cin = y_blc.shape
    p, L_out = _extract_patches(y_blc.astype(jnp.bfloat16), k, stride, k // 2)
    patches = p.reshape(B * L_out, k * Cin)
    patches, M0 = _pad_rows(patches)
    out = _single_matmul(patches, prm["w"], prm["b"])
    return out[:M0].reshape(B, L_out, -1)


def _ms_module_dense(y_blc, prm, stride, cout):
    """MultiScaleModule 0 (Cin=1): one dense 48-tap matmul for all 4 kernels."""
    B, L, Cin = y_blc.shape
    p, L_out = _extract_patches(y_blc.astype(jnp.bfloat16), MS_KMAX, stride,
                                MS_KMAX // 2)
    patches = p.reshape(B * L_out, MS_KMAX * Cin)
    patches, M0 = _pad_rows(patches)
    out = _single_matmul(patches, prm["w"], prm["b"])   # (M, 4*cout)
    return out[:M0].reshape(B, L_out, len(MS_KERNELS) * cout)


def _ms_module_grouped(y_blc, prm, stride, cout, taps):
    """MultiScaleModules 1..4: one fused pallas_call for all 4 kernel sizes."""
    B, L, Cin = y_blc.shape
    kblk = taps * Cin
    nblocks = [-(-k // taps) for k in MS_KERNELS]
    starts = [sum(nblocks[:g]) for g in range(len(MS_KERNELS))]
    ends = [starts[g] + nblocks[g] - 1 for g in range(len(MS_KERNELS))]

    # One im2col with the maximal (48-tap) window; smaller kernels use its
    # centered sub-windows (padding=k//2 gives identical output positions).
    p48, L_out = _extract_patches(y_blc.astype(jnp.bfloat16), MS_KMAX, stride,
                                  MS_KMAX // 2)
    M0 = B * L_out
    cols = []
    for g, k in enumerate(MS_KERNELS):
        off = MS_KMAX // 2 - k // 2
        pg = p48[:, :, off:off + k, :].reshape(M0, k * Cin)
        pad_c = nblocks[g] * kblk - k * Cin
        if pad_c:
            pg = jnp.pad(pg, ((0, 0), (0, pad_c)))
        cols.append(pg)
    patches = jnp.concatenate(cols, axis=1)
    patches, _ = _pad_rows(patches)

    out = _grouped_matmul(patches, prm["w"], prm["b"], starts, ends, kblk, cout)
    out = out[:, :M0, :]                                # (4, M0, cout)
    return jnp.transpose(out, (1, 0, 2)).reshape(B, L_out,
                                                 len(MS_KERNELS) * cout)


@jax.jit
def mscnn4_forward(prep, x_ncl):
    # x_ncl: (B, C_in=1, L) like PyTorch; internally channels-last (B, L, C).
    x = jnp.transpose(x_ncl, (0, 2, 1)).astype(jnp.float32)

    # multiscale branch: one fused pallas_call per MultiScaleModule.
    y1 = x
    for mi, (_, cout, stride) in enumerate(MS_CFG):
        if mi == 0:
            y1 = _ms_module_dense(y1, prep["ms"][mi], stride, cout)
        else:
            y1 = _ms_module_grouped(y1, prep["ms"][mi], stride, cout,
                                    MS_BLOCK_TAPS[mi])

    # plain conv branch.
    y2 = x
    for bi, (_, _, k, s) in enumerate(CB_CFG):
        y2 = _cb_block(y2, prep["cb"][bi], k, s)

    feat = jnp.concatenate([y1, y2], axis=-1)           # (B, L_f, 1280)
    prob = _head(feat, prep["fc_w"], prep["fc_b"])      # (B, 15)
    feature_map = jnp.transpose(feat, (0, 2, 1))        # (B, 1280, L_f), NCL
    return feature_map, prob


# ---------------------------------------------------------------------------
# One-time parameter preparation (outside the jitted forward)
# ---------------------------------------------------------------------------
def _fold_block(blk, k, cin, cout):
    """-> (w_mat (k*cin, cout) with BN scale folded, bias (cout,)), both f32."""
    scale = blk["gamma"] / jnp.sqrt(blk["var"] + BN_EPS)
    w_mat = jnp.transpose(blk["w"], (2, 1, 0)).reshape(k * cin, cout)
    w_mat = w_mat * scale[None, :]
    bias = (blk["b"] - blk["mean"]) * scale + blk["beta"]
    return w_mat, bias


def prepare_params(params):
    """Fold BN into weights, transpose to (K*Cin, Cout), cast to bf16 and pack
    per-module fused weight buffers.  Runs once, outside the jitted forward."""
    prep = {"ms": [], "cb": [],
            "fc_w": params["fc_w"].astype(jnp.float32),
            "fc_b": params["fc_b"].reshape(1, -1).astype(jnp.float32)}

    # MS module 0 (Cin=1): dense 48-tap packing, one column group per kernel.
    cin0, cout0, _ = MS_CFG[0]
    w_dense = jnp.zeros((MS_KMAX * cin0, len(MS_KERNELS) * cout0), jnp.float32)
    b_dense = []
    for g, k in enumerate(MS_KERNELS):
        w_mat, bias = _fold_block(params["ms"][0][g], k, cin0, cout0)
        r0 = (MS_KMAX // 2 - k // 2) * cin0
        w_dense = w_dense.at[r0:r0 + k * cin0,
                             g * cout0:(g + 1) * cout0].set(w_mat)
        b_dense.append(bias)
    prep["ms"].append({
        "w": w_dense.astype(jnp.bfloat16),
        "b": jnp.concatenate(b_dense).reshape(1, len(MS_KERNELS) * cout0),
    })

    # MS modules 1..4: block-aligned concatenation along K per kernel size.
    for mi in range(1, len(MS_CFG)):
        cin, cout, _ = MS_CFG[mi]
        taps = MS_BLOCK_TAPS[mi]
        kblk = taps * cin
        w_rows, biases = [], []
        for g, k in enumerate(MS_KERNELS):
            w_mat, bias = _fold_block(params["ms"][mi][g], k, cin, cout)
            pad_r = (-(-k // taps)) * kblk - k * cin
            if pad_r:
                w_mat = jnp.pad(w_mat, ((0, pad_r), (0, 0)))
            w_rows.append(w_mat)
            biases.append(bias)
        prep["ms"].append({
            "w": jnp.concatenate(w_rows, axis=0).astype(jnp.bfloat16),
            "b": jnp.stack(biases).reshape(len(MS_KERNELS), 1, cout),
        })

    # ConvBranch blocks.
    for bi, (cin, cout, k, _) in enumerate(CB_CFG):
        w_mat, bias = _fold_block(params["cb"][bi], k, cin, cout)
        prep["cb"].append({"w": w_mat.astype(jnp.bfloat16),
                           "b": bias.reshape(1, cout)})
    return prep


# ---------------------------------------------------------------------------
# Deterministic parameter initialization (PyTorch-layout raw params)
# ---------------------------------------------------------------------------
def _init_block(key, cin, cout, k):
    ks = jax.random.split(key, 6)
    bound = 1.0 / math.sqrt(cin * k)
    return dict(
        w=jax.random.uniform(ks[0], (cout, cin, k), jnp.float32, -bound, bound),
        b=jax.random.uniform(ks[1], (cout,), jnp.float32, -bound, bound),
        gamma=jax.random.uniform(ks[2], (cout,), jnp.float32, 0.8, 1.2),
        beta=jax.random.uniform(ks[3], (cout,), jnp.float32, -0.1, 0.1),
        mean=jax.random.uniform(ks[4], (cout,), jnp.float32, -0.1, 0.1),
        var=jax.random.uniform(ks[5], (cout,), jnp.float32, 0.5, 1.5),
    )


def init_params(key, out_channel=15):
    k_ms, k_cb, k_fc = jax.random.split(key, 3)
    ms_keys = jax.random.split(k_ms, len(MS_CFG) * len(MS_KERNELS))
    ms, idx = [], 0
    for (cin, cout, _) in MS_CFG:
        mod = []
        for k in MS_KERNELS:
            mod.append(_init_block(ms_keys[idx], cin, cout, k))
            idx += 1
        ms.append(mod)
    cb_keys = jax.random.split(k_cb, len(CB_CFG))
    cb = [_init_block(cb_keys[i], cin, cout, k)
          for i, (cin, cout, k, _) in enumerate(CB_CFG)]
    fk1, fk2 = jax.random.split(k_fc)
    bound = 1.0 / math.sqrt(1280)
    fc_w = jax.random.uniform(fk1, (1280, out_channel), jnp.float32, -bound, bound)
    fc_b = jax.random.uniform(fk2, (out_channel,), jnp.float32, -bound, bound)
    return dict(ms=ms, cb=cb, fc_w=fc_w, fc_b=fc_b)


if __name__ == "__main__":
    key = jax.random.PRNGKey(0)
    pkey, xkey = jax.random.split(key)
    params = init_params(pkey)
    prep = prepare_params(params)   # one-time BN fold / transpose / bf16 pack

    # (batch=2, in_channel=1, length=64): both branches end at length 2, so the
    # 1024-ch multiscale branch and 256-ch conv branch concatenate to 1280 ch.
    x = jax.random.normal(xkey, (2, 1, 64), jnp.float32)

    feature_map, prob = mscnn4_forward(prep, x)
    jax.block_until_ready((feature_map, prob))

    assert feature_map.shape == (2, 1280, 2), feature_map.shape
    assert prob.shape == (2, 15), prob.shape
    assert bool(jnp.all(jnp.isfinite(feature_map)))
    assert bool(jnp.all(jnp.isfinite(prob)))
    assert bool(jnp.allclose(jnp.sum(prob, axis=-1), 1.0, atol=1e-4))
    print("KERNEL_OK")
</pallas_src>

<mosaic_0001>
module attributes {stable_mosaic.version = 11 : i64} {
  func.func @_mm_bias_relu_kernel(%arg0: i32, %arg1: memref<40x48xbf16, #tpu.memory_space<vmem>>, %arg2: memref<48x64xbf16, #tpu.memory_space<vmem>>, %arg3: memref<1x64xf32, #tpu.memory_space<vmem>>, %arg4: memref<40x64xf32, #tpu.memory_space<vmem>>) attributes {dimension_semantics = [#tpu.dimension_semantics<arbitrary>], iteration_bounds = array<i64: 1>, scalar_prefetch = 0 : i64, scratch_operands = 0 : i64, tpu.core_type = #tpu.core_type<tc>, window_params = [{pipeline_mode = #tpu.pipeline_mode<synchronous>, transform_indices = @transform_0, window_bounds = array<i64: 40, 48>}, {pipeline_mode = #tpu.pipeline_mode<synchronous>, transform_indices = @transform_1, window_bounds = array<i64: 48, 64>}, {pipeline_mode = #tpu.pipeline_mode<synchronous>, transform_indices = @transform_2, window_bounds = array<i64: 1, 64>}, {pipeline_mode = #tpu.pipeline_mode<synchronous>, transform_indices = @transform_3, window_bounds = array<i64: 40, 64>}]} {
    %c0 = arith.constant 0 : index
    %c0_0 = arith.constant 0 : index
    %0 = vector.load %arg1[%c0, %c0_0] : memref<40x48xbf16, #tpu.memory_space<vmem>>, vector<40x48xbf16>
    %c0_1 = arith.constant 0 : index
    %c0_2 = arith.constant 0 : index
    %1 = vector.load %arg2[%c0_1, %c0_2] : memref<48x64xbf16, #tpu.memory_space<vmem>>, vector<48x64xbf16>
    %cst = arith.constant dense<0.000000e+00> : vector<40x64xf32>
    %2 = tpu.matmul %0, %1, %cst {dimension_numbers = #tpu.dot_dimension_numbers<[1], [0], [0], [1], [0, 0, 1, 1], [], []>} : vector<40x48xbf16>, vector<48x64xbf16>, vector<40x64xf32> -> vector<40x64xf32>
    %c0_3 = arith.constant 0 : index
    %c0_4 = arith.constant 0 : index
    %3 = vector.load %arg3[%c0_3, %c0_4] : memref<1x64xf32, #tpu.memory_space<vmem>>, vector<1x64xf32>
    %4 = vector.broadcast %3 : vector<1x64xf32> to vector<40x64xf32>
    %5 = arith.addf %2, %4 : vector<40x64xf32>
    %cst_5 = arith.constant 0.000000e+00 : f32
    %6 = vector.broadcast %cst_5 : f32 to vector<40x64xf32>
    %7 = arith.maximumf %5, %6 : vector<40x64xf32>
    %c0_6 = arith.constant 0 : index
    %c0_7 = arith.constant 0 : index
    %8 = vector.load %arg4[%c0_6, %c0_7] : memref<40x64xf32, #tpu.memory_space<vmem>>, vector<40x64xf32>
    tpu.vector_store %arg4[%c0_6, %c0_7], %7 {strides = array<i32>} : memref<40x64xf32, #tpu.memory_space<vmem>>, vector<40x64xf32>,
    return
  }
  func.func @transform_0(%arg0: i32) -> (i32, i32) {
    %c0_i32 = arith.constant 0 : i32
    %c0_i32_0 = arith.constant 0 : i32
    %c0_i32_1 = arith.constant 0 : i32
    return %c0_i32, %c0_i32_0 : i32, i32
  }
  func.func @transform_1(%arg0: i32) -> (i32, i32) {
    %c0_i32 = arith.constant 0 : i32
    %c0_i32_0 = arith.constant 0 : i32
    %c0_i32_1 = arith.constant 0 : i32
    return %c0_i32, %c0_i32_0 : i32, i32
  }
  func.func @transform_2(%arg0: i32) -> (i32, i32) {
    %c0_i32 = arith.constant 0 : i32
    %c0_i32_0 = arith.constant 0 : i32
    %c0_i32_1 = arith.constant 0 : i32
    return %c0_i32, %c0_i32_0 : i32, i32
  }
  func.func @transform_3(%arg0: i32) -> (i32, i32) {
    %c0_i32 = arith.constant 0 : i32
    %c0_i32_0 = arith.constant 0 : i32
    %c0_i32_1 = arith.constant 0 : i32
    return %c0_i32, %c0_i32_0 : i32, i32
  }
}

module attributes {stable_mosaic.version = 11 : i64} {
  func.func @kernel(%arg0: i32, %arg1: memref<24x1536xbf16, #tpu.memory_space<vmem>>, %arg2: memref<1536x32xbf16, #tpu.memory_space<vmem>>, %arg3: memref<1x1x32xf32, #tpu.memory_space<vmem>>, %arg4: memref<1x24x32xf32, #tpu.memory_space<vmem>>, %arg5: memref<24x32xf32, #tpu.memory_space<vmem>>) attributes {dimension_semantics = [#tpu.dimension_semantics<arbitrary>], iteration_bounds = array<i64: 5>, scalar_prefetch = 0 : i64, scratch_operands = 1 : i64, tpu.core_type = #tpu.core_type<tc>, window_params = [{transform_indices = @transform_0, window_bounds = array<i64: 24, 1536>}, {transform_indices = @transform_1, window_bounds = array<i64: 1536, 32>}, {transform_indices = @transform_2, window_bounds = array<i64: 1, 1, 32>}, {transform_indices = @transform_3, window_bounds = array<i64: 1, 24, 32>}]} {
    %c0_i32 = arith.constant 0 : i32
    %0 = arith.cmpi eq, %arg0, %c0_i32 : i32
    %c1_i32 = arith.constant 1 : i32
    %1 = arith.cmpi eq, %arg0, %c1_i32 : i32
    %2 = arith.ori %0, %1 : i1
    %c2_i32 = arith.constant 2 : i32
    %3 = arith.cmpi eq, %arg0, %c2_i32 : i32
    %4 = arith.ori %2, %3 : i1
    %c3_i32 = arith.constant 3 : i32
    %5 = arith.cmpi eq, %arg0, %c3_i32 : i32
    %6 = arith.ori %4, %5 : i1
    %c0_i32_0 = arith.constant 0 : i32
    %7 = arith.cmpi eq, %arg0, %c0_i32_0 : i32
    %c1_i32_1 = arith.constant 1 : i32
    %8 = arith.cmpi eq, %arg0, %c1_i32_1 : i32
    %9 = arith.ori %7, %8 : i1
    %c2_i32_2 = arith.constant 2 : i32
    %10 = arith.cmpi eq, %arg0, %c2_i32_2 : i32
    %11 = arith.ori %9, %10 : i1
    %c4_i32 = arith.constant 4 : i32
    %12 = arith.cmpi eq, %arg0, %c4_i32 : i32
    %13 = arith.ori %11, %12 : i1
    %14 = arith.extui %6 : i1 to i32
    %c0_i32_3 = arith.constant 0 : i32
    %15 = arith.cmpi ne, %14, %c0_i32_3 : i32
    scf.if %15 {
      %cst_12 = arith.constant 0.000000e+00 : f32
      %24 = vector.broadcast %cst_12 : f32 to vector<24x32xf32>
      %c0_13 = arith.constant 0 : index
      %c0_14 = arith.constant 0 : index
      %25 = vector.load %arg5[%c0_13, %c0_14] : memref<24x32xf32, #tpu.memory_space<vmem>>, vector<24x32xf32>
      tpu.vector_store %arg5[%c0_13, %c0_14], %24 {strides = array<i32>} : memref<24x32xf32, #tpu.memory_space<vmem>>, vector<24x32xf32>,
    } else {
    }
    %c0 = arith.constant 0 : index
    %c0_4 = arith.constant 0 : index
    %16 = vector.load %arg5[%c0, %c0_4] : memref<24x32xf32, #tpu.memory_space<vmem>>, vector<24x32xf32>
    %c0_5 = arith.constant 0 : index
    %c0_6 = arith.constant 0 : index
    %17 = vector.load %arg1[%c0_5, %c0_6] : memref<24x1536xbf16, #tpu.memory_space<vmem>>, vector<24x1536xbf16>
    %c0_7 = arith.constant 0 : index
    %c0_8 = arith.constant 0 : index
    %18 = vector.load %arg2[%c0_7, %c0_8] : memref<1536x32xbf16, #tpu.memory_space<vmem>>, vector<1536x32xbf16>
    %cst = arith.constant dense<0.000000e+00> : vector<24x32xf32>
    %19 = tpu.matmul %17, %18, %cst {dimension_numbers = #tpu.dot_dimension_numbers<[1], [0], [0], [1], [0, 0, 1, 1], [], []>} : vector<24x1536xbf16>, vector<1536x32xbf16>, vector<24x32xf32> -> vector<24x32xf32>
    %20 = arith.addf %16, %19 : vector<24x32xf32>
    %c0_9 = arith.constant 0 : index
    %c0_10 = arith.constant 0 : index
    %21 = vector.load %arg5[%c0_9, %c0_10] : memref<24x32xf32, #tpu.memory_space<vmem>>, vector<24x32xf32>
    tpu.vector_store %arg5[%c0_9, %c0_10], %20 {strides = array<i32>} : memref<24x32xf32, #tpu.memory_space<vmem>>, vector<24x32xf32>,
    %22 = arith.extui %13 : i1 to i32
    %c0_i32_11 = arith.constant 0 : i32
    %23 = arith.cmpi ne, %22, %c0_i32_11 : i32
    scf.if %23 {
      %c0_12 = arith.constant 0 : index
      %c0_13 = arith.constant 0 : index
      %24 = vector.load %arg5[%c0_12, %c0_13] : memref<24x32xf32, #tpu.memory_space<vmem>>, vector<24x32xf32>
      %c0_14 = arith.constant 0 : index
      %c0_15 = arith.constant 0 : index
      %c0_16 = arith.constant 0 : index
      %25 = vector.load %arg3[%c0_14, %c0_15, %c0_16] : memref<1x1x32xf32, #tpu.memory_space<vmem>>, vector<1x1x32xf32>
      %26 = vector.shape_cast %25 : vector<1x1x32xf32> to vector<1x32xf32>
      %27 = vector.broadcast %26 : vector<1x32xf32> to vector<24x32xf32>
      %28 = arith.addf %24, %27 : vector<24x32xf32>
      %cst_17 = arith.constant 0.000000e+00 : f32
      %29 = vector.broadcast %cst_17 : f32 to vector<24x32xf32>
      %30 = arith.maximumf %28, %29 : vector<24x32xf32>
      %c0_18 = arith.constant 0 : index
      %c0_19 = arith.constant 0 : index
      %c0_20 = arith.constant 0 : index
      %31 = vector.load %arg4[%c0_18, %c0_19, %c0_20] : memref<1x24x32xf32, #tpu.memory_space<vmem>>, vector<1x24x32xf32>
      %32 = vector.shape_cast %31 : vector<1x24x32xf32> to vector<24x32xf32>
      %33 = vector.shape_cast %30 : vector<24x32xf32> to vector<1x24x32xf32>
      tpu.vector_store %arg4[%c0_18, %c0_19, %c0_20], %33 {strides = array<i32>} : memref<1x24x32xf32, #tpu.memory_space<vmem>>, vector<1x24x32xf32>,
    } else {
    }
    return
  }
  func.func @transform_0(%arg0: i32) -> (i32, i32) {
    %c0_i32 = arith.constant 0 : i32
    %c0_i32_0 = arith.constant 0 : i32
    return %c0_i32, %arg0 : i32, i32
  }
  func.func @transform_1(%arg0: i32) -> (i32, i32) {
    %c0_i32 = arith.constant 0 : i32
    %c0_i32_0 = arith.constant 0 : i32
    return %arg0, %c0_i32 : i32, i32
  }
  func.func @transform_2(%arg0: i32) -> (i32, i32, i32) {
    %c1_i32 = arith.constant 1 : i32
    %0 = arith.cmpi sge, %arg0, %c1_i32 : i32
    %1 = arith.extui %0 : i1 to i32
    %c2_i32 = arith.constant 2 : i32
    %2 = arith.cmpi sge, %arg0, %c2_i32 : i32
    %3 = arith.extui %2 : i1 to i32
    %4 = arith.addi %1, %3 : i32
    %c3_i32 = arith.constant 3 : i32
    %5 = arith.cmpi sge, %arg0, %c3_i32 : i32
    %6 = arith.extui %5 : i1 to i32
    %7 = arith.addi %4, %6 : i32
    %c0_i32 = arith.constant 0 : i32
    %c0_i32_0 = arith.constant 0 : i32
    %c0_i32_1 = arith.constant 0 : i32
    return %7, %c0_i32, %c0_i32_0 : i32, i32, i32
  }
  func.func @transform_3(%arg0: i32) -> (i32, i32, i32) {
    %c1_i32 = arith.constant 1 : i32
    %0 = arith.cmpi sge, %arg0, %c1_i32 : i32
    %1 = arith.extui %0 : i1 to i32
    %c2_i32 = arith.constant 2 : i32
    %2 = arith.cmpi sge, %arg0, %c2_i32 : i32
    %3 = arith.extui %2 : i1 to i32
    %4 = arith.addi %1, %3 : i32
    %c3_i32 = arith.constant 3 : i32
    %5 = arith.cmpi sge, %arg0, %c3_i32 : i32
    %6 = arith.extui %5 : i1 to i32
    %7 = arith.addi %4, %6 : i32
    %c0_i32 = arith.constant 0 : i32
    %c0_i32_0 = arith.constant 0 : i32
    %c0_i32_1 = arith.constant 0 : i32
    return %7, %c0_i32, %c0_i32_0 : i32, i32, i32
  }
}

module attributes {stable_mosaic.version = 11 : i64} {
  func.func @kernel(%arg0: i32, %arg1: memref<16x3072xbf16, #tpu.memory_space<vmem>>, %arg2: memref<3072x64xbf16, #tpu.memory_space<vmem>>, %arg3: memref<1x1x64xf32, #tpu.memory_space<vmem>>, %arg4: memref<1x16x64xf32, #tpu.memory_space<vmem>>, %arg5: memref<16x64xf32, #tpu.memory_space<vmem>>) attributes {dimension_semantics = [#tpu.dimension_semantics<arbitrary>], iteration_bounds = array<i64: 5>, scalar_prefetch = 0 : i64, scratch_operands = 1 : i64, tpu.core_type = #tpu.core_type<tc>, window_params = [{transform_indices = @transform_0, window_bounds = array<i64: 16, 3072>}, {transform_indices = @transform_1, window_bounds = array<i64: 3072, 64>}, {transform_indices = @transform_2, window_bounds = array<i64: 1, 1, 64>}, {transform_indices = @transform_3, window_bounds = array<i64: 1, 16, 64>}]} {
    %c0_i32 = arith.constant 0 : i32
    %0 = arith.cmpi eq, %arg0, %c0_i32 : i32
    %c1_i32 = arith.constant 1 : i32
    %1 = arith.cmpi eq, %arg0, %c1_i32 : i32
    %2 = arith.ori %0, %1 : i1
    %c2_i32 = arith.constant 2 : i32
    %3 = arith.cmpi eq, %arg0, %c2_i32 : i32
    %4 = arith.ori %2, %3 : i1
    %c3_i32 = arith.constant 3 : i32
    %5 = arith.cmpi eq, %arg0, %c3_i32 : i32
    %6 = arith.ori %4, %5 : i1
    %c0_i32_0 = arith.constant 0 : i32
    %7 = arith.cmpi eq, %arg0, %c0_i32_0 : i32
    %c1_i32_1 = arith.constant 1 : i32
    %8 = arith.cmpi eq, %arg0, %c1_i32_1 : i32
    %9 = arith.ori %7, %8 : i1
    %c2_i32_2 = arith.constant 2 : i32
    %10 = arith.cmpi eq, %arg0, %c2_i32_2 : i32
    %11 = arith.ori %9, %10 : i1
    %c4_i32 = arith.constant 4 : i32
    %12 = arith.cmpi eq, %arg0, %c4_i32 : i32
    %13 = arith.ori %11, %12 : i1
    %14 = arith.extui %6 : i1 to i32
    %c0_i32_3 = arith.constant 0 : i32
    %15 = arith.cmpi ne, %14, %c0_i32_3 : i32
    scf.if %15 {
      %cst_12 = arith.constant 0.000000e+00 : f32
      %24 = vector.broadcast %cst_12 : f32 to vector<16x64xf32>
      %c0_13 = arith.constant 0 : index
      %c0_14 = arith.constant 0 : index
      %25 = vector.load %arg5[%c0_13, %c0_14] : memref<16x64xf32, #tpu.memory_space<vmem>>, vector<16x64xf32>
      tpu.vector_store %arg5[%c0_13, %c0_14], %24 {strides = array<i32>} : memref<16x64xf32, #tpu.memory_space<vmem>>, vector<16x64xf32>,
    } else {
    }
    %c0 = arith.constant 0 : index
    %c0_4 = arith.constant 0 : index
    %16 = vector.load %arg5[%c0, %c0_4] : memref<16x64xf32, #tpu.memory_space<vmem>>, vector<16x64xf32>
    %c0_5 = arith.constant 0 : index
    %c0_6 = arith.constant 0 : index
    %17 = vector.load %arg1[%c0_5, %c0_6] : memref<16x3072xbf16, #tpu.memory_space<vmem>>, vector<16x3072xbf16>
    %c0_7 = arith.constant 0 : index
    %c0_8 = arith.constant 0 : index
    %18 = vector.load %arg2[%c0_7, %c0_8] : memref<3072x64xbf16, #tpu.memory_space<vmem>>, vector<3072x64xbf16>
    %cst = arith.constant dense<0.000000e+00> : vector<16x64xf32>
    %19 = tpu.matmul %17, %18, %cst {dimension_numbers = #tpu.dot_dimension_numbers<[1], [0], [0], [1], [0, 0, 1, 1], [], []>} : vector<16x3072xbf16>, vector<3072x64xbf16>, vector<16x64xf32> -> vector<16x64xf32>
    %20 = arith.addf %16, %19 : vector<16x64xf32>
    %c0_9 = arith.constant 0 : index
    %c0_10 = arith.constant 0 : index
    %21 = vector.load %arg5[%c0_9, %c0_10] : memref<16x64xf32, #tpu.memory_space<vmem>>, vector<16x64xf32>
    tpu.vector_store %arg5[%c0_9, %c0_10], %20 {strides = array<i32>} : memref<16x64xf32, #tpu.memory_space<vmem>>, vector<16x64xf32>,
    %22 = arith.extui %13 : i1 to i32
    %c0_i32_11 = arith.constant 0 : i32
    %23 = arith.cmpi ne, %22, %c0_i32_11 : i32
    scf.if %23 {
      %c0_12 = arith.constant 0 : index
      %c0_13 = arith.constant 0 : index
      %24 = vector.load %arg5[%c0_12, %c0_13] : memref<16x64xf32, #tpu.memory_space<vmem>>, vector<16x64xf32>
      %c0_14 = arith.constant 0 : index
      %c0_15 = arith.constant 0 : index
      %c0_16 = arith.constant 0 : index
      %25 = vector.load %arg3[%c0_14, %c0_15, %c0_16] : memref<1x1x64xf32, #tpu.memory_space<vmem>>, vector<1x1x64xf32>
      %26 = vector.shape_cast %25 : vector<1x1x64xf32> to vector<1x64xf32>
      %27 = vector.broadcast %26 : vector<1x64xf32> to vector<16x64xf32>
      %28 = arith.addf %24, %27 : vector<16x64xf32>
      %cst_17 = arith.constant 0.000000e+00 : f32
      %29 = vector.broadcast %cst_17 : f32 to vector<16x64xf32>
      %30 = arith.maximumf %28, %29 : vector<16x64xf32>
      %c0_18 = arith.constant 0 : index
      %c0_19 = arith.constant 0 : index
      %c0_20 = arith.constant 0 : index
      %31 = vector.load %arg4[%c0_18, %c0_19, %c0_20] : memref<1x16x64xf32, #tpu.memory_space<vmem>>, vector<1x16x64xf32>
      %32 = vector.shape_cast %31 : vector<1x16x64xf32> to vector<16x64xf32>
      %33 = vector.shape_cast %30 : vector<16x64xf32> to vector<1x16x64xf32>
      tpu.vector_store %arg4[%c0_18, %c0_19, %c0_20], %33 {strides = array<i32>} : memref<1x16x64xf32, #tpu.memory_space<vmem>>, vector<1x16x64xf32>,
    } else {
    }
    return
  }
  func.func @transform_0(%arg0: i32) -> (i32, i32) {
    %c0_i32 = arith.constant 0 : i32
    %c0_i32_0 = arith.constant 0 : i32
    return %c0_i32, %arg0 : i32, i32
  }
  func.func @transform_1(%arg0: i32) -> (i32, i32) {
    %c0_i32 = arith.constant 0 : i32
    %c0_i32_0 = arith.constant 0 : i32
    return %arg0, %c0_i32 : i32, i32
  }
  func.func @transform_2(%arg0: i32) -> (i32, i32, i32) {
    %c1_i32 = arith.constant 1 : i32
    %0 = arith.cmpi sge, %arg0, %c1_i32 : i32
    %1 = arith.extui %0 : i1 to i32
    %c2_i32 = arith.constant 2 : i32
    %2 = arith.cmpi sge, %arg0, %c2_i32 : i32
    %3 = arith.extui %2 : i1 to i32
    %4 = arith.addi %1, %3 : i32
    %c3_i32 = arith.constant 3 : i32
    %5 = arith.cmpi sge, %arg0, %c3_i32 : i32
    %6 = arith.extui %5 : i1 to i32
    %7 = arith.addi %4, %6 : i32
    %c0_i32 = arith.constant 0 : i32
    %c0_i32_0 = arith.constant 0 : i32
    %c0_i32_1 = arith.constant 0 : i32
    return %7, %c0_i32, %c0_i32_0 : i32, i32, i32
  }
  func.func @transform_3(%arg0: i32) -> (i32, i32, i32) {
    %c1_i32 = arith.constant 1 : i32
    %0 = arith.cmpi sge, %arg0, %c1_i32 : i32
    %1 = arith.extui %0 : i1 to i32
    %c2_i32 = arith.constant 2 : i32
    %2 = arith.cmpi sge, %arg0, %c2_i32 : i32
    %3 = arith.extui %2 : i1 to i32
    %4 = arith.addi %1, %3 : i32
    %c3_i32 = arith.constant 3 : i32
    %5 = arith.cmpi sge, %arg0, %c3_i32 : i32
    %6 = arith.extui %5 : i1 to i32
    %7 = arith.addi %4, %6 : i32
    %c0_i32 = arith.constant 0 : i32
    %c0_i32_0 = arith.constant 0 : i32
    %c0_i32_1 = arith.constant 0 : i32
    return %7, %c0_i32, %c0_i32_0 : i32, i32, i32
  }
}

module attributes {stable_mosaic.version = 11 : i64} {
  func.func @kernel(%arg0: i32, %arg1: memref<8x3072xbf16, #tpu.memory_space<vmem>>, %arg2: memref<3072x128xbf16, #tpu.memory_space<vmem>>, %arg3: memref<1x1x128xf32, #tpu.memory_space<vmem>>, %arg4: memref<1x8x128xf32, #tpu.memory_space<vmem>>, %arg5: memref<8x128xf32, #tpu.memory_space<vmem>>) attributes {dimension_semantics = [#tpu.dimension_semantics<arbitrary>], iteration_bounds = array<i64: 8>, scalar_prefetch = 0 : i64, scratch_operands = 1 : i64, tpu.core_type = #tpu.core_type<tc>, window_params = [{transform_indices = @transform_0, window_bounds = array<i64: 8, 3072>}, {transform_indices = @transform_1, window_bounds = array<i64: 3072, 128>}, {transform_indices = @transform_2, window_bounds = array<i64: 1, 1, 128>}, {transform_indices = @transform_3, window_bounds = array<i64: 1, 8, 128>}]} {
    %c0_i32 = arith.constant 0 : i32
    %0 = arith.cmpi eq, %arg0, %c0_i32 : i32
    %c1_i32 = arith.constant 1 : i32
    %1 = arith.cmpi eq, %arg0, %c1_i32 : i32
    %2 = arith.ori %0, %1 : i1
    %c2_i32 = arith.constant 2 : i32
    %3 = arith.cmpi eq, %arg0, %c2_i32 : i32
    %4 = arith.ori %2, %3 : i1
    %c4_i32 = arith.constant 4 : i32
    %5 = arith.cmpi eq, %arg0, %c4_i32 : i32
    %6 = arith.ori %4, %5 : i1
    %c0_i32_0 = arith.constant 0 : i32
    %7 = arith.cmpi eq, %arg0, %c0_i32_0 : i32
    %c1_i32_1 = arith.constant 1 : i32
    %8 = arith.cmpi eq, %arg0, %c1_i32_1 : i32
    %9 = arith.ori %7, %8 : i1
    %c3_i32 = arith.constant 3 : i32
    %10 = arith.cmpi eq, %arg0, %c3_i32 : i32
    %11 = arith.ori %9, %10 : i1
    %c7_i32 = arith.constant 7 : i32
    %12 = arith.cmpi eq, %arg0, %c7_i32 : i32
    %13 = arith.ori %11, %12 : i1
    %14 = arith.extui %6 : i1 to i32
    %c0_i32_2 = arith.constant 0 : i32
    %15 = arith.cmpi ne, %14, %c0_i32_2 : i32
    scf.if %15 {
      %cst_11 = arith.constant 0.000000e+00 : f32
      %24 = vector.broadcast %cst_11 : f32 to vector<8x128xf32>
      %c0_12 = arith.constant 0 : index
      %c0_13 = arith.constant 0 : index
      %25 = vector.load %arg5[%c0_12, %c0_13] : memref<8x128xf32, #tpu.memory_space<vmem>>, vector<8x128xf32>
      tpu.vector_store %arg5[%c0_12, %c0_13], %24 {strides = array<i32>} : memref<8x128xf32, #tpu.memory_space<vmem>>, vector<8x128xf32>,
    } else {
    }
    %c0 = arith.constant 0 : index
    %c0_3 = arith.constant 0 : index
    %16 = vector.load %arg5[%c0, %c0_3] : memref<8x128xf32, #tpu.memory_space<vmem>>, vector<8x128xf32>
    %c0_4 = arith.constant 0 : index
    %c0_5 = arith.constant 0 : index
    %17 = vector.load %arg1[%c0_4, %c0_5] : memref<8x3072xbf16, #tpu.memory_space<vmem>>, vector<8x3072xbf16>
    %c0_6 = arith.constant 0 : index
    %c0_7 = arith.constant 0 : index
    %18 = vector.load %arg2[%c0_6, %c0_7] : memref<3072x128xbf16, #tpu.memory_space<vmem>>, vector<3072x128xbf16>
    %cst = arith.constant dense<0.000000e+00> : vector<8x128xf32>
    %19 = tpu.matmul %17, %18, %cst {dimension_numbers = #tpu.dot_dimension_numbers<[1], [0], [0], [1], [0, 0, 1, 1], [], []>} : vector<8x3072xbf16>, vector<3072x128xbf16>, vector<8x128xf32> -> vector<8x128xf32>
    %20 = arith.addf %16, %19 : vector<8x128xf32>
    %c0_8 = arith.constant 0 : index
    %c0_9 = arith.constant 0 : index
    %21 = vector.load %arg5[%c0_8, %c0_9] : memref<8x128xf32, #tpu.memory_space<vmem>>, vector<8x128xf32>
    tpu.vector_store %arg5[%c0_8, %c0_9], %20 {strides = array<i32>} : memref<8x128xf32, #tpu.memory_space<vmem>>, vector<8x128xf32>,
    %22 = arith.extui %13 : i1 to i32
    %c0_i32_10 = arith.constant 0 : i32
    %23 = arith.cmpi ne, %22, %c0_i32_10 : i32
    scf.if %23 {
      %c0_11 = arith.constant 0 : index
      %c0_12 = arith.constant 0 : index
      %24 = vector.load %arg5[%c0_11, %c0_12] : memref<8x128xf32, #tpu.memory_space<vmem>>, vector<8x128xf32>
      %c0_13 = arith.constant 0 : index
      %c0_14 = arith.constant 0 : index
      %c0_15 = arith.constant 0 : index
      %25 = vector.load %arg3[%c0_13, %c0_14, %c0_15] : memref<1x1x128xf32, #tpu.memory_space<vmem>>, vector<1x1x128xf32>
      %26 = vector.shape_cast %25 : vector<1x1x128xf32> to vector<1x128xf32>
      %27 = vector.broadcast %26 : vector<1x128xf32> to vector<8x128xf32>
      %28 = arith.addf %24, %27 : vector<8x128xf32>
      %cst_16 = arith.constant 0.000000e+00 : f32
      %29 = vector.broadcast %cst_16 : f32 to vector<8x128xf32>
      %30 = arith.maximumf %28, %29 : vector<8x128xf32>
      %c0_17 = arith.constant 0 : index
      %c0_18 = arith.constant 0 : index
      %c0_19 = arith.constant 0 : index
      %31 = vector.load %arg4[%c0_17, %c0_18, %c0_19] : memref<1x8x128xf32, #tpu.memory_space<vmem>>, vector<1x8x128xf32>
      %32 = vector.shape_cast %31 : vector<1x8x128xf32> to vector<8x128xf32>
      %33 = vector.shape_cast %30 : vector<8x128xf32> to vector<1x8x128xf32>
      tpu.vector_store %arg4[%c0_17, %c0_18, %c0_19], %33 {strides = array<i32>} : memref<1x8x128xf32, #tpu.memory_space<vmem>>, vector<1x8x128xf32>,
    } else {
    }
    return
  }
  func.func @transform_0(%arg0: i32) -> (i32, i32) {
    %c0_i32 = arith.constant 0 : i32
    %c0_i32_0 = arith.constant 0 : i32
    return %c0_i32, %arg0 : i32, i32
  }
  func.func @transform_1(%arg0: i32) -> (i32, i32) {
    %c0_i32 = arith.constant 0 : i32
    %c0_i32_0 = arith.constant 0 : i32
    return %arg0, %c0_i32 : i32, i32
  }
  func.func @transform_2(%arg0: i32) -> (i32, i32, i32) {
    %c1_i32 = arith.constant 1 : i32
    %0 = arith.cmpi sge, %arg0, %c1_i32 : i32
    %1 = arith.extui %0 : i1 to i32
    %c2_i32 = arith.constant 2 : i32
    %2 = arith.cmpi sge, %arg0, %c2_i32 : i32
    %3 = arith.extui %2 : i1 to i32
    %4 = arith.addi %1, %3 : i32
    %c4_i32 = arith.constant 4 : i32
    %5 = arith.cmpi sge, %arg0, %c4_i32 : i32
    %6 = arith.extui %5 : i1 to i32
    %7 = arith.addi %4, %6 : i32
    %c0_i32 = arith.constant 0 : i32
    %c0_i32_0 = arith.constant 0 : i32
    %c0_i32_1 = arith.constant 0 : i32
    return %7, %c0_i32, %c0_i32_0 : i32, i32, i32
  }
  func.func @transform_3(%arg0: i32) -> (i32, i32, i32) {
    %c1_i32 = arith.constant 1 : i32
    %0 = arith.cmpi sge, %arg0, %c1_i32 : i32
    %1 = arith.extui %0 : i1 to i32
    %c2_i32 = arith.constant 2 : i32
    %2 = arith.cmpi sge, %arg0, %c2_i32 : i32
    %3 = arith.extui %2 : i1 to i32
    %4 = arith.addi %1, %3 : i32
    %c4_i32 = arith.constant 4 : i32
    %5 = arith.cmpi sge, %arg0, %c4_i32 : i32
    %6 = arith.extui %5 : i1 to i32
    %7 = arith.addi %4, %6 : i32
    %c0_i32 = arith.constant 0 : i32
    %c0_i32_0 = arith.constant 0 : i32
    %c0_i32_1 = arith.constant 0 : i32
    return %7, %c0_i32, %c0_i32_0 : i32, i32, i32
  }
}

module attributes {stable_mosaic.version = 11 : i64} {
  func.func @kernel(%arg0: i32, %arg1: memref<8x6144xbf16, #tpu.memory_space<vmem>>, %arg2: memref<6144x256xbf16, #tpu.memory_space<vmem>>, %arg3: memref<1x1x256xf32, #tpu.memory_space<vmem>>, %arg4: memref<1x8x256xf32, #tpu.memory_space<vmem>>, %arg5: memref<8x256xf32, #tpu.memory_space<vmem>>) attributes {dimension_semantics = [#tpu.dimension_semantics<arbitrary>], iteration_bounds = array<i64: 8>, scalar_prefetch = 0 : i64, scratch_operands = 1 : i64, tpu.core_type = #tpu.core_type<tc>, window_params = [{transform_indices = @transform_0, window_bounds = array<i64: 8, 6144>}, {transform_indices = @transform_1, window_bounds = array<i64: 6144, 256>}, {transform_indices = @transform_2, window_bounds = array<i64: 1, 1, 256>}, {transform_indices = @transform_3, window_bounds = array<i64: 1, 8, 256>}]} {
    %c0_i32 = arith.constant 0 : i32
    %0 = arith.cmpi eq, %arg0, %c0_i32 : i32
    %c1_i32 = arith.constant 1 : i32
    %1 = arith.cmpi eq, %arg0, %c1_i32 : i32
    %2 = arith.ori %0, %1 : i1
    %c2_i32 = arith.constant 2 : i32
    %3 = arith.cmpi eq, %arg0, %c2_i32 : i32
    %4 = arith.ori %2, %3 : i1
    %c4_i32 = arith.constant 4 : i32
    %5 = arith.cmpi eq, %arg0, %c4_i32 : i32
    %6 = arith.ori %4, %5 : i1
    %c0_i32_0 = arith.constant 0 : i32
    %7 = arith.cmpi eq, %arg0, %c0_i32_0 : i32
    %c1_i32_1 = arith.constant 1 : i32
    %8 = arith.cmpi eq, %arg0, %c1_i32_1 : i32
    %9 = arith.ori %7, %8 : i1
    %c3_i32 = arith.constant 3 : i32
    %10 = arith.cmpi eq, %arg0, %c3_i32 : i32
    %11 = arith.ori %9, %10 : i1
    %c7_i32 = arith.constant 7 : i32
    %12 = arith.cmpi eq, %arg0, %c7_i32 : i32
    %13 = arith.ori %11, %12 : i1
    %14 = arith.extui %6 : i1 to i32
    %c0_i32_2 = arith.constant 0 : i32
    %15 = arith.cmpi ne, %14, %c0_i32_2 : i32
    scf.if %15 {
      %cst_11 = arith.constant 0.000000e+00 : f32
      %24 = vector.broadcast %cst_11 : f32 to vector<8x256xf32>
      %c0_12 = arith.constant 0 : index
      %c0_13 = arith.constant 0 : index
      %25 = vector.load %arg5[%c0_12, %c0_13] : memref<8x256xf32, #tpu.memory_space<vmem>>, vector<8x256xf32>
      tpu.vector_store %arg5[%c0_12, %c0_13], %24 {strides = array<i32>} : memref<8x256xf32, #tpu.memory_space<vmem>>, vector<8x256xf32>,
    } else {
    }
    %c0 = arith.constant 0 : index
    %c0_3 = arith.constant 0 : index
    %16 = vector.load %arg5[%c0, %c0_3] : memref<8x256xf32, #tpu.memory_space<vmem>>, vector<8x256xf32>
    %c0_4 = arith.constant 0 : index
    %c0_5 = arith.constant 0 : index
    %17 = vector.load %arg1[%c0_4, %c0_5] : memref<8x6144xbf16, #tpu.memory_space<vmem>>, vector<8x6144xbf16>
    %c0_6 = arith.constant 0 : index
    %c0_7 = arith.constant 0 : index
    %18 = vector.load %arg2[%c0_6, %c0_7] : memref<6144x256xbf16, #tpu.memory_space<vmem>>, vector<6144x256xbf16>
    %cst = arith.constant dense<0.000000e+00> : vector<8x256xf32>
    %19 = tpu.matmul %17, %18, %cst {dimension_numbers = #tpu.dot_dimension_numbers<[1], [0], [0], [1], [0, 0, 1, 1], [], []>} : vector<8x6144xbf16>, vector<6144x256xbf16>, vector<8x256xf32> -> vector<8x256xf32>
    %20 = arith.addf %16, %19 : vector<8x256xf32>
    %c0_8 = arith.constant 0 : index
    %c0_9 = arith.constant 0 : index
    %21 = vector.load %arg5[%c0_8, %c0_9] : memref<8x256xf32, #tpu.memory_space<vmem>>, vector<8x256xf32>
    tpu.vector_store %arg5[%c0_8, %c0_9], %20 {strides = array<i32>} : memref<8x256xf32, #tpu.memory_space<vmem>>, vector<8x256xf32>,
    %22 = arith.extui %13 : i1 to i32
    %c0_i32_10 = arith.constant 0 : i32
    %23 = arith.cmpi ne, %22, %c0_i32_10 : i32
    scf.if %23 {
      %c0_11 = arith.constant 0 : index
      %c0_12 = arith.constant 0 : index
      %24 = vector.load %arg5[%c0_11, %c0_12] : memref<8x256xf32, #tpu.memory_space<vmem>>, vector<8x256xf32>
      %c0_13 = arith.constant 0 : index
      %c0_14 = arith.constant 0 : index
      %c0_15 = arith.constant 0 : index
      %25 = vector.load %arg3[%c0_13, %c0_14, %c0_15] : memref<1x1x256xf32, #tpu.memory_space<vmem>>, vector<1x1x256xf32>
      %26 = vector.shape_cast %25 : vector<1x1x256xf32> to vector<1x256xf32>
      %27 = vector.broadcast %26 : vector<1x256xf32> to vector<8x256xf32>
      %28 = arith.addf %24, %27 : vector<8x256xf32>
      %cst_16 = arith.constant 0.000000e+00 : f32
      %29 = vector.broadcast %cst_16 : f32 to vector<8x256xf32>
      %30 = arith.maximumf %28, %29 : vector<8x256xf32>
      %c0_17 = arith.constant 0 : index
      %c0_18 = arith.constant 0 : index
      %c0_19 = arith.constant 0 : index
      %31 = vector.load %arg4[%c0_17, %c0_18, %c0_19] : memref<1x8x256xf32, #tpu.memory_space<vmem>>, vector<1x8x256xf32>
      %32 = vector.shape_cast %31 : vector<1x8x256xf32> to vector<8x256xf32>
      %33 = vector.shape_cast %30 : vector<8x256xf32> to vector<1x8x256xf32>
      tpu.vector_store %arg4[%c0_17, %c0_18, %c0_19], %33 {strides = array<i32>} : memref<1x8x256xf32, #tpu.memory_space<vmem>>, vector<1x8x256xf32>,
    } else {
    }
    return
  }
  func.func @transform_0(%arg0: i32) -> (i32, i32) {
    %c0_i32 = arith.constant 0 : i32
    %c0_i32_0 = arith.constant 0 : i32
    return %c0_i32, %arg0 : i32, i32
  }
  func.func @transform_1(%arg0: i32) -> (i32, i32) {
    %c0_i32 = arith.constant 0 : i32
    %c0_i32_0 = arith.constant 0 : i32
    return %arg0, %c0_i32 : i32, i32
  }
  func.func @transform_2(%arg0: i32) -> (i32, i32, i32) {
    %c1_i32 = arith.constant 1 : i32
    %0 = arith.cmpi sge, %arg0, %c1_i32 : i32
    %1 = arith.extui %0 : i1 to i32
    %c2_i32 = arith.constant 2 : i32
    %2 = arith.cmpi sge, %arg0, %c2_i32 : i32
    %3 = arith.extui %2 : i1 to i32
    %4 = arith.addi %1, %3 : i32
    %c4_i32 = arith.constant 4 : i32
    %5 = arith.cmpi sge, %arg0, %c4_i32 : i32
    %6 = arith.extui %5 : i1 to i32
    %7 = arith.addi %4, %6 : i32
    %c0_i32 = arith.constant 0 : i32
    %c0_i32_0 = arith.constant 0 : i32
    %c0_i32_1 = arith.constant 0 : i32
    return %7, %c0_i32, %c0_i32_0 : i32, i32, i32
  }
  func.func @transform_3(%arg0: i32) -> (i32, i32, i32) {
    %c1_i32 = arith.constant 1 : i32
    %0 = arith.cmpi sge, %arg0, %c1_i32 : i32
    %1 = arith.extui %0 : i1 to i32
    %c2_i32 = arith.constant 2 : i32
    %2 = arith.cmpi sge, %arg0, %c2_i32 : i32
    %3 = arith.extui %2 : i1 to i32
    %4 = arith.addi %1, %3 : i32
    %c4_i32 = arith.constant 4 : i32
    %5 = arith.cmpi sge, %arg0, %c4_i32 : i32
    %6 = arith.extui %5 : i1 to i32
    %7 = arith.addi %4, %6 : i32
    %c0_i32 = arith.constant 0 : i32
    %c0_i32_0 = arith.constant 0 : i32
    %c0_i32_1 = arith.constant 0 : i32
    return %7, %c0_i32, %c0_i32_0 : i32, i32, i32
  }
}

module attributes {stable_mosaic.version = 11 : i64} {
  func.func @_mm_bias_relu_kernel(%arg0: i32, %arg1: memref<40x6xbf16, #tpu.memory_space<vmem>>, %arg2: memref<6x16xbf16, #tpu.memory_space<vmem>>, %arg3: memref<1x16xf32, #tpu.memory_space<vmem>>, %arg4: memref<40x16xf32, #tpu.memory_space<vmem>>) attributes {dimension_semantics = [#tpu.dimension_semantics<arbitrary>], iteration_bounds = array<i64: 1>, scalar_prefetch = 0 : i64, scratch_operands = 0 : i64, tpu.core_type = #tpu.core_type<tc>, window_params = [{pipeline_mode = #tpu.pipeline_mode<synchronous>, transform_indices = @transform_0, window_bounds = array<i64: 40, 6>}, {pipeline_mode = #tpu.pipeline_mode<synchronous>, transform_indices = @transform_1, window_bounds = array<i64: 6, 16>}, {pipeline_mode = #tpu.pipeline_mode<synchronous>, transform_indices = @transform_2, window_bounds = array<i64: 1, 16>}, {pipeline_mode = #tpu.pipeline_mode<synchronous>, transform_indices = @transform_3, window_bounds = array<i64: 40, 16>}]} {
    %c0 = arith.constant 0 : index
    %c0_0 = arith.constant 0 : index
    %0 = vector.load %arg1[%c0, %c0_0] : memref<40x6xbf16, #tpu.memory_space<vmem>>, vector<40x6xbf16>
    %c0_1 = arith.constant 0 : index
    %c0_2 = arith.constant 0 : index
    %1 = vector.load %arg2[%c0_1, %c0_2] : memref<6x16xbf16, #tpu.memory_space<vmem>>, vector<6x16xbf16>
    %cst = arith.constant dense<0.000000e+00> : vector<40x16xf32>
    %2 = tpu.matmul %0, %1, %cst {dimension_numbers = #tpu.dot_dimension_numbers<[1], [0], [0], [1], [0, 0, 1, 1], [], []>} : vector<40x6xbf16>, vector<6x16xbf16>, vector<40x16xf32> -> vector<40x16xf32>
    %c0_3 = arith.constant 0 : index
    %c0_4 = arith.constant 0 : index
    %3 = vector.load %arg3[%c0_3, %c0_4] : memref<1x16xf32, #tpu.memory_space<vmem>>, vector<1x16xf32>
    %4 = vector.broadcast %3 : vector<1x16xf32> to vector<40x16xf32>
    %5 = arith.addf %2, %4 : vector<40x16xf32>
    %cst_5 = arith.constant 0.000000e+00 : f32
    %6 = vector.broadcast %cst_5 : f32 to vector<40x16xf32>
    %7 = arith.maximumf %5, %6 : vector<40x16xf32>
    %c0_6 = arith.constant 0 : index
    %c0_7 = arith.constant 0 : index
    %8 = vector.load %arg4[%c0_6, %c0_7] : memref<40x16xf32, #tpu.memory_space<vmem>>, vector<40x16xf32>
    tpu.vector_store %arg4[%c0_6, %c0_7], %7 {strides = array<i32>} : memref<40x16xf32, #tpu.memory_space<vmem>>, vector<40x16xf32>,
    return
  }
  func.func @transform_0(%arg0: i32) -> (i32, i32) {
    %c0_i32 = arith.constant 0 : i32
    %c0_i32_0 = arith.constant 0 : i32
    %c0_i32_1 = arith.constant 0 : i32
    return %c0_i32, %c0_i32_0 : i32, i32
  }
  func.func @transform_1(%arg0: i32) -> (i32, i32) {
    %c0_i32 = arith.constant 0 : i32
    %c0_i32_0 = arith.constant 0 : i32
    %c0_i32_1 = arith.constant 0 : i32
    return %c0_i32, %c0_i32_0 : i32, i32
  }
  func.func @transform_2(%arg0: i32) -> (i32, i32) {
    %c0_i32 = arith.constant 0 : i32
    %c0_i32_0 = arith.constant 0 : i32
    %c0_i32_1 = arith.constant 0 : i32
    return %c0_i32, %c0_i32_0 : i32, i32
  }
  func.func @transform_3(%arg0: i32) -> (i32, i32) {
    %c0_i32 = arith.constant 0 : i32
    %c0_i32_0 = arith.constant 0 : i32
    %c0_i32_1 = arith.constant 0 : i32
    return %c0_i32, %c0_i32_0 : i32, i32
  }
}

module attributes {stable_mosaic.version = 11 : i64} {
  func.func @_mm_bias_relu_kernel(%arg0: i32, %arg1: memref<24x80xbf16, #tpu.memory_space<vmem>>, %arg2: memref<80x32xbf16, #tpu.memory_space<vmem>>, %arg3: memref<1x32xf32, #tpu.memory_space<vmem>>, %arg4: memref<24x32xf32, #tpu.memory_space<vmem>>) attributes {dimension_semantics = [#tpu.dimension_semantics<arbitrary>], iteration_bounds = array<i64: 1>, scalar_prefetch = 0 : i64, scratch_operands = 0 : i64, tpu.core_type = #tpu.core_type<tc>, window_params = [{pipeline_mode = #tpu.pipeline_mode<synchronous>, transform_indices = @transform_0, window_bounds = array<i64: 24, 80>}, {pipeline_mode = #tpu.pipeline_mode<synchronous>, transform_indices = @transform_1, window_bounds = array<i64: 80, 32>}, {pipeline_mode = #tpu.pipeline_mode<synchronous>, transform_indices = @transform_2, window_bounds = array<i64: 1, 32>}, {pipeline_mode = #tpu.pipeline_mode<synchronous>, transform_indices = @transform_3, window_bounds = array<i64: 24, 32>}]} {
    %c0 = arith.constant 0 : index
    %c0_0 = arith.constant 0 : index
    %0 = vector.load %arg1[%c0, %c0_0] : memref<24x80xbf16, #tpu.memory_space<vmem>>, vector<24x80xbf16>
    %c0_1 = arith.constant 0 : index
    %c0_2 = arith.constant 0 : index
    %1 = vector.load %arg2[%c0_1, %c0_2] : memref<80x32xbf16, #tpu.memory_space<vmem>>, vector<80x32xbf16>
    %cst = arith.constant dense<0.000000e+00> : vector<24x32xf32>
    %2 = tpu.matmul %0, %1, %cst {dimension_numbers = #tpu.dot_dimension_numbers<[1], [0], [0], [1], [0, 0, 1, 1], [], []>} : vector<24x80xbf16>, vector<80x32xbf16>, vector<24x32xf32> -> vector<24x32xf32>
    %c0_3 = arith.constant 0 : index
    %c0_4 = arith.constant 0 : index
    %3 = vector.load %arg3[%c0_3, %c0_4] : memref<1x32xf32, #tpu.memory_space<vmem>>, vector<1x32xf32>
    %4 = vector.broadcast %3 : vector<1x32xf32> to vector<24x32xf32>
    %5 = arith.addf %2, %4 : vector<24x32xf32>
    %cst_5 = arith.constant 0.000000e+00 : f32
    %6 = vector.broadcast %cst_5 : f32 to vector<24x32xf32>
    %7 = arith.maximumf %5, %6 : vector<24x32xf32>
    %c0_6 = arith.constant 0 : index
    %c0_7 = arith.constant 0 : index
    %8 = vector.load %arg4[%c0_6, %c0_7] : memref<24x32xf32, #tpu.memory_space<vmem>>, vector<24x32xf32>
    tpu.vector_store %arg4[%c0_6, %c0_7], %7 {strides = array<i32>} : memref<24x32xf32, #tpu.memory_space<vmem>>, vector<24x32xf32>,
    return
  }
  func.func @transform_0(%arg0: i32) -> (i32, i32) {
    %c0_i32 = arith.constant 0 : i32
    %c0_i32_0 = arith.constant 0 : i32
    %c0_i32_1 = arith.constant 0 : i32
    return %c0_i32, %c0_i32_0 : i32, i32
  }
  func.func @transform_1(%arg0: i32) -> (i32, i32) {
    %c0_i32 = arith.constant 0 : i32
    %c0_i32_0 = arith.constant 0 : i32
    %c0_i32_1 = arith.constant 0 : i32
    return %c0_i32, %c0_i32_0 : i32, i32
  }
  func.func @transform_2(%arg0: i32) -> (i32, i32) {
    %c0_i32 = arith.constant 0 : i32
    %c0_i32_0 = arith.constant 0 : i32
    %c0_i32_1 = arith.constant 0 : i32
    return %c0_i32, %c0_i32_0 : i32, i32
  }
  func.func @transform_3(%arg0: i32) -> (i32, i32) {
    %c0_i32 = arith.constant 0 : i32
    %c0_i32_0 = arith.constant 0 : i32
    %c0_i32_1 = arith.constant 0 : i32
    return %c0_i32, %c0_i32_0 : i32, i32
  }
}

module attributes {stable_mosaic.version = 11 : i64} {
  func.func @_mm_bias_relu_kernel(%arg0: i32, %arg1: memref<16x128xbf16, #tpu.memory_space<vmem>>, %arg2: memref<128x64xbf16, #tpu.memory_space<vmem>>, %arg3: memref<1x64xf32, #tpu.memory_space<vmem>>, %arg4: memref<16x64xf32, #tpu.memory_space<vmem>>) attributes {dimension_semantics = [#tpu.dimension_semantics<arbitrary>], iteration_bounds = array<i64: 1>, scalar_prefetch = 0 : i64, scratch_operands = 0 : i64, tpu.core_type = #tpu.core_type<tc>, window_params = [{pipeline_mode = #tpu.pipeline_mode<synchronous>, transform_indices = @transform_0, window_bounds = array<i64: 16, 128>}, {pipeline_mode = #tpu.pipeline_mode<synchronous>, transform_indices = @transform_1, window_bounds = array<i64: 128, 64>}, {pipeline_mode = #tpu.pipeline_mode<synchronous>, transform_indices = @transform_2, window_bounds = array<i64: 1, 64>}, {pipeline_mode = #tpu.pipeline_mode<synchronous>, transform_indices = @transform_3, window_bounds = array<i64: 16, 64>}]} {
    %c0 = arith.constant 0 : index
    %c0_0 = arith.constant 0 : index
    %0 = vector.load %arg1[%c0, %c0_0] : memref<16x128xbf16, #tpu.memory_space<vmem>>, vector<16x128xbf16>
    %c0_1 = arith.constant 0 : index
    %c0_2 = arith.constant 0 : index
    %1 = vector.load %arg2[%c0_1, %c0_2] : memref<128x64xbf16, #tpu.memory_space<vmem>>, vector<128x64xbf16>
    %cst = arith.constant dense<0.000000e+00> : vector<16x64xf32>
    %2 = tpu.matmul %0, %1, %cst {dimension_numbers = #tpu.dot_dimension_numbers<[1], [0], [0], [1], [0, 0, 1, 1], [], []>} : vector<16x128xbf16>, vector<128x64xbf16>, vector<16x64xf32> -> vector<16x64xf32>
    %c0_3 = arith.constant 0 : index
    %c0_4 = arith.constant 0 : index
    %3 = vector.load %arg3[%c0_3, %c0_4] : memref<1x64xf32, #tpu.memory_space<vmem>>, vector<1x64xf32>
    %4 = vector.broadcast %3 : vector<1x64xf32> to vector<16x64xf32>
    %5 = arith.addf %2, %4 : vector<16x64xf32>
    %cst_5 = arith.constant 0.000000e+00 : f32
    %6 = vector.broadcast %cst_5 : f32 to vector<16x64xf32>
    %7 = arith.maximumf %5, %6 : vector<16x64xf32>
    %c0_6 = arith.constant 0 : index
    %c0_7 = arith.constant 0 : index
    %8 = vector.load %arg4[%c0_6, %c0_7] : memref<16x64xf32, #tpu.memory_space<vmem>>, vector<16x64xf32>
    tpu.vector_store %arg4[%c0_6, %c0_7], %7 {strides = array<i32>} : memref<16x64xf32, #tpu.memory_space<vmem>>, vector<16x64xf32>,
    return
  }
  func.func @transform_0(%arg0: i32) -> (i32, i32) {
    %c0_i32 = arith.constant 0 : i32
    %c0_i32_0 = arith.constant 0 : i32
    %c0_i32_1 = arith.constant 0 : i32
    return %c0_i32, %c0_i32_0 : i32, i32
  }
  func.func @transform_1(%arg0: i32) -> (i32, i32) {
    %c0_i32 = arith.constant 0 : i32
    %c0_i32_0 = arith.constant 0 : i32
    %c0_i32_1 = arith.constant 0 : i32
    return %c0_i32, %c0_i32_0 : i32, i32
  }
  func.func @transform_2(%arg0: i32) -> (i32, i32) {
    %c0_i32 = arith.constant 0 : i32
    %c0_i32_0 = arith.constant 0 : i32
    %c0_i32_1 = arith.constant 0 : i32
    return %c0_i32, %c0_i32_0 : i32, i32
  }
  func.func @transform_3(%arg0: i32) -> (i32, i32) {
    %c0_i32 = arith.constant 0 : i32
    %c0_i32_0 = arith.constant 0 : i32
    %c0_i32_1 = arith.constant 0 : i32
    return %c0_i32, %c0_i32_0 : i32, i32
  }
}

module attributes {stable_mosaic.version = 11 : i64} {
  func.func @_mm_bias_relu_kernel(%arg0: i32, %arg1: memref<8x192xbf16, #tpu.memory_space<vmem>>, %arg2: memref<192x128xbf16, #tpu.memory_space<vmem>>, %arg3: memref<1x128xf32, #tpu.memory_space<vmem>>, %arg4: memref<8x128xf32, #tpu.memory_space<vmem>>) attributes {dimension_semantics = [#tpu.dimension_semantics<arbitrary>], iteration_bounds = array<i64: 1>, scalar_prefetch = 0 : i64, scratch_operands = 0 : i64, tpu.core_type = #tpu.core_type<tc>, window_params = [{pipeline_mode = #tpu.pipeline_mode<synchronous>, transform_indices = @transform_0, window_bounds = array<i64: 8, 192>}, {pipeline_mode = #tpu.pipeline_mode<synchronous>, transform_indices = @transform_1, window_bounds = array<i64: 192, 128>}, {pipeline_mode = #tpu.pipeline_mode<synchronous>, transform_indices = @transform_2, window_bounds = array<i64: 1, 128>}, {pipeline_mode = #tpu.pipeline_mode<synchronous>, transform_indices = @transform_3, window_bounds = array<i64: 8, 128>}]} {
    %c0 = arith.constant 0 : index
    %c0_0 = arith.constant 0 : index
    %0 = vector.load %arg1[%c0, %c0_0] : memref<8x192xbf16, #tpu.memory_space<vmem>>, vector<8x192xbf16>
    %c0_1 = arith.constant 0 : index
    %c0_2 = arith.constant 0 : index
    %1 = vector.load %arg2[%c0_1, %c0_2] : memref<192x128xbf16, #tpu.memory_space<vmem>>, vector<192x128xbf16>
    %cst = arith.constant dense<0.000000e+00> : vector<8x128xf32>
    %2 = tpu.matmul %0, %1, %cst {dimension_numbers = #tpu.dot_dimension_numbers<[1], [0], [0], [1], [0, 0, 1, 1], [], []>} : vector<8x192xbf16>, vector<192x128xbf16>, vector<8x128xf32> -> vector<8x128xf32>
    %c0_3 = arith.constant 0 : index
    %c0_4 = arith.constant 0 : index
    %3 = vector.load %arg3[%c0_3, %c0_4] : memref<1x128xf32, #tpu.memory_space<vmem>>, vector<1x128xf32>
    %4 = vector.broadcast %3 : vector<1x128xf32> to vector<8x128xf32>
    %5 = arith.addf %2, %4 : vector<8x128xf32>
    %cst_5 = arith.constant 0.000000e+00 : f32
    %6 = vector.broadcast %cst_5 : f32 to vector<8x128xf32>
    %7 = arith.maximumf %5, %6 : vector<8x128xf32>
    %c0_6 = arith.constant 0 : index
    %c0_7 = arith.constant 0 : index
    %8 = vector.load %arg4[%c0_6, %c0_7] : memref<8x128xf32, #tpu.memory_space<vmem>>, vector<8x128xf32>
    tpu.vector_store %arg4[%c0_6, %c0_7], %7 {strides = array<i32>} : memref<8x128xf32, #tpu.memory_space<vmem>>, vector<8x128xf32>,
    return
  }
  func.func @transform_0(%arg0: i32) -> (i32, i32) {
    %c0_i32 = arith.constant 0 : i32
    %c0_i32_0 = arith.constant 0 : i32
    %c0_i32_1 = arith.constant 0 : i32
    return %c0_i32, %c0_i32_0 : i32, i32
  }
  func.func @transform_1(%arg0: i32) -> (i32, i32) {
    %c0_i32 = arith.constant 0 : i32
    %c0_i32_0 = arith.constant 0 : i32
    %c0_i32_1 = arith.constant 0 : i32
    return %c0_i32, %c0_i32_0 : i32, i32
  }
  func.func @transform_2(%arg0: i32) -> (i32, i32) {
    %c0_i32 = arith.constant 0 : i32
    %c0_i32_0 = arith.constant 0 : i32
    %c0_i32_1 = arith.constant 0 : i32
    return %c0_i32, %c0_i32_0 : i32, i32
  }
  func.func @transform_3(%arg0: i32) -> (i32, i32) {
    %c0_i32 = arith.constant 0 : i32
    %c0_i32_0 = arith.constant 0 : i32
    %c0_i32_1 = arith.constant 0 : i32
    return %c0_i32, %c0_i32_0 : i32, i32
  }
}

module attributes {stable_mosaic.version = 11 : i64} {
  func.func @_mm_bias_relu_kernel(%arg0: i32, %arg1: memref<8x256xbf16, #tpu.memory_space<vmem>>, %arg2: memref<256x256xbf16, #tpu.memory_space<vmem>>, %arg3: memref<1x256xf32, #tpu.memory_space<vmem>>, %arg4: memref<8x256xf32, #tpu.memory_space<vmem>>) attributes {dimension_semantics = [#tpu.dimension_semantics<arbitrary>], iteration_bounds = array<i64: 1>, scalar_prefetch = 0 : i64, scratch_operands = 0 : i64, tpu.core_type = #tpu.core_type<tc>, window_params = [{pipeline_mode = #tpu.pipeline_mode<synchronous>, transform_indices = @transform_0, window_bounds = array<i64: 8, 256>}, {pipeline_mode = #tpu.pipeline_mode<synchronous>, transform_indices = @transform_1, window_bounds = array<i64: 256, 256>}, {pipeline_mode = #tpu.pipeline_mode<synchronous>, transform_indices = @transform_2, window_bounds = array<i64: 1, 256>}, {pipeline_mode = #tpu.pipeline_mode<synchronous>, transform_indices = @transform_3, window_bounds = array<i64: 8, 256>}]} {
    %c0 = arith.constant 0 : index
    %c0_0 = arith.constant 0 : index
    %0 = vector.load %arg1[%c0, %c0_0] : memref<8x256xbf16, #tpu.memory_space<vmem>>, vector<8x256xbf16>
    %c0_1 = arith.constant 0 : index
    %c0_2 = arith.constant 0 : index
    %1 = vector.load %arg2[%c0_1, %c0_2] : memref<256x256xbf16, #tpu.memory_space<vmem>>, vector<256x256xbf16>
    %cst = arith.constant dense<0.000000e+00> : vector<8x256xf32>
    %2 = tpu.matmul %0, %1, %cst {dimension_numbers = #tpu.dot_dimension_numbers<[1], [0], [0], [1], [0, 0, 1, 1], [], []>} : vector<8x256xbf16>, vector<256x256xbf16>, vector<8x256xf32> -> vector<8x256xf32>
    %c0_3 = arith.constant 0 : index
    %c0_4 = arith.constant 0 : index
    %3 = vector.load %arg3[%c0_3, %c0_4] : memref<1x256xf32, #tpu.memory_space<vmem>>, vector<1x256xf32>
    %4 = vector.broadcast %3 : vector<1x256xf32> to vector<8x256xf32>
    %5 = arith.addf %2, %4 : vector<8x256xf32>
    %cst_5 = arith.constant 0.000000e+00 : f32
    %6 = vector.broadcast %cst_5 : f32 to vector<8x256xf32>
    %7 = arith.maximumf %5, %6 : vector<8x256xf32>
    %c0_6 = arith.constant 0 : index
    %c0_7 = arith.constant 0 : index
    %8 = vector.load %arg4[%c0_6, %c0_7] : memref<8x256xf32, #tpu.memory_space<vmem>>, vector<8x256xf32>
    tpu.vector_store %arg4[%c0_6, %c0_7], %7 {strides = array<i32>} : memref<8x256xf32, #tpu.memory_space<vmem>>, vector<8x256xf32>,
    return
  }
  func.func @transform_0(%arg0: i32) -> (i32, i32) {
    %c0_i32 = arith.constant 0 : i32
    %c0_i32_0 = arith.constant 0 : i32
    %c0_i32_1 = arith.constant 0 : i32
    return %c0_i32, %c0_i32_0 : i32, i32
  }
  func.func @transform_1(%arg0: i32) -> (i32, i32) {
    %c0_i32 = arith.constant 0 : i32
    %c0_i32_0 = arith.constant 0 : i32
    %c0_i32_1 = arith.constant 0 : i32
    return %c0_i32, %c0_i32_0 : i32, i32
  }
  func.func @transform_2(%arg0: i32) -> (i32, i32) {
    %c0_i32 = arith.constant 0 : i32
    %c0_i32_0 = arith.constant 0 : i32
    %c0_i32_1 = arith.constant 0 : i32
    return %c0_i32, %c0_i32_0 : i32, i32
  }
  func.func @transform_3(%arg0: i32) -> (i32, i32) {
    %c0_i32 = arith.constant 0 : i32
    %c0_i32_0 = arith.constant 0 : i32
    %c0_i32_1 = arith.constant 0 : i32
    return %c0_i32, %c0_i32_0 : i32, i32
  }
}

module attributes {stable_mosaic.version = 11 : i64} {
  func.func @_head_kernel(%arg0: i32, %arg1: memref<2x2x1280xf32, #tpu.memory_space<vmem>>, %arg2: memref<1280x15xf32, #tpu.memory_space<vmem>>, %arg3: memref<1x15xf32, #tpu.memory_space<vmem>>, %arg4: memref<2x15xf32, #tpu.memory_space<vmem>>) attributes {dimension_semantics = [#tpu.dimension_semantics<arbitrary>], iteration_bounds = array<i64: 1>, scalar_prefetch = 0 : i64, scratch_operands = 0 : i64, tpu.core_type = #tpu.core_type<tc>, window_params = [{pipeline_mode = #tpu.pipeline_mode<synchronous>, transform_indices = @transform_0, window_bounds = array<i64: 2, 2, 1280>}, {pipeline_mode = #tpu.pipeline_mode<synchronous>, transform_indices = @transform_1, window_bounds = array<i64: 1280, 15>}, {pipeline_mode = #tpu.pipeline_mode<synchronous>, transform_indices = @transform_2, window_bounds = array<i64: 1, 15>}, {pipeline_mode = #tpu.pipeline_mode<synchronous>, transform_indices = @transform_3, window_bounds = array<i64: 2, 15>}]} {
    %c0 = arith.constant 0 : index
    %c0_0 = arith.constant 0 : index
    %c0_1 = arith.constant 0 : index
    %0 = vector.load %arg1[%c0, %c0_0, %c0_1] : memref<2x2x1280xf32, #tpu.memory_space<vmem>>, vector<2x2x1280xf32>
    %cst = arith.constant dense<0.000000e+00> : vector<2x1280xf32>
    %1 = vector.multi_reduction <add>, %0, %cst [1] : vector<2x2x1280xf32> to vector<2x1280xf32>
    %cst_2 = arith.constant 2.000000e+00 : f32
    %2 = vector.broadcast %cst_2 : f32 to vector<2x1280xf32>
    %3 = arith.divf %1, %2 : vector<2x1280xf32>
    %c0_3 = arith.constant 0 : index
    %c0_4 = arith.constant 0 : index
    %4 = vector.load %arg2[%c0_3, %c0_4] : memref<1280x15xf32, #tpu.memory_space<vmem>>, vector<1280x15xf32>
    %cst_5 = arith.constant dense<0.000000e+00> : vector<2x15xf32>
    %5 = tpu.matmul %3, %4, %cst_5 {dimension_numbers = #tpu.dot_dimension_numbers<[1], [0], [0], [1], [0, 0, 1, 1], [], []>} : vector<2x1280xf32>, vector<1280x15xf32>, vector<2x15xf32> -> vector<2x15xf32>
    %c0_6 = arith.constant 0 : index
    %c0_7 = arith.constant 0 : index
    %6 = vector.load %arg3[%c0_6, %c0_7] : memref<1x15xf32, #tpu.memory_space<vmem>>, vector<1x15xf32>
    %7 = vector.broadcast %6 : vector<1x15xf32> to vector<2x15xf32>
    %8 = arith.addf %5, %7 : vector<2x15xf32>
    %cst_8 = arith.constant dense<0xFF800000> : vector<2xf32>
    %9 = vector.multi_reduction <maximumf>, %8, %cst_8 [1] : vector<2x15xf32> to vector<2xf32>
    %10 = vector.shape_cast %9 : vector<2xf32> to vector<2x1xf32>
    %11 = vector.broadcast %10 : vector<2x1xf32> to vector<2x15xf32>
    %12 = arith.subf %8, %11 : vector<2x15xf32>
    %13 = math.exp %12 : vector<2x15xf32>
    %cst_9 = arith.constant dense<0.000000e+00> : vector<2xf32>
    %14 = vector.multi_reduction <add>, %13, %cst_9 [1] : vector<2x15xf32> to vector<2xf32>
    %15 = vector.shape_cast %14 : vector<2xf32> to vector<2x1xf32>
    %16 = vector.broadcast %15 : vector<2x1xf32> to vector<2x15xf32>
    %17 = arith.divf %13, %16 : vector<2x15xf32>
    %c0_10 = arith.constant 0 : index
    %c0_11 = arith.constant 0 : index
    %18 = vector.load %arg4[%c0_10, %c0_11] : memref<2x15xf32, #tpu.memory_space<vmem>>, vector<2x15xf32>
    tpu.vector_store %arg4[%c0_10, %c0_11], %17 {strides = array<i32>} : memref<2x15xf32, #tpu.memory_space<vmem>>, vector<2x15xf32>,
    return
  }
  func.func @transform_0(%arg0: i32) -> (i32, i32, i32) {
    %c0_i32 = arith.constant 0 : i32
    %c0_i32_0 = arith.constant 0 : i32
    %c0_i32_1 = arith.constant 0 : i32
    %c0_i32_2 = arith.constant 0 : i32
    return %c0_i32, %c0_i32_0, %c0_i32_1 : i32, i32, i32
  }
  func.func @transform_1(%arg0: i32) -> (i32, i32) {
    %c0_i32 = arith.constant 0 : i32
    %c0_i32_0 = arith.constant 0 : i32
    %c0_i32_1 = arith.constant 0 : i32
    return %c0_i32, %c0_i32_0 : i32, i32
  }
  func.func @transform_2(%arg0: i32) -> (i32, i32) {
    %c0_i32 = arith.constant 0 : i32
    %c0_i32_0 = arith.constant 0 : i32
    %c0_i32_1 = arith.constant 0 : i32
    return %c0_i32, %c0_i32_0 : i32, i32
  }
  func.func @transform_3(%arg0: i32) -> (i32, i32) {
    %c0_i32 = arith.constant 0 : i32
    %c0_i32_0 = arith.constant 0 : i32
    %c0_i32_1 = arith.constant 0 : i32
    return %c0_i32, %c0_i32_0 : i32, i32
  }
}

</mosaic_0001>

<bundles_post_ra>
// kernel: mscnn4_forward.11
= control target key start
LH: loop header
LB: loop body
LE: loop exit
PB: predicated region body
PF: predicated region fallthrough
CT: control target
= control target key end

     0   :  { %8 = vsyncpa [#allocation3], 0  ;;  %s355_s0 = inlined_call_operand.vmem [shape: bf16[40,48], index: 0, kind: input, shape index: {}]   ;;  %s356_s1 = inlined_call_operand.hbm [shape: bf16[48,64], index: 1, kind: input, shape index: {}]   ;;  %s357_s2 = inlined_call_operand.hbm [shape: f32[1,64], index: 2, kind: input, shape index: {}]   ;;  %s358_s3 = inlined_call_operand.vmem [shape: f32[40,64], index: 3, kind: output, shape index: {}]  }
   0x1   :  { %9 = vsyncpa [#allocation5], 0  ;;  %s273_s12 = smov [#allocation2]   ;;  %s225_s16 = scalar_lea.hbm %s356_s1, 384 }
   0x2   :  { %s17_s13 = sshll.u32 %s273_s12, 4  ;;  %p226_p0 = scmp.ne.s32.totalorder %s356_s1, %s225_s16  ;;  %s18_s13 = int_to_ptr.vmem [resolvable:$true] %s17_s13 }
   0x3   :  { %p229_p1 = scmp.lt.u32.totalorder %s225_s16, %s356_s1 }
   0x5   :  { %p231_p2 = pnand %p229_p1, %p226_p0 }
   0x7   :  { %234 = shalt.err (!%p231_p2)
}
   0x8   :  { %s235_s21 = scalar_lea.vmem %s18_s13, 384  ;;  %p240_p4 = scmp.lt.s32.totalorder %s18_s13, %s18_s13 }
   0x9   :  { %p236_p3 = scmp.ne.s32.totalorder %s18_s13, %s235_s21  ;;  %p241_p5 = scmp.lt.s32.totalorder %s235_s21, %s235_s21 }
   0xb   :  { %p242_p6 = por %p241_p5, %p240_p4 }
   0xd   :  { %p243_p7 = pnand %p242_p6, %p236_p3 }
   0xf   :  { %246 = shalt.err (!%p243_p7)
}
  0x10   :  { %s274_s22 = smov 64   ;;  %s275_s23 = smov 4  }
  0x11   :  { %23 = dma.hbm_to_vmem [thread:$0]  %s356_s1, 384, %s18_s13, [#allocation3], %s274_s22, %s274_s22, %s275_s23  }
  0x12   :  { %s276_s26 = smov [#allocation4]   ;;  %s247_s30 = scalar_lea.hbm %s357_s2, 16 }
  0x13   :  { %s30_s27 = sshll.u32 %s276_s26, 4  ;;  %p248_p8 = scmp.ne.s32.totalorder %s357_s2, %s247_s30  ;;  %s31_s27 = int_to_ptr.vmem [resolvable:$true] %s30_s27 }
  0x14   :  { %p251_p9 = scmp.lt.u32.totalorder %s247_s30, %s357_s2 }
  0x16   :  { %p253_p10 = pnand %p251_p9, %p248_p8 }
  0x18   :  { %256 = shalt.err (!%p253_p10)
}
  0x19   :  { %s257_s8 = scalar_lea.vmem %s31_s27, 16  ;;  %s261_s1 = scalar_lea.vmem %s31_s27, 32 }
  0x1a   :  { %p258_p11 = scmp.ne.s32.totalorder %s31_s27, %s257_s8  ;;  %p262_p12 = scmp.lt.s32.totalorder %s31_s27, %s31_s27 }
  0x1b   :  { %p263_p13 = scmp.lt.s32.totalorder %s261_s1, %s257_s8 }
  0x1d   :  { %p264_p0 = por %p263_p13, %p262_p12 }
  0x1f   :  { %p265_p1 = pnand %p264_p0, %p258_p11 }
  0x21   :  { %268 = shalt.err (!%p265_p1)
}
  0x22   :  { %33 = dma.hbm_to_vmem [thread:$0]  %s357_s2, 16, %s31_s27, [#allocation5]  }
  0x23   :  { %269 = dma.done.wait [#allocation3], 384  }
  0x24   :  { %270 = vsyncadd [#allocation3], 4294966912 }
  0x25   :  { %271 = dma.done.wait [#allocation5], 16  }
  0x26   :  { %272 = vsyncadd [#allocation5], 4294967280  ;;  %v277_v0 = vmov 0.0   ;;  %vm278_vm0 = vmmov 0   ;;  %v219_v1 = vld [vmem:[#allocation2] sm:$0xff]   ;;  %v220_v2 = vld [vmem:[#allocation2 + $0x8] sm:$0xff]  }
  0x27   :  { %207 = vmatprep.subr.bf16.mxu1 %v277_v0  ;;  %189 = vmatprep.subr.bf16.mxu0 %v277_v0  ;;  %v221_v3 = vld [vmem:[#allocation2 + $0x10] sm:$0xff]   ;;  %v222_v4 = vld [vmem:[%s355_s0 + $0x8] sm:$0xff]   ;;  %v223_v5 = vld [vmem:[%s355_s0] sm:$0xff]   ;;  %vm90_vm1 = vcmask 392192   ;;  %vm161_vm2 = vcmask 523264  }
  0x28   :  { %199 = vmatprep.mubr.msk.bf16.mxu1 %vm278_vm0, %v277_v0  ;;  %195 = vmatprep.mubr.msk.bf16.mxu0 %vm278_vm0, %v277_v0  ;;  %v224_v6 = vld [vmem:[%s355_s0 + $0x10] ss:$0 sps:$4 sm:$0xff]   ;;  %v173_v7 = vld [vmem:[#allocation4] ss:$0 sm:$0xff] }
  0x29   :  { %210 = vmatpush3.bf16.msra.mxu1 %v219_v1  ;;  %190 = vmatpush3.bf16.msra.mxu0 %v219_v1 }
  0x2a   :  { %208 = vmatprep.subr.bf16.mxu1 %v277_v0  ;;  %191 = vmatprep.subr.bf16.mxu0 %v277_v0 }
  0x2d   :  { %211 = vmatpush3.bf16.msra.mxu1 %v220_v2  ;;  %192 = vmatpush3.bf16.msra.mxu0 %v220_v2 }
  0x2e   :  { %209 = vmatprep.subr.bf16.mxu1 %v277_v0  ;;  %193 = vmatprep.subr.bf16.mxu0 %v277_v0 }
  0x31   :  { %212 = vmatpush3.bf16.msra.mxu1 %v221_v3  ;;  %194 = vmatpush3.bf16.msra.mxu0 %v221_v3 }
  0x34   :  { %200 = vmatmul.mubr.msk.bf16.vlgmr.msra.gmra.mrb[0].mxu1 %vm90_vm1, %v222_v4  ;;  %196 = vmatmul.mubr.msk.bf16.vlgmr.msra.gmra.mrb[0].mxu0 %vm90_vm1, %v223_v5 }
  0x35   :  { %203 = vmatprep.mubr.msk.bf16.mxu1 %vm278_vm0, %v277_v0 }
  0x3c   :  { %204 = vmatmul.mubr.msk.bf16.gmra.mrb[4].mxu1 %vm90_vm1, %v224_v6 }
 0x107   :  { %v142_v8 = vpop.f32.mrb[0].mxu1  ;;  %v134_v9 = vpop.f32.mrb[0].mxu0 }
 0x108   :  { %v143_v10 = vadd.f32 %v173_v7, %v142_v8  ;;  %v201_v11 = vpop.f32.mrb[1].mxu1  ;;  %v135_v12 = vadd.f32 %v173_v7, %v134_v9  ;;  %v197_v13 = vpop.f32.mrb[1].mxu0 }
 0x109   :  { %v145_v14 = vpop.f32.mrb[2].mxu1  ;;  %v137_v15 = vpop.f32.mrb[2].mxu0 }
 0x10a   :  { %v158_v16 = vmax.f32 %v143_v10, 0.0  ;;  %v146_v17 = vadd.f32 %v173_v7, %v145_v14  ;;  %v156_v18 = vmax.f32 %v135_v12, 0.0  ;;  %v202_v19 = vpop.f32.mrb[3].mxu1  ;;  %v138_v20 = vadd.f32 %v173_v7, %v137_v15  ;;  %v198_v21 = vpop.f32.mrb[3].mxu0 }
 0x10c   :  { %164 = vst.msk [vmem:[%s358_s3 + $0x10] sm:$0xff] %vm161_vm2, %v158_v16  ;;  %v159_v22 = vmax.f32 %v146_v17, 0.0  ;;  %162 = vst.msk [vmem:[%s358_s3] sm:$0xff] %vm161_vm2, %v156_v18  ;;  %v157_v23 = vmax.f32 %v138_v20, 0.0 }
 0x10e   :  { %165 = vst.msk [vmem:[%s358_s3 + $0x18] sm:$0xff] %vm161_vm2, %v159_v22  ;;  %163 = vst.msk [vmem:[%s358_s3 + $0x8] sm:$0xff] %vm161_vm2, %v157_v23 }
 0x10f   :  { %v150_v24 = vpop.f32.mrb[4].mxu1 }
 0x110   :  { %v151_v25 = vadd.f32 %v173_v7, %v150_v24  ;;  %v205_v26 = vpop.f32.mrb[5].mxu1 }
 0x111   :  { %v153_v27 = vpop.f32.mrb[6].mxu1 }
 0x112   :  { %v160_v28 = vmax.f32 %v151_v25, 0.0  ;;  %v206_v29 = vpop.f32.mrb[7].mxu1 }
 0x114   :  { %166 = vst.msk [vmem:[%s358_s3 + $0x20] sm:$0xff] %vm161_vm2, %v160_v28 }
 0x115   :  { %171 = vsyncpa [#allocation3], 1 }
 0x116   :  { %172 = vsyncpa [#allocation5], 1 }

// kernel: mscnn4_forward.12
= control target key start
LH: loop header
LB: loop body
LE: loop exit
PB: predicated region body
PF: predicated region fallthrough
CT: control target
= control target key end

     0   :  { %s2188_s12 = smov 0   ;;  %s2190_s13 = smov 0   ;;  %s2439_s0 = inlined_call_operand.vmem [shape: bf16[24,7680], index: 0, kind: input, shape index: {}]   ;;  %s2440_s1 = inlined_call_operand.vmem [shape: bf16[7680,32], index: 1, kind: input, shape index: {}]   ;;  %s2441_s2 = inlined_call_operand.vmem [shape: f32[4,1,32], index: 2, kind: input, shape index: {}]   ;;  %s2442_s3 = inlined_call_operand.vmem [shape: f32[4,24,32], index: 3, kind: output, shape index: {}]  }
   0x1   :  { %s2192_s14 = smov 0  }
   0x2 LB: > { %s2204_s15 = sadd.s32 4294967295, %s2165_s14   ;;  %s2207_s16 = sadd.s32 1, %s2165_s14   ;;  %s2165_s14 = sphi %s2192_s14, %s2446_s14   ;;  %s2161_s13 = sphi %s2190_s13, %s2445_s13   ;;  %s2157_s12 = sphi %s2188_s12, %s2444_s12  }
   0x3   : > { %s17_s17 = ssub.s32 %s2165_s14, %s2207_s16  ;;  %s20_s18 = sadd.s32 1, %s2161_s13 }
   0x4   : > { %p18_p0 = scmp.eq.s32.totalorder %s17_s17, 0  ;;  %p27_p1 = scmp.ne.s32.totalorder %s2161_s13, %s2157_s12 }
   0x5   : > { %p28_p2 = scmp.eq.s32.totalorder %s2165_s14, 0  ;;  %p1692_p4 = scmp.ge.s32.totalorder %s2165_s14, 5 }
   0x6   : > { %s2216_s19 = scalar_select %p18_p0, %s2161_s13, %s20_s18  }
   0x7   : > { %p29_p3 = por %p28_p2, %p27_p1  ;;  %163 = sbr.rel (%p1692_p4) target bundleno = 28 (0x1c), region = 16 }
   0xe   : > { %166 = sbr.rel (!%p29_p3) target bundleno = 28 (0x1c), region = 20  ;;  %s168_s20 = sand.u32 (%p29_p3), 1, %s2161_s13  }
   0xf   : > { %s1820_s21 = smul.u32 (%p29_p3), 48, %s2165_s14 }
  0x10   : > { %s1989_s22 = smul.u32 (%p29_p3), 144, %s168_s20 }
  0x11   : > { %s2224_s25 = scalar_lea.vmem (%p29_p3), %s2439_s0, %s1820_s21 }
  0x12   : > { %v186_v0 = vld [vmem:[%s2224_s25] sm:$0xff] (%p29_p3)  ;;  %v188_v1 = vld [vmem:[%s2224_s25 + $0x8] sm:$0xff] (%p29_p3)  ;;  %v190_v2 = vld [vmem:[%s2224_s25 + $0x10] sm:$0xff] (%p29_p3)  ;;  %s2229_s26 = scalar_lea.vmem (%p29_p3), [#allocation3], %s1989_s22 }
  0x13   : > { %187 = vst [vmem:[%s2229_s26] sm:$0xff] (%p29_p3), %v186_v0  ;;  %189 = vst [vmem:[%s2229_s26 + $0x8] sm:$0xff] (%p29_p3), %v188_v1  ;;  %v192_v3 = vld [vmem:[%s2224_s25 + $0x18] sm:$0xff] (%p29_p3)  ;;  %v194_v4 = vld [vmem:[%s2224_s25 + $0x20] sm:$0xff] (%p29_p3) }
  0x14   : > { %191 = vst [vmem:[%s2229_s26 + $0x10] sm:$0xff] (%p29_p3), %v190_v2  ;;  %v196_v5 = vld [vmem:[%s2224_s25 + $0x28] sm:$0xff] (%p29_p3)  ;;  %193 = vst [vmem:[%s2229_s26 + $0x18] sm:$0xff] (%p29_p3), %v192_v3  ;;  %v198_v6 = vld [vmem:[%s2224_s25 + $0xf0] sm:$0xff] (%p29_p3) }
  0x15   : > { %195 = vst [vmem:[%s2229_s26 + $0x20] sm:$0xff] %v194_v4  ;;  %197 = vst [vmem:[%s2229_s26 + $0x28] sm:$0xff] %v196_v5  ;;  %v200_v7 = vld [vmem:[%s2224_s25 + $0xf8] sm:$0xff]  ;;  %v202_v8 = vld [vmem:[%s2224_s25 + $0x100] sm:$0xff] }
  0x16   : > { %199 = vst [vmem:[%s2229_s26 + $0x30] sm:$0xff] %v198_v6  ;;  %201 = vst [vmem:[%s2229_s26 + $0x38] sm:$0xff] %v200_v7  ;;  %v204_v9 = vld [vmem:[%s2224_s25 + $0x108] sm:$0xff]  ;;  %v206_v10 = vld [vmem:[%s2224_s25 + $0x110] sm:$0xff] }
  0x17   : > { %203 = vst [vmem:[%s2229_s26 + $0x40] sm:$0xff] %v202_v8  ;;  %v208_v11 = vld [vmem:[%s2224_s25 + $0x118] sm:$0xff]  ;;  %205 = vst [vmem:[%s2229_s26 + $0x48] sm:$0xff] %v204_v9  ;;  %v210_v12 = vld [vmem:[%s2224_s25 + $0x1e0] sm:$0xff] }
  0x18   : > { %207 = vst [vmem:[%s2229_s26 + $0x50] sm:$0xff] %v206_v10  ;;  %209 = vst [vmem:[%s2229_s26 + $0x58] sm:$0xff] %v208_v11  ;;  %v212_v13 = vld [vmem:[%s2224_s25 + $0x1e8] sm:$0xff]  ;;  %v214_v14 = vld [vmem:[%s2224_s25 + $0x1f0] sm:$0xff] }
  0x19   : > { %211 = vst [vmem:[%s2229_s26 + $0x60] sm:$0xff] %v210_v12  ;;  %213 = vst [vmem:[%s2229_s26 + $0x68] sm:$0xff] %v212_v13  ;;  %v216_v15 = vld [vmem:[%s2224_s25 + $0x1f8] sm:$0xff]  ;;  %v218_v16 = vld [vmem:[%s2224_s25 + $0x200] sm:$0xff] }
  0x1a   : > { %215 = vst [vmem:[%s2229_s26 + $0x70] sm:$0xff] %v214_v14  ;;  %v220_v17 = vld [vmem:[%s2224_s25 + $0x208] sm:$0xff]  ;;  %217 = vst [vmem:[%s2229_s26 + $0x78] sm:$0xff] %v216_v15 }
  0x1b   : > { %219 = vst [vmem:[%s2229_s26 + $0x80] sm:$0xff] %v218_v16  ;;  %221 = vst [vmem:[%s2229_s26 + $0x88] sm:$0xff] %v220_v17 }
  0x1c PF: > { %p1694_p5 = scmp.ge.s32.totalorder %s2165_s14, 1  ;;  %p257_p6 = scmp.lt.s32.totalorder %s2165_s14, 6 }
  0x1e   : > { %p258_p7 = pnand %p1694_p5, %p257_p6 }
  0x1f   : > { %s264_s27 = sand.u32 (!%p258_p7), 1, %s2157_s12   ;;  %s312_s28 = smul.u32 (!%p258_p7), 192, %s2204_s15 }
  0x20   : > { %261 = sbr.rel (%p258_p7) target bundleno = 393 (0x189), region = 51  ;;  %p318_p8 = scmp.ge.s32.totalorder (!%p258_p7), %s2204_s15, 1 }
  0x21   : > { %s1990_s29 = smul.u32 (!%p258_p7), 144, %s264_s27  ;;  %p313_p9 = scmp.lt.s32.totalorder (!%p258_p7), %s312_s28, 959 }
  0x22   : > { %p320_p10 = scmp.ge.s32.totalorder (!%p258_p7), %s2204_s15, 2  ;;  %p323_p11 = scmp.ge.s32.totalorder (!%p258_p7), %s2204_s15, 3 }
  0x23   : > { %p359_p12 = scmp.eq.s32.totalorder (!%p258_p7), %s2204_s15, 0  ;;  %p360_p13 = scmp.eq.s32.totalorder (!%p258_p7), %s2204_s15, 1 }
  0x24   : > { %p362_p1 = scmp.eq.s32.totalorder (!%p258_p7), %s2204_s15, 2  ;;  %p364_p3 = scmp.eq.s32.totalorder (!%p258_p7), %s2204_s15, 3 }
  0x25   : > { %p361_p0 = por (!%p258_p7), %p360_p13, %p359_p12  ;;  %p366_p5 = scmp.eq.s32.totalorder (!%p258_p7), %s2204_s15, 4 }
  0x26   : > { %s2297_s15 = scalar_lea.vmem (!%p258_p7), [#allocation3], %s1990_s29 }
  0x27   : > { %s2448_s28 = smov (!%p313_p9, %s312_s28), 959  ;;  %p363_p4 = por %p362_p1, %p361_p0 }
  0x28   : > { %s319_s30 = scalar_select %p318_p8, 1, 0 }
  0x29   : > { %s1695_s4 = sshll.u32 %s2448_s28, 2  ;;  %p365_p6 = por %p364_p3, %p363_p4 }
  0x2a   : > { %s2275_s7 = scalar_lea.vmem %s2440_s1, %s1695_s4  ;;  %p2283_p7 = por %p366_p5, %p363_p4  ;;  %vm371_vm0 = vcmask (%p365_p6), 261120   ;;  %v2167_v18 = vmov (%p365_p6), 0.0  }
  0x2b   : > { %s321_s8 = scalar_select %p320_p10, 1, 0 }
  0x2c   : > { %s324_s9 = scalar_select %p323_p11, 1, 0 }
  0x2d   : > { %s322_s10 = sadd.s32 %s321_s8, %s319_s30  ;;  %372 = vst.msk [vmem:[#allocation2] sm:$0xff] (%p365_p6), %vm371_vm0, %v2167_v18  ;;  %373 = vst.msk [vmem:[#allocation2 + $0x8] sm:$0xff] (%p365_p6), %vm371_vm0, %v2167_v18 }
  0x2e   : > { %s325_s11 = sadd.s32 %s324_s9, %s322_s10  ;;  %370 = sbr.rel (!%p365_p6) target bundleno = 53 (0x35), region = 59  ;;  %374 = vst.msk [vmem:[#allocation2 + $0x10] sm:$0xff] (%p365_p6), %vm371_vm0, %v2167_v18 }
  0x2f   : > { %p326_p2 = scmp.lt.s32.totalorder %s325_s11, 3 }
  0x31   : > { %s2450_s11 = smov (!%p326_p2, %s325_s11), 3 }
  0x32   : > { %s328_s18 = scalar_lea.vmem %s2441_s2, %s2450_s11  ;;  %s1991_s20 = smul.u32 24, %s2450_s11 }
  0x34   : > { %s2295_s23 = scalar_lea.vmem %s2442_s3, %s1991_s20 }
  0x35 PF: > { %v2017_v19 = vld [vmem:[%s2275_s7 + $0x40] sm:$0xff]   ;;  %v2021_v23 = vld [vmem:[%s2275_s7 + $0x48] sm:$0xff]   ;;  %v2025_v27 = vld [vmem:[%s2275_s7 + $0x50] sm:$0xff]   ;;  %vm1557_vm1 = vcmask 261120  }
  0x36   : > { %v2018_v20 = vld [vmem:[%s2275_s7 + $0xc0] sm:$0xff]   ;;  %1821 = vmatprep.subr.bf16.mxu0 %v2017_v19  ;;  %v2022_v24 = vld [vmem:[%s2275_s7 + $0xc8] sm:$0xff]   ;;  %v2026_v28 = vld [vmem:[%s2275_s7 + $0xd0] sm:$0xff]  }
  0x37   : > { %v2019_v21 = vld [vmem:[%s2275_s7] sm:$0xff]   ;;  %1849 = vmatprep.subr.bf16.mxu1 %v2018_v20  ;;  %v2023_v25 = vld [vmem:[%s2275_s7 + $0x8] sm:$0xff]   ;;  %v2027_v29 = vld [vmem:[%s2275_s7 + $0x10] sm:$0xff]  }
  0x38   : > { %v2020_v22 = vld [vmem:[%s2275_s7 + $0x80] sm:$0xff]   ;;  %1822 = vmatpush3.bf16.msra.mxu0 %v2019_v21  ;;  %v2024_v26 = vld [vmem:[%s2275_s7 + $0x88] sm:$0xff]   ;;  %v2028_v30 = vld [vmem:[%s2275_s7 + $0x90] sm:$0xff]  }
  0x39   : > { %1850 = vmatpush3.bf16.msra.mxu1 %v2020_v22  ;;  %1823 = vmatprep.subr.bf16.mxu0 %v2021_v23  ;;  %v2029_v31 = vld [vmem:[%s2275_s7 + $0x58] sm:$0xff]   ;;  %v2033_v35 = vld [vmem:[%s2275_s7 + $0x60] sm:$0xff]   ;;  %v2037_v39 = vld [vmem:[%s2275_s7 + $0x68] sm:$0xff]  }
  0x3a   : > { %1851 = vmatprep.subr.bf16.mxu1 %v2022_v24  ;;  %v2030_v32 = vld [vmem:[%s2275_s7 + $0xd8] sm:$0xff]   ;;  %v2034_v36 = vld [vmem:[%s2275_s7 + $0xe0] sm:$0xff]   ;;  %v2038_v40 = vld [vmem:[%s2275_s7 + $0xe8] sm:$0xff]  }
  0x3b   : > { %v2031_v33 = vld [vmem:[%s2275_s7 + $0x18] sm:$0xff]   ;;  %v2035_v37 = vld [vmem:[%s2275_s7 + $0x20] sm:$0xff]   ;;  %v2039_v41 = vld [vmem:[%s2275_s7 + $0x28] sm:$0xff]  }
  0x3c   : > { %1824 = vmatpush3.bf16.msra.mxu0 %v2023_v25  ;;  %v2032_v34 = vld [vmem:[%s2275_s7 + $0x98] sm:$0xff]   ;;  %v2036_v38 = vld [vmem:[%s2275_s7 + $0xa0] sm:$0xff]   ;;  %v2040_v42 = vld [vmem:[%s2275_s7 + $0xa8] sm:$0xff]  }
  0x3d   : > { %1852 = vmatpush3.bf16.msra.mxu1 %v2024_v26  ;;  %1825 = vmatprep.subr.bf16.mxu0 %v2025_v27  ;;  %v2041_v43 = vld [vmem:[%s2275_s7 + $0x70] sm:$0xff]   ;;  %v2045_v47 = vld [vmem:[%s2275_s7 + $0x78] sm:$0xff]   ;;  %v2055_v55 = vld [vmem:[%s2275_s7 + $0x140] sm:$0xff]  }
  0x3e   : > { %1853 = vmatprep.subr.bf16.mxu1 %v2026_v28  ;;  %v2042_v44 = vld [vmem:[%s2275_s7 + $0xf0] sm:$0xff]   ;;  %v2046_v48 = vld [vmem:[%s2275_s7 + $0xf8] sm:$0xff]   ;;  %v2056_v56 = vld [vmem:[%s2275_s7 + $0x1c0] sm:$0xff]  }
  0x3f   : > { %v2043_v45 = vld [vmem:[%s2275_s7 + $0x30] sm:$0xff]   ;;  %v2047_v49 = vld [vmem:[%s2275_s7 + $0x38] sm:$0xff]   ;;  %v2057_v57 = vld [vmem:[%s2275_s7 + $0x100] sm:$0xff]  }
  0x40   : > { %1826 = vmatpush3.bf16.msra.mxu0 %v2027_v29  ;;  %v2044_v46 = vld [vmem:[%s2275_s7 + $0xb0] sm:$0xff]   ;;  %v2048_v50 = vld [vmem:[%s2275_s7 + $0xb8] sm:$0xff]   ;;  %v2058_v58 = vld [vmem:[%s2275_s7 + $0x180] sm:$0xff]  }
  0x41   : > { %1854 = vmatpush3.bf16.msra.mxu1 %v2028_v30  ;;  %1827 = vmatprep.subr.bf16.mxu0 %v2029_v31  ;;  %v2049_v51 = vld [vmem:[%s2297_s15] ss:$48 sps:$4 sm:$0xff]   ;;  %v2051_v52 = vld [vmem:[%s2297_s15 + $0x4] ss:$48 sps:$4 sm:$0xff]   ;;  %v2052_v53 = vld [vmem:[%s2297_s15 + $0x8] ss:$48 sps:$4 sm:$0xff]  }
  0x42   : > { %1855 = vmatprep.subr.bf16.mxu1 %v2030_v32  ;;  %v2054_v54 = vld [vmem:[%s2297_s15 + $0xc] ss:$48 sps:$4 sm:$0xff]   ;;  %1298 = vmatprep.mubr.bf16.mxu0 %v2051_v52  ;;  %v2059_v59 = vld [vmem:[%s2275_s7 + $0x148] sm:$0xff]   ;;  %v2067_v3 = vld [vmem:[%s2275_s7 + $0x158] sm:$0xff]  }
  0x43   : > { %1346 = vmatprep.mubr.bf16.mxu1 %v2054_v54  ;;  %v2060_v60 = vld [vmem:[%s2275_s7 + $0x1c8] sm:$0xff]   ;;  %v2063_v63 = vld [vmem:[%s2275_s7 + $0x150] sm:$0xff]   ;;  %v2068_v4 = vld [vmem:[%s2275_s7 + $0x1d8] sm:$0xff]  }
  0x44   : > { %1828 = vmatpush3.bf16.msra.mxu0 %v2031_v33  ;;  %v2061_v61 = vld [vmem:[%s2275_s7 + $0x108] sm:$0xff]   ;;  %v2064_v0 = vld [vmem:[%s2275_s7 + $0x1d0] sm:$0xff]   ;;  %v2069_v5 = vld [vmem:[%s2275_s7 + $0x118] sm:$0xff]  }
  0x45   : > { %1856 = vmatpush3.bf16.msra.mxu1 %v2032_v34  ;;  %1829 = vmatprep.subr.bf16.mxu0 %v2033_v35  ;;  %v2062_v62 = vld [vmem:[%s2275_s7 + $0x188] sm:$0xff]   ;;  %v2065_v1 = vld [vmem:[%s2275_s7 + $0x110] sm:$0xff]   ;;  %v2070_v6 = vld [vmem:[%s2275_s7 + $0x198] sm:$0xff]  }
  0x46   : > { %1857 = vmatprep.subr.bf16.mxu1 %v2034_v36  ;;  %v2066_v2 = vld [vmem:[%s2275_s7 + $0x190] sm:$0xff]   ;;  %v2071_v7 = vld [vmem:[%s2275_s7 + $0x160] sm:$0xff]   ;;  %v2075_v11 = vld [vmem:[%s2275_s7 + $0x168] sm:$0xff]  }
  0x47   : > { %v2072_v8 = vld [vmem:[%s2275_s7 + $0x1e0] sm:$0xff]   ;;  %v2076_v12 = vld [vmem:[%s2275_s7 + $0x1e8] sm:$0xff]   ;;  %v2083_v21 = vld [vmem:[%s2275_s7 + $0x170] sm:$0xff]  }
  0x48   : > { %1830 = vmatpush3.bf16.msra.mxu0 %v2035_v37  ;;  %v2073_v9 = vld [vmem:[%s2275_s7 + $0x120] sm:$0xff]   ;;  %v390_v13 = vld [vmem:[%s2297_s15 + $0x60] sm:$0xff]  ;;  %v2084_v22 = vld [vmem:[%s2275_s7 + $0x1f0] sm:$0xff]  }
  0x49   : > { %1858 = vmatpush3.bf16.msra.mxu1 %v2036_v38  ;;  %1831 = vmatprep.subr.bf16.mxu0 %v2037_v39  ;;  %v2074_v10 = vld [vmem:[%s2275_s7 + $0x1a0] sm:$0xff]   ;;  %v1710_v14 = vcombine.high %v390_v13, %v390_v13  ;;  %v2078_v15 = vld [vmem:[%s2275_s7 + $0x128] sm:$0xff]   ;;  %v1709_v16 = vcombine.low %v390_v13, %v390_v13  ;;  %v2085_v23 = vld [vmem:[%s2275_s7 + $0x130] sm:$0xff]  }
  0x4a   : > { %1859 = vmatprep.subr.bf16.mxu1 %v2038_v40  ;;  %v2079_v17 = vld [vmem:[%s2275_s7 + $0x1a8] sm:$0xff]   ;;  %v391_v18 = vld [vmem:[%s2297_s15 + $0x68] sm:$0xff]  ;;  %v2087_v25 = vld [vmem:[%s2275_s7 + $0x178] sm:$0xff]  }
  0x4b   : > { %v1712_v19 = vcombine.high %v391_v18, %v391_v18  ;;  %v1711_v20 = vcombine.low %v391_v18, %v391_v18  ;;  %v2086_v24 = vld [vmem:[%s2275_s7 + $0x1b0] sm:$0xff]   ;;  %v2088_v26 = vld [vmem:[%s2275_s7 + $0x1f8] sm:$0xff]   ;;  %v2097_v33 = vld [vmem:[%s2275_s7 + $0x240] sm:$0xff]  }
  0x4c   : > { %1832 = vmatpush3.bf16.msra.mxu0 %v2039_v41  ;;  %v2089_v27 = vld [vmem:[%s2275_s7 + $0x138] sm:$0xff]   ;;  %v2094_v31 = vld [vmem:[%s2297_s15 + $0x18] ss:$48 sps:$4 sm:$0xff]   ;;  %v2096_v32 = vld [vmem:[%s2297_s15 + $0x1c] ss:$48 sps:$4 sm:$0xff]  }
  0x4d   : > { %1860 = vmatpush3.bf16.msra.mxu1 %v2040_v42  ;;  %1833 = vmatprep.subr.bf16.mxu0 %v2041_v43  ;;  %v2090_v28 = vld [vmem:[%s2275_s7 + $0x1b8] sm:$0xff]   ;;  %v2098_v34 = vld [vmem:[%s2275_s7 + $0x2c0] sm:$0xff]   ;;  %v2101_v37 = vld [vmem:[%s2275_s7 + $0x248] sm:$0xff]  }
  0x4e   : > { %1861 = vmatprep.subr.bf16.mxu1 %v2042_v44  ;;  %v2091_v29 = vld [vmem:[%s2297_s15 + $0x10] ss:$48 sps:$4 sm:$0xff]   ;;  %v2093_v30 = vld [vmem:[%s2297_s15 + $0x14] ss:$48 sps:$4 sm:$0xff]   ;;  %v2099_v35 = vld [vmem:[%s2275_s7 + $0x200] sm:$0xff]  }
  0x4f   : > { %v2100_v36 = vld [vmem:[%s2275_s7 + $0x280] sm:$0xff]   ;;  %v2102_v38 = vld [vmem:[%s2275_s7 + $0x2c8] sm:$0xff]   ;;  %v2107_v44 = vld [vmem:[%s2275_s7 + $0x250] sm:$0xff]  }
  0x50   : > { %1834 = vmatpush3.bf16.msra.mxu0 %v2043_v45  ;;  %v2103_v39 = vld [vmem:[%s2275_s7 + $0x208] sm:$0xff]   ;;  %v2108_v45 = vld [vmem:[%s2275_s7 + $0x2d0] sm:$0xff]   ;;  %v2114_v52 = vld [vmem:[%s2275_s7 + $0x2d8] sm:$0xff]  }
  0x51   : > { %1862 = vmatpush3.bf16.msra.mxu1 %v2044_v46  ;;  %1835 = vmatprep.subr.bf16.mxu0 %v2045_v47  ;;  %v2104_v40 = vld [vmem:[%s2275_s7 + $0x288] sm:$0xff]   ;;  %v393_v46 = vld [vmem:[%s2297_s15 + $0x78] sm:$0xff]  ;;  %v2116_v54 = vld [vmem:[%s2275_s7 + $0x298] sm:$0xff]  }
  0x52   : > { %1863 = vmatprep.subr.bf16.mxu1 %v2046_v48  ;;  %v392_v41 = vld [vmem:[%s2297_s15 + $0x70] sm:$0xff]  ;;  %v1716_v47 = vcombine.high %v393_v46, %v393_v46  ;;  %v2110_v48 = vld [vmem:[%s2275_s7 + $0x210] sm:$0xff]  }
  0x53   : > { %v1714_v42 = vcombine.high %v392_v41, %v392_v41  ;;  %v1713_v43 = vcombine.low %v392_v41, %v392_v41 }
  0x54   : > { %1836 = vmatpush3.bf16.msra.mxu0 %v2047_v49  ;;  %v1715_v49 = vcombine.low %v393_v46, %v393_v46 }
  0x55   : > { %1864 = vmatpush3.bf16.msra.mxu1 %v2048_v50  ;;  %1877 = vmatprep.subr.bf16.mxu0 %v2055_v55  ;;  %v2111_v50 = vld [vmem:[%s2275_s7 + $0x290] sm:$0xff]   ;;  %v2117_v55 = vld [vmem:[%s2275_s7 + $0x260] sm:$0xff]  }
  0x56   : > { %1905 = vmatprep.subr.bf16.mxu1 %v2056_v56  ;;  %v2118_v56 = vld [vmem:[%s2275_s7 + $0x2e0] sm:$0xff]  }
  0x57   : > { %1299 = vmatmul.mubr.bf16.vlgmr.msra.gmra.mrb[0].mxu0 %v2049_v51  ;;  %v2113_v51 = vld [vmem:[%s2275_s7 + $0x258] sm:$0xff]  }
  0x58   : > { %1347 = vmatmul.mubr.bf16.vlgmr.msra.gmra.mrb[0].mxu1 %v2052_v53  ;;  %1878 = vmatpush3.bf16.msra.mxu0 %v2057_v57  ;;  %v2115_v53 = vld [vmem:[%s2275_s7 + $0x218] sm:$0xff]   ;;  %v2119_v57 = vld [vmem:[%s2275_s7 + $0x220] sm:$0xff]  }
  0x59   : > { %1906 = vmatpush3.bf16.msra.mxu1 %v2058_v58  ;;  %1879 = vmatprep.subr.bf16.mxu0 %v2059_v59  ;;  %v2120_v58 = vld [vmem:[%s2275_s7 + $0x2a0] sm:$0xff]   ;;  %v2121_v59 = vld [vmem:[%s2275_s7 + $0x268] sm:$0xff]  }
  0x5a   : > { %1907 = vmatprep.subr.bf16.mxu1 %v2060_v60  ;;  %1306 = vmatprep.mubr.bf16.mxu0 %v1710_v14  ;;  %v2122_v60 = vld [vmem:[%s2275_s7 + $0x2e8] sm:$0xff]  }
  0x5b   : > { %1354 = vmatprep.mubr.bf16.mxu1 %v1712_v19 }
  0x5c   : > { %1880 = vmatpush3.bf16.msra.mxu0 %v2061_v61  ;;  %v2123_v61 = vld [vmem:[%s2275_s7 + $0x228] sm:$0xff]  }
  0x5d   : > { %1908 = vmatpush3.bf16.msra.mxu1 %v2062_v62  ;;  %1881 = vmatprep.subr.bf16.mxu0 %v2063_v63  ;;  %v2124_v62 = vld [vmem:[%s2275_s7 + $0x2a8] sm:$0xff]   ;;  %v2125_v63 = vld [vmem:[%s2275_s7 + $0x270] sm:$0xff]  }
  0x5e   : > { %1909 = vmatprep.subr.bf16.mxu1 %v2064_v0  ;;  %v2126_v0 = vld [vmem:[%s2275_s7 + $0x2f0] sm:$0xff]  }
  0x5f   : > { %1307 = vmatmul.mubr.bf16.gmra.mrb[4].mxu0 %v1709_v16 }
  0x60   : > { %1882 = vmatpush3.bf16.msra.mxu0 %v2065_v1  ;;  %1355 = vmatmul.mubr.bf16.gmra.mrb[4].mxu1 %v1711_v20  ;;  %v2127_v1 = vld [vmem:[%s2275_s7 + $0x230] sm:$0xff]  }
  0x61   : > { %1910 = vmatpush3.bf16.msra.mxu1 %v2066_v2  ;;  %1883 = vmatprep.subr.bf16.mxu0 %v2067_v3  ;;  %v2128_v2 = vld [vmem:[%s2275_s7 + $0x2b0] sm:$0xff]   ;;  %v2129_v3 = vld [vmem:[%s2275_s7 + $0x278] sm:$0xff]  }
  0x62   : > { %1911 = vmatprep.subr.bf16.mxu1 %v2068_v4  ;;  %1394 = vmatprep.mubr.bf16.mxu0 %v2093_v30  ;;  %v2130_v4 = vld [vmem:[%s2275_s7 + $0x2f8] sm:$0xff]  }
  0x63   : > { %1442 = vmatprep.mubr.bf16.mxu1 %v2096_v32 }
  0x64   : > { %1884 = vmatpush3.bf16.msra.mxu0 %v2069_v5  ;;  %v2131_v5 = vld [vmem:[%s2275_s7 + $0x238] sm:$0xff]  }
  0x65   : > { %1912 = vmatpush3.bf16.msra.mxu1 %v2070_v6  ;;  %1885 = vmatprep.subr.bf16.mxu0 %v2071_v7  ;;  %v2132_v6 = vld [vmem:[%s2275_s7 + $0x2b8] sm:$0xff]  }
  0x66   : > { %1913 = vmatprep.subr.bf16.mxu1 %v2072_v8  ;;  %v2133_v7 = vld [vmem:[%s2297_s15 + $0x20] ss:$48 sps:$4 sm:$0xff]   ;;  %v2135_v8 = vld [vmem:[%s2297_s15 + $0x24] ss:$48 sps:$4 sm:$0xff]  }
  0x68   : > { %1886 = vmatpush3.bf16.msra.mxu0 %v2073_v9  ;;  %v2136_v9 = vld [vmem:[%s2297_s15 + $0x28] ss:$48 sps:$4 sm:$0xff]  }
  0x69   : > { %1914 = vmatpush3.bf16.msra.mxu1 %v2074_v10  ;;  %1887 = vmatprep.subr.bf16.mxu0 %v2075_v11  ;;  %v2138_v10 = vld [vmem:[%s2297_s15 + $0x2c] ss:$48 sps:$4 sm:$0xff]   ;;  %v394_v11 = vld [vmem:[%s2297_s15 + $0x80] sm:$0xff] }
  0x6a   : > { %1915 = vmatprep.subr.bf16.mxu1 %v2076_v12  ;;  %v395_v12 = vld [vmem:[%s2297_s15 + $0x88] sm:$0xff]  ;;  %v1718_v13 = vcombine.high %v394_v11, %v394_v11 }
  0x6b   : > { %v1720_v14 = vcombine.high %v395_v12, %v395_v12  ;;  %v1719_v16 = vcombine.low %v395_v12, %v395_v12 }
  0x6c   : > { %1888 = vmatpush3.bf16.msra.mxu0 %v2078_v15  ;;  %v1717_v15 = vcombine.low %v394_v11, %v394_v11 }
  0x6d   : > { %1916 = vmatpush3.bf16.msra.mxu1 %v2079_v17  ;;  %1889 = vmatprep.subr.bf16.mxu0 %v2083_v21 }
  0x6e   : > { %1917 = vmatprep.subr.bf16.mxu1 %v2084_v22 }
  0x70   : > { %1890 = vmatpush3.bf16.msra.mxu0 %v2085_v23 }
  0x71   : > { %1918 = vmatpush3.bf16.msra.mxu1 %v2086_v24  ;;  %1891 = vmatprep.subr.bf16.mxu0 %v2087_v25 }
  0x72   : > { %1919 = vmatprep.subr.bf16.mxu1 %v2088_v26 }
  0x74   : > { %1892 = vmatpush3.bf16.msra.mxu0 %v2089_v27 }
  0x75   : > { %1920 = vmatpush3.bf16.msra.mxu1 %v2090_v28  ;;  %1933 = vmatprep.subr.bf16.mxu0 %v2097_v33 }
  0x76   : > { %1961 = vmatprep.subr.bf16.mxu1 %v2098_v34 }
  0x77   : > { %1395 = vmatmul.mubr.bf16.vlgmr.msra.gmra.mrb[8].mxu0 %v2091_v29 }
  0x78   : > { %1443 = vmatmul.mubr.bf16.vlgmr.msra.gmra.mrb[8].mxu1 %v2094_v31  ;;  %1934 = vmatpush3.bf16.msra.mxu0 %v2099_v35 }
  0x79   : > { %1962 = vmatpush3.bf16.msra.mxu1 %v2100_v36  ;;  %1935 = vmatprep.subr.bf16.mxu0 %v2101_v37 }
  0x7a   : > { %1963 = vmatprep.subr.bf16.mxu1 %v2102_v38  ;;  %1402 = vmatprep.mubr.bf16.mxu0 %v1714_v42 }
  0x7b   : > { %1450 = vmatprep.mubr.bf16.mxu1 %v1716_v47 }
  0x7c   : > { %1936 = vmatpush3.bf16.msra.mxu0 %v2103_v39 }
  0x7d   : > { %1964 = vmatpush3.bf16.msra.mxu1 %v2104_v40  ;;  %1937 = vmatprep.subr.bf16.mxu0 %v2107_v44 }
  0x7e   : > { %1965 = vmatprep.subr.bf16.mxu1 %v2108_v45 }
  0x7f   : > { %1403 = vmatmul.mubr.bf16.gmra.mrb[12].mxu0 %v1713_v43 }
  0x80   : > { %1938 = vmatpush3.bf16.msra.mxu0 %v2110_v48  ;;  %1451 = vmatmul.mubr.bf16.gmra.mrb[12].mxu1 %v1715_v49 }
  0x81   : > { %1966 = vmatpush3.bf16.msra.mxu1 %v2111_v50  ;;  %1939 = vmatprep.subr.bf16.mxu0 %v2113_v51 }
  0x82   : > { %1967 = vmatprep.subr.bf16.mxu1 %v2114_v52  ;;  %1490 = vmatprep.mubr.bf16.mxu0 %v2135_v8 }
  0x83   : > { %1538 = vmatprep.mubr.bf16.mxu1 %v2138_v10 }
  0x84   : > { %1940 = vmatpush3.bf16.msra.mxu0 %v2115_v53 }
  0x85   : > { %1968 = vmatpush3.bf16.msra.mxu1 %v2116_v54  ;;  %1941 = vmatprep.subr.bf16.mxu0 %v2117_v55 }
  0x86   : > { %1969 = vmatprep.subr.bf16.mxu1 %v2118_v56 }
  0x88   : > { %1942 = vmatpush3.bf16.msra.mxu0 %v2119_v57 }
  0x89   : > { %1970 = vmatpush3.bf16.msra.mxu1 %v2120_v58  ;;  %1943 = vmatprep.subr.bf16.mxu0 %v2121_v59 }
  0x8a   : > { %1971 = vmatprep.subr.bf16.mxu1 %v2122_v60 }
  0x8c   : > { %1944 = vmatpush3.bf16.msra.mxu0 %v2123_v61 }
  0x8d   : > { %1972 = vmatpush3.bf16.msra.mxu1 %v2124_v62  ;;  %1945 = vmatprep.subr.bf16.mxu0 %v2125_v63 }
  0x8e   : > { %1973 = vmatprep.subr.bf16.mxu1 %v2126_v0 }
  0x90   : > { %1946 = vmatpush3.bf16.msra.mxu0 %v2127_v1 }
  0x91   : > { %1974 = vmatpush3.bf16.msra.mxu1 %v2128_v2  ;;  %1947 = vmatprep.subr.bf16.mxu0 %v2129_v3 }
  0x92   : > { %1975 = vmatprep.subr.bf16.mxu1 %v2130_v4 }
  0x94   : > { %1948 = vmatpush3.bf16.msra.mxu0 %v2131_v5 }
  0x95   : > { %1976 = vmatpush3.bf16.msra.mxu1 %v2132_v6 }
  0x97   : > { %1491 = vmatmul.mubr.bf16.vlgmr.msra.gmra.mrb[16].mxu0 %v2133_v7 }
  0x98   : > { %1539 = vmatmul.mubr.bf16.vlgmr.msra.gmra.mrb[16].mxu1 %v2136_v9  ;;  %1498 = vmatprep.mubr.bf16.mxu0 %v1718_v13 }
  0x99   : > { %1546 = vmatprep.mubr.bf16.mxu1 %v1720_v14 }
  0x9f   : > { %1499 = vmatmul.mubr.bf16.gmra.mrb[20].mxu0 %v1717_v15 }
  0xa0   : > { %1547 = vmatmul.mubr.bf16.gmra.mrb[20].mxu1 %v1719_v16 }
 0x12a   : > { %v1837_v17 = vpop.f32.mrb[0].mxu0 }
 0x12b   : > { %v1865_v18 = vpop.f32.mrb[0].mxu1  ;;  %v1838_v19 = vpop.f32.mrb[1].mxu0 }
 0x12c   : > { %v1839_v20 = vadd.f32 %v1838_v19, %v1837_v17  ;;  %v1866_v21 = vpop.f32.mrb[1].mxu1  ;;  %v1840_v22 = vpop.f32.mrb[2].mxu0  ;;  %v375_v17 = vld [vmem:[#allocation2] sm:$0xff] }
 0x12d   : > { %v1867_v23 = vadd.f32 %v1866_v21, %v1865_v18  ;;  %v1868_v24 = vpop.f32.mrb[2].mxu1  ;;  %v1841_v25 = vpop.f32.mrb[3].mxu0 }
 0x12e   : > { %v1842_v26 = vadd.f32 %v1841_v25, %v1840_v22  ;;  %v1869_v27 = vpop.f32.mrb[3].mxu1  ;;  %v376_v22 = vld [vmem:[#allocation2 + $0x8] sm:$0xff] }
 0x12f   : > { %v1349_v28 = vadd.f32 %v1867_v23, %v1839_v20  ;;  %v1870_v29 = vadd.f32 %v1869_v27, %v1868_v24 }
 0x131   : > { %v1352_v30 = vadd.f32 %v1870_v29, %v1842_v26 }
 0x132   : > { %v1843_v31 = vpop.f32.mrb[4].mxu0 }
 0x133   : > { %v1844_v32 = vpop.f32.mrb[5].mxu0  ;;  %v1871_v35 = vpop.f32.mrb[4].mxu1 }
 0x134   : > { %v1845_v33 = vadd.f32 %v1844_v32, %v1843_v31  ;;  %v1846_v34 = vpop.f32.mrb[6].mxu0  ;;  %v1872_v37 = vpop.f32.mrb[5].mxu1 }
 0x135   : > { %v1847_v36 = vpop.f32.mrb[7].mxu0  ;;  %v1873_v38 = vadd.f32 %v1872_v37, %v1871_v35  ;;  %v1874_v39 = vpop.f32.mrb[6].mxu1 }
 0x136   : > { %v1875_v40 = vpop.f32.mrb[7].mxu1  ;;  %v377_v36 = vld [vmem:[#allocation2 + $0x10] sm:$0xff] }
 0x137   : > { %v1357_v41 = vadd.f32 %v1873_v38, %v1845_v33 }
 0x14a   : > { %v1893_v42 = vpop.f32.mrb[8].mxu0 }
 0x14b   : > { %v1921_v43 = vpop.f32.mrb[8].mxu1  ;;  %v1894_v44 = vpop.f32.mrb[9].mxu0 }
 0x14c   : > { %v1895_v45 = vadd.f32 %v1894_v44, %v1893_v42  ;;  %v1922_v46 = vpop.f32.mrb[9].mxu1  ;;  %v1896_v47 = vpop.f32.mrb[10].mxu0 }
 0x14d   : > { %v1923_v48 = vadd.f32 %v1922_v46, %v1921_v43  ;;  %v1924_v49 = vpop.f32.mrb[10].mxu1  ;;  %v1897_v50 = vpop.f32.mrb[11].mxu0 }
 0x14e   : > { %v1397_v51 = vadd.f32 %v1895_v45, %v1349_v28  ;;  %v1898_v52 = vadd.f32 %v1897_v50, %v1896_v47  ;;  %v1925_v53 = vpop.f32.mrb[11].mxu1 }
 0x14f   : > { %v1926_v54 = vadd.f32 %v1925_v53, %v1924_v49 }
 0x150   : > { %v1445_v55 = vadd.f32 %v1923_v48, %v1397_v51  ;;  %v1400_v56 = vadd.f32 %v1898_v52, %v1352_v30 }
 0x152   : > { %v1448_v57 = vadd.f32 %v1926_v54, %v1400_v56  ;;  %v1899_v58 = vpop.f32.mrb[12].mxu0 }
 0x153   : > { %v1900_v59 = vpop.f32.mrb[13].mxu0  ;;  %v1927_v62 = vpop.f32.mrb[12].mxu1 }
 0x154   : > { %v1901_v60 = vadd.f32 %v1900_v59, %v1899_v58  ;;  %v1902_v61 = vpop.f32.mrb[14].mxu0  ;;  %v1928_v1 = vpop.f32.mrb[13].mxu1 }
 0x155   : > { %v1903_v63 = vpop.f32.mrb[15].mxu0  ;;  %v1929_v2 = vadd.f32 %v1928_v1, %v1927_v62  ;;  %v1930_v3 = vpop.f32.mrb[14].mxu1 }
 0x156   : > { %v1405_v0 = vadd.f32 %v1901_v60, %v1357_v41  ;;  %v1931_v4 = vpop.f32.mrb[15].mxu1  ;;  %v1817_v41 = vld [vmem:[%s328_s18] ss:$0 sm:$0xff] (%p2283_p7) }
 0x158   : > { %v1453_v5 = vadd.f32 %v1929_v2, %v1405_v0 }
 0x16a   : > { %v1949_v6 = vpop.f32.mrb[16].mxu0 }
 0x16b   : > { %v1950_v7 = vpop.f32.mrb[17].mxu0  ;;  %v1977_v8 = vpop.f32.mrb[16].mxu1 }
 0x16c   : > { %v1951_v9 = vadd.f32 %v1950_v7, %v1949_v6  ;;  %v1952_v10 = vpop.f32.mrb[18].mxu0  ;;  %v1978_v11 = vpop.f32.mrb[17].mxu1 }
 0x16d   : > { %v1953_v12 = vpop.f32.mrb[19].mxu0  ;;  %v1979_v14 = vadd.f32 %v1978_v11, %v1977_v8  ;;  %v1980_v15 = vpop.f32.mrb[18].mxu1 }
 0x16e   : > { %v1493_v13 = vadd.f32 %v1951_v9, %v1445_v55  ;;  %v1954_v16 = vadd.f32 %v1953_v12, %v1952_v10  ;;  %v1981_v18 = vpop.f32.mrb[19].mxu1 }
 0x16f   : > { %v1982_v21 = vadd.f32 %v1981_v18, %v1980_v15 }
 0x170   : > { %v1541_v19 = vadd.f32 %v1979_v14, %v1493_v13  ;;  %v1496_v20 = vadd.f32 %v1954_v16, %v1448_v57 }
 0x172   : > { %v1554_v23 = vadd.f32 %v1541_v19, %v375_v17  ;;  %v1544_v24 = vadd.f32 %v1982_v21, %v1496_v20  ;;  %v1955_v25 = vpop.f32.mrb[20].mxu0 }
 0x173   : > { %v1956_v26 = vpop.f32.mrb[21].mxu0  ;;  %v1983_v28 = vpop.f32.mrb[20].mxu1 }
 0x174   : > { %1558 = vst.msk [vmem:[#allocation2] sm:$0xff] %vm1557_vm1, %v1554_v23  ;;  %v1555_v27 = vadd.f32 %v1544_v24, %v376_v22  ;;  %v1957_v29 = vadd.f32 %v1956_v26, %v1955_v25  ;;  %v1958_v30 = vpop.f32.mrb[22].mxu0  ;;  %v1984_v31 = vpop.f32.mrb[21].mxu1 }
 0x175   : > { %v1959_v32 = vpop.f32.mrb[23].mxu0  ;;  %v1985_v34 = vadd.f32 %v1984_v31, %v1983_v28  ;;  %v1986_v35 = vpop.f32.mrb[22].mxu1 }
 0x176   : > { %1559 = vst.msk [vmem:[#allocation2 + $0x8] sm:$0xff] %vm1557_vm1, %v1555_v27  ;;  %v1501_v33 = vadd.f32 %v1957_v29, %v1453_v5  ;;  %v1987_v37 = vpop.f32.mrb[23].mxu1  ;;  %1563 = sbr.rel (!%p2283_p7) target bundleno = 393 (0x189), region = 63 }
 0x178   : > { %v1549_v38 = vadd.f32 %v1985_v34, %v1501_v33 }
 0x17a   : > { %v1556_v39 = vadd.f32 %v1549_v38, %v377_v36 }
 0x17b   : > { %v1564_v40 = vld [vmem:[#allocation2] sm:$0xff] (%p2283_p7) }
 0x17c   : > { %1560 = vst.msk [vmem:[#allocation2 + $0x10] sm:$0xff] %vm1557_vm1, %v1556_v39  ;;  %v1574_v43 = vadd.f32 (%p2283_p7), %v1817_v41, %v1564_v40 }
 0x17d   : > { %v1565_v42 = vld [vmem:[#allocation2 + $0x8] sm:$0xff] }
 0x17e   : > { %v1575_v44 = vadd.f32 %v1817_v41, %v1565_v42  ;;  %v1577_v47 = vmax.f32 %v1574_v43, 0.0 }
 0x180   : > { %v1578_v48 = vmax.f32 %v1575_v44, 0.0  ;;  %1580 = vst.msk [vmem:[%s2295_s23] sm:$0xff] %vm1557_vm1, %v1577_v47 }
 0x182   : > { %1581 = vst.msk [vmem:[%s2295_s23 + $0x8] sm:$0xff] %vm1557_vm1, %v1578_v48 }
 0x183   : > { %v1566_v45 = vld [vmem:[#allocation2 + $0x10] sm:$0xff] }
 0x184   : > { %v1576_v46 = vadd.f32 %v1817_v41, %v1566_v45 }
 0x186   : > { %v1579_v49 = vmax.f32 %v1576_v46, 0.0 }
 0x188   : > { %1582 = vst.msk [vmem:[%s2295_s23 + $0x10] sm:$0xff] %vm1557_vm1, %v1579_v49 }
 0x189 PF: > { %p10_p8 = scmp.ge.s32.totalorder %s2207_s16, 7   ;;  %s2444_s12 = smov %s2161_s13 }
 0x18a   : > { %s2445_s13 = smov %s2216_s19  ;;  %s2446_s14 = smov %s2207_s16 }
 0x18b   :  { %12 = sbr.rel (!%p10_p8) target bundleno = 2 (0x2), region = 104 }

// kernel: mscnn4_forward.13
= control target key start
LH: loop header
LB: loop body
LE: loop exit
PB: predicated region body
PF: predicated region fallthrough
CT: control target
= control target key end

     0   :  { %s3447_s12 = smov 0   ;;  %s3449_s13 = smov 0   ;;  %s3809_s0 = inlined_call_operand.vmem [shape: bf16[16,15360], index: 0, kind: input, shape index: {}]   ;;  %s3810_s1 = inlined_call_operand.vmem [shape: bf16[15360,64], index: 1, kind: input, shape index: {}]   ;;  %s3811_s2 = inlined_call_operand.vmem [shape: f32[4,1,64], index: 2, kind: input, shape index: {}]   ;;  %s3812_s3 = inlined_call_operand.vmem [shape: f32[4,16,64], index: 3, kind: output, shape index: {}]  }
   0x1   :  { %s3451_s14 = smov 0  }
   0x2 LB: > { %s3463_s15 = sadd.s32 4294967295, %s3424_s14   ;;  %s3466_s16 = sadd.s32 1, %s3424_s14   ;;  %s3424_s14 = sphi %s3451_s14, %s3816_s14   ;;  %s3420_s13 = sphi %s3449_s13, %s3815_s13   ;;  %s3416_s12 = sphi %s3447_s12, %s3814_s12  }
   0x3   : > { %s17_s17 = ssub.s32 %s3424_s14, %s3466_s16  ;;  %s20_s18 = sadd.s32 1, %s3420_s13 }
   0x4   : > { %p18_p0 = scmp.eq.s32.totalorder %s17_s17, 0  ;;  %p27_p1 = scmp.ne.s32.totalorder %s3420_s13, %s3416_s12 }
   0x5   : > { %p28_p2 = scmp.eq.s32.totalorder %s3424_s14, 0  ;;  %p2692_p4 = scmp.ge.s32.totalorder %s3424_s14, 5 }
   0x6   : > { %s3475_s19 = scalar_select %p18_p0, %s3420_s13, %s20_s18  }
   0x7   : > { %p29_p3 = por %p28_p2, %p27_p1  ;;  %163 = sbr.rel (%p2692_p4) target bundleno = 31 (0x1f), region = 16 }
   0xe   : > { %166 = sbr.rel (!%p29_p3) target bundleno = 31 (0x1f), region = 20  ;;  %s168_s20 = sand.u32 (%p29_p3), 1, %s3420_s13  }
   0xf   : > { %s2917_s21 = smul.u32 (%p29_p3), 96, %s3424_s14 }
  0x10   : > { %s3183_s22 = smul.u32 (%p29_p3), 192, %s168_s20 }
  0x11   : > { %s3483_s25 = scalar_lea.vmem (%p29_p3), %s3809_s0, %s2917_s21 }
  0x12   : > { %v186_v0 = vld [vmem:[%s3483_s25] sm:$0xff] (%p29_p3)  ;;  %v188_v1 = vld [vmem:[%s3483_s25 + $0x8] sm:$0xff] (%p29_p3)  ;;  %v190_v2 = vld [vmem:[%s3483_s25 + $0x10] sm:$0xff] (%p29_p3)  ;;  %s3488_s26 = scalar_lea.vmem (%p29_p3), [#allocation3], %s3183_s22 }
  0x13   : > { %187 = vst [vmem:[%s3488_s26] sm:$0xff] (%p29_p3), %v186_v0  ;;  %189 = vst [vmem:[%s3488_s26 + $0x8] sm:$0xff] (%p29_p3), %v188_v1  ;;  %v192_v3 = vld [vmem:[%s3483_s25 + $0x18] sm:$0xff] (%p29_p3)  ;;  %v194_v4 = vld [vmem:[%s3483_s25 + $0x20] sm:$0xff] (%p29_p3) }
  0x14   : > { %191 = vst [vmem:[%s3488_s26 + $0x10] sm:$0xff] (%p29_p3), %v190_v2  ;;  %v196_v5 = vld [vmem:[%s3483_s25 + $0x28] sm:$0xff] (%p29_p3)  ;;  %193 = vst [vmem:[%s3488_s26 + $0x18] sm:$0xff] (%p29_p3), %v192_v3  ;;  %v198_v6 = vld [vmem:[%s3483_s25 + $0x30] sm:$0xff] (%p29_p3) }
  0x15   : > { %195 = vst [vmem:[%s3488_s26 + $0x20] sm:$0xff] %v194_v4  ;;  %197 = vst [vmem:[%s3488_s26 + $0x28] sm:$0xff] %v196_v5  ;;  %v200_v7 = vld [vmem:[%s3483_s25 + $0x38] sm:$0xff]  ;;  %v202_v8 = vld [vmem:[%s3483_s25 + $0x40] sm:$0xff] }
  0x16   : > { %199 = vst [vmem:[%s3488_s26 + $0x30] sm:$0xff] %v198_v6  ;;  %201 = vst [vmem:[%s3488_s26 + $0x38] sm:$0xff] %v200_v7  ;;  %v204_v9 = vld [vmem:[%s3483_s25 + $0x48] sm:$0xff]  ;;  %v206_v10 = vld [vmem:[%s3483_s25 + $0x50] sm:$0xff] }
  0x17   : > { %203 = vst [vmem:[%s3488_s26 + $0x40] sm:$0xff] %v202_v8  ;;  %v208_v11 = vld [vmem:[%s3483_s25 + $0x58] sm:$0xff]  ;;  %205 = vst [vmem:[%s3488_s26 + $0x48] sm:$0xff] %v204_v9  ;;  %v210_v12 = vld [vmem:[%s3483_s25 + $0x1e0] sm:$0xff] }
  0x18   : > { %207 = vst [vmem:[%s3488_s26 + $0x50] sm:$0xff] %v206_v10  ;;  %209 = vst [vmem:[%s3488_s26 + $0x58] sm:$0xff] %v208_v11  ;;  %v212_v13 = vld [vmem:[%s3483_s25 + $0x1e8] sm:$0xff]  ;;  %v214_v14 = vld [vmem:[%s3483_s25 + $0x1f0] sm:$0xff] }
  0x19   : > { %211 = vst [vmem:[%s3488_s26 + $0x60] sm:$0xff] %v210_v12  ;;  %213 = vst [vmem:[%s3488_s26 + $0x68] sm:$0xff] %v212_v13  ;;  %v216_v15 = vld [vmem:[%s3483_s25 + $0x1f8] sm:$0xff]  ;;  %v218_v16 = vld [vmem:[%s3483_s25 + $0x200] sm:$0xff] }
  0x1a   : > { %215 = vst [vmem:[%s3488_s26 + $0x70] sm:$0xff] %v214_v14  ;;  %v220_v17 = vld [vmem:[%s3483_s25 + $0x208] sm:$0xff]  ;;  %217 = vst [vmem:[%s3488_s26 + $0x78] sm:$0xff] %v216_v15  ;;  %v222_v18 = vld [vmem:[%s3483_s25 + $0x210] sm:$0xff] }
  0x1b   : > { %219 = vst [vmem:[%s3488_s26 + $0x80] sm:$0xff] %v218_v16  ;;  %221 = vst [vmem:[%s3488_s26 + $0x88] sm:$0xff] %v220_v17  ;;  %v224_v19 = vld [vmem:[%s3483_s25 + $0x218] sm:$0xff]  ;;  %v226_v20 = vld [vmem:[%s3483_s25 + $0x220] sm:$0xff] }
  0x1c   : > { %223 = vst [vmem:[%s3488_s26 + $0x90] sm:$0xff] %v222_v18  ;;  %225 = vst [vmem:[%s3488_s26 + $0x98] sm:$0xff] %v224_v19  ;;  %v228_v21 = vld [vmem:[%s3483_s25 + $0x228] sm:$0xff]  ;;  %v230_v22 = vld [vmem:[%s3483_s25 + $0x230] sm:$0xff] }
  0x1d   : > { %227 = vst [vmem:[%s3488_s26 + $0xa0] sm:$0xff] %v226_v20  ;;  %v232_v23 = vld [vmem:[%s3483_s25 + $0x238] sm:$0xff]  ;;  %229 = vst [vmem:[%s3488_s26 + $0xa8] sm:$0xff] %v228_v21 }
  0x1e   : > { %231 = vst [vmem:[%s3488_s26 + $0xb0] sm:$0xff] %v230_v22  ;;  %233 = vst [vmem:[%s3488_s26 + $0xb8] sm:$0xff] %v232_v23 }
  0x1f PF: > { %p2694_p5 = scmp.ge.s32.totalorder %s3424_s14, 1  ;;  %p269_p6 = scmp.lt.s32.totalorder %s3424_s14, 6 }
  0x21   : > { %p270_p7 = pnand %p2694_p5, %p269_p6 }
  0x22   : > { %s276_s27 = sand.u32 (!%p270_p7), 1, %s3416_s12   ;;  %s324_s28 = smul.u32 (!%p270_p7), 384, %s3463_s15 }
  0x23   : > { %273 = sbr.rel (%p270_p7) target bundleno = 485 (0x1e5), region = 51  ;;  %p330_p8 = scmp.ge.s32.totalorder (!%p270_p7), %s3463_s15, 1 }
  0x24   : > { %s3184_s29 = smul.u32 (!%p270_p7), 192, %s276_s27  ;;  %p325_p9 = scmp.lt.s32.totalorder (!%p270_p7), %s324_s28, 1919 }
  0x25   : > { %p332_p10 = scmp.ge.s32.totalorder (!%p270_p7), %s3463_s15, 2  ;;  %p335_p11 = scmp.ge.s32.totalorder (!%p270_p7), %s3463_s15, 3 }
  0x26   : > { %p371_p12 = scmp.eq.s32.totalorder (!%p270_p7), %s3463_s15, 0  ;;  %p372_p13 = scmp.eq.s32.totalorder (!%p270_p7), %s3463_s15, 1 }
  0x27   : > { %p374_p1 = scmp.eq.s32.totalorder (!%p270_p7), %s3463_s15, 2  ;;  %p376_p3 = scmp.eq.s32.totalorder (!%p270_p7), %s3463_s15, 3 }
  0x28   : > { %p373_p0 = por (!%p270_p7), %p372_p13, %p371_p12  ;;  %p378_p5 = scmp.eq.s32.totalorder (!%p270_p7), %s3463_s15, 4 }
  0x29   : > { %s3568_s15 = scalar_lea.vmem (!%p270_p7), [#allocation3], %s3184_s29 }
  0x2a   : > { %s3818_s28 = smov (!%p325_p9, %s324_s28), 1919  ;;  %p375_p4 = por %p374_p1, %p373_p0 }
  0x2b   : > { %s331_s30 = scalar_select %p330_p8, 1, 0 }
  0x2c   : > { %s2695_s4 = sshll.u32 %s3818_s28, 2  ;;  %p377_p6 = por %p376_p3, %p375_p4 }
  0x2d   : > { %s3546_s7 = scalar_lea.vmem %s3810_s1, %s2695_s4  ;;  %p3554_p7 = por %p378_p5, %p375_p4  ;;  %vm383_vm0 = vcmask (%p377_p6), 523264   ;;  %v3426_v24 = vmov (%p377_p6), 0.0  }
  0x2e   : > { %s333_s8 = scalar_select %p332_p10, 1, 0 }
  0x2f   : > { %s336_s9 = scalar_select %p335_p11, 1, 0 }
  0x30   : > { %s334_s10 = sadd.s32 %s333_s8, %s331_s30  ;;  %382 = sbr.rel (!%p377_p6) target bundleno = 55 (0x37), region = 59  ;;  %384 = vst.msk [vmem:[#allocation2] sm:$0xff] (%p377_p6), %vm383_vm0, %v3426_v24  ;;  %385 = vst.msk [vmem:[#allocation2 + $0x8] sm:$0xff] (%p377_p6), %vm383_vm0, %v3426_v24 }
  0x31   : > { %s337_s11 = sadd.s32 %s336_s9, %s334_s10 }
  0x32   : > { %p338_p2 = scmp.lt.s32.totalorder %s337_s11, 3 }
  0x34   : > { %s3820_s11 = smov (!%p338_p2, %s337_s11), 3 }
  0x35   : > { %s340_s18 = scalar_lea.vmem %s3811_s2, %s3820_s11  ;;  %s2918_s20 = sshll.u32 %s3820_s11, 4 }
  0x36   : > { %s3566_s23 = scalar_lea.vmem %s3812_s3, %s2918_s20 }
  0x37 PF: > { %v3210_v25 = vld [vmem:[%s3546_s7 + $0x40] sm:$0xff]   ;;  %v3214_v29 = vld [vmem:[%s3546_s7 + $0x48] sm:$0xff]   ;;  %v3218_v33 = vld [vmem:[%s3546_s7 + $0x50] sm:$0xff]   ;;  %vm2562_vm1 = vcmask 523264  }
  0x38   : > { %v3211_v26 = vld [vmem:[%s3546_s7 + $0xc0] sm:$0xff]   ;;  %2919 = vmatprep.subr.bf16.mxu0 %v3210_v25  ;;  %v3215_v30 = vld [vmem:[%s3546_s7 + $0xc8] sm:$0xff]   ;;  %v3219_v34 = vld [vmem:[%s3546_s7 + $0xd0] sm:$0xff]  }
  0x39   : > { %v3212_v27 = vld [vmem:[%s3546_s7] sm:$0xff]   ;;  %2941 = vmatprep.subr.bf16.mxu1 %v3211_v26  ;;  %v3216_v31 = vld [vmem:[%s3546_s7 + $0x8] sm:$0xff]   ;;  %v3220_v35 = vld [vmem:[%s3546_s7 + $0x10] sm:$0xff]  }
  0x3a   : > { %v3213_v28 = vld [vmem:[%s3546_s7 + $0x80] sm:$0xff]   ;;  %2920 = vmatpush3.bf16.msra.mxu0 %v3212_v27  ;;  %v3217_v32 = vld [vmem:[%s3546_s7 + $0x88] sm:$0xff]   ;;  %v3221_v36 = vld [vmem:[%s3546_s7 + $0x90] sm:$0xff]  }
  0x3b   : > { %2942 = vmatpush3.bf16.msra.mxu1 %v3213_v28  ;;  %2921 = vmatprep.subr.bf16.mxu0 %v3214_v29  ;;  %v3222_v37 = vld [vmem:[%s3546_s7 + $0x58] sm:$0xff]   ;;  %v3226_v41 = vld [vmem:[%s3546_s7 + $0x60] sm:$0xff]   ;;  %v3230_v45 = vld [vmem:[%s3546_s7 + $0x68] sm:$0xff]  }
  0x3c   : > { %2943 = vmatprep.subr.bf16.mxu1 %v3215_v30  ;;  %v3223_v38 = vld [vmem:[%s3546_s7 + $0xd8] sm:$0xff]   ;;  %v3227_v42 = vld [vmem:[%s3546_s7 + $0xe0] sm:$0xff]   ;;  %v3231_v46 = vld [vmem:[%s3546_s7 + $0xe8] sm:$0xff]  }
  0x3d   : > { %v3224_v39 = vld [vmem:[%s3546_s7 + $0x18] sm:$0xff]   ;;  %v3228_v43 = vld [vmem:[%s3546_s7 + $0x20] sm:$0xff]   ;;  %v3232_v47 = vld [vmem:[%s3546_s7 + $0x28] sm:$0xff]  }
  0x3e   : > { %2922 = vmatpush3.bf16.msra.mxu0 %v3216_v31  ;;  %v3225_v40 = vld [vmem:[%s3546_s7 + $0x98] sm:$0xff]   ;;  %v3229_v44 = vld [vmem:[%s3546_s7 + $0xa0] sm:$0xff]   ;;  %v3233_v48 = vld [vmem:[%s3546_s7 + $0xa8] sm:$0xff]  }
  0x3f   : > { %2944 = vmatpush3.bf16.msra.mxu1 %v3217_v32  ;;  %2923 = vmatprep.subr.bf16.mxu0 %v3218_v33  ;;  %v3234_v49 = vld [vmem:[%s3546_s7 + $0x70] sm:$0xff]   ;;  %v3238_v53 = vld [vmem:[%s3546_s7 + $0x78] sm:$0xff]   ;;  %v3242_v1 = vld [vmem:[%s3546_s7 + $0x140] sm:$0xff]  }
  0x40   : > { %2945 = vmatprep.subr.bf16.mxu1 %v3219_v34  ;;  %v3235_v50 = vld [vmem:[%s3546_s7 + $0xf0] sm:$0xff]   ;;  %v3239_v54 = vld [vmem:[%s3546_s7 + $0xf8] sm:$0xff]   ;;  %v3243_v2 = vld [vmem:[%s3546_s7 + $0x1c0] sm:$0xff]  }
  0x41   : > { %v3236_v51 = vld [vmem:[%s3546_s7 + $0x30] sm:$0xff]   ;;  %v3240_v55 = vld [vmem:[%s3546_s7 + $0x38] sm:$0xff]   ;;  %v3244_v3 = vld [vmem:[%s3546_s7 + $0x100] sm:$0xff]  }
  0x42   : > { %2924 = vmatpush3.bf16.msra.mxu0 %v3220_v35  ;;  %v3237_v52 = vld [vmem:[%s3546_s7 + $0xb0] sm:$0xff]   ;;  %v3241_v56 = vld [vmem:[%s3546_s7 + $0xb8] sm:$0xff]   ;;  %v3245_v4 = vld [vmem:[%s3546_s7 + $0x180] sm:$0xff]  }
  0x43   : > { %2946 = vmatpush3.bf16.msra.mxu1 %v3221_v36  ;;  %2925 = vmatprep.subr.bf16.mxu0 %v3222_v37  ;;  %v388_v57 = vld [vmem:[%s3568_s15] sm:$0xff]  ;;  %v389_v59 = vld [vmem:[%s3568_s15 + $0x8] sm:$0xff]  ;;  %v3246_v5 = vld [vmem:[%s3546_s7 + $0x148] sm:$0xff]  }
  0x44   : > { %2947 = vmatprep.subr.bf16.mxu1 %v3223_v38  ;;  %v400_v58 = vld [vmem:[%s3568_s15 + $0x60] sm:$0xff]  ;;  %v401_v62 = vld [vmem:[%s3568_s15 + $0x68] sm:$0xff]  ;;  %v3247_v6 = vld [vmem:[%s3546_s7 + $0x1c8] sm:$0xff]  }
  0x45   : > { %v2698_v60 = vcombine.low %v388_v57, %v400_v58  ;;  %v2699_v61 = vcombine.high %v388_v57, %v400_v58  ;;  %v2700_v63 = vcombine.low %v389_v59, %v401_v62  ;;  %v2701_v0 = vcombine.high %v389_v59, %v401_v62  ;;  %v3248_v7 = vld [vmem:[%s3546_s7 + $0x108] sm:$0xff]   ;;  %v3250_v9 = vld [vmem:[%s3546_s7 + $0x150] sm:$0xff]   ;;  %v3254_v13 = vld [vmem:[%s3546_s7 + $0x158] sm:$0xff]  }
  0x46   : > { %2926 = vmatpush3.bf16.msra.mxu0 %v3224_v39  ;;  %v3249_v8 = vld [vmem:[%s3546_s7 + $0x188] sm:$0xff]   ;;  %v3251_v10 = vld [vmem:[%s3546_s7 + $0x1d0] sm:$0xff]   ;;  %v3255_v14 = vld [vmem:[%s3546_s7 + $0x1d8] sm:$0xff]  }
  0x47   : > { %2948 = vmatpush3.bf16.msra.mxu1 %v3225_v40  ;;  %2927 = vmatprep.subr.bf16.mxu0 %v3226_v41  ;;  %v3252_v11 = vld [vmem:[%s3546_s7 + $0x110] sm:$0xff]   ;;  %v3256_v15 = vld [vmem:[%s3546_s7 + $0x118] sm:$0xff]   ;;  %v3258_v17 = vld [vmem:[%s3546_s7 + $0x160] sm:$0xff]  }
  0x48   : > { %2949 = vmatprep.subr.bf16.mxu1 %v3227_v42  ;;  %2100 = vmatprep.mubr.bf16.mxu0 %v2699_v61  ;;  %v3253_v12 = vld [vmem:[%s3546_s7 + $0x190] sm:$0xff]   ;;  %v3257_v16 = vld [vmem:[%s3546_s7 + $0x198] sm:$0xff]   ;;  %v3259_v18 = vld [vmem:[%s3546_s7 + $0x1e0] sm:$0xff]  }
  0x49   : > { %2141 = vmatprep.mubr.bf16.mxu1 %v2701_v0  ;;  %v3260_v19 = vld [vmem:[%s3546_s7 + $0x120] sm:$0xff]   ;;  %v3262_v21 = vld [vmem:[%s3546_s7 + $0x168] sm:$0xff]   ;;  %v3266_v25 = vld [vmem:[%s3546_s7 + $0x170] sm:$0xff]  }
  0x4a   : > { %2928 = vmatpush3.bf16.msra.mxu0 %v3228_v43  ;;  %v3261_v20 = vld [vmem:[%s3546_s7 + $0x1a0] sm:$0xff]   ;;  %v3263_v22 = vld [vmem:[%s3546_s7 + $0x1e8] sm:$0xff]   ;;  %v3267_v26 = vld [vmem:[%s3546_s7 + $0x1f0] sm:$0xff]  }
  0x4b   : > { %2950 = vmatpush3.bf16.msra.mxu1 %v3229_v44  ;;  %2929 = vmatprep.subr.bf16.mxu0 %v3230_v45  ;;  %v3264_v23 = vld [vmem:[%s3546_s7 + $0x128] sm:$0xff]   ;;  %v3268_v27 = vld [vmem:[%s3546_s7 + $0x130] sm:$0xff]   ;;  %v3270_v29 = vld [vmem:[%s3546_s7 + $0x178] sm:$0xff]  }
  0x4c   : > { %2951 = vmatprep.subr.bf16.mxu1 %v3231_v46  ;;  %v3265_v24 = vld [vmem:[%s3546_s7 + $0x1a8] sm:$0xff]   ;;  %v3269_v28 = vld [vmem:[%s3546_s7 + $0x1b0] sm:$0xff]   ;;  %v3271_v30 = vld [vmem:[%s3546_s7 + $0x1f8] sm:$0xff]  }
  0x4d   : > { %v3272_v31 = vld [vmem:[%s3546_s7 + $0x138] sm:$0xff]   ;;  %v390_v33 = vld [vmem:[%s3568_s15 + $0x10] sm:$0xff]  ;;  %v391_v37 = vld [vmem:[%s3568_s15 + $0x18] sm:$0xff] }
  0x4e   : > { %2930 = vmatpush3.bf16.msra.mxu0 %v3232_v47  ;;  %v3273_v32 = vld [vmem:[%s3546_s7 + $0x1b8] sm:$0xff]   ;;  %v402_v34 = vld [vmem:[%s3568_s15 + $0x70] sm:$0xff]  ;;  %v403_v38 = vld [vmem:[%s3568_s15 + $0x78] sm:$0xff] }
  0x4f   : > { %2952 = vmatpush3.bf16.msra.mxu1 %v3233_v48  ;;  %2931 = vmatprep.subr.bf16.mxu0 %v3234_v49  ;;  %v2702_v35 = vcombine.low %v390_v33, %v402_v34  ;;  %v2703_v36 = vcombine.high %v390_v33, %v402_v34  ;;  %v2704_v39 = vcombine.low %v391_v37, %v403_v38  ;;  %v3274_v41 = vld [vmem:[%s3546_s7 + $0x240] sm:$0xff]   ;;  %v3278_v45 = vld [vmem:[%s3546_s7 + $0x248] sm:$0xff]   ;;  %v3282_v49 = vld [vmem:[%s3546_s7 + $0x250] sm:$0xff]  }
  0x50   : > { %2953 = vmatprep.subr.bf16.mxu1 %v3235_v50  ;;  %v2705_v40 = vcombine.high %v391_v37, %v403_v38  ;;  %v3275_v42 = vld [vmem:[%s3546_s7 + $0x2c0] sm:$0xff]   ;;  %v3279_v46 = vld [vmem:[%s3546_s7 + $0x2c8] sm:$0xff]   ;;  %v3283_v50 = vld [vmem:[%s3546_s7 + $0x2d0] sm:$0xff]  }
  0x51   : > { %v3276_v43 = vld [vmem:[%s3546_s7 + $0x200] sm:$0xff]   ;;  %v3280_v47 = vld [vmem:[%s3546_s7 + $0x208] sm:$0xff]  }
  0x52   : > { %2932 = vmatpush3.bf16.msra.mxu0 %v3236_v51  ;;  %v3277_v44 = vld [vmem:[%s3546_s7 + $0x280] sm:$0xff]   ;;  %v3281_v48 = vld [vmem:[%s3546_s7 + $0x288] sm:$0xff]   ;;  %v3284_v51 = vld [vmem:[%s3546_s7 + $0x210] sm:$0xff]  }
  0x53   : > { %2954 = vmatpush3.bf16.msra.mxu1 %v3237_v52  ;;  %2933 = vmatprep.subr.bf16.mxu0 %v3238_v53  ;;  %v3285_v52 = vld [vmem:[%s3546_s7 + $0x290] sm:$0xff]   ;;  %v3286_v53 = vld [vmem:[%s3546_s7 + $0x258] sm:$0xff]   ;;  %v3290_v57 = vld [vmem:[%s3546_s7 + $0x260] sm:$0xff]  }
  0x54   : > { %2955 = vmatprep.subr.bf16.mxu1 %v3239_v54  ;;  %v3287_v54 = vld [vmem:[%s3546_s7 + $0x2d8] sm:$0xff]   ;;  %v3291_v58 = vld [vmem:[%s3546_s7 + $0x2e0] sm:$0xff]   ;;  %v3294_v61 = vld [vmem:[%s3546_s7 + $0x268] sm:$0xff]  }
  0x55   : > { %v3292_v59 = vld [vmem:[%s3546_s7 + $0x220] sm:$0xff]   ;;  %v3295_v62 = vld [vmem:[%s3546_s7 + $0x2e8] sm:$0xff]  }
  0x56   : > { %2934 = vmatpush3.bf16.msra.mxu0 %v3240_v55  ;;  %v3288_v55 = vld [vmem:[%s3546_s7 + $0x218] sm:$0xff]   ;;  %v3297_v0 = vld [vmem:[%s3546_s7 + $0x2a8] sm:$0xff]   ;;  %v3322_v33 = vld [vmem:[%s3546_s7 + $0x360] sm:$0xff]  }
  0x57   : > { %2956 = vmatpush3.bf16.msra.mxu1 %v3241_v56  ;;  %2963 = vmatprep.subr.bf16.mxu0 %v3242_v1  ;;  %v3289_v56 = vld [vmem:[%s3546_s7 + $0x298] sm:$0xff]   ;;  %v3298_v1 = vld [vmem:[%s3546_s7 + $0x270] sm:$0xff]   ;;  %v3323_v34 = vld [vmem:[%s3546_s7 + $0x3e0] sm:$0xff]  }
  0x58   : > { %2985 = vmatprep.subr.bf16.mxu1 %v3243_v2  ;;  %v3299_v2 = vld [vmem:[%s3546_s7 + $0x2f0] sm:$0xff]   ;;  %v3326_v37 = vld [vmem:[%s3546_s7 + $0x368] sm:$0xff]  }
  0x59   : > { %2101 = vmatmul.mubr.bf16.vlgmr.msra.gmra.mrb[0].mxu0 %v2698_v60  ;;  %v3293_v60 = vld [vmem:[%s3546_s7 + $0x2a0] sm:$0xff]   ;;  %v3327_v38 = vld [vmem:[%s3546_s7 + $0x3e8] sm:$0xff]  }
  0x5a   : > { %2142 = vmatmul.mubr.bf16.vlgmr.msra.gmra.mrb[0].mxu1 %v2700_v63  ;;  %2964 = vmatpush3.bf16.msra.mxu0 %v3244_v3  ;;  %v3296_v63 = vld [vmem:[%s3546_s7 + $0x228] sm:$0xff]   ;;  %v3300_v3 = vld [vmem:[%s3546_s7 + $0x230] sm:$0xff]  }
  0x5b   : > { %2986 = vmatpush3.bf16.msra.mxu1 %v3245_v4  ;;  %2965 = vmatprep.subr.bf16.mxu0 %v3246_v5  ;;  %v3301_v4 = vld [vmem:[%s3546_s7 + $0x2b0] sm:$0xff]   ;;  %v3302_v5 = vld [vmem:[%s3546_s7 + $0x278] sm:$0xff]  }
  0x5c   : > { %2987 = vmatprep.subr.bf16.mxu1 %v3247_v6  ;;  %2182 = vmatprep.mubr.bf16.mxu0 %v2703_v36  ;;  %v3303_v6 = vld [vmem:[%s3546_s7 + $0x2f8] sm:$0xff]   ;;  %v3325_v36 = vld [vmem:[%s3546_s7 + $0x3a0] sm:$0xff]  }
  0x5d   : > { %2223 = vmatprep.mubr.bf16.mxu1 %v2705_v40  ;;  %v3329_v40 = vld [vmem:[%s3546_s7 + $0x3a8] sm:$0xff]  }
  0x5e   : > { %2966 = vmatpush3.bf16.msra.mxu0 %v3248_v7  ;;  %v3304_v7 = vld [vmem:[%s3546_s7 + $0x238] sm:$0xff]  }
  0x5f   : > { %2988 = vmatpush3.bf16.msra.mxu1 %v3249_v8  ;;  %2967 = vmatprep.subr.bf16.mxu0 %v3250_v9  ;;  %v3305_v8 = vld [vmem:[%s3546_s7 + $0x2b8] sm:$0xff]   ;;  %v392_v9 = vld [vmem:[%s3568_s15 + $0x20] sm:$0xff] }
  0x60   : > { %2989 = vmatprep.subr.bf16.mxu1 %v3251_v10  ;;  %v404_v10 = vld [vmem:[%s3568_s15 + $0x80] sm:$0xff] }
  0x62   : > { %2968 = vmatpush3.bf16.msra.mxu0 %v3252_v11  ;;  %v393_v11 = vld [vmem:[%s3568_s15 + $0x28] sm:$0xff] }
  0x63   : > { %2990 = vmatpush3.bf16.msra.mxu1 %v3253_v12  ;;  %2969 = vmatprep.subr.bf16.mxu0 %v3254_v13  ;;  %v405_v12 = vld [vmem:[%s3568_s15 + $0x88] sm:$0xff]  ;;  %v2706_v13 = vcombine.low %v392_v9, %v404_v10 }
  0x64   : > { %2991 = vmatprep.subr.bf16.mxu1 %v3255_v14  ;;  %v2707_v14 = vcombine.high %v392_v9, %v404_v10  ;;  %v3354_v9 = vld [vmem:[%s3546_s7 + $0x460] sm:$0xff]  }
  0x65   : > { %v3355_v10 = vld [vmem:[%s3546_s7 + $0x4e0] sm:$0xff]  }
  0x66   : > { %2970 = vmatpush3.bf16.msra.mxu0 %v3256_v15  ;;  %v2708_v15 = vcombine.low %v393_v11, %v405_v12 }
  0x67   : > { %2992 = vmatpush3.bf16.msra.mxu1 %v3257_v16  ;;  %2971 = vmatprep.subr.bf16.mxu0 %v3258_v17  ;;  %v2709_v16 = vcombine.high %v393_v11, %v405_v12  ;;  %v3306_v17 = vld [vmem:[%s3546_s7 + $0x340] sm:$0xff]  }
  0x68   : > { %2993 = vmatprep.subr.bf16.mxu1 %v3259_v18  ;;  %v3307_v18 = vld [vmem:[%s3546_s7 + $0x3c0] sm:$0xff]  }
  0x69   : > { %v3356_v11 = vld [vmem:[%s3546_s7 + $0x420] sm:$0xff]  }
  0x6a   : > { %2972 = vmatpush3.bf16.msra.mxu0 %v3260_v19  ;;  %v3308_v19 = vld [vmem:[%s3546_s7 + $0x300] sm:$0xff]  }
  0x6b   : > { %2994 = vmatpush3.bf16.msra.mxu1 %v3261_v20  ;;  %2973 = vmatprep.subr.bf16.mxu0 %v3262_v21  ;;  %v3309_v20 = vld [vmem:[%s3546_s7 + $0x380] sm:$0xff]   ;;  %v3310_v21 = vld [vmem:[%s3546_s7 + $0x348] sm:$0xff]  }
  0x6c   : > { %2995 = vmatprep.subr.bf16.mxu1 %v3263_v22  ;;  %v3311_v22 = vld [vmem:[%s3546_s7 + $0x3c8] sm:$0xff]   ;;  %v3357_v12 = vld [vmem:[%s3546_s7 + $0x4a0] sm:$0xff]  }
  0x6e   : > { %2974 = vmatpush3.bf16.msra.mxu0 %v3264_v23  ;;  %v3312_v23 = vld [vmem:[%s3546_s7 + $0x308] sm:$0xff]  }
  0x6f   : > { %2996 = vmatpush3.bf16.msra.mxu1 %v3265_v24  ;;  %2975 = vmatprep.subr.bf16.mxu0 %v3266_v25  ;;  %v3313_v24 = vld [vmem:[%s3546_s7 + $0x388] sm:$0xff]   ;;  %v3314_v25 = vld [vmem:[%s3546_s7 + $0x350] sm:$0xff]  }
  0x70   : > { %2997 = vmatprep.subr.bf16.mxu1 %v3267_v26  ;;  %v3315_v26 = vld [vmem:[%s3546_s7 + $0x3d0] sm:$0xff]  }
  0x72   : > { %2976 = vmatpush3.bf16.msra.mxu0 %v3268_v27  ;;  %v3316_v27 = vld [vmem:[%s3546_s7 + $0x310] sm:$0xff]  }
  0x73   : > { %2998 = vmatpush3.bf16.msra.mxu1 %v3269_v28  ;;  %2977 = vmatprep.subr.bf16.mxu0 %v3270_v29  ;;  %v3317_v28 = vld [vmem:[%s3546_s7 + $0x390] sm:$0xff]   ;;  %v3318_v29 = vld [vmem:[%s3546_s7 + $0x358] sm:$0xff]  }
  0x74   : > { %2999 = vmatprep.subr.bf16.mxu1 %v3271_v30  ;;  %v3319_v30 = vld [vmem:[%s3546_s7 + $0x3d8] sm:$0xff]  }
  0x76   : > { %2978 = vmatpush3.bf16.msra.mxu0 %v3272_v31  ;;  %v3320_v31 = vld [vmem:[%s3546_s7 + $0x318] sm:$0xff]  }
  0x77   : > { %3000 = vmatpush3.bf16.msra.mxu1 %v3273_v32  ;;  %3007 = vmatprep.subr.bf16.mxu0 %v3274_v41  ;;  %v3321_v32 = vld [vmem:[%s3546_s7 + $0x398] sm:$0xff]   ;;  %v3330_v41 = vld [vmem:[%s3546_s7 + $0x370] sm:$0xff]  }
  0x78   : > { %3029 = vmatprep.subr.bf16.mxu1 %v3275_v42  ;;  %v3331_v42 = vld [vmem:[%s3546_s7 + $0x3f0] sm:$0xff]  }
  0x79   : > { %2183 = vmatmul.mubr.bf16.vlgmr.msra.gmra.mrb[4].mxu0 %v2702_v35  ;;  %v3324_v35 = vld [vmem:[%s3546_s7 + $0x320] sm:$0xff]  }
  0x7a   : > { %2224 = vmatmul.mubr.bf16.vlgmr.msra.gmra.mrb[4].mxu1 %v2704_v39  ;;  %3008 = vmatpush3.bf16.msra.mxu0 %v3276_v43  ;;  %v3328_v39 = vld [vmem:[%s3546_s7 + $0x328] sm:$0xff]   ;;  %v3332_v43 = vld [vmem:[%s3546_s7 + $0x330] sm:$0xff]  }
  0x7b   : > { %3030 = vmatpush3.bf16.msra.mxu1 %v3277_v44  ;;  %3009 = vmatprep.subr.bf16.mxu0 %v3278_v45  ;;  %v3333_v44 = vld [vmem:[%s3546_s7 + $0x3b0] sm:$0xff]   ;;  %v3334_v45 = vld [vmem:[%s3546_s7 + $0x378] sm:$0xff]  }
  0x7c   : > { %3031 = vmatprep.subr.bf16.mxu1 %v3279_v46  ;;  %2264 = vmatprep.mubr.bf16.mxu0 %v2707_v14  ;;  %v3335_v46 = vld [vmem:[%s3546_s7 + $0x3f8] sm:$0xff]   ;;  %v3359_v14 = vld [vmem:[%s3546_s7 + $0x4e8] sm:$0xff]  }
  0x7d   : > { %2305 = vmatprep.mubr.bf16.mxu1 %v2709_v16  ;;  %v3361_v16 = vld [vmem:[%s3546_s7 + $0x4a8] sm:$0xff]  }
  0x7e   : > { %3010 = vmatpush3.bf16.msra.mxu0 %v3280_v47  ;;  %v3336_v47 = vld [vmem:[%s3546_s7 + $0x338] sm:$0xff]  }
  0x7f   : > { %3032 = vmatpush3.bf16.msra.mxu1 %v3281_v48  ;;  %3011 = vmatprep.subr.bf16.mxu0 %v3282_v49  ;;  %v3337_v48 = vld [vmem:[%s3546_s7 + $0x3b8] sm:$0xff]   ;;  %v394_v49 = vld [vmem:[%s3568_s15 + $0x30] sm:$0xff] }
  0x80   : > { %3033 = vmatprep.subr.bf16.mxu1 %v3283_v50  ;;  %v406_v50 = vld [vmem:[%s3568_s15 + $0x90] sm:$0xff] }
  0x82   : > { %3012 = vmatpush3.bf16.msra.mxu0 %v3284_v51  ;;  %v395_v51 = vld [vmem:[%s3568_s15 + $0x38] sm:$0xff] }
  0x83   : > { %3034 = vmatpush3.bf16.msra.mxu1 %v3285_v52  ;;  %3013 = vmatprep.subr.bf16.mxu0 %v3286_v53  ;;  %v2710_v52 = vcombine.low %v394_v49, %v406_v50  ;;  %v2711_v53 = vcombine.high %v394_v49, %v406_v50  ;;  %v3386_v49 = vld [vmem:[%s3546_s7 + $0x560] sm:$0xff]  }
  0x84   : > { %3035 = vmatprep.subr.bf16.mxu1 %v3287_v54  ;;  %v407_v54 = vld [vmem:[%s3568_s15 + $0x98] sm:$0xff]  ;;  %v3387_v50 = vld [vmem:[%s3546_s7 + $0x5e0] sm:$0xff]  }
  0x86   : > { %3014 = vmatpush3.bf16.msra.mxu0 %v3288_v55  ;;  %v2712_v55 = vcombine.low %v395_v51, %v407_v54 }
  0x87   : > { %3036 = vmatpush3.bf16.msra.mxu1 %v3289_v56  ;;  %3015 = vmatprep.subr.bf16.mxu0 %v3290_v57  ;;  %v2713_v56 = vcombine.high %v395_v51, %v407_v54  ;;  %v3338_v57 = vld [vmem:[%s3546_s7 + $0x440] sm:$0xff]   ;;  %v3391_v54 = vld [vmem:[%s3546_s7 + $0x5e8] sm:$0xff]  }
  0x88   : > { %3037 = vmatprep.subr.bf16.mxu1 %v3291_v58  ;;  %v3339_v58 = vld [vmem:[%s3546_s7 + $0x4c0] sm:$0xff]  }
  0x89   : > { %v3388_v51 = vld [vmem:[%s3546_s7 + $0x520] sm:$0xff]  }
  0x8a   : > { %3016 = vmatpush3.bf16.msra.mxu0 %v3292_v59  ;;  %v3340_v59 = vld [vmem:[%s3546_s7 + $0x400] sm:$0xff]  }
  0x8b   : > { %3038 = vmatpush3.bf16.msra.mxu1 %v3293_v60  ;;  %3017 = vmatprep.subr.bf16.mxu0 %v3294_v61  ;;  %v3341_v60 = vld [vmem:[%s3546_s7 + $0x480] sm:$0xff]   ;;  %v3342_v61 = vld [vmem:[%s3546_s7 + $0x448] sm:$0xff]  }
  0x8c   : > { %3039 = vmatprep.subr.bf16.mxu1 %v3295_v62  ;;  %v3343_v62 = vld [vmem:[%s3546_s7 + $0x4c8] sm:$0xff]  }
  0x8e   : > { %3018 = vmatpush3.bf16.msra.mxu0 %v3296_v63  ;;  %v3344_v63 = vld [vmem:[%s3546_s7 + $0x408] sm:$0xff]  }
  0x8f   : > { %3040 = vmatpush3.bf16.msra.mxu1 %v3297_v0  ;;  %3019 = vmatprep.subr.bf16.mxu0 %v3298_v1  ;;  %v3345_v0 = vld [vmem:[%s3546_s7 + $0x488] sm:$0xff]   ;;  %v3346_v1 = vld [vmem:[%s3546_s7 + $0x450] sm:$0xff]  }
  0x90   : > { %3041 = vmatprep.subr.bf16.mxu1 %v3299_v2  ;;  %v3347_v2 = vld [vmem:[%s3546_s7 + $0x4d0] sm:$0xff]  }
  0x92   : > { %3020 = vmatpush3.bf16.msra.mxu0 %v3300_v3  ;;  %v3348_v3 = vld [vmem:[%s3546_s7 + $0x410] sm:$0xff]  }
  0x93   : > { %3042 = vmatpush3.bf16.msra.mxu1 %v3301_v4  ;;  %3021 = vmatprep.subr.bf16.mxu0 %v3302_v5  ;;  %v3349_v4 = vld [vmem:[%s3546_s7 + $0x490] sm:$0xff]   ;;  %v3350_v5 = vld [vmem:[%s3546_s7 + $0x458] sm:$0xff]  }
  0x94   : > { %3043 = vmatprep.subr.bf16.mxu1 %v3303_v6  ;;  %v3351_v6 = vld [vmem:[%s3546_s7 + $0x4d8] sm:$0xff]  }
  0x96   : > { %3022 = vmatpush3.bf16.msra.mxu0 %v3304_v7  ;;  %v3352_v7 = vld [vmem:[%s3546_s7 + $0x418] sm:$0xff]  }
  0x97   : > { %3044 = vmatpush3.bf16.msra.mxu1 %v3305_v8  ;;  %3051 = vmatprep.subr.bf16.mxu0 %v3306_v17  ;;  %v3353_v8 = vld [vmem:[%s3546_s7 + $0x498] sm:$0xff]   ;;  %v3362_v17 = vld [vmem:[%s3546_s7 + $0x470] sm:$0xff]  }
  0x98   : > { %3073 = vmatprep.subr.bf16.mxu1 %v3307_v18  ;;  %v3363_v18 = vld [vmem:[%s3546_s7 + $0x4f0] sm:$0xff]  }
  0x99   : > { %2265 = vmatmul.mubr.bf16.vlgmr.msra.gmra.mrb[8].mxu0 %v2706_v13  ;;  %v3358_v13 = vld [vmem:[%s3546_s7 + $0x468] sm:$0xff]  }
  0x9a   : > { %2306 = vmatmul.mubr.bf16.vlgmr.msra.gmra.mrb[8].mxu1 %v2708_v15  ;;  %3052 = vmatpush3.bf16.msra.mxu0 %v3308_v19  ;;  %v3360_v15 = vld [vmem:[%s3546_s7 + $0x428] sm:$0xff]   ;;  %v3364_v19 = vld [vmem:[%s3546_s7 + $0x430] sm:$0xff]  }
  0x9b   : > { %3074 = vmatpush3.bf16.msra.mxu1 %v3309_v20  ;;  %3053 = vmatprep.subr.bf16.mxu0 %v3310_v21  ;;  %v3365_v20 = vld [vmem:[%s3546_s7 + $0x4b0] sm:$0xff]   ;;  %v3366_v21 = vld [vmem:[%s3546_s7 + $0x478] sm:$0xff]  }
  0x9c   : > { %3075 = vmatprep.subr.bf16.mxu1 %v3311_v22  ;;  %2346 = vmatprep.mubr.bf16.mxu0 %v2711_v53  ;;  %v3367_v22 = vld [vmem:[%s3546_s7 + $0x4f8] sm:$0xff]   ;;  %v3390_v53 = vld [vmem:[%s3546_s7 + $0x568] sm:$0xff]  }
  0x9d   : > { %2387 = vmatprep.mubr.bf16.mxu1 %v2713_v56  ;;  %v3393_v56 = vld [vmem:[%s3546_s7 + $0x5a8] sm:$0xff]  }
  0x9e   : > { %3054 = vmatpush3.bf16.msra.mxu0 %v3312_v23  ;;  %v3368_v23 = vld [vmem:[%s3546_s7 + $0x438] sm:$0xff]  }
  0x9f   : > { %3076 = vmatpush3.bf16.msra.mxu1 %v3313_v24  ;;  %3055 = vmatprep.subr.bf16.mxu0 %v3314_v25  ;;  %v3369_v24 = vld [vmem:[%s3546_s7 + $0x4b8] sm:$0xff]   ;;  %v396_v25 = vld [vmem:[%s3568_s15 + $0x40] sm:$0xff] }
  0xa0   : > { %3077 = vmatprep.subr.bf16.mxu1 %v3315_v26  ;;  %v408_v26 = vld [vmem:[%s3568_s15 + $0xa0] sm:$0xff] }
  0xa2   : > { %3056 = vmatpush3.bf16.msra.mxu0 %v3316_v27  ;;  %v2714_v27 = vcombine.low %v396_v25, %v408_v26 }
  0xa3   : > { %3078 = vmatpush3.bf16.msra.mxu1 %v3317_v28  ;;  %3057 = vmatprep.subr.bf16.mxu0 %v3318_v29  ;;  %v2715_v28 = vcombine.high %v396_v25, %v408_v26  ;;  %v397_v29 = vld [vmem:[%s3568_s15 + $0x48] sm:$0xff] }
  0xa4   : > { %3079 = vmatprep.subr.bf16.mxu1 %v3319_v30  ;;  %v409_v30 = vld [vmem:[%s3568_s15 + $0xa8] sm:$0xff] }
  0xa6   : > { %3058 = vmatpush3.bf16.msra.mxu0 %v3320_v31  ;;  %v2716_v31 = vcombine.low %v397_v29, %v409_v30 }
  0xa7   : > { %3080 = vmatpush3.bf16.msra.mxu1 %v3321_v32  ;;  %3059 = vmatprep.subr.bf16.mxu0 %v3322_v33  ;;  %v2717_v32 = vcombine.high %v397_v29, %v409_v30  ;;  %v3370_v33 = vld [vmem:[%s3546_s7 + $0x540] sm:$0xff]  }
  0xa8   : > { %3081 = vmatprep.subr.bf16.mxu1 %v3323_v34  ;;  %v3371_v34 = vld [vmem:[%s3546_s7 + $0x5c0] sm:$0xff]  }
  0xaa   : > { %3060 = vmatpush3.bf16.msra.mxu0 %v3324_v35  ;;  %v3372_v35 = vld [vmem:[%s3546_s7 + $0x500] sm:$0xff]  }
  0xab   : > { %3082 = vmatpush3.bf16.msra.mxu1 %v3325_v36  ;;  %3061 = vmatprep.subr.bf16.mxu0 %v3326_v37  ;;  %v3373_v36 = vld [vmem:[%s3546_s7 + $0x580] sm:$0xff]   ;;  %v3374_v37 = vld [vmem:[%s3546_s7 + $0x548] sm:$0xff]  }
  0xac   : > { %3083 = vmatprep.subr.bf16.mxu1 %v3327_v38  ;;  %v3375_v38 = vld [vmem:[%s3546_s7 + $0x5c8] sm:$0xff]  }
  0xae   : > { %3062 = vmatpush3.bf16.msra.mxu0 %v3328_v39  ;;  %v3376_v39 = vld [vmem:[%s3546_s7 + $0x508] sm:$0xff]  }
  0xaf   : > { %3084 = vmatpush3.bf16.msra.mxu1 %v3329_v40  ;;  %3063 = vmatprep.subr.bf16.mxu0 %v3330_v41  ;;  %v3377_v40 = vld [vmem:[%s3546_s7 + $0x588] sm:$0xff]   ;;  %v3378_v41 = vld [vmem:[%s3546_s7 + $0x550] sm:$0xff]  }
  0xb0   : > { %3085 = vmatprep.subr.bf16.mxu1 %v3331_v42  ;;  %v3379_v42 = vld [vmem:[%s3546_s7 + $0x5d0] sm:$0xff]  }
  0xb2   : > { %3064 = vmatpush3.bf16.msra.mxu0 %v3332_v43  ;;  %v3380_v43 = vld [vmem:[%s3546_s7 + $0x510] sm:$0xff]  }
  0xb3   : > { %3086 = vmatpush3.bf16.msra.mxu1 %v3333_v44  ;;  %3065 = vmatprep.subr.bf16.mxu0 %v3334_v45  ;;  %v3381_v44 = vld [vmem:[%s3546_s7 + $0x590] sm:$0xff]   ;;  %v3382_v45 = vld [vmem:[%s3546_s7 + $0x558] sm:$0xff]  }
  0xb4   : > { %3087 = vmatprep.subr.bf16.mxu1 %v3335_v46  ;;  %v3383_v46 = vld [vmem:[%s3546_s7 + $0x5d8] sm:$0xff]  }
  0xb6   : > { %3066 = vmatpush3.bf16.msra.mxu0 %v3336_v47  ;;  %v3384_v47 = vld [vmem:[%s3546_s7 + $0x518] sm:$0xff]  }
  0xb7   : > { %3088 = vmatpush3.bf16.msra.mxu1 %v3337_v48  ;;  %3095 = vmatprep.subr.bf16.mxu0 %v3338_v57  ;;  %v3385_v48 = vld [vmem:[%s3546_s7 + $0x598] sm:$0xff]   ;;  %v3394_v57 = vld [vmem:[%s3546_s7 + $0x570] sm:$0xff]  }
  0xb8   : > { %3117 = vmatprep.subr.bf16.mxu1 %v3339_v58  ;;  %v3395_v58 = vld [vmem:[%s3546_s7 + $0x5f0] sm:$0xff]  }
  0xb9   : > { %2347 = vmatmul.mubr.bf16.vlgmr.msra.gmra.mrb[12].mxu0 %v2710_v52  ;;  %v3389_v52 = vld [vmem:[%s3546_s7 + $0x5a0] sm:$0xff]  }
  0xba   : > { %2388 = vmatmul.mubr.bf16.vlgmr.msra.gmra.mrb[12].mxu1 %v2712_v55  ;;  %3096 = vmatpush3.bf16.msra.mxu0 %v3340_v59  ;;  %v3392_v55 = vld [vmem:[%s3546_s7 + $0x528] sm:$0xff]   ;;  %v3396_v59 = vld [vmem:[%s3546_s7 + $0x530] sm:$0xff]  }
  0xbb   : > { %3118 = vmatpush3.bf16.msra.mxu1 %v3341_v60  ;;  %3097 = vmatprep.subr.bf16.mxu0 %v3342_v61  ;;  %v3397_v60 = vld [vmem:[%s3546_s7 + $0x5b0] sm:$0xff]   ;;  %v3398_v61 = vld [vmem:[%s3546_s7 + $0x578] sm:$0xff]  }
  0xbc   : > { %3119 = vmatprep.subr.bf16.mxu1 %v3343_v62  ;;  %2428 = vmatprep.mubr.bf16.mxu0 %v2715_v28  ;;  %v3399_v62 = vld [vmem:[%s3546_s7 + $0x5f8] sm:$0xff]  }
  0xbd   : > { %2469 = vmatprep.mubr.bf16.mxu1 %v2717_v32 }
  0xbe   : > { %3098 = vmatpush3.bf16.msra.mxu0 %v3344_v63  ;;  %v3400_v63 = vld [vmem:[%s3546_s7 + $0x538] sm:$0xff]  }
  0xbf   : > { %3120 = vmatpush3.bf16.msra.mxu1 %v3345_v0  ;;  %3099 = vmatprep.subr.bf16.mxu0 %v3346_v1  ;;  %v3401_v0 = vld [vmem:[%s3546_s7 + $0x5b8] sm:$0xff]   ;;  %v398_v1 = vld [vmem:[%s3568_s15 + $0x50] sm:$0xff] }
  0xc0   : > { %3121 = vmatprep.subr.bf16.mxu1 %v3347_v2  ;;  %v410_v2 = vld [vmem:[%s3568_s15 + $0xb0] sm:$0xff] }
  0xc2   : > { %3100 = vmatpush3.bf16.msra.mxu0 %v3348_v3  ;;  %v399_v3 = vld [vmem:[%s3568_s15 + $0x58] sm:$0xff] }
  0xc3   : > { %3122 = vmatpush3.bf16.msra.mxu1 %v3349_v4  ;;  %3101 = vmatprep.subr.bf16.mxu0 %v3350_v5  ;;  %v411_v4 = vld [vmem:[%s3568_s15 + $0xb8] sm:$0xff]  ;;  %v2718_v5 = vcombine.low %v398_v1, %v410_v2 }
  0xc4   : > { %3123 = vmatprep.subr.bf16.mxu1 %v3351_v6  ;;  %v2719_v6 = vcombine.high %v398_v1, %v410_v2 }
  0xc6   : > { %3102 = vmatpush3.bf16.msra.mxu0 %v3352_v7  ;;  %v2720_v7 = vcombine.low %v399_v3, %v411_v4 }
  0xc7   : > { %3124 = vmatpush3.bf16.msra.mxu1 %v3353_v8  ;;  %3103 = vmatprep.subr.bf16.mxu0 %v3354_v9  ;;  %v2721_v8 = vcombine.high %v399_v3, %v411_v4 }
  0xc8   : > { %3125 = vmatprep.subr.bf16.mxu1 %v3355_v10 }
  0xca   : > { %3104 = vmatpush3.bf16.msra.mxu0 %v3356_v11 }
  0xcb   : > { %3126 = vmatpush3.bf16.msra.mxu1 %v3357_v12  ;;  %3105 = vmatprep.subr.bf16.mxu0 %v3358_v13 }
  0xcc   : > { %3127 = vmatprep.subr.bf16.mxu1 %v3359_v14 }
  0xce   : > { %3106 = vmatpush3.bf16.msra.mxu0 %v3360_v15 }
  0xcf   : > { %3128 = vmatpush3.bf16.msra.mxu1 %v3361_v16  ;;  %3107 = vmatprep.subr.bf16.mxu0 %v3362_v17 }
  0xd0   : > { %3129 = vmatprep.subr.bf16.mxu1 %v3363_v18 }
  0xd2   : > { %3108 = vmatpush3.bf16.msra.mxu0 %v3364_v19 }
  0xd3   : > { %3130 = vmatpush3.bf16.msra.mxu1 %v3365_v20  ;;  %3109 = vmatprep.subr.bf16.mxu0 %v3366_v21 }
  0xd4   : > { %3131 = vmatprep.subr.bf16.mxu1 %v3367_v22 }
  0xd6   : > { %3110 = vmatpush3.bf16.msra.mxu0 %v3368_v23 }
  0xd7   : > { %3132 = vmatpush3.bf16.msra.mxu1 %v3369_v24  ;;  %3139 = vmatprep.subr.bf16.mxu0 %v3370_v33 }
  0xd8   : > { %3161 = vmatprep.subr.bf16.mxu1 %v3371_v34 }
  0xd9   : > { %2429 = vmatmul.mubr.bf16.vlgmr.msra.gmra.mrb[16].mxu0 %v2714_v27 }
  0xda   : > { %2470 = vmatmul.mubr.bf16.vlgmr.msra.gmra.mrb[16].mxu1 %v2716_v31  ;;  %3140 = vmatpush3.bf16.msra.mxu0 %v3372_v35 }
  0xdb   : > { %3162 = vmatpush3.bf16.msra.mxu1 %v3373_v36  ;;  %3141 = vmatprep.subr.bf16.mxu0 %v3374_v37 }
  0xdc   : > { %3163 = vmatprep.subr.bf16.mxu1 %v3375_v38  ;;  %2510 = vmatprep.mubr.bf16.mxu0 %v2719_v6 }
  0xdd   : > { %2551 = vmatprep.mubr.bf16.mxu1 %v2721_v8 }
  0xde   : > { %3142 = vmatpush3.bf16.msra.mxu0 %v3376_v39 }
  0xdf   : > { %3164 = vmatpush3.bf16.msra.mxu1 %v3377_v40  ;;  %3143 = vmatprep.subr.bf16.mxu0 %v3378_v41 }
  0xe0   : > { %3165 = vmatprep.subr.bf16.mxu1 %v3379_v42 }
  0xe2   : > { %3144 = vmatpush3.bf16.msra.mxu0 %v3380_v43 }
  0xe3   : > { %3166 = vmatpush3.bf16.msra.mxu1 %v3381_v44  ;;  %3145 = vmatprep.subr.bf16.mxu0 %v3382_v45 }
  0xe4   : > { %3167 = vmatprep.subr.bf16.mxu1 %v3383_v46 }
  0xe6   : > { %3146 = vmatpush3.bf16.msra.mxu0 %v3384_v47 }
  0xe7   : > { %3168 = vmatpush3.bf16.msra.mxu1 %v3385_v48  ;;  %3147 = vmatprep.subr.bf16.mxu0 %v3386_v49 }
  0xe8   : > { %3169 = vmatprep.subr.bf16.mxu1 %v3387_v50 }
  0xea   : > { %3148 = vmatpush3.bf16.msra.mxu0 %v3388_v51 }
  0xeb   : > { %3170 = vmatpush3.bf16.msra.mxu1 %v3389_v52  ;;  %3149 = vmatprep.subr.bf16.mxu0 %v3390_v53 }
  0xec   : > { %3171 = vmatprep.subr.bf16.mxu1 %v3391_v54 }
  0xee   : > { %3150 = vmatpush3.bf16.msra.mxu0 %v3392_v55 }
  0xef   : > { %3172 = vmatpush3.bf16.msra.mxu1 %v3393_v56  ;;  %3151 = vmatprep.subr.bf16.mxu0 %v3394_v57 }
  0xf0   : > { %3173 = vmatprep.subr.bf16.mxu1 %v3395_v58 }
  0xf2   : > { %3152 = vmatpush3.bf16.msra.mxu0 %v3396_v59 }
  0xf3   : > { %3174 = vmatpush3.bf16.msra.mxu1 %v3397_v60  ;;  %3153 = vmatprep.subr.bf16.mxu0 %v3398_v61 }
  0xf4   : > { %3175 = vmatprep.subr.bf16.mxu1 %v3399_v62 }
  0xf6   : > { %3154 = vmatpush3.bf16.msra.mxu0 %v3400_v63 }
  0xf7   : > { %3176 = vmatpush3.bf16.msra.mxu1 %v3401_v0 }
  0xf9   : > { %2511 = vmatmul.mubr.bf16.vlgmr.msra.gmra.mrb[20].mxu0 %v2718_v5 }
  0xfa   : > { %2552 = vmatmul.mubr.bf16.vlgmr.msra.gmra.mrb[20].mxu1 %v2720_v7 }
 0x12c   : > { %v2935_v9 = vpop.f32.mrb[0].mxu0 }
 0x12d   : > { %v2957_v10 = vpop.f32.mrb[0].mxu1  ;;  %v2936_v11 = vpop.f32.mrb[1].mxu0 }
 0x12e   : > { %v2937_v12 = vadd.f32 %v2936_v11, %v2935_v9  ;;  %v2958_v13 = vpop.f32.mrb[1].mxu1  ;;  %v2938_v14 = vpop.f32.mrb[2].mxu0 }
 0x12f   : > { %v2959_v15 = vadd.f32 %v2958_v13, %v2957_v10  ;;  %v2960_v16 = vpop.f32.mrb[2].mxu1  ;;  %v2939_v17 = vpop.f32.mrb[3].mxu0 }
 0x130   : > { %v2940_v18 = vadd.f32 %v2939_v17, %v2938_v14  ;;  %v2961_v19 = vpop.f32.mrb[3].mxu1 }
 0x131   : > { %v2144_v20 = vadd.f32 %v2959_v15, %v2937_v12  ;;  %v2962_v21 = vadd.f32 %v2961_v19, %v2960_v16 }
 0x133   : > { %v2147_v22 = vadd.f32 %v2962_v21, %v2940_v18 }
 0x14c   : > { %v2979_v23 = vpop.f32.mrb[4].mxu0 }
 0x14d   : > { %v3001_v24 = vpop.f32.mrb[4].mxu1  ;;  %v2980_v25 = vpop.f32.mrb[5].mxu0 }
 0x14e   : > { %v2981_v26 = vadd.f32 %v2980_v25, %v2979_v23  ;;  %v3002_v27 = vpop.f32.mrb[5].mxu1  ;;  %v2982_v28 = vpop.f32.mrb[6].mxu0 }
 0x14f   : > { %v3003_v29 = vadd.f32 %v3002_v27, %v3001_v24  ;;  %v3004_v30 = vpop.f32.mrb[6].mxu1  ;;  %v2983_v31 = vpop.f32.mrb[7].mxu0 }
 0x150   : > { %v2185_v32 = vadd.f32 %v2981_v26, %v2144_v20  ;;  %v2984_v33 = vadd.f32 %v2983_v31, %v2982_v28  ;;  %v3005_v34 = vpop.f32.mrb[7].mxu1 }
 0x151   : > { %v3006_v35 = vadd.f32 %v3005_v34, %v3004_v30 }
 0x152   : > { %v2226_v36 = vadd.f32 %v3003_v29, %v2185_v32  ;;  %v2188_v37 = vadd.f32 %v2984_v33, %v2147_v22 }
 0x154   : > { %v2229_v38 = vadd.f32 %v3006_v35, %v2188_v37 }
 0x16c   : > { %v3023_v39 = vpop.f32.mrb[8].mxu0 }
 0x16d   : > { %v3045_v40 = vpop.f32.mrb[8].mxu1  ;;  %v3024_v41 = vpop.f32.mrb[9].mxu0 }
 0x16e   : > { %v3046_v42 = vpop.f32.mrb[9].mxu1  ;;  %v3025_v43 = vadd.f32 %v3024_v41, %v3023_v39  ;;  %v3026_v45 = vpop.f32.mrb[10].mxu0  ;;  %v387_v39 = vld [vmem:[#allocation2 + $0x8] sm:$0xff] }
 0x16f   : > { %v3047_v44 = vadd.f32 %v3046_v42, %v3045_v40  ;;  %v3048_v46 = vpop.f32.mrb[10].mxu1  ;;  %v3027_v47 = vpop.f32.mrb[11].mxu0 }
 0x170   : > { %v3049_v48 = vpop.f32.mrb[11].mxu1  ;;  %v2267_v49 = vadd.f32 %v3025_v43, %v2226_v36  ;;  %v3028_v50 = vadd.f32 %v3027_v47, %v3026_v45  ;;  %v386_v36 = vld [vmem:[#allocation2] sm:$0xff] }
 0x171   : > { %v3050_v51 = vadd.f32 %v3049_v48, %v3048_v46 }
 0x172   : > { %v2308_v52 = vadd.f32 %v3047_v44, %v2267_v49  ;;  %v2270_v53 = vadd.f32 %v3028_v50, %v2229_v38  ;;  %v2914_v44 = vld [vmem:[%s340_s18] ss:$0 sm:$0xff] (%p3554_p7) }
 0x174   : > { %v2311_v54 = vadd.f32 %v3050_v51, %v2270_v53 }
 0x18c   : > { %v3067_v55 = vpop.f32.mrb[12].mxu0 }
 0x18d   : > { %v3089_v56 = vpop.f32.mrb[12].mxu1  ;;  %v3068_v57 = vpop.f32.mrb[13].mxu0 }
 0x18e   : > { %v3069_v58 = vadd.f32 %v3068_v57, %v3067_v55  ;;  %v3090_v59 = vpop.f32.mrb[13].mxu1  ;;  %v3070_v60 = vpop.f32.mrb[14].mxu0 }
 0x18f   : > { %v3091_v61 = vadd.f32 %v3090_v59, %v3089_v56  ;;  %v3092_v62 = vpop.f32.mrb[14].mxu1  ;;  %v3071_v63 = vpop.f32.mrb[15].mxu0 }
 0x190   : > { %v2349_v0 = vadd.f32 %v3069_v58, %v2308_v52  ;;  %v3072_v1 = vadd.f32 %v3071_v63, %v3070_v60  ;;  %v3093_v2 = vpop.f32.mrb[15].mxu1 }
 0x191   : > { %v3094_v3 = vadd.f32 %v3093_v2, %v3092_v62 }
 0x192   : > { %v2390_v4 = vadd.f32 %v3091_v61, %v2349_v0  ;;  %v2352_v5 = vadd.f32 %v3072_v1, %v2311_v54 }
 0x194   : > { %v2393_v6 = vadd.f32 %v3094_v3, %v2352_v5 }
 0x1ac   : > { %v3111_v7 = vpop.f32.mrb[16].mxu0 }
 0x1ad   : > { %v3133_v8 = vpop.f32.mrb[16].mxu1  ;;  %v3112_v9 = vpop.f32.mrb[17].mxu0 }
 0x1ae   : > { %v3113_v10 = vadd.f32 %v3112_v9, %v3111_v7  ;;  %v3134_v11 = vpop.f32.mrb[17].mxu1  ;;  %v3114_v12 = vpop.f32.mrb[18].mxu0 }
 0x1af   : > { %v3135_v13 = vadd.f32 %v3134_v11, %v3133_v8  ;;  %v3136_v14 = vpop.f32.mrb[18].mxu1  ;;  %v3115_v15 = vpop.f32.mrb[19].mxu0 }
 0x1b0   : > { %v2431_v16 = vadd.f32 %v3113_v10, %v2390_v4  ;;  %v3116_v17 = vadd.f32 %v3115_v15, %v3114_v12  ;;  %v3137_v18 = vpop.f32.mrb[19].mxu1 }
 0x1b1   : > { %v3138_v19 = vadd.f32 %v3137_v18, %v3136_v14 }
 0x1b2   : > { %v2472_v20 = vadd.f32 %v3135_v13, %v2431_v16  ;;  %v2434_v21 = vadd.f32 %v3116_v17, %v2393_v6 }
 0x1b4   : > { %v2475_v22 = vadd.f32 %v3138_v19, %v2434_v21 }
 0x1cc   : > { %v3155_v23 = vpop.f32.mrb[20].mxu0 }
 0x1cd   : > { %v3177_v24 = vpop.f32.mrb[20].mxu1  ;;  %v3156_v25 = vpop.f32.mrb[21].mxu0 }
 0x1ce   : > { %v3178_v26 = vpop.f32.mrb[21].mxu1  ;;  %v3157_v27 = vadd.f32 %v3156_v25, %v3155_v23  ;;  %v3158_v29 = vpop.f32.mrb[22].mxu0 }
 0x1cf   : > { %v3179_v28 = vadd.f32 %v3178_v26, %v3177_v24  ;;  %v3180_v30 = vpop.f32.mrb[22].mxu1  ;;  %v3159_v31 = vpop.f32.mrb[23].mxu0 }
 0x1d0   : > { %v3181_v32 = vpop.f32.mrb[23].mxu1  ;;  %v2513_v33 = vadd.f32 %v3157_v27, %v2472_v20  ;;  %v3160_v34 = vadd.f32 %v3159_v31, %v3158_v29 }
 0x1d1   : > { %v3182_v35 = vadd.f32 %v3181_v32, %v3180_v30 }
 0x1d2   : > { %v2554_v37 = vadd.f32 %v3179_v28, %v2513_v33  ;;  %v2516_v38 = vadd.f32 %v3160_v34, %v2475_v22  ;;  %2567 = sbr.rel (!%p3554_p7) target bundleno = 485 (0x1e5), region = 63 }
 0x1d4   : > { %v2560_v40 = vadd.f32 %v2554_v37, %v386_v36  ;;  %v2557_v41 = vadd.f32 %v3182_v35, %v2516_v38 }
 0x1d6   : > { %2563 = vst.msk [vmem:[#allocation2] sm:$0xff] %vm2562_vm1, %v2560_v40  ;;  %v2561_v42 = vadd.f32 %v2557_v41, %v387_v39 }
 0x1d8   : > { %2564 = vst.msk [vmem:[#allocation2 + $0x8] sm:$0xff] %vm2562_vm1, %v2561_v42 }
 0x1dd   : > { %v2568_v43 = vld [vmem:[#allocation2] sm:$0xff] }
 0x1de   : > { %v2577_v46 = vadd.f32 %v2914_v44, %v2568_v43 }
 0x1df   : > { %v2569_v45 = vld [vmem:[#allocation2 + $0x8] sm:$0xff] }
 0x1e0   : > { %v2578_v47 = vadd.f32 %v2914_v44, %v2569_v45  ;;  %v2579_v48 = vmax.f32 %v2577_v46, 0.0 }
 0x1e2   : > { %v2580_v49 = vmax.f32 %v2578_v47, 0.0  ;;  %2581 = vst.msk [vmem:[%s3566_s23] sm:$0xff] %vm2562_vm1, %v2579_v48 }
 0x1e4   : > { %2582 = vst.msk [vmem:[%s3566_s23 + $0x8] sm:$0xff] %vm2562_vm1, %v2580_v49 }
 0x1e5 PF: > { %p10_p8 = scmp.ge.s32.totalorder %s3466_s16, 7   ;;  %s3814_s12 = smov %s3420_s13 }
 0x1e6   : > { %s3815_s13 = smov %s3475_s19  ;;  %s3816_s14 = smov %s3466_s16 }
 0x1e7   :  { %12 = sbr.rel (!%p10_p8) target bundleno = 2 (0x2), region = 104 }

// kernel: mscnn4_forward.14
= control target key start
LH: loop header
LB: loop body
LE: loop exit
PB: predicated region body
PF: predicated region fallthrough
CT: control target
= control target key end

     0   :  { %8 = vsyncpa [#allocation4], 0  ;;  %s3769_s0 = inlined_call_operand.vmem [shape: bf16[8,24576], index: 0, kind: input, shape index: {}]   ;;  %s3770_s1 = inlined_call_operand.hbm [shape: bf16[24576,128], index: 1, kind: input, shape index: {}]   ;;  %s3771_s2 = inlined_call_operand.vmem [shape: f32[4,1,128], index: 2, kind: input, shape index: {}]   ;;  %s3772_s3 = inlined_call_operand.vmem [shape: f32[4,8,128], index: 3, kind: output, shape index: {}]  }
   0x1   :  { %10 = vsyncpa [#allocation4 + $0x1], 0  ;;  %s3418_s12 = smov 0   ;;  %s3420_s13 = smov 0  }
   0x2   :  { %s3422_s14 = smov 0   ;;  %s3424_s15 = smov 0  }
   0x3 LB: > { %s3437_s16 = sadd.s32 4294967295, %s3392_s15   ;;  %s3440_s17 = sadd.s32 1, %s3392_s15   ;;  %s3392_s15 = sphi %s3424_s15, %s3782_s15   ;;  %s3388_s14 = sphi %s3422_s14, %s3781_s14   ;;  %s3384_s13 = sphi %s3420_s13, %s3780_s13   ;;  %s3380_s12 = sphi %s3418_s12, %s3779_s12  }
   0x4   : > { %s46_s18 = ssub.s32 %s3392_s15, %s3440_s17  ;;  %s49_s19 = sadd.s32 1, %s3388_s14 }
   0x5   : > { %p47_p0 = scmp.eq.s32.totalorder %s46_s18, 0  ;;  %p56_p1 = scmp.ne.s32.totalorder %s3388_s14, %s3384_s13 }
   0x6   : > { %p57_p2 = scmp.eq.s32.totalorder %s3392_s15, 0  ;;  %p62_p3 = scmp.ne.s32.totalorder %s3384_s13, %s3380_s12 }
   0x7   : > { %s3450_s20 = scalar_select %p47_p0, %s3388_s14, %s49_s19  }
   0x8   : > { %p58_p4 = por %p57_p2, %p56_p1  ;;  %p3773_p5 = scmp.eq.s32.totalorder %s3437_s16, 0 }
   0x9   : > { %p3076_p6 = scmp.lt.s32.totalorder %s3392_s15, 8  ;;  %s179_s22 = sand.u32 1, %s3388_s14  }
   0xa   : > { %p3456_p7 = por %p3773_p5, %p62_p3  ;;  %s3068_s23 = smul.u32 1536, %s179_s22 }
   0xb   : > { %s2803_s24 = smul.u32 24576, %s3392_s15  ;;  %p3462_p8 = pnand %p3076_p6, %p58_p4 }
   0xc   : > { %s183_s29 = scalar_lea.vmem [#allocation3], %s3068_s23  ;;  %s3474_s4 = scalar_lea.sflag [#allocation4], %s179_s22 }
   0xd   : > { %s3469_s28 = scalar_lea.hbm %s3770_s1, %s2803_s24  ;;  %s190_s30 = sshll.u32 %s183_s29, 4  ;;  %s3471_s30 = int_to_ptr.vmem [resolvable:$true] %s190_s30 }
   0xe   : > { %s3328_s5 = scalar_lea.hbm %s3469_s28, 24576  ;;  %p3330_p11 = pneg %p3462_p8 }
   0xf   : > { %p3329_p10 = scmp.ne.s32.totalorder %s3469_s28, %s3328_s5  ;;  %s3333_s8 = scalar_lea.hbm %s3770_s1, 196608 }
  0x10   : > { %p3334_p0 = scmp.lt.u32.totalorder %s3469_s28, %s3770_s1  ;;  %p3335_p1 = scmp.lt.u32.totalorder %s3333_s8, %s3328_s5 }
  0x11   : > { %p3331_p12 = pnand %p3330_p11, %p3329_p10  ;;  %p3337_p3 = scmp.lt.u32.totalorder %s3328_s5, %s3469_s28 }
  0x12   : > { %p3336_p2 = por %p3335_p1, %p3334_p0 }
  0x13   : > { %p3332_p13 = pneg %p3331_p12 }
  0x14   : > { %p3338_p4 = por %p3337_p3, %p3336_p2 }
  0x16   : > { %p3339_p6 = pnand %p3338_p4, %p3332_p13 }
  0x18   : > { %3342 = shalt.err (!%p3339_p6)
}
  0x19   : > { %s3343_s11 = scalar_lea.vmem %s3471_s30, 24576  ;;  %s3394_s12 = smov [#allocation3]  }
  0x1a   : > { %p3344_p10 = scmp.ne.s32.totalorder %s3471_s30, %s3343_s11  ;;  %s3348_s18 = sshll.u32 %s3394_s12, 4  ;;  %s3349_s18 = int_to_ptr.vmem [resolvable:$false] %s3348_s18 }
  0x1b   : > { %s3350_s19 = scalar_lea.vmem %s3349_s18, 49152  ;;  %p3351_p9 = scmp.lt.s32.totalorder %s3471_s30, %s3349_s18 }
  0x1c   : > { %p3346_p12 = pnand %p3344_p10, %p3330_p11  ;;  %p3352_p0 = scmp.lt.s32.totalorder %s3350_s19, %s3343_s11 }
  0x1e   : > { %p3347_p5 = pneg %p3346_p12  ;;  %p3353_p1 = por %p3352_p0, %p3351_p9 }
  0x20   : > { %p3354_p2 = pnand %p3353_p1, %p3347_p5 }
  0x22   : > { %3357 = shalt.err (!%p3354_p2)
}
  0x23   : > { %s3395_s22 = smov 64   ;;  %s3396_s23 = smov 4  }
  0x24   : > { %3075 = dma.hbm_to_vmem [thread:$0]  (!%p3462_p8), %s3469_s28, 24576, %s3471_s30, %s3474_s4, %s3395_s22, %s3395_s22, %s3396_s23  }
  0x25   : > { %p220_p11 = scmp.lt.s32.totalorder %s3392_s15, 9  ;;  %p3776_p13 = scmp.ge.s32.totalorder %s3392_s15, 1 }
  0x27   : > { %p221_p3 = pnand %p3776_p13, %p220_p11 }
  0x28   : > { %s226_s24 = sand.u32 (!%p221_p3), 1, %s3384_s13  }
  0x29   : > { %224 = sbr.rel (%p221_p3) target bundleno = 499 (0x1f3), region = 32  ;;  %s227_s27 = scalar_lea.sflag (!%p221_p3), [#allocation4], %s226_s24 }
  0x2a   : > { %s3069_s26 = smul.u32 (!%p221_p3), 1536, %s226_s24 }
  0x2c   : > { %s3506_s29 = scalar_lea.vmem (!%p221_p3), [#allocation3], %s3069_s26 }
  0x30   : > { %3375 = dma.done.wait (%p3456_p7), %s227_s27, 24576  }
  0x31   : > { %3377 = vsyncadd (%p3456_p7), %s227_s27, 4294942720  ;;  %s276_s15 = smul.u32 24, %s3437_s16  ;;  %p283_p5 = scmp.ge.s32.totalorder %s3437_s16, 1 }
  0x32   : > { %p285_p8 = scmp.ge.s32.totalorder %s3437_s16, 2  ;;  %p288_p9 = scmp.ge.s32.totalorder %s3437_s16, 4 }
  0x33   : > { %p277_p4 = scmp.lt.s32.totalorder %s276_s15, 191  ;;  %p324_p6 = scmp.eq.s32.totalorder %s3437_s16, 1 }
  0x34   : > { %s284_s25 = scalar_select %p283_p5, 1, 0 }
  0x35   : > { %s3784_s15 = smov (!%p277_p4, %s276_s15), 191  ;;  %p3777_p7 = scmp.eq.s32.totalorder %s3437_s16, 0 }
  0x36   : > { %s286_s21 = scalar_select %p285_p8, 1, 0 }
  0x37   : > { %s2582_s28 = sshll.u32 %s3784_s15, 2  ;;  %p325_p10 = por %p324_p6, %p3777_p7 }
  0x38   : > { %s3522_s5 = scalar_lea.vmem %s3769_s0, %s2582_s28  ;;  %s287_s6 = sadd.s32 %s286_s21, %s284_s25 }
  0x39   : > { %s289_s7 = scalar_select %p288_p9, 1, 0 }
  0x3a   : > { %p326_p12 = scmp.eq.s32.totalorder %s3437_s16, 2  ;;  %p328_p0 = scmp.eq.s32.totalorder %s3437_s16, 4 }
  0x3b   : > { %s290_s8 = sadd.s32 %s289_s7, %s287_s6  ;;  %p330_p1 = scmp.eq.s32.totalorder %s3437_s16, 3 }
  0x3c   : > { %p291_p2 = scmp.lt.s32.totalorder %s290_s8, 3  ;;  %p327_p11 = por %p326_p12, %p325_p10 }
  0x3d   : > { %p331_p13 = por %p330_p1, %p325_p10  ;;  %p332_p3 = scmp.eq.s32.totalorder %s3437_s16, 7 }
  0x3e   : > { %s3786_s8 = smov (!%p291_p2, %s290_s8), 3  ;;  %p329_p5 = por %p328_p0, %p327_p11 }
  0x3f   : > { %p3530_p8 = por %p332_p3, %p331_p13  ;;  %s293_s12 = scalar_lea.vmem %s3771_s2, %s3786_s8  ;;  %v3397_v0 = vmov (%p329_p5), 0.0  }
  0x40   : > { %s2583_s18 = sshll.u32 %s3786_s8, 3  ;;  %336 = sbr.rel (!%p329_p5) target bundleno = 71 (0x47), region = 40  ;;  %337 = vst [vmem:[#allocation2] sm:$0xff] (%p329_p5), %v3397_v0 }
  0x41   : > { %s3542_s23 = scalar_lea.vmem %s3772_s3, %s2583_s18 }
  0x47 PF: > { %v3112_v1 = vld [vmem:[%s3506_s29 + $0x40] sm:$0xff]   ;;  %v3116_v5 = vld [vmem:[%s3506_s29 + $0x48] sm:$0xff]   ;;  %v3120_v9 = vld [vmem:[%s3506_s29 + $0x50] sm:$0xff]  }
  0x48   : > { %v3113_v2 = vld [vmem:[%s3506_s29 + $0xc0] sm:$0xff]   ;;  %2804 = vmatprep.subr.bf16.mxu0 %v3112_v1  ;;  %v3117_v6 = vld [vmem:[%s3506_s29 + $0xc8] sm:$0xff]   ;;  %v3121_v10 = vld [vmem:[%s3506_s29 + $0xd0] sm:$0xff]  }
  0x49   : > { %v3114_v3 = vld [vmem:[%s3506_s29] sm:$0xff]   ;;  %2826 = vmatprep.subr.bf16.mxu1 %v3113_v2  ;;  %v3118_v7 = vld [vmem:[%s3506_s29 + $0x8] sm:$0xff]   ;;  %v3122_v11 = vld [vmem:[%s3506_s29 + $0x10] sm:$0xff]  }
  0x4a   : > { %v3115_v4 = vld [vmem:[%s3506_s29 + $0x80] sm:$0xff]   ;;  %2805 = vmatpush3.bf16.msra.mxu0 %v3114_v3  ;;  %v3119_v8 = vld [vmem:[%s3506_s29 + $0x88] sm:$0xff]   ;;  %v3123_v12 = vld [vmem:[%s3506_s29 + $0x90] sm:$0xff]  }
  0x4b   : > { %2827 = vmatpush3.bf16.msra.mxu1 %v3115_v4  ;;  %2806 = vmatprep.subr.bf16.mxu0 %v3116_v5  ;;  %v3124_v13 = vld [vmem:[%s3506_s29 + $0x58] sm:$0xff]   ;;  %v3128_v17 = vld [vmem:[%s3506_s29 + $0x60] sm:$0xff]   ;;  %v3132_v21 = vld [vmem:[%s3506_s29 + $0x68] sm:$0xff]  }
  0x4c   : > { %2828 = vmatprep.subr.bf16.mxu1 %v3117_v6  ;;  %v3125_v14 = vld [vmem:[%s3506_s29 + $0xd8] sm:$0xff]   ;;  %v3129_v18 = vld [vmem:[%s3506_s29 + $0xe0] sm:$0xff]   ;;  %v3133_v22 = vld [vmem:[%s3506_s29 + $0xe8] sm:$0xff]  }
  0x4d   : > { %v3126_v15 = vld [vmem:[%s3506_s29 + $0x18] sm:$0xff]   ;;  %v3130_v19 = vld [vmem:[%s3506_s29 + $0x20] sm:$0xff]   ;;  %v3134_v23 = vld [vmem:[%s3506_s29 + $0x28] sm:$0xff]  }
  0x4e   : > { %2807 = vmatpush3.bf16.msra.mxu0 %v3118_v7  ;;  %v3127_v16 = vld [vmem:[%s3506_s29 + $0x98] sm:$0xff]   ;;  %v3131_v20 = vld [vmem:[%s3506_s29 + $0xa0] sm:$0xff]   ;;  %v3135_v24 = vld [vmem:[%s3506_s29 + $0xa8] sm:$0xff]  }
  0x4f   : > { %2829 = vmatpush3.bf16.msra.mxu1 %v3119_v8  ;;  %2808 = vmatprep.subr.bf16.mxu0 %v3120_v9  ;;  %v3136_v25 = vld [vmem:[%s3506_s29 + $0x70] sm:$0xff]   ;;  %v3140_v29 = vld [vmem:[%s3506_s29 + $0x78] sm:$0xff]   ;;  %v340_v34 = vld [vmem:[%s3522_s5 + $0x8] sm:$0xff] }
  0x50   : > { %2830 = vmatprep.subr.bf16.mxu1 %v3121_v10  ;;  %v3137_v26 = vld [vmem:[%s3506_s29 + $0xf0] sm:$0xff]   ;;  %v3141_v30 = vld [vmem:[%s3506_s29 + $0xf8] sm:$0xff]   ;;  %v2586_v37 = vcombine.low %v340_v34, %v340_v34  ;;  %v2587_v38 = vcombine.high %v340_v34, %v340_v34  ;;  %v3148_v39 = vld [vmem:[%s3506_s29 + $0x140] sm:$0xff]  }
  0x51   : > { %v3138_v27 = vld [vmem:[%s3506_s29 + $0x30] sm:$0xff]   ;;  %v3142_v31 = vld [vmem:[%s3506_s29 + $0x38] sm:$0xff]   ;;  %v3149_v40 = vld [vmem:[%s3506_s29 + $0x1c0] sm:$0xff]  }
  0x52   : > { %2809 = vmatpush3.bf16.msra.mxu0 %v3122_v11  ;;  %v3139_v28 = vld [vmem:[%s3506_s29 + $0xb0] sm:$0xff]   ;;  %v3143_v32 = vld [vmem:[%s3506_s29 + $0xb8] sm:$0xff]   ;;  %2043 = vmatprep.mubr.bf16.mxu1 %v2587_v38  ;;  %v3150_v41 = vld [vmem:[%s3506_s29 + $0x100] sm:$0xff]  }
  0x53   : > { %2831 = vmatpush3.bf16.msra.mxu1 %v3123_v12  ;;  %2810 = vmatprep.subr.bf16.mxu0 %v3124_v13  ;;  %v339_v33 = vld [vmem:[%s3522_s5] sm:$0xff]  ;;  %v3151_v42 = vld [vmem:[%s3506_s29 + $0x180] sm:$0xff]   ;;  %v3152_v43 = vld [vmem:[%s3506_s29 + $0x148] sm:$0xff]  }
  0x54   : > { %2832 = vmatprep.subr.bf16.mxu1 %v3125_v14  ;;  %v2584_v35 = vcombine.low %v339_v33, %v339_v33  ;;  %v2585_v36 = vcombine.high %v339_v33, %v339_v33  ;;  %v3153_v44 = vld [vmem:[%s3506_s29 + $0x1c8] sm:$0xff]   ;;  %v3156_v47 = vld [vmem:[%s3506_s29 + $0x150] sm:$0xff]   ;;  %v3160_v51 = vld [vmem:[%s3506_s29 + $0x158] sm:$0xff]  }
  0x55   : > { %v3154_v45 = vld [vmem:[%s3506_s29 + $0x108] sm:$0xff]   ;;  %v3157_v48 = vld [vmem:[%s3506_s29 + $0x1d0] sm:$0xff]   ;;  %v3161_v52 = vld [vmem:[%s3506_s29 + $0x1d8] sm:$0xff]  }
  0x56   : > { %2811 = vmatpush3.bf16.msra.mxu0 %v3126_v15  ;;  %2003 = vmatprep.mubr.bf16.mxu0 %v2585_v36  ;;  %v3155_v46 = vld [vmem:[%s3506_s29 + $0x188] sm:$0xff]   ;;  %v3158_v49 = vld [vmem:[%s3506_s29 + $0x110] sm:$0xff]   ;;  %v3162_v53 = vld [vmem:[%s3506_s29 + $0x118] sm:$0xff]  }
  0x57   : > { %2833 = vmatpush3.bf16.msra.mxu1 %v3127_v16  ;;  %2812 = vmatprep.subr.bf16.mxu0 %v3128_v17  ;;  %v3159_v50 = vld [vmem:[%s3506_s29 + $0x190] sm:$0xff]   ;;  %v3163_v54 = vld [vmem:[%s3506_s29 + $0x198] sm:$0xff]   ;;  %v3164_v55 = vld [vmem:[%s3506_s29 + $0x160] sm:$0xff]  }
  0x58   : > { %2834 = vmatprep.subr.bf16.mxu1 %v3129_v18  ;;  %v3165_v56 = vld [vmem:[%s3506_s29 + $0x1e0] sm:$0xff]   ;;  %v3168_v59 = vld [vmem:[%s3506_s29 + $0x168] sm:$0xff]   ;;  %v3172_v63 = vld [vmem:[%s3506_s29 + $0x170] sm:$0xff]  }
  0x59   : > { %v3166_v57 = vld [vmem:[%s3506_s29 + $0x120] sm:$0xff]   ;;  %v3169_v60 = vld [vmem:[%s3506_s29 + $0x1e8] sm:$0xff]   ;;  %v3173_v0 = vld [vmem:[%s3506_s29 + $0x1f0] sm:$0xff]  }
  0x5a   : > { %2813 = vmatpush3.bf16.msra.mxu0 %v3130_v19  ;;  %v3167_v58 = vld [vmem:[%s3506_s29 + $0x1a0] sm:$0xff]   ;;  %v3170_v61 = vld [vmem:[%s3506_s29 + $0x128] sm:$0xff]   ;;  %v3174_v1 = vld [vmem:[%s3506_s29 + $0x130] sm:$0xff]  }
  0x5b   : > { %2835 = vmatpush3.bf16.msra.mxu1 %v3131_v20  ;;  %2814 = vmatprep.subr.bf16.mxu0 %v3132_v21  ;;  %v3171_v62 = vld [vmem:[%s3506_s29 + $0x1a8] sm:$0xff]   ;;  %v3175_v2 = vld [vmem:[%s3506_s29 + $0x1b0] sm:$0xff]   ;;  %v3176_v3 = vld [vmem:[%s3506_s29 + $0x178] sm:$0xff]  }
  0x5c   : > { %2836 = vmatprep.subr.bf16.mxu1 %v3133_v22  ;;  %v3177_v4 = vld [vmem:[%s3506_s29 + $0x1f8] sm:$0xff]   ;;  %v341_v7 = vld [vmem:[%s3522_s5 + $0x10] sm:$0xff]  ;;  %v342_v10 = vld [vmem:[%s3522_s5 + $0x18] sm:$0xff] }
  0x5d   : > { %v3178_v5 = vld [vmem:[%s3506_s29 + $0x138] sm:$0xff]   ;;  %v2588_v8 = vcombine.low %v341_v7, %v341_v7  ;;  %v2589_v9 = vcombine.high %v341_v7, %v341_v7  ;;  %v2590_v11 = vcombine.low %v342_v10, %v342_v10  ;;  %v2591_v12 = vcombine.high %v342_v10, %v342_v10  ;;  %v3184_v13 = vld [vmem:[%s3506_s29 + $0x240] sm:$0xff]   ;;  %v3188_v17 = vld [vmem:[%s3506_s29 + $0x248] sm:$0xff]  }
  0x5e   : > { %2815 = vmatpush3.bf16.msra.mxu0 %v3134_v23  ;;  %v3179_v6 = vld [vmem:[%s3506_s29 + $0x1b8] sm:$0xff]   ;;  %v3185_v14 = vld [vmem:[%s3506_s29 + $0x2c0] sm:$0xff]   ;;  %v3189_v18 = vld [vmem:[%s3506_s29 + $0x2c8] sm:$0xff]  }
  0x5f   : > { %2837 = vmatpush3.bf16.msra.mxu1 %v3135_v24  ;;  %2816 = vmatprep.subr.bf16.mxu0 %v3136_v25  ;;  %v3186_v15 = vld [vmem:[%s3506_s29 + $0x200] sm:$0xff]   ;;  %v3190_v19 = vld [vmem:[%s3506_s29 + $0x208] sm:$0xff]   ;;  %v3192_v21 = vld [vmem:[%s3506_s29 + $0x250] sm:$0xff]  }
  0x60   : > { %2838 = vmatprep.subr.bf16.mxu1 %v3137_v26  ;;  %v3187_v16 = vld [vmem:[%s3506_s29 + $0x280] sm:$0xff]   ;;  %v3191_v20 = vld [vmem:[%s3506_s29 + $0x288] sm:$0xff]   ;;  %v3193_v22 = vld [vmem:[%s3506_s29 + $0x2d0] sm:$0xff]  }
  0x61   : > { %v3194_v23 = vld [vmem:[%s3506_s29 + $0x210] sm:$0xff]   ;;  %v3196_v25 = vld [vmem:[%s3506_s29 + $0x258] sm:$0xff]   ;;  %v3204_v33 = vld [vmem:[%s3506_s29 + $0x268] sm:$0xff]  }
  0x62   : > { %2817 = vmatpush3.bf16.msra.mxu0 %v3138_v27  ;;  %v3195_v24 = vld [vmem:[%s3506_s29 + $0x290] sm:$0xff]   ;;  %v3197_v26 = vld [vmem:[%s3506_s29 + $0x2d8] sm:$0xff]   ;;  %v3205_v34 = vld [vmem:[%s3506_s29 + $0x2e8] sm:$0xff]  }
  0x63   : > { %2839 = vmatpush3.bf16.msra.mxu1 %v3139_v28  ;;  %2818 = vmatprep.subr.bf16.mxu0 %v3140_v29  ;;  %v3198_v27 = vld [vmem:[%s3506_s29 + $0x218] sm:$0xff]   ;;  %v3200_v29 = vld [vmem:[%s3506_s29 + $0x260] sm:$0xff]   ;;  %v3207_v36 = vld [vmem:[%s3506_s29 + $0x2a8] sm:$0xff]  }
  0x64   : > { %2840 = vmatprep.subr.bf16.mxu1 %v3141_v30  ;;  %v3199_v28 = vld [vmem:[%s3506_s29 + $0x298] sm:$0xff]   ;;  %v3201_v30 = vld [vmem:[%s3506_s29 + $0x2e0] sm:$0xff]   ;;  %v3209_v38 = vld [vmem:[%s3506_s29 + $0x2f0] sm:$0xff]  }
  0x65   : > { %v3240_v7 = vld [vmem:[%s3506_s29 + $0x368] sm:$0xff]  }
  0x66   : > { %2819 = vmatpush3.bf16.msra.mxu0 %v3142_v31  ;;  %v3202_v31 = vld [vmem:[%s3506_s29 + $0x220] sm:$0xff]   ;;  %v3243_v10 = vld [vmem:[%s3506_s29 + $0x3a8] sm:$0xff]  }
  0x67   : > { %2841 = vmatpush3.bf16.msra.mxu1 %v3143_v32  ;;  %2848 = vmatprep.subr.bf16.mxu0 %v3148_v39  ;;  %v3203_v32 = vld [vmem:[%s3506_s29 + $0x2a0] sm:$0xff]   ;;  %v3210_v39 = vld [vmem:[%s3506_s29 + $0x230] sm:$0xff]  }
  0x68   : > { %2870 = vmatprep.subr.bf16.mxu1 %v3149_v40  ;;  %v3211_v40 = vld [vmem:[%s3506_s29 + $0x2b0] sm:$0xff]  }
  0x69   : > { %2004 = vmatmul.mubr.bf16.vlgmr.msra.gmra.mrb[0].mxu0 %v2584_v35  ;;  %v3206_v35 = vld [vmem:[%s3506_s29 + $0x228] sm:$0xff]  }
  0x6a   : > { %2044 = vmatmul.mubr.bf16.vlgmr.msra.gmra.mrb[0].mxu1 %v2586_v37  ;;  %2849 = vmatpush3.bf16.msra.mxu0 %v3150_v41  ;;  %v3208_v37 = vld [vmem:[%s3506_s29 + $0x270] sm:$0xff]   ;;  %v3212_v41 = vld [vmem:[%s3506_s29 + $0x278] sm:$0xff]  }
  0x6b   : > { %2871 = vmatpush3.bf16.msra.mxu1 %v3151_v42  ;;  %2850 = vmatprep.subr.bf16.mxu0 %v3152_v43  ;;  %v3213_v42 = vld [vmem:[%s3506_s29 + $0x2f8] sm:$0xff]  }
  0x6c   : > { %2872 = vmatprep.subr.bf16.mxu1 %v3153_v44  ;;  %2083 = vmatprep.mubr.bf16.mxu0 %v2589_v9  ;;  %v3214_v43 = vld [vmem:[%s3506_s29 + $0x238] sm:$0xff]   ;;  %v3242_v9 = vld [vmem:[%s3506_s29 + $0x328] sm:$0xff]  }
  0x6d   : > { %2123 = vmatprep.mubr.bf16.mxu1 %v2591_v12  ;;  %v3215_v44 = vld [vmem:[%s3506_s29 + $0x2b8] sm:$0xff]   ;;  %v3245_v12 = vld [vmem:[%s3506_s29 + $0x3f0] sm:$0xff]  }
  0x6e   : > { %2851 = vmatpush3.bf16.msra.mxu0 %v3154_v45  ;;  %v343_v45 = vld [vmem:[%s3522_s5 + $0x20] sm:$0xff] }
  0x6f   : > { %2873 = vmatpush3.bf16.msra.mxu1 %v3155_v46  ;;  %2852 = vmatprep.subr.bf16.mxu0 %v3156_v47  ;;  %v344_v46 = vld [vmem:[%s3522_s5 + $0x28] sm:$0xff]  ;;  %v2592_v47 = vcombine.low %v343_v45, %v343_v45 }
  0x70   : > { %2874 = vmatprep.subr.bf16.mxu1 %v3157_v48  ;;  %v2593_v48 = vcombine.high %v343_v45, %v343_v45  ;;  %v3276_v45 = vld [vmem:[%s3506_s29 + $0x468] sm:$0xff]  }
  0x72   : > { %2853 = vmatpush3.bf16.msra.mxu0 %v3158_v49  ;;  %v2594_v49 = vcombine.low %v344_v46, %v344_v46 }
  0x73   : > { %2875 = vmatpush3.bf16.msra.mxu1 %v3159_v50  ;;  %2854 = vmatprep.subr.bf16.mxu0 %v3160_v51  ;;  %v2595_v50 = vcombine.high %v344_v46, %v344_v46  ;;  %v3220_v51 = vld [vmem:[%s3506_s29 + $0x340] sm:$0xff]   ;;  %v3277_v46 = vld [vmem:[%s3506_s29 + $0x4e8] sm:$0xff]  }
  0x74   : > { %2876 = vmatprep.subr.bf16.mxu1 %v3161_v52  ;;  %v3221_v52 = vld [vmem:[%s3506_s29 + $0x3c0] sm:$0xff]  }
  0x76   : > { %2855 = vmatpush3.bf16.msra.mxu0 %v3162_v53  ;;  %v3222_v53 = vld [vmem:[%s3506_s29 + $0x300] sm:$0xff]  }
  0x77   : > { %2877 = vmatpush3.bf16.msra.mxu1 %v3163_v54  ;;  %2856 = vmatprep.subr.bf16.mxu0 %v3164_v55  ;;  %v3223_v54 = vld [vmem:[%s3506_s29 + $0x380] sm:$0xff]   ;;  %v3224_v55 = vld [vmem:[%s3506_s29 + $0x348] sm:$0xff]  }
  0x78   : > { %2878 = vmatprep.subr.bf16.mxu1 %v3165_v56  ;;  %v3225_v56 = vld [vmem:[%s3506_s29 + $0x3c8] sm:$0xff]  }
  0x7a   : > { %2857 = vmatpush3.bf16.msra.mxu0 %v3166_v57  ;;  %v3226_v57 = vld [vmem:[%s3506_s29 + $0x308] sm:$0xff]  }
  0x7b   : > { %2879 = vmatpush3.bf16.msra.mxu1 %v3167_v58  ;;  %2858 = vmatprep.subr.bf16.mxu0 %v3168_v59  ;;  %v3227_v58 = vld [vmem:[%s3506_s29 + $0x388] sm:$0xff]   ;;  %v3228_v59 = vld [vmem:[%s3506_s29 + $0x350] sm:$0xff]  }
  0x7c   : > { %2880 = vmatprep.subr.bf16.mxu1 %v3169_v60  ;;  %v3229_v60 = vld [vmem:[%s3506_s29 + $0x3d0] sm:$0xff]  }
  0x7e   : > { %2859 = vmatpush3.bf16.msra.mxu0 %v3170_v61  ;;  %v3230_v61 = vld [vmem:[%s3506_s29 + $0x310] sm:$0xff]  }
  0x7f   : > { %2881 = vmatpush3.bf16.msra.mxu1 %v3171_v62  ;;  %2860 = vmatprep.subr.bf16.mxu0 %v3172_v63  ;;  %v3231_v62 = vld [vmem:[%s3506_s29 + $0x390] sm:$0xff]   ;;  %v3232_v63 = vld [vmem:[%s3506_s29 + $0x358] sm:$0xff]  }
  0x80   : > { %2882 = vmatprep.subr.bf16.mxu1 %v3173_v0  ;;  %v3233_v0 = vld [vmem:[%s3506_s29 + $0x3d8] sm:$0xff]  }
  0x82   : > { %2861 = vmatpush3.bf16.msra.mxu0 %v3174_v1  ;;  %v3234_v1 = vld [vmem:[%s3506_s29 + $0x318] sm:$0xff]  }
  0x83   : > { %2883 = vmatpush3.bf16.msra.mxu1 %v3175_v2  ;;  %2862 = vmatprep.subr.bf16.mxu0 %v3176_v3  ;;  %v3235_v2 = vld [vmem:[%s3506_s29 + $0x398] sm:$0xff]   ;;  %v3236_v3 = vld [vmem:[%s3506_s29 + $0x360] sm:$0xff]  }
  0x84   : > { %2884 = vmatprep.subr.bf16.mxu1 %v3177_v4  ;;  %v3237_v4 = vld [vmem:[%s3506_s29 + $0x3e0] sm:$0xff]  }
  0x86   : > { %2863 = vmatpush3.bf16.msra.mxu0 %v3178_v5  ;;  %v3238_v5 = vld [vmem:[%s3506_s29 + $0x320] sm:$0xff]  }
  0x87   : > { %2885 = vmatpush3.bf16.msra.mxu1 %v3179_v6  ;;  %2892 = vmatprep.subr.bf16.mxu0 %v3184_v13  ;;  %v3239_v6 = vld [vmem:[%s3506_s29 + $0x3a0] sm:$0xff]   ;;  %v3246_v13 = vld [vmem:[%s3506_s29 + $0x330] sm:$0xff]  }
  0x88   : > { %2914 = vmatprep.subr.bf16.mxu1 %v3185_v14  ;;  %v3247_v14 = vld [vmem:[%s3506_s29 + $0x3b0] sm:$0xff]  }
  0x89   : > { %2084 = vmatmul.mubr.bf16.vlgmr.msra.gmra.mrb[4].mxu0 %v2588_v8  ;;  %v3241_v8 = vld [vmem:[%s3506_s29 + $0x3e8] sm:$0xff]  }
  0x8a   : > { %2124 = vmatmul.mubr.bf16.vlgmr.msra.gmra.mrb[4].mxu1 %v2590_v11  ;;  %2893 = vmatpush3.bf16.msra.mxu0 %v3186_v15  ;;  %v3244_v11 = vld [vmem:[%s3506_s29 + $0x370] sm:$0xff]   ;;  %v3248_v15 = vld [vmem:[%s3506_s29 + $0x378] sm:$0xff]  }
  0x8b   : > { %2915 = vmatpush3.bf16.msra.mxu1 %v3187_v16  ;;  %2894 = vmatprep.subr.bf16.mxu0 %v3188_v17  ;;  %v3249_v16 = vld [vmem:[%s3506_s29 + $0x3f8] sm:$0xff]  }
  0x8c   : > { %2916 = vmatprep.subr.bf16.mxu1 %v3189_v18  ;;  %2163 = vmatprep.mubr.bf16.mxu0 %v2593_v48  ;;  %v3250_v17 = vld [vmem:[%s3506_s29 + $0x338] sm:$0xff]   ;;  %v3279_v48 = vld [vmem:[%s3506_s29 + $0x4a8] sm:$0xff]  }
  0x8d   : > { %2203 = vmatprep.mubr.bf16.mxu1 %v2595_v50  ;;  %v3251_v18 = vld [vmem:[%s3506_s29 + $0x3b8] sm:$0xff]   ;;  %v3281_v50 = vld [vmem:[%s3506_s29 + $0x4f0] sm:$0xff]  }
  0x8e   : > { %2895 = vmatpush3.bf16.msra.mxu0 %v3190_v19  ;;  %v345_v19 = vld [vmem:[%s3522_s5 + $0x30] sm:$0xff] }
  0x8f   : > { %2917 = vmatpush3.bf16.msra.mxu1 %v3191_v20  ;;  %2896 = vmatprep.subr.bf16.mxu0 %v3192_v21  ;;  %v346_v20 = vld [vmem:[%s3522_s5 + $0x38] sm:$0xff]  ;;  %v2596_v21 = vcombine.low %v345_v19, %v345_v19 }
  0x90   : > { %2918 = vmatprep.subr.bf16.mxu1 %v3193_v22  ;;  %v2597_v22 = vcombine.high %v345_v19, %v345_v19  ;;  %v3312_v19 = vld [vmem:[%s3506_s29 + $0x568] sm:$0xff]  }
  0x92   : > { %2897 = vmatpush3.bf16.msra.mxu0 %v3194_v23  ;;  %v2598_v23 = vcombine.low %v346_v20, %v346_v20 }
  0x93   : > { %2919 = vmatpush3.bf16.msra.mxu1 %v3195_v24  ;;  %2898 = vmatprep.subr.bf16.mxu0 %v3196_v25  ;;  %v3256_v24 = vld [vmem:[%s3506_s29 + $0x440] sm:$0xff]   ;;  %v2599_v25 = vcombine.high %v346_v20, %v346_v20  ;;  %v3313_v20 = vld [vmem:[%s3506_s29 + $0x5e8] sm:$0xff]  }
  0x94   : > { %2920 = vmatprep.subr.bf16.mxu1 %v3197_v26  ;;  %v3257_v26 = vld [vmem:[%s3506_s29 + $0x4c0] sm:$0xff]  }
  0x96   : > { %2899 = vmatpush3.bf16.msra.mxu0 %v3198_v27  ;;  %v3258_v27 = vld [vmem:[%s3506_s29 + $0x400] sm:$0xff]  }
  0x97   : > { %2921 = vmatpush3.bf16.msra.mxu1 %v3199_v28  ;;  %2900 = vmatprep.subr.bf16.mxu0 %v3200_v29  ;;  %v3259_v28 = vld [vmem:[%s3506_s29 + $0x480] sm:$0xff]   ;;  %v3260_v29 = vld [vmem:[%s3506_s29 + $0x448] sm:$0xff]  }
  0x98   : > { %2922 = vmatprep.subr.bf16.mxu1 %v3201_v30  ;;  %v3261_v30 = vld [vmem:[%s3506_s29 + $0x4c8] sm:$0xff]  }
  0x9a   : > { %2901 = vmatpush3.bf16.msra.mxu0 %v3202_v31  ;;  %v3262_v31 = vld [vmem:[%s3506_s29 + $0x408] sm:$0xff]  }
  0x9b   : > { %2923 = vmatpush3.bf16.msra.mxu1 %v3203_v32  ;;  %2902 = vmatprep.subr.bf16.mxu0 %v3204_v33  ;;  %v3263_v32 = vld [vmem:[%s3506_s29 + $0x488] sm:$0xff]   ;;  %v3264_v33 = vld [vmem:[%s3506_s29 + $0x450] sm:$0xff]  }
  0x9c   : > { %2924 = vmatprep.subr.bf16.mxu1 %v3205_v34  ;;  %v3265_v34 = vld [vmem:[%s3506_s29 + $0x4d0] sm:$0xff]  }
  0x9e   : > { %2903 = vmatpush3.bf16.msra.mxu0 %v3206_v35  ;;  %v3266_v35 = vld [vmem:[%s3506_s29 + $0x410] sm:$0xff]  }
  0x9f   : > { %2925 = vmatpush3.bf16.msra.mxu1 %v3207_v36  ;;  %2904 = vmatprep.subr.bf16.mxu0 %v3208_v37  ;;  %v3267_v36 = vld [vmem:[%s3506_s29 + $0x490] sm:$0xff]   ;;  %v3268_v37 = vld [vmem:[%s3506_s29 + $0x458] sm:$0xff]  }
  0xa0   : > { %2926 = vmatprep.subr.bf16.mxu1 %v3209_v38  ;;  %v3269_v38 = vld [vmem:[%s3506_s29 + $0x4d8] sm:$0xff]  }
  0xa2   : > { %2905 = vmatpush3.bf16.msra.mxu0 %v3210_v39  ;;  %v3270_v39 = vld [vmem:[%s3506_s29 + $0x418] sm:$0xff]  }
  0xa3   : > { %2927 = vmatpush3.bf16.msra.mxu1 %v3211_v40  ;;  %2906 = vmatprep.subr.bf16.mxu0 %v3212_v41  ;;  %v3271_v40 = vld [vmem:[%s3506_s29 + $0x498] sm:$0xff]   ;;  %v3272_v41 = vld [vmem:[%s3506_s29 + $0x460] sm:$0xff]  }
  0xa4   : > { %2928 = vmatprep.subr.bf16.mxu1 %v3213_v42  ;;  %v3273_v42 = vld [vmem:[%s3506_s29 + $0x4e0] sm:$0xff]  }
  0xa6   : > { %2907 = vmatpush3.bf16.msra.mxu0 %v3214_v43  ;;  %v3274_v43 = vld [vmem:[%s3506_s29 + $0x420] sm:$0xff]  }
  0xa7   : > { %2929 = vmatpush3.bf16.msra.mxu1 %v3215_v44  ;;  %2936 = vmatprep.subr.bf16.mxu0 %v3220_v51  ;;  %v3275_v44 = vld [vmem:[%s3506_s29 + $0x4a0] sm:$0xff]   ;;  %v3282_v51 = vld [vmem:[%s3506_s29 + $0x430] sm:$0xff]  }
  0xa8   : > { %2958 = vmatprep.subr.bf16.mxu1 %v3221_v52  ;;  %v3283_v52 = vld [vmem:[%s3506_s29 + $0x4b0] sm:$0xff]  }
  0xa9   : > { %2164 = vmatmul.mubr.bf16.vlgmr.msra.gmra.mrb[8].mxu0 %v2592_v47  ;;  %v3278_v47 = vld [vmem:[%s3506_s29 + $0x428] sm:$0xff]  }
  0xaa   : > { %2204 = vmatmul.mubr.bf16.vlgmr.msra.gmra.mrb[8].mxu1 %v2594_v49  ;;  %2937 = vmatpush3.bf16.msra.mxu0 %v3222_v53  ;;  %v3280_v49 = vld [vmem:[%s3506_s29 + $0x470] sm:$0xff]   ;;  %v3284_v53 = vld [vmem:[%s3506_s29 + $0x478] sm:$0xff]  }
  0xab   : > { %2959 = vmatpush3.bf16.msra.mxu1 %v3223_v54  ;;  %2938 = vmatprep.subr.bf16.mxu0 %v3224_v55  ;;  %v3285_v54 = vld [vmem:[%s3506_s29 + $0x4f8] sm:$0xff]  }
  0xac   : > { %2960 = vmatprep.subr.bf16.mxu1 %v3225_v56  ;;  %2243 = vmatprep.mubr.bf16.mxu0 %v2597_v22  ;;  %v3286_v55 = vld [vmem:[%s3506_s29 + $0x438] sm:$0xff]   ;;  %v3315_v22 = vld [vmem:[%s3506_s29 + $0x5a8] sm:$0xff]  }
  0xad   : > { %2283 = vmatprep.mubr.bf16.mxu1 %v2599_v25  ;;  %v3287_v56 = vld [vmem:[%s3506_s29 + $0x4b8] sm:$0xff]   ;;  %v3318_v25 = vld [vmem:[%s3506_s29 + $0x530] sm:$0xff]  }
  0xae   : > { %2939 = vmatpush3.bf16.msra.mxu0 %v3226_v57  ;;  %v347_v57 = vld [vmem:[%s3522_s5 + $0x40] sm:$0xff] }
  0xaf   : > { %2961 = vmatpush3.bf16.msra.mxu1 %v3227_v58  ;;  %2940 = vmatprep.subr.bf16.mxu0 %v3228_v59  ;;  %v2600_v58 = vcombine.low %v347_v57, %v347_v57  ;;  %v2601_v59 = vcombine.high %v347_v57, %v347_v57 }
  0xb0   : > { %2962 = vmatprep.subr.bf16.mxu1 %v3229_v60  ;;  %v348_v60 = vld [vmem:[%s3522_s5 + $0x48] sm:$0xff] }
  0xb2   : > { %2941 = vmatpush3.bf16.msra.mxu0 %v3230_v61  ;;  %v2602_v61 = vcombine.low %v348_v60, %v348_v60 }
  0xb3   : > { %2963 = vmatpush3.bf16.msra.mxu1 %v3231_v62  ;;  %2942 = vmatprep.subr.bf16.mxu0 %v3232_v63  ;;  %v2603_v62 = vcombine.high %v348_v60, %v348_v60  ;;  %v3292_v63 = vld [vmem:[%s3506_s29 + $0x540] sm:$0xff]  }
  0xb4   : > { %2964 = vmatprep.subr.bf16.mxu1 %v3233_v0  ;;  %v3293_v0 = vld [vmem:[%s3506_s29 + $0x5c0] sm:$0xff]  }
  0xb6   : > { %2943 = vmatpush3.bf16.msra.mxu0 %v3234_v1  ;;  %v3294_v1 = vld [vmem:[%s3506_s29 + $0x500] sm:$0xff]  }
  0xb7   : > { %2965 = vmatpush3.bf16.msra.mxu1 %v3235_v2  ;;  %2944 = vmatprep.subr.bf16.mxu0 %v3236_v3  ;;  %v3295_v2 = vld [vmem:[%s3506_s29 + $0x580] sm:$0xff]   ;;  %v3296_v3 = vld [vmem:[%s3506_s29 + $0x548] sm:$0xff]  }
  0xb8   : > { %2966 = vmatprep.subr.bf16.mxu1 %v3237_v4  ;;  %v3297_v4 = vld [vmem:[%s3506_s29 + $0x5c8] sm:$0xff]  }
  0xba   : > { %2945 = vmatpush3.bf16.msra.mxu0 %v3238_v5  ;;  %v3298_v5 = vld [vmem:[%s3506_s29 + $0x508] sm:$0xff]  }
  0xbb   : > { %2967 = vmatpush3.bf16.msra.mxu1 %v3239_v6  ;;  %2946 = vmatprep.subr.bf16.mxu0 %v3240_v7  ;;  %v3299_v6 = vld [vmem:[%s3506_s29 + $0x588] sm:$0xff]   ;;  %v3300_v7 = vld [vmem:[%s3506_s29 + $0x550] sm:$0xff]  }
  0xbc   : > { %2968 = vmatprep.subr.bf16.mxu1 %v3241_v8  ;;  %v3301_v8 = vld [vmem:[%s3506_s29 + $0x5d0] sm:$0xff]  }
  0xbe   : > { %2947 = vmatpush3.bf16.msra.mxu0 %v3242_v9  ;;  %v3302_v9 = vld [vmem:[%s3506_s29 + $0x510] sm:$0xff]  }
  0xbf   : > { %2969 = vmatpush3.bf16.msra.mxu1 %v3243_v10  ;;  %2948 = vmatprep.subr.bf16.mxu0 %v3244_v11  ;;  %v3303_v10 = vld [vmem:[%s3506_s29 + $0x590] sm:$0xff]   ;;  %v3304_v11 = vld [vmem:[%s3506_s29 + $0x558] sm:$0xff]  }
  0xc0   : > { %2970 = vmatprep.subr.bf16.mxu1 %v3245_v12  ;;  %v3305_v12 = vld [vmem:[%s3506_s29 + $0x5d8] sm:$0xff]  }
  0xc2   : > { %2949 = vmatpush3.bf16.msra.mxu0 %v3246_v13  ;;  %v3306_v13 = vld [vmem:[%s3506_s29 + $0x518] sm:$0xff]  }
  0xc3   : > { %2971 = vmatpush3.bf16.msra.mxu1 %v3247_v14  ;;  %2950 = vmatprep.subr.bf16.mxu0 %v3248_v15  ;;  %v3307_v14 = vld [vmem:[%s3506_s29 + $0x598] sm:$0xff]   ;;  %v3308_v15 = vld [vmem:[%s3506_s29 + $0x560] sm:$0xff]  }
  0xc4   : > { %2972 = vmatprep.subr.bf16.mxu1 %v3249_v16  ;;  %v3309_v16 = vld [vmem:[%s3506_s29 + $0x5e0] sm:$0xff]  }
  0xc6   : > { %2951 = vmatpush3.bf16.msra.mxu0 %v3250_v17  ;;  %v3310_v17 = vld [vmem:[%s3506_s29 + $0x520] sm:$0xff]  }
  0xc7   : > { %2973 = vmatpush3.bf16.msra.mxu1 %v3251_v18  ;;  %2980 = vmatprep.subr.bf16.mxu0 %v3256_v24  ;;  %v3311_v18 = vld [vmem:[%s3506_s29 + $0x5a0] sm:$0xff]   ;;  %v3317_v24 = vld [vmem:[%s3506_s29 + $0x5f0] sm:$0xff]  }
  0xc8   : > { %3002 = vmatprep.subr.bf16.mxu1 %v3257_v26  ;;  %v3319_v26 = vld [vmem:[%s3506_s29 + $0x5b0] sm:$0xff]  }
  0xc9   : > { %2244 = vmatmul.mubr.bf16.vlgmr.msra.gmra.mrb[12].mxu0 %v2596_v21  ;;  %v3314_v21 = vld [vmem:[%s3506_s29 + $0x528] sm:$0xff]  }
  0xca   : > { %2284 = vmatmul.mubr.bf16.vlgmr.msra.gmra.mrb[12].mxu1 %v2598_v23  ;;  %2981 = vmatpush3.bf16.msra.mxu0 %v3258_v27  ;;  %v3316_v23 = vld [vmem:[%s3506_s29 + $0x570] sm:$0xff]   ;;  %v3320_v27 = vld [vmem:[%s3506_s29 + $0x578] sm:$0xff]  }
  0xcb   : > { %3003 = vmatpush3.bf16.msra.mxu1 %v3259_v28  ;;  %2982 = vmatprep.subr.bf16.mxu0 %v3260_v29  ;;  %v3321_v28 = vld [vmem:[%s3506_s29 + $0x5f8] sm:$0xff]  }
  0xcc   : > { %3004 = vmatprep.subr.bf16.mxu1 %v3261_v30  ;;  %2323 = vmatprep.mubr.bf16.mxu0 %v2601_v59  ;;  %v3322_v29 = vld [vmem:[%s3506_s29 + $0x538] sm:$0xff]  }
  0xcd   : > { %2363 = vmatprep.mubr.bf16.mxu1 %v2603_v62  ;;  %v3323_v30 = vld [vmem:[%s3506_s29 + $0x5b8] sm:$0xff]  }
  0xce   : > { %2983 = vmatpush3.bf16.msra.mxu0 %v3262_v31  ;;  %v349_v31 = vld [vmem:[%s3522_s5 + $0x50] sm:$0xff] }
  0xcf   : > { %3005 = vmatpush3.bf16.msra.mxu1 %v3263_v32  ;;  %2984 = vmatprep.subr.bf16.mxu0 %v3264_v33  ;;  %v350_v32 = vld [vmem:[%s3522_s5 + $0x58] sm:$0xff]  ;;  %v2604_v33 = vcombine.low %v349_v31, %v349_v31 }
  0xd0   : > { %3006 = vmatprep.subr.bf16.mxu1 %v3265_v34  ;;  %v2605_v34 = vcombine.high %v349_v31, %v349_v31 }
  0xd2   : > { %2985 = vmatpush3.bf16.msra.mxu0 %v3266_v35  ;;  %v2606_v35 = vcombine.low %v350_v32, %v350_v32 }
  0xd3   : > { %3007 = vmatpush3.bf16.msra.mxu1 %v3267_v36  ;;  %2986 = vmatprep.subr.bf16.mxu0 %v3268_v37  ;;  %v2607_v36 = vcombine.high %v350_v32, %v350_v32 }
  0xd4   : > { %3008 = vmatprep.subr.bf16.mxu1 %v3269_v38 }
  0xd6   : > { %2987 = vmatpush3.bf16.msra.mxu0 %v3270_v39 }
  0xd7   : > { %3009 = vmatpush3.bf16.msra.mxu1 %v3271_v40  ;;  %2988 = vmatprep.subr.bf16.mxu0 %v3272_v41 }
  0xd8   : > { %3010 = vmatprep.subr.bf16.mxu1 %v3273_v42 }
  0xda   : > { %2989 = vmatpush3.bf16.msra.mxu0 %v3274_v43 }
  0xdb   : > { %3011 = vmatpush3.bf16.msra.mxu1 %v3275_v44  ;;  %2990 = vmatprep.subr.bf16.mxu0 %v3276_v45 }
  0xdc   : > { %3012 = vmatprep.subr.bf16.mxu1 %v3277_v46 }
  0xde   : > { %2991 = vmatpush3.bf16.msra.mxu0 %v3278_v47 }
  0xdf   : > { %3013 = vmatpush3.bf16.msra.mxu1 %v3279_v48  ;;  %2992 = vmatprep.subr.bf16.mxu0 %v3280_v49 }
  0xe0   : > { %3014 = vmatprep.subr.bf16.mxu1 %v3281_v50 }
  0xe2   : > { %2993 = vmatpush3.bf16.msra.mxu0 %v3282_v51 }
  0xe3   : > { %3015 = vmatpush3.bf16.msra.mxu1 %v3283_v52  ;;  %2994 = vmatprep.subr.bf16.mxu0 %v3284_v53 }
  0xe4   : > { %3016 = vmatprep.subr.bf16.mxu1 %v3285_v54 }
  0xe6   : > { %2995 = vmatpush3.bf16.msra.mxu0 %v3286_v55 }
  0xe7   : > { %3017 = vmatpush3.bf16.msra.mxu1 %v3287_v56  ;;  %3024 = vmatprep.subr.bf16.mxu0 %v3292_v63 }
  0xe8   : > { %3046 = vmatprep.subr.bf16.mxu1 %v3293_v0 }
  0xe9   : > { %2324 = vmatmul.mubr.bf16.vlgmr.msra.gmra.mrb[16].mxu0 %v2600_v58 }
  0xea   : > { %2364 = vmatmul.mubr.bf16.vlgmr.msra.gmra.mrb[16].mxu1 %v2602_v61  ;;  %3025 = vmatpush3.bf16.msra.mxu0 %v3294_v1 }
  0xeb   : > { %3047 = vmatpush3.bf16.msra.mxu1 %v3295_v2  ;;  %3026 = vmatprep.subr.bf16.mxu0 %v3296_v3 }
  0xec   : > { %3048 = vmatprep.subr.bf16.mxu1 %v3297_v4  ;;  %2403 = vmatprep.mubr.bf16.mxu0 %v2605_v34 }
  0xed   : > { %2443 = vmatprep.mubr.bf16.mxu1 %v2607_v36 }
  0xee   : > { %3027 = vmatpush3.bf16.msra.mxu0 %v3298_v5 }
  0xef   : > { %3049 = vmatpush3.bf16.msra.mxu1 %v3299_v6  ;;  %3028 = vmatprep.subr.bf16.mxu0 %v3300_v7 }
  0xf0   : > { %3050 = vmatprep.subr.bf16.mxu1 %v3301_v8 }
  0xf2   : > { %3029 = vmatpush3.bf16.msra.mxu0 %v3302_v9 }
  0xf3   : > { %3051 = vmatpush3.bf16.msra.mxu1 %v3303_v10  ;;  %3030 = vmatprep.subr.bf16.mxu0 %v3304_v11 }
  0xf4   : > { %3052 = vmatprep.subr.bf16.mxu1 %v3305_v12 }
  0xf6   : > { %3031 = vmatpush3.bf16.msra.mxu0 %v3306_v13 }
  0xf7   : > { %3053 = vmatpush3.bf16.msra.mxu1 %v3307_v14  ;;  %3032 = vmatprep.subr.bf16.mxu0 %v3308_v15 }
  0xf8   : > { %3054 = vmatprep.subr.bf16.mxu1 %v3309_v16 }
  0xfa   : > { %3033 = vmatpush3.bf16.msra.mxu0 %v3310_v17 }
  0xfb   : > { %3055 = vmatpush3.bf16.msra.mxu1 %v3311_v18  ;;  %3034 = vmatprep.subr.bf16.mxu0 %v3312_v19 }
  0xfc   : > { %3056 = vmatprep.subr.bf16.mxu1 %v3313_v20 }
  0xfe   : > { %3035 = vmatpush3.bf16.msra.mxu0 %v3314_v21 }
  0xff   : > { %3057 = vmatpush3.bf16.msra.mxu1 %v3315_v22  ;;  %3036 = vmatprep.subr.bf16.mxu0 %v3316_v23 }
 0x100   : > { %3058 = vmatprep.subr.bf16.mxu1 %v3317_v24 }
 0x102   : > { %3037 = vmatpush3.bf16.msra.mxu0 %v3318_v25 }
 0x103   : > { %3059 = vmatpush3.bf16.msra.mxu1 %v3319_v26  ;;  %3038 = vmatprep.subr.bf16.mxu0 %v3320_v27 }
 0x104   : > { %3060 = vmatprep.subr.bf16.mxu1 %v3321_v28 }
 0x106   : > { %3039 = vmatpush3.bf16.msra.mxu0 %v3322_v29 }
 0x107   : > { %3061 = vmatpush3.bf16.msra.mxu1 %v3323_v30 }
 0x109   : > { %2404 = vmatmul.mubr.bf16.vlgmr.msra.gmra.mrb[20].mxu0 %v2604_v33 }
 0x10a   : > { %2444 = vmatmul.mubr.bf16.vlgmr.msra.gmra.mrb[20].mxu1 %v2606_v35 }
 0x13c   : > { %v2820_v37 = vpop.f32.mrb[0].mxu0 }
 0x13d   : > { %v2842_v38 = vpop.f32.mrb[0].mxu1  ;;  %v2821_v39 = vpop.f32.mrb[1].mxu0 }
 0x13e   : > { %v2843_v40 = vpop.f32.mrb[1].mxu1  ;;  %v2822_v41 = vadd.f32 %v2821_v39, %v2820_v37  ;;  %v2823_v43 = vpop.f32.mrb[2].mxu0 }
 0x13f   : > { %v2844_v42 = vadd.f32 %v2843_v40, %v2842_v38  ;;  %v2845_v44 = vpop.f32.mrb[2].mxu1  ;;  %v2824_v45 = vpop.f32.mrb[3].mxu0  ;;  %v338_v43 = vld [vmem:[#allocation2] sm:$0xff] }
 0x140   : > { %v2846_v46 = vpop.f32.mrb[3].mxu1 }
 0x141   : > { %v2046_v47 = vadd.f32 %v2844_v42, %v2822_v41 }
 0x15c   : > { %v2864_v48 = vpop.f32.mrb[4].mxu0 }
 0x15d   : > { %v2886_v49 = vpop.f32.mrb[4].mxu1  ;;  %v2865_v50 = vpop.f32.mrb[5].mxu0 }
 0x15e   : > { %v2887_v51 = vpop.f32.mrb[5].mxu1  ;;  %v2866_v52 = vadd.f32 %v2865_v50, %v2864_v48  ;;  %v2867_v54 = vpop.f32.mrb[6].mxu0 }
 0x15f   : > { %v2888_v53 = vadd.f32 %v2887_v51, %v2886_v49  ;;  %v2889_v55 = vpop.f32.mrb[6].mxu1  ;;  %v2868_v56 = vpop.f32.mrb[7].mxu0 }
 0x160   : > { %v2890_v57 = vpop.f32.mrb[7].mxu1  ;;  %v2086_v58 = vadd.f32 %v2866_v52, %v2046_v47  ;;  %v2800_v47 = vld [vmem:[%s293_s12] ss:$0 sm:$0xff] (%p3530_p8) }
 0x162   : > { %v2126_v59 = vadd.f32 %v2888_v53, %v2086_v58 }
 0x17c   : > { %v2908_v60 = vpop.f32.mrb[8].mxu0 }
 0x17d   : > { %v2930_v61 = vpop.f32.mrb[8].mxu1  ;;  %v2909_v62 = vpop.f32.mrb[9].mxu0 }
 0x17e   : > { %v2910_v63 = vadd.f32 %v2909_v62, %v2908_v60  ;;  %v2931_v0 = vpop.f32.mrb[9].mxu1  ;;  %v2911_v1 = vpop.f32.mrb[10].mxu0 }
 0x17f   : > { %v2932_v2 = vadd.f32 %v2931_v0, %v2930_v61  ;;  %v2933_v3 = vpop.f32.mrb[10].mxu1  ;;  %v2912_v4 = vpop.f32.mrb[11].mxu0 }
 0x180   : > { %v2166_v5 = vadd.f32 %v2910_v63, %v2126_v59  ;;  %v2934_v6 = vpop.f32.mrb[11].mxu1 }
 0x182   : > { %v2206_v7 = vadd.f32 %v2932_v2, %v2166_v5 }
 0x19c   : > { %v2952_v8 = vpop.f32.mrb[12].mxu0 }
 0x19d   : > { %v2974_v9 = vpop.f32.mrb[12].mxu1  ;;  %v2953_v10 = vpop.f32.mrb[13].mxu0 }
 0x19e   : > { %v2954_v11 = vadd.f32 %v2953_v10, %v2952_v8  ;;  %v2975_v12 = vpop.f32.mrb[13].mxu1  ;;  %v2955_v13 = vpop.f32.mrb[14].mxu0 }
 0x19f   : > { %v2976_v14 = vadd.f32 %v2975_v12, %v2974_v9  ;;  %v2977_v15 = vpop.f32.mrb[14].mxu1  ;;  %v2956_v16 = vpop.f32.mrb[15].mxu0 }
 0x1a0   : > { %v2246_v17 = vadd.f32 %v2954_v11, %v2206_v7  ;;  %v2978_v18 = vpop.f32.mrb[15].mxu1 }
 0x1a2   : > { %v2286_v19 = vadd.f32 %v2976_v14, %v2246_v17 }
 0x1bc   : > { %v2996_v20 = vpop.f32.mrb[16].mxu0 }
 0x1bd   : > { %v3018_v21 = vpop.f32.mrb[16].mxu1  ;;  %v2997_v22 = vpop.f32.mrb[17].mxu0 }
 0x1be   : > { %v3019_v23 = vpop.f32.mrb[17].mxu1  ;;  %v2998_v24 = vadd.f32 %v2997_v22, %v2996_v20  ;;  %v2999_v26 = vpop.f32.mrb[18].mxu0 }
 0x1bf   : > { %v3020_v25 = vadd.f32 %v3019_v23, %v3018_v21  ;;  %v3021_v27 = vpop.f32.mrb[18].mxu1  ;;  %v3000_v28 = vpop.f32.mrb[19].mxu0 }
 0x1c0   : > { %v3022_v29 = vpop.f32.mrb[19].mxu1  ;;  %v2326_v30 = vadd.f32 %v2998_v24, %v2286_v19 }
 0x1c2   : > { %v2366_v31 = vadd.f32 %v3020_v25, %v2326_v30 }
 0x1dc   : > { %v3040_v32 = vpop.f32.mrb[20].mxu0 }
 0x1dd   : > { %v3062_v33 = vpop.f32.mrb[20].mxu1  ;;  %v3041_v34 = vpop.f32.mrb[21].mxu0 }
 0x1de   : > { %v3042_v35 = vadd.f32 %v3041_v34, %v3040_v32  ;;  %v3063_v36 = vpop.f32.mrb[21].mxu1  ;;  %v3043_v37 = vpop.f32.mrb[22].mxu0 }
 0x1df   : > { %v3064_v38 = vadd.f32 %v3063_v36, %v3062_v33  ;;  %v3065_v39 = vpop.f32.mrb[22].mxu1  ;;  %v3044_v40 = vpop.f32.mrb[23].mxu0 }
 0x1e0   : > { %v2406_v41 = vadd.f32 %v3042_v35, %v2366_v31  ;;  %v3066_v42 = vpop.f32.mrb[23].mxu1  ;;  %2455 = sbr.rel (!%p3530_p8) target bundleno = 499 (0x1f3), region = 44 }
 0x1e2   : > { %v2446_v44 = vadd.f32 %v3064_v38, %v2406_v41 }
 0x1e4   : > { %v2451_v45 = vadd.f32 %v2446_v44, %v338_v43 }
 0x1e6   : > { %2452 = vst [vmem:[#allocation2] sm:$0xff] %v2451_v45 }
 0x1ed   : > { %v2456_v46 = vld [vmem:[#allocation2] sm:$0xff] }
 0x1ee   : > { %v2464_v48 = vadd.f32 %v2800_v47, %v2456_v46 }
 0x1f0   : > { %v2465_v49 = vmax.f32 %v2464_v48, 0.0 }
 0x1f2   : > { %2466 = vst [vmem:[%s3542_s23] sm:$0xff] %v2465_v49 }
 0x1f3 PF: > { %p13_p9 = scmp.ge.s32.totalorder %s3440_s17, 10   ;;  %s3779_s12 = smov %s3384_s13 }
 0x1f4   : > { %s3780_s13 = smov %s3388_s14  ;;  %s3781_s14 = smov %s3450_s20 }
 0x1f5   : > { %s3782_s15 = smov %s3440_s17  ;;  %15 = sbr.rel (!%p13_p9) target bundleno = 3 (0x3), region = 86 }
 0x1fc   :  { %2510 = vsyncpa [#allocation4], 1 }
 0x1fd   :  { %2512 = vsyncpa [#allocation4 + $0x1], 1 }

// kernel: mscnn4_forward.16
= control target key start
LH: loop header
LB: loop body
LE: loop exit
PB: predicated region body
PF: predicated region fallthrough
CT: control target
= control target key end

     0   :  { %vm51_vm0 = vcmask 1042432   ;;  %v158_v0 = vmov 0.0   ;;  %vm159_vm1 = vmmov 0   ;;  %vm41_vm2 = vcmask 48128   ;;  %s215_s1 = inlined_call_operand.vmem [shape: bf16[6,16], index: 1, kind: input, shape index: {}]   ;;  %s216_s0 = inlined_call_operand.vmem [shape: bf16[40,6], index: 0, kind: input, shape index: {}]   ;;  %s217_s2 = inlined_call_operand.vmem [shape: f32[1,16], index: 2, kind: input, shape index: {}]   ;;  %s218_s3 = inlined_call_operand.vmem [shape: f32[40,16], index: 3, kind: output, shape index: {}]  }
   0x1   :  { %151 = vmatprep.subr.bf16.mxu1 %v158_v0  ;;  %v20_v1 = vld [vmem:[%s215_s1] sm:$0x7]  ;;  %137 = vmatprep.subr.bf16.mxu0 %v158_v0  ;;  %v155_v3 = vld [vmem:[%s216_s0 + $0x8] sm:$0xff]   ;;  %v157_v5 = vld [vmem:[%s216_s0 + $0x10] ss:$0 sps:$4 sm:$0xff]   ;;  %vm116_vm3 = vcmask 130048  }
   0x2   :  { %v53_v2 = vsel %vm51_vm0, %v20_v1, 0  ;;  %143 = vmatprep.mubr.msk.bf16.mxu1 %vm159_vm1, %v158_v0  ;;  %139 = vmatprep.mubr.msk.bf16.mxu0 %vm159_vm1, %v158_v0  ;;  %v156_v4 = vld [vmem:[%s216_s0] sm:$0xff]  }
   0x3   :  { %152 = vmatpush3.bf16.msra.mxu1 %v53_v2  ;;  %138 = vmatpush3.bf16.msra.mxu0 %v53_v2  ;;  %v126_v6 = vld [vmem:[%s217_s2] ss:$0 sm:$0xff] }
   0x6   :  { %144 = vmatmul.mubr.msk.bf16.vlgmr.msra.gmra.mrb[0].mxu1 %vm41_vm2, %v155_v3  ;;  %140 = vmatmul.mubr.msk.bf16.vlgmr.msra.gmra.mrb[0].mxu0 %vm41_vm2, %v156_v4 }
   0x7   :  { %147 = vmatprep.mubr.msk.bf16.mxu1 %vm159_vm1, %v158_v0 }
   0xe   :  { %148 = vmatmul.mubr.msk.bf16.gmra.mrb[4].mxu1 %vm41_vm2, %v157_v5 }
  0xd9   :  { %v97_v7 = vpop.f32.mrb[0].mxu1  ;;  %v89_v8 = vpop.f32.mrb[0].mxu0 }
  0xda   :  { %v98_v9 = vadd.f32 %v126_v6, %v97_v7  ;;  %v145_v10 = vpop.f32.mrb[1].mxu1  ;;  %v90_v11 = vadd.f32 %v126_v6, %v89_v8  ;;  %v141_v12 = vpop.f32.mrb[1].mxu0 }
  0xdb   :  { %v100_v13 = vpop.f32.mrb[2].mxu1  ;;  %v92_v14 = vpop.f32.mrb[2].mxu0 }
  0xdc   :  { %v113_v15 = vmax.f32 %v98_v9, 0.0  ;;  %v101_v16 = vadd.f32 %v126_v6, %v100_v13  ;;  %v111_v17 = vmax.f32 %v90_v11, 0.0  ;;  %v146_v18 = vpop.f32.mrb[3].mxu1  ;;  %v93_v19 = vadd.f32 %v126_v6, %v92_v14  ;;  %v142_v20 = vpop.f32.mrb[3].mxu0 }
  0xde   :  { %119 = vst.msk [vmem:[%s218_s3 + $0x10] sm:$0xff] %vm116_vm3, %v113_v15  ;;  %v114_v21 = vmax.f32 %v101_v16, 0.0  ;;  %117 = vst.msk [vmem:[%s218_s3] sm:$0xff] %vm116_vm3, %v111_v17  ;;  %v112_v22 = vmax.f32 %v93_v19, 0.0 }
  0xe0   :  { %120 = vst.msk [vmem:[%s218_s3 + $0x18] sm:$0xff] %vm116_vm3, %v114_v21  ;;  %118 = vst.msk [vmem:[%s218_s3 + $0x8] sm:$0xff] %vm116_vm3, %v112_v22 }
  0xe1   :  { %v105_v23 = vpop.f32.mrb[4].mxu1 }
  0xe2   :  { %v106_v24 = vadd.f32 %v126_v6, %v105_v23  ;;  %v149_v25 = vpop.f32.mrb[5].mxu1 }
  0xe3   :  { %v108_v26 = vpop.f32.mrb[6].mxu1 }
  0xe4   :  { %v115_v27 = vmax.f32 %v106_v24, 0.0  ;;  %v150_v28 = vpop.f32.mrb[7].mxu1 }
  0xe6   :  { %121 = vst.msk [vmem:[%s218_s3 + $0x20] sm:$0xff] %vm116_vm3, %v115_v27 }

// kernel: mscnn4_forward.17
= control target key start
LH: loop header
LB: loop body
LE: loop exit
PB: predicated region body
PF: predicated region fallthrough
CT: control target
= control target key end

     0   :  { %vm73_vm0 = vcmask 654336   ;;  %vm131_vm1 = vcmask 261120   ;;  %s230_s1 = inlined_call_operand.vmem [shape: bf16[80,32], index: 1, kind: input, shape index: {}]   ;;  %s231_s0 = inlined_call_operand.vmem [shape: bf16[24,80], index: 0, kind: input, shape index: {}]   ;;  %s232_s2 = inlined_call_operand.vmem [shape: f32[1,32], index: 2, kind: input, shape index: {}]   ;;  %s233_s3 = inlined_call_operand.vmem [shape: f32[24,32], index: 3, kind: output, shape index: {}]  }
   0x1   :  { %v170_v0 = vld [vmem:[%s230_s1] sm:$0xff]   ;;  %v171_v1 = vld [vmem:[%s230_s1 + $0x8] sm:$0xff]   ;;  %v172_v2 = vld [vmem:[%s230_s1 + $0x10] sm:$0xff]  }
   0x2   :  { %156 = vmatprep.subr.bf16.mxu0 %v170_v0  ;;  %v175_v3 = vld [vmem:[%s231_s0] sm:$0xff]   ;;  %v173_v4 = vld [vmem:[%s230_s1 + $0x18] sm:$0xff]   ;;  %v176_v6 = vld [vmem:[%s231_s0 + $0x8] ss:$0 sps:$4 sm:$0xff]  }
   0x3   :  { %157 = vmatpush3.bf16.msra.mxu0 %v170_v0  ;;  %166 = vmatprep.mubr.msk.bf16.mxu0 %vm73_vm0, %v175_v3  ;;  %v174_v5 = vld [vmem:[%s230_s1 + $0x20] sm:$0xff]  }
   0x4   :  { %158 = vmatprep.subr.bf16.mxu0 %v171_v1  ;;  %v139_v7 = vld [vmem:[%s232_s2] ss:$0 sm:$0xff] }
   0x7   :  { %159 = vmatpush3.bf16.msra.mxu0 %v171_v1 }
   0x8   :  { %160 = vmatprep.subr.bf16.mxu0 %v172_v2 }
   0xb   :  { %161 = vmatpush3.bf16.msra.mxu0 %v172_v2 }
   0xc   :  { %162 = vmatprep.subr.bf16.mxu0 %v173_v4 }
   0xf   :  { %163 = vmatpush3.bf16.msra.mxu0 %v173_v4 }
  0x10   :  { %164 = vmatprep.subr.bf16.mxu0 %v174_v5 }
  0x13   :  { %165 = vmatpush3.bf16.msra.mxu0 %v174_v5 }
  0x16   :  { %167 = vmatmul.mubr.msk.bf16.vlgmr.msra.gmra.mrb[0].mxu0 %vm73_vm0, %v176_v6 }
  0xe9   :  { %v168_v8 = vpop.f32.mrb[0].mxu0 }
  0xea   :  { %v123_v9 = vadd.f32 %v168_v8, %v139_v7  ;;  %v114_v10 = vpop.f32.mrb[1].mxu0 }
  0xeb   :  { %v115_v11 = vadd.f32 %v139_v7, %v114_v10  ;;  %v169_v12 = vpop.f32.mrb[2].mxu0 }
  0xec   :  { %v130_v13 = vmax.f32 %v123_v9, 0.0  ;;  %v117_v14 = vpop.f32.mrb[3].mxu0 }
  0xed   :  { %v128_v15 = vmax.f32 %v115_v11, 0.0  ;;  %v118_v16 = vadd.f32 %v139_v7, %v117_v14 }
  0xee   :  { %134 = vst.msk [vmem:[%s233_s3 + $0x10] sm:$0xff] %vm131_vm1, %v130_v13 }
  0xef   :  { %132 = vst.msk [vmem:[%s233_s3] sm:$0xff] %vm131_vm1, %v128_v15  ;;  %v129_v17 = vmax.f32 %v118_v16, 0.0 }
  0xf1   :  { %133 = vst.msk [vmem:[%s233_s3 + $0x8] sm:$0xff] %vm131_vm1, %v129_v17 }

// kernel: mscnn4_forward.18
= control target key start
LH: loop header
LB: loop body
LE: loop exit
PB: predicated region body
PF: predicated region fallthrough
CT: control target
= control target key end

     0   :  { %v194_v0 = vmov 0.0   ;;  %vm195_vm0 = vmmov 0   ;;  %vm137_vm1 = vcmask 523264   ;;  %s252_s1 = inlined_call_operand.vmem [shape: bf16[128,64], index: 1, kind: input, shape index: {}]   ;;  %s253_s0 = inlined_call_operand.vmem [shape: bf16[16,128], index: 0, kind: input, shape index: {}]   ;;  %s254_s2 = inlined_call_operand.vmem [shape: f32[1,64], index: 2, kind: input, shape index: {}]   ;;  %s255_s3 = inlined_call_operand.vmem [shape: f32[16,64], index: 3, kind: output, shape index: {}]  }
   0x1   :  { %163 = vmatprep.subr.bf16.mxu0 %v194_v0  ;;  %v185_v1 = vld [vmem:[%s252_s1] sm:$0xff]   ;;  %179 = vmatprep.mubr.msk.bf16.mxu0 %vm195_vm0, %v194_v0  ;;  %v186_v2 = vld [vmem:[%s252_s1 + $0x8] sm:$0xff]   ;;  %v187_v3 = vld [vmem:[%s252_s1 + $0x10] sm:$0xff]  }
   0x2   :  { %164 = vmatpush3.bf16.msra.mxu0 %v185_v1  ;;  %v188_v4 = vld [vmem:[%s252_s1 + $0x18] sm:$0xff]   ;;  %v189_v5 = vld [vmem:[%s252_s1 + $0x20] sm:$0xff]   ;;  %v190_v6 = vld [vmem:[%s252_s1 + $0x28] sm:$0xff]  }
   0x3   :  { %165 = vmatprep.subr.bf16.mxu0 %v194_v0  ;;  %v191_v7 = vld [vmem:[%s252_s1 + $0x30] sm:$0xff]   ;;  %v192_v8 = vld [vmem:[%s252_s1 + $0x38] sm:$0xff]   ;;  %v193_v9 = vld [vmem:[%s253_s0] sm:$0xff]  }
   0x4   :  { %v144_v10 = vld [vmem:[%s254_s2] ss:$0 sm:$0xff] }
   0x6   :  { %166 = vmatpush3.bf16.msra.mxu0 %v186_v2 }
   0x7   :  { %167 = vmatprep.subr.bf16.mxu0 %v194_v0 }
   0xa   :  { %168 = vmatpush3.bf16.msra.mxu0 %v187_v3 }
   0xb   :  { %169 = vmatprep.subr.bf16.mxu0 %v194_v0 }
   0xe   :  { %170 = vmatpush3.bf16.msra.mxu0 %v188_v4 }
   0xf   :  { %171 = vmatprep.subr.bf16.mxu0 %v194_v0 }
  0x12   :  { %172 = vmatpush3.bf16.msra.mxu0 %v189_v5 }
  0x13   :  { %173 = vmatprep.subr.bf16.mxu0 %v194_v0 }
  0x16   :  { %174 = vmatpush3.bf16.msra.mxu0 %v190_v6 }
  0x17   :  { %175 = vmatprep.subr.bf16.mxu0 %v194_v0 }
  0x1a   :  { %176 = vmatpush3.bf16.msra.mxu0 %v191_v7 }
  0x1b   :  { %177 = vmatprep.subr.bf16.mxu0 %v194_v0 }
  0x1e   :  { %178 = vmatpush3.bf16.msra.mxu0 %v192_v8 }
  0x21   :  { %180 = vmatmul.mubr.bf16.vlgmr.msra.gmra.mrb[0].mxu0 %v193_v9 }
  0xf4   :  { %v128_v11 = vpop.f32.mrb[0].mxu0 }
  0xf5   :  { %v129_v12 = vadd.f32 %v144_v10, %v128_v11  ;;  %v181_v13 = vpop.f32.mrb[1].mxu0 }
  0xf6   :  { %v131_v14 = vpop.f32.mrb[2].mxu0 }
  0xf7   :  { %v135_v15 = vmax.f32 %v129_v12, 0.0  ;;  %v132_v16 = vadd.f32 %v144_v10, %v131_v14  ;;  %v182_v17 = vpop.f32.mrb[3].mxu0 }
  0xf9   :  { %138 = vst.msk [vmem:[%s255_s3] sm:$0xff] %vm137_vm1, %v135_v15  ;;  %v136_v18 = vmax.f32 %v132_v16, 0.0 }
  0xfb   :  { %139 = vst.msk [vmem:[%s255_s3 + $0x8] sm:$0xff] %vm137_vm1, %v136_v18 }

// kernel: mscnn4_forward.15
= control target key start
LH: loop header
LB: loop body
LE: loop exit
PB: predicated region body
PF: predicated region fallthrough
CT: control target
= control target key end

     0   :  { %s8312_s12 = smov 0   ;;  %s9349_s0 = inlined_call_operand.vmem [shape: bf16[8,49152], index: 0, kind: input, shape index: {}]   ;;  %s9350_s1 = inlined_call_operand.vmem [shape: bf16[49152,256], index: 1, kind: input, shape index: {}]   ;;  %s9351_s2 = inlined_call_operand.vmem [shape: f32[4,1,256], index: 2, kind: input, shape index: {}]   ;;  %s9352_s3 = inlined_call_operand.vmem [shape: f32[4,8,256], index: 3, kind: output, shape index: {}]  }
   0x1 LB: > { %s8318_s13 = sadd.s32 4294967295, %s8289_s12   ;;  %p6247_p0 = scmp.ge.s32.totalorder %s8289_s12, 1  ;;  %s8289_s12 = sphi %s8312_s12, %s13_s12  }
   0x2   : > { %p207_p1 = scmp.lt.s32.totalorder %s8289_s12, 9 }
   0x4   : > { %p208_p2 = pnand %p6247_p0, %p207_p1 }
   0x5   : > { %s257_s14 = smul.u32 (!%p208_p2), 48, %s8318_s13  ;;  %p270_p3 = scmp.ge.s32.totalorder (!%p208_p2), %s8318_s13, 1 }
   0x6   : > { %211 = sbr.rel (%p208_p2) target bundleno = 1031 (0x407), region = 32  ;;  %p272_p4 = scmp.ge.s32.totalorder (!%p208_p2), %s8318_s13, 2 }
   0x7   : > { %s263_s15 = smul.u32 (!%p208_p2), 768, %s8318_s13  ;;  %p258_p5 = scmp.lt.s32.totalorder (!%p208_p2), %s257_s14, 383 }
   0x8   : > { %p275_p6 = scmp.ge.s32.totalorder (!%p208_p2), %s8318_s13, 4  ;;  %p311_p8 = scmp.eq.s32.totalorder (!%p208_p2), %s8318_s13, 0 }
   0x9   : > { %p264_p7 = scmp.lt.s32.totalorder (!%p208_p2), %s263_s15, 6143  ;;  %p312_p9 = scmp.eq.s32.totalorder (!%p208_p2), %s8318_s13, 1 }
   0xa   : > { %p314_p11 = scmp.eq.s32.totalorder (!%p208_p2), %s8318_s13, 2  ;;  %p316_p12 = scmp.eq.s32.totalorder (!%p208_p2), %s8318_s13, 4 }
   0xb   : > { %p8339_p10 = por (!%p208_p2), %p312_p9, %p311_p8  ;;  %p318_p1 = scmp.eq.s32.totalorder (!%p208_p2), %s8318_s13, 3 }
   0xc   : > { %p320_p2 = scmp.eq.s32.totalorder (!%p208_p2), %s8318_s13, 7 }
   0xd   : > { %s9356_s14 = smov (!%p258_p5, %s257_s14), 383  ;;  %s9358_s15 = smov (!%p264_p7, %s263_s15), 6143 }
   0xe   : > { %s6248_s16 = sshll.u32 %s9356_s14, 2  ;;  %s7072_s20 = sshll.u32 %s9358_s15, 3 }
   0xf   : > { %s8332_s19 = scalar_lea.vmem %s9349_s0, %s6248_s16  ;;  %s8337_s23 = scalar_lea.vmem %s9350_s1, %s7072_s20 }
  0x10   : > { %s271_s25 = scalar_select %p270_p3, 1, 0 }
  0x11   : > { %s273_s26 = scalar_select %p272_p4, 1, 0 }
  0x12   : > { %s276_s27 = scalar_select %p275_p6, 1, 0 }
  0x13   : > { %s274_s28 = sadd.s32 %s273_s26, %s271_s25  ;;  %p315_p0 = por %p314_p11, %p8339_p10 }
  0x14   : > { %s277_s29 = sadd.s32 %s276_s27, %s274_s28  ;;  %p319_p7 = por %p318_p1, %p8339_p10 }
  0x15   : > { %p278_p13 = scmp.lt.s32.totalorder %s277_s29, 3  ;;  %p317_p5 = por %p316_p12, %p315_p0 }
  0x16   : > { %p8365_p3 = por %p320_p2, %p319_p7  ;;  %v8291_v0 = vmov (%p317_p5), 0.0  }
  0x17   : > { %s9360_s29 = smov (!%p278_p13, %s277_s29), 3  ;;  %324 = sbr.rel (!%p317_p5) target bundleno = 30 (0x1e), region = 36 }
  0x18   : > { %s6251_s30 = sshll.u32 %s9360_s29, 1  ;;  %s7073_s4 = sshll.u32 %s9360_s29, 4  ;;  %325 = vst [vmem:[#allocation2] sm:$0xff] (%p317_p5), %v8291_v0  ;;  %326 = vst [vmem:[#allocation2 + $0x8] sm:$0xff] (%p317_p5), %v8291_v0 }
  0x19   : > { %s8358_s7 = scalar_lea.vmem %s9351_s2, %s6251_s30  ;;  %s8363_s10 = scalar_lea.vmem %s9352_s3, %s7073_s4 }
  0x1e PF: > { %v7083_v1 = vld [vmem:[%s8337_s23 + $0x4] ss:$8 sps:$4 sm:$0xff]   ;;  %v7087_v3 = vld [vmem:[%s8337_s23] ss:$8 sps:$4 sm:$0xff]   ;;  %v7089_v5 = vld [vmem:[%s8337_s23 + $0x14] ss:$8 sps:$4 sm:$0xff]  }
  0x1f   : > { %v7085_v2 = vld [vmem:[%s8337_s23 + $0x104] ss:$8 sps:$4 sm:$0xff]   ;;  %5129 = vmatprep.subr.bf16.mxu0 %v7083_v1  ;;  %v7088_v4 = vld [vmem:[%s8337_s23 + $0x100] ss:$8 sps:$4 sm:$0xff]   ;;  %v7091_v6 = vld [vmem:[%s8337_s23 + $0x114] ss:$8 sps:$4 sm:$0xff]  }
  0x20   : > { %5170 = vmatprep.subr.bf16.mxu1 %v7085_v2  ;;  %5130 = vmatpush1.bf16.msra.mxu0 %v7087_v3  ;;  %v7093_v7 = vld [vmem:[%s8337_s23 + $0x10] ss:$8 sps:$4 sm:$0xff]   ;;  %v7095_v9 = vld [vmem:[%s8337_s23 + $0x24] ss:$8 sps:$4 sm:$0xff]   ;;  %v7099_v11 = vld [vmem:[%s8337_s23 + $0x20] ss:$8 sps:$4 sm:$0xff]  }
  0x21   : > { %5171 = vmatpush1.bf16.msra.mxu1 %v7088_v4  ;;  %5131 = vmatprep.subr.bf16.mxu0 %v7089_v5  ;;  %v7094_v8 = vld [vmem:[%s8337_s23 + $0x110] ss:$8 sps:$4 sm:$0xff]   ;;  %v7097_v10 = vld [vmem:[%s8337_s23 + $0x124] ss:$8 sps:$4 sm:$0xff]   ;;  %v7100_v12 = vld [vmem:[%s8337_s23 + $0x120] ss:$8 sps:$4 sm:$0xff]  }
  0x22   : > { %5172 = vmatprep.subr.bf16.mxu1 %v7091_v6  ;;  %v7101_v13 = vld [vmem:[%s8337_s23 + $0x34] ss:$8 sps:$4 sm:$0xff]   ;;  %v7105_v15 = vld [vmem:[%s8337_s23 + $0x30] ss:$8 sps:$4 sm:$0xff]   ;;  %v7107_v17 = vld [vmem:[%s8337_s23 + $0x44] ss:$8 sps:$4 sm:$0xff]  }
  0x23   : > { %v7103_v14 = vld [vmem:[%s8337_s23 + $0x134] ss:$8 sps:$4 sm:$0xff]   ;;  %v7106_v16 = vld [vmem:[%s8337_s23 + $0x130] ss:$8 sps:$4 sm:$0xff]   ;;  %v7109_v18 = vld [vmem:[%s8337_s23 + $0x144] ss:$8 sps:$4 sm:$0xff]  }
  0x24   : > { %5132 = vmatpush1.bf16.msra.mxu0 %v7093_v7  ;;  %v7111_v19 = vld [vmem:[%s8337_s23 + $0x40] ss:$8 sps:$4 sm:$0xff]   ;;  %v7113_v21 = vld [vmem:[%s8337_s23 + $0x54] ss:$8 sps:$4 sm:$0xff]   ;;  %v7117_v23 = vld [vmem:[%s8337_s23 + $0x50] ss:$8 sps:$4 sm:$0xff]  }
  0x25   : > { %5173 = vmatpush1.bf16.msra.mxu1 %v7094_v8  ;;  %5133 = vmatprep.subr.bf16.mxu0 %v7095_v9  ;;  %v7112_v20 = vld [vmem:[%s8337_s23 + $0x140] ss:$8 sps:$4 sm:$0xff]   ;;  %v7115_v22 = vld [vmem:[%s8337_s23 + $0x154] ss:$8 sps:$4 sm:$0xff]   ;;  %v7118_v24 = vld [vmem:[%s8337_s23 + $0x150] ss:$8 sps:$4 sm:$0xff]  }
  0x26   : > { %5174 = vmatprep.subr.bf16.mxu1 %v7097_v10  ;;  %v7119_v25 = vld [vmem:[%s8337_s23 + $0x64] ss:$8 sps:$4 sm:$0xff]   ;;  %v7123_v27 = vld [vmem:[%s8337_s23 + $0x60] ss:$8 sps:$4 sm:$0xff]   ;;  %v7125_v29 = vld [vmem:[%s8337_s23 + $0x74] ss:$8 sps:$4 sm:$0xff]  }
  0x27   : > { %v7121_v26 = vld [vmem:[%s8337_s23 + $0x164] ss:$8 sps:$4 sm:$0xff]   ;;  %v7124_v28 = vld [vmem:[%s8337_s23 + $0x160] ss:$8 sps:$4 sm:$0xff]   ;;  %v7127_v30 = vld [vmem:[%s8337_s23 + $0x174] ss:$8 sps:$4 sm:$0xff]  }
  0x28   : > { %5134 = vmatpush1.bf16.msra.mxu0 %v7099_v11  ;;  %v7129_v31 = vld [vmem:[%s8337_s23 + $0x70] ss:$8 sps:$4 sm:$0xff]   ;;  %v7131_v33 = vld [vmem:[%s8337_s23 + $0x84] ss:$8 sps:$4 sm:$0xff]   ;;  %v7135_v35 = vld [vmem:[%s8337_s23 + $0x80] ss:$8 sps:$4 sm:$0xff]  }
  0x29   : > { %5175 = vmatpush1.bf16.msra.mxu1 %v7100_v12  ;;  %5135 = vmatprep.subr.bf16.mxu0 %v7101_v13  ;;  %v7130_v32 = vld [vmem:[%s8337_s23 + $0x170] ss:$8 sps:$4 sm:$0xff]   ;;  %v7133_v34 = vld [vmem:[%s8337_s23 + $0x184] ss:$8 sps:$4 sm:$0xff]   ;;  %v7136_v36 = vld [vmem:[%s8337_s23 + $0x180] ss:$8 sps:$4 sm:$0xff]  }
  0x2a   : > { %5176 = vmatprep.subr.bf16.mxu1 %v7103_v14  ;;  %v7137_v37 = vld [vmem:[%s8337_s23 + $0x94] ss:$8 sps:$4 sm:$0xff]   ;;  %v7141_v39 = vld [vmem:[%s8337_s23 + $0x90] ss:$8 sps:$4 sm:$0xff]   ;;  %v7143_v41 = vld [vmem:[%s8337_s23 + $0xa4] ss:$8 sps:$4 sm:$0xff]  }
  0x2b   : > { %v7139_v38 = vld [vmem:[%s8337_s23 + $0x194] ss:$8 sps:$4 sm:$0xff]   ;;  %v7142_v40 = vld [vmem:[%s8337_s23 + $0x190] ss:$8 sps:$4 sm:$0xff]   ;;  %v7145_v42 = vld [vmem:[%s8337_s23 + $0x1a4] ss:$8 sps:$4 sm:$0xff]  }
  0x2c   : > { %5136 = vmatpush1.bf16.msra.mxu0 %v7105_v15  ;;  %v7147_v43 = vld [vmem:[%s8337_s23 + $0xa0] ss:$8 sps:$4 sm:$0xff]   ;;  %v7149_v45 = vld [vmem:[%s8337_s23 + $0xb4] ss:$8 sps:$4 sm:$0xff]   ;;  %v7153_v50 = vld [vmem:[%s8337_s23 + $0xb0] ss:$8 sps:$4 sm:$0xff]  }
  0x2d   : > { %5177 = vmatpush1.bf16.msra.mxu1 %v7106_v16  ;;  %5137 = vmatprep.subr.bf16.mxu0 %v7107_v17  ;;  %v7148_v44 = vld [vmem:[%s8337_s23 + $0x1a0] ss:$8 sps:$4 sm:$0xff]   ;;  %v7151_v46 = vld [vmem:[%s8337_s23 + $0x1b4] ss:$8 sps:$4 sm:$0xff]   ;;  %v7154_v51 = vld [vmem:[%s8337_s23 + $0x1b0] ss:$8 sps:$4 sm:$0xff]  }
  0x2e   : > { %5178 = vmatprep.subr.bf16.mxu1 %v7109_v18  ;;  %v329_v47 = vld [vmem:[%s8332_s19] sm:$0xff]  ;;  %v330_v49 = vld [vmem:[%s8332_s19 + $0x8] sm:$0xff]  ;;  %v7161_v57 = vld [vmem:[%s8337_s23 + $0xd4] ss:$8 sps:$4 sm:$0xff]  }
  0x2f   : > { %v6255_v48 = vcombine.high %v329_v47, %v329_v47  ;;  %v6257_v52 = vcombine.high %v330_v49, %v330_v49  ;;  %v7155_v53 = vld [vmem:[%s8337_s23 + $0xc4] ss:$8 sps:$4 sm:$0xff]   ;;  %v7159_v55 = vld [vmem:[%s8337_s23 + $0xc0] ss:$8 sps:$4 sm:$0xff]   ;;  %v7163_v58 = vld [vmem:[%s8337_s23 + $0x1d4] ss:$8 sps:$4 sm:$0xff]   ;;  %v6254_v7 = vcombine.low %v329_v47, %v329_v47  ;;  %v6256_v8 = vcombine.low %v330_v49, %v330_v49 }
  0x30   : > { %5138 = vmatpush1.bf16.msra.mxu0 %v7111_v19  ;;  %v7157_v54 = vld [vmem:[%s8337_s23 + $0x1c4] ss:$8 sps:$4 sm:$0xff]   ;;  %v7160_v56 = vld [vmem:[%s8337_s23 + $0x1c0] ss:$8 sps:$4 sm:$0xff]   ;;  %v7165_v59 = vld [vmem:[%s8337_s23 + $0xd0] ss:$8 sps:$4 sm:$0xff]  }
  0x31   : > { %5179 = vmatpush1.bf16.msra.mxu1 %v7112_v20  ;;  %5139 = vmatprep.subr.bf16.mxu0 %v7113_v21  ;;  %v7166_v60 = vld [vmem:[%s8337_s23 + $0x1d0] ss:$8 sps:$4 sm:$0xff]   ;;  %v7167_v61 = vld [vmem:[%s8337_s23 + $0xe4] ss:$8 sps:$4 sm:$0xff]   ;;  %v7171_v63 = vld [vmem:[%s8337_s23 + $0xe0] ss:$8 sps:$4 sm:$0xff]  }
  0x32   : > { %5180 = vmatprep.subr.bf16.mxu1 %v7115_v22  ;;  %5161 = vmatprep.mubr.bf16.mxu0 %v6255_v48  ;;  %v7169_v62 = vld [vmem:[%s8337_s23 + $0x1e4] ss:$8 sps:$4 sm:$0xff]   ;;  %v7172_v0 = vld [vmem:[%s8337_s23 + $0x1e0] ss:$8 sps:$4 sm:$0xff]   ;;  %v7173_v1 = vld [vmem:[%s8337_s23 + $0xf4] ss:$8 sps:$4 sm:$0xff]  }
  0x33   : > { %5202 = vmatprep.mubr.bf16.mxu1 %v6257_v52  ;;  %v7175_v2 = vld [vmem:[%s8337_s23 + $0x1f4] ss:$8 sps:$4 sm:$0xff]   ;;  %v7177_v3 = vld [vmem:[%s8337_s23 + $0xf0] ss:$8 sps:$4 sm:$0xff]   ;;  %v7185_v5 = vld [vmem:[%s8337_s23 + $0x204] ss:$8 sps:$4 sm:$0xff]  }
  0x34   : > { %5140 = vmatpush1.bf16.msra.mxu0 %v7117_v23  ;;  %v7178_v4 = vld [vmem:[%s8337_s23 + $0x1f0] ss:$8 sps:$4 sm:$0xff]   ;;  %v7188_v6 = vld [vmem:[%s8337_s23 + $0x304] ss:$8 sps:$4 sm:$0xff]   ;;  %v7183_v9 = vld [vmem:[%s8337_s23 + $0x200] ss:$8 sps:$4 sm:$0xff]  }
  0x35   : > { %5181 = vmatpush1.bf16.msra.mxu1 %v7118_v24  ;;  %5141 = vmatprep.subr.bf16.mxu0 %v7119_v25  ;;  %v7186_v10 = vld [vmem:[%s8337_s23 + $0x300] ss:$8 sps:$4 sm:$0xff]   ;;  %v7191_v11 = vld [vmem:[%s8337_s23 + $0x214] ss:$8 sps:$4 sm:$0xff]   ;;  %v7189_v13 = vld [vmem:[%s8337_s23 + $0x210] ss:$8 sps:$4 sm:$0xff]  }
  0x36   : > { %5182 = vmatprep.subr.bf16.mxu1 %v7121_v26  ;;  %v7194_v12 = vld [vmem:[%s8337_s23 + $0x314] ss:$8 sps:$4 sm:$0xff]   ;;  %v7192_v14 = vld [vmem:[%s8337_s23 + $0x310] ss:$8 sps:$4 sm:$0xff]   ;;  %v7197_v15 = vld [vmem:[%s8337_s23 + $0x224] ss:$8 sps:$4 sm:$0xff]  }
  0x37   : > { %v7200_v16 = vld [vmem:[%s8337_s23 + $0x324] ss:$8 sps:$4 sm:$0xff]   ;;  %v7195_v17 = vld [vmem:[%s8337_s23 + $0x220] ss:$8 sps:$4 sm:$0xff]   ;;  %v7203_v19 = vld [vmem:[%s8337_s23 + $0x234] ss:$8 sps:$4 sm:$0xff]  }
  0x38   : > { %5142 = vmatpush1.bf16.msra.mxu0 %v7123_v27  ;;  %v7198_v18 = vld [vmem:[%s8337_s23 + $0x320] ss:$8 sps:$4 sm:$0xff]   ;;  %v7206_v20 = vld [vmem:[%s8337_s23 + $0x334] ss:$8 sps:$4 sm:$0xff]   ;;  %v7201_v21 = vld [vmem:[%s8337_s23 + $0x230] ss:$8 sps:$4 sm:$0xff]  }
  0x39   : > { %5183 = vmatpush1.bf16.msra.mxu1 %v7124_v28  ;;  %5143 = vmatprep.subr.bf16.mxu0 %v7125_v29  ;;  %v7204_v22 = vld [vmem:[%s8337_s23 + $0x330] ss:$8 sps:$4 sm:$0xff]   ;;  %v7209_v23 = vld [vmem:[%s8337_s23 + $0x244] ss:$8 sps:$4 sm:$0xff]   ;;  %v7207_v25 = vld [vmem:[%s8337_s23 + $0x240] ss:$8 sps:$4 sm:$0xff]  }
  0x3a   : > { %5184 = vmatprep.subr.bf16.mxu1 %v7127_v30  ;;  %v7212_v24 = vld [vmem:[%s8337_s23 + $0x344] ss:$8 sps:$4 sm:$0xff]   ;;  %v7210_v26 = vld [vmem:[%s8337_s23 + $0x340] ss:$8 sps:$4 sm:$0xff]   ;;  %v7215_v27 = vld [vmem:[%s8337_s23 + $0x254] ss:$8 sps:$4 sm:$0xff]  }
  0x3b   : > { %v7218_v28 = vld [vmem:[%s8337_s23 + $0x354] ss:$8 sps:$4 sm:$0xff]   ;;  %v7213_v29 = vld [vmem:[%s8337_s23 + $0x250] ss:$8 sps:$4 sm:$0xff]   ;;  %v7248_v52 = vld [vmem:[%s8337_s23 + $0x3a4] ss:$8 sps:$4 sm:$0xff]  }
  0x3c   : > { %5144 = vmatpush1.bf16.msra.mxu0 %v7129_v31  ;;  %v7216_v30 = vld [vmem:[%s8337_s23 + $0x350] ss:$8 sps:$4 sm:$0xff]   ;;  %v7221_v31 = vld [vmem:[%s8337_s23 + $0x264] ss:$8 sps:$4 sm:$0xff]   ;;  %v7239_v47 = vld [vmem:[%s8337_s23 + $0x294] ss:$8 sps:$4 sm:$0xff]  }
  0x3d   : > { %5185 = vmatpush1.bf16.msra.mxu1 %v7130_v32  ;;  %5145 = vmatprep.subr.bf16.mxu0 %v7131_v33  ;;  %v7224_v32 = vld [vmem:[%s8337_s23 + $0x364] ss:$8 sps:$4 sm:$0xff]   ;;  %v8462_v33 = vld [vmem:[%s8332_s19 + $0x10] sm:$0xff] }
  0x3e   : > { %5186 = vmatprep.subr.bf16.mxu1 %v7133_v34  ;;  %v8465_v34 = vld [vmem:[%s8332_s19 + $0x18] sm:$0xff] }
  0x3f   : > { %v7242_v48 = vld [vmem:[%s8337_s23 + $0x394] ss:$8 sps:$4 sm:$0xff]   ;;  %v7237_v49 = vld [vmem:[%s8337_s23 + $0x290] ss:$8 sps:$4 sm:$0xff]  }
  0x40   : > { %5146 = vmatpush1.bf16.msra.mxu0 %v7135_v35  ;;  %v7219_v35 = vld [vmem:[%s8337_s23 + $0x260] ss:$8 sps:$4 sm:$0xff]  }
  0x41   : > { %5187 = vmatpush1.bf16.msra.mxu1 %v7136_v36  ;;  %5147 = vmatprep.subr.bf16.mxu0 %v7137_v37  ;;  %v7222_v36 = vld [vmem:[%s8337_s23 + $0x360] ss:$8 sps:$4 sm:$0xff]   ;;  %v6259_v37 = vcombine.high %v8462_v33, %v8462_v33 }
  0x42   : > { %5188 = vmatprep.subr.bf16.mxu1 %v7139_v38  ;;  %v6261_v38 = vcombine.high %v8465_v34, %v8465_v34 }
  0x44   : > { %5148 = vmatpush1.bf16.msra.mxu0 %v7141_v39  ;;  %v7227_v39 = vld [vmem:[%s8337_s23 + $0x274] ss:$8 sps:$4 sm:$0xff]  }
  0x45   : > { %5189 = vmatpush1.bf16.msra.mxu1 %v7142_v40  ;;  %5149 = vmatprep.subr.bf16.mxu0 %v7143_v41  ;;  %v7230_v40 = vld [vmem:[%s8337_s23 + $0x374] ss:$8 sps:$4 sm:$0xff]   ;;  %v7225_v41 = vld [vmem:[%s8337_s23 + $0x270] ss:$8 sps:$4 sm:$0xff]  }
  0x46   : > { %5190 = vmatprep.subr.bf16.mxu1 %v7145_v42  ;;  %v7228_v42 = vld [vmem:[%s8337_s23 + $0x370] ss:$8 sps:$4 sm:$0xff]  }
  0x48   : > { %5150 = vmatpush1.bf16.msra.mxu0 %v7147_v43  ;;  %v7233_v43 = vld [vmem:[%s8337_s23 + $0x284] ss:$8 sps:$4 sm:$0xff]  }
  0x49   : > { %5191 = vmatpush1.bf16.msra.mxu1 %v7148_v44  ;;  %5151 = vmatprep.subr.bf16.mxu0 %v7149_v45  ;;  %v7236_v44 = vld [vmem:[%s8337_s23 + $0x384] ss:$8 sps:$4 sm:$0xff]   ;;  %v7231_v45 = vld [vmem:[%s8337_s23 + $0x280] ss:$8 sps:$4 sm:$0xff]  }
  0x4a   : > { %5192 = vmatprep.subr.bf16.mxu1 %v7151_v46  ;;  %v7234_v46 = vld [vmem:[%s8337_s23 + $0x380] ss:$8 sps:$4 sm:$0xff]  }
  0x4c   : > { %5152 = vmatpush1.bf16.msra.mxu0 %v7153_v50  ;;  %v7240_v50 = vld [vmem:[%s8337_s23 + $0x390] ss:$8 sps:$4 sm:$0xff]  }
  0x4d   : > { %5193 = vmatpush1.bf16.msra.mxu1 %v7154_v51  ;;  %5153 = vmatprep.subr.bf16.mxu0 %v7155_v53  ;;  %v7245_v51 = vld [vmem:[%s8337_s23 + $0x2a4] ss:$8 sps:$4 sm:$0xff]   ;;  %v7243_v53 = vld [vmem:[%s8337_s23 + $0x2a0] ss:$8 sps:$4 sm:$0xff]  }
  0x4e   : > { %5194 = vmatprep.subr.bf16.mxu1 %v7157_v54  ;;  %v7246_v54 = vld [vmem:[%s8337_s23 + $0x3a0] ss:$8 sps:$4 sm:$0xff]  }
  0x50   : > { %5154 = vmatpush1.bf16.msra.mxu0 %v7159_v55  ;;  %v7251_v55 = vld [vmem:[%s8337_s23 + $0x2b4] ss:$8 sps:$4 sm:$0xff]  }
  0x51   : > { %5195 = vmatpush1.bf16.msra.mxu1 %v7160_v56  ;;  %5155 = vmatprep.subr.bf16.mxu0 %v7161_v57  ;;  %v7254_v56 = vld [vmem:[%s8337_s23 + $0x3b4] ss:$8 sps:$4 sm:$0xff]   ;;  %v7249_v57 = vld [vmem:[%s8337_s23 + $0x2b0] ss:$8 sps:$4 sm:$0xff]  }
  0x52   : > { %5196 = vmatprep.subr.bf16.mxu1 %v7163_v58  ;;  %v7252_v58 = vld [vmem:[%s8337_s23 + $0x3b0] ss:$8 sps:$4 sm:$0xff]  }
  0x54   : > { %5156 = vmatpush1.bf16.msra.mxu0 %v7165_v59  ;;  %v7257_v59 = vld [vmem:[%s8337_s23 + $0x2c4] ss:$8 sps:$4 sm:$0xff]  }
  0x55   : > { %5197 = vmatpush1.bf16.msra.mxu1 %v7166_v60  ;;  %5157 = vmatprep.subr.bf16.mxu0 %v7167_v61  ;;  %v7260_v60 = vld [vmem:[%s8337_s23 + $0x3c4] ss:$8 sps:$4 sm:$0xff]   ;;  %v7255_v61 = vld [vmem:[%s8337_s23 + $0x2c0] ss:$8 sps:$4 sm:$0xff]  }
  0x56   : > { %5198 = vmatprep.subr.bf16.mxu1 %v7169_v62  ;;  %v7258_v62 = vld [vmem:[%s8337_s23 + $0x3c0] ss:$8 sps:$4 sm:$0xff]  }
  0x58   : > { %5158 = vmatpush1.bf16.msra.mxu0 %v7171_v63  ;;  %v7263_v63 = vld [vmem:[%s8337_s23 + $0x2d4] ss:$8 sps:$4 sm:$0xff]  }
  0x59   : > { %5199 = vmatpush1.bf16.msra.mxu1 %v7172_v0  ;;  %5159 = vmatprep.subr.bf16.mxu0 %v7173_v1  ;;  %v7266_v0 = vld [vmem:[%s8337_s23 + $0x3d4] ss:$8 sps:$4 sm:$0xff]   ;;  %v7261_v1 = vld [vmem:[%s8337_s23 + $0x2d0] ss:$8 sps:$4 sm:$0xff]  }
  0x5a   : > { %5200 = vmatprep.subr.bf16.mxu1 %v7175_v2  ;;  %v7264_v2 = vld [vmem:[%s8337_s23 + $0x3d0] ss:$8 sps:$4 sm:$0xff]  }
  0x5c   : > { %5160 = vmatpush1.bf16.msra.mxu0 %v7177_v3  ;;  %v7269_v3 = vld [vmem:[%s8337_s23 + $0x2e4] ss:$8 sps:$4 sm:$0xff]  }
  0x5d   : > { %5201 = vmatpush1.bf16.msra.mxu1 %v7178_v4  ;;  %5211 = vmatprep.subr.bf16.mxu0 %v7185_v5  ;;  %v7272_v4 = vld [vmem:[%s8337_s23 + $0x3e4] ss:$8 sps:$4 sm:$0xff]   ;;  %v7267_v5 = vld [vmem:[%s8337_s23 + $0x2e0] ss:$8 sps:$4 sm:$0xff]  }
  0x5e   : > { %5252 = vmatprep.subr.bf16.mxu1 %v7188_v6  ;;  %v7270_v6 = vld [vmem:[%s8337_s23 + $0x3e0] ss:$8 sps:$4 sm:$0xff]  }
  0x5f   : > { %5162 = vmatmul.mubr.bf16.vlgmr.msra.gmra.mrb[0].mxu0 %v6254_v7  ;;  %v7275_v7 = vld [vmem:[%s8337_s23 + $0x2f4] ss:$8 sps:$4 sm:$0xff]  }
  0x60   : > { %5203 = vmatmul.mubr.bf16.vlgmr.msra.gmra.mrb[0].mxu1 %v6256_v8  ;;  %5212 = vmatpush1.bf16.msra.mxu0 %v7183_v9  ;;  %v7278_v8 = vld [vmem:[%s8337_s23 + $0x3f4] ss:$8 sps:$4 sm:$0xff]   ;;  %v7273_v9 = vld [vmem:[%s8337_s23 + $0x2f0] ss:$8 sps:$4 sm:$0xff]  }
  0x61   : > { %5253 = vmatpush1.bf16.msra.mxu1 %v7186_v10  ;;  %5213 = vmatprep.subr.bf16.mxu0 %v7191_v11  ;;  %v7276_v10 = vld [vmem:[%s8337_s23 + $0x3f0] ss:$8 sps:$4 sm:$0xff]   ;;  %v7285_v11 = vld [vmem:[%s8337_s23 + $0x404] ss:$8 sps:$4 sm:$0xff]  }
  0x62   : > { %5254 = vmatprep.subr.bf16.mxu1 %v7194_v12  ;;  %5243 = vmatprep.mubr.bf16.mxu0 %v6259_v37  ;;  %v7288_v12 = vld [vmem:[%s8337_s23 + $0x504] ss:$8 sps:$4 sm:$0xff]   ;;  %v7315_v37 = vld [vmem:[%s8337_s23 + $0x454] ss:$8 sps:$4 sm:$0xff]  }
  0x63   : > { %5284 = vmatprep.mubr.bf16.mxu1 %v6261_v38  ;;  %v7318_v38 = vld [vmem:[%s8337_s23 + $0x554] ss:$8 sps:$4 sm:$0xff]  }
  0x64   : > { %5214 = vmatpush1.bf16.msra.mxu0 %v7189_v13  ;;  %v6258_v13 = vcombine.low %v8462_v33, %v8462_v33  ;;  %v7309_v33 = vld [vmem:[%s8337_s23 + $0x444] ss:$8 sps:$4 sm:$0xff]  }
  0x65   : > { %5255 = vmatpush1.bf16.msra.mxu1 %v7192_v14  ;;  %5215 = vmatprep.subr.bf16.mxu0 %v7197_v15  ;;  %v6260_v14 = vcombine.low %v8465_v34, %v8465_v34  ;;  %v7283_v15 = vld [vmem:[%s8337_s23 + $0x400] ss:$8 sps:$4 sm:$0xff]   ;;  %v7312_v34 = vld [vmem:[%s8337_s23 + $0x544] ss:$8 sps:$4 sm:$0xff]  }
  0x66   : > { %5256 = vmatprep.subr.bf16.mxu1 %v7200_v16  ;;  %v7286_v16 = vld [vmem:[%s8337_s23 + $0x500] ss:$8 sps:$4 sm:$0xff]  }
  0x68   : > { %5216 = vmatpush1.bf16.msra.mxu0 %v7195_v17  ;;  %v7291_v17 = vld [vmem:[%s8337_s23 + $0x414] ss:$8 sps:$4 sm:$0xff]  }
  0x69   : > { %5257 = vmatpush1.bf16.msra.mxu1 %v7198_v18  ;;  %5217 = vmatprep.subr.bf16.mxu0 %v7203_v19  ;;  %v7294_v18 = vld [vmem:[%s8337_s23 + $0x514] ss:$8 sps:$4 sm:$0xff]   ;;  %v8520_v19 = vld [vmem:[%s8332_s19 + $0x20] sm:$0xff] }
  0x6a   : > { %5258 = vmatprep.subr.bf16.mxu1 %v7206_v20  ;;  %v8523_v20 = vld [vmem:[%s8332_s19 + $0x28] sm:$0xff] }
  0x6c   : > { %5218 = vmatpush1.bf16.msra.mxu0 %v7201_v21  ;;  %v6263_v21 = vcombine.high %v8520_v19, %v8520_v19 }
  0x6d   : > { %5259 = vmatpush1.bf16.msra.mxu1 %v7204_v22  ;;  %5219 = vmatprep.subr.bf16.mxu0 %v7209_v23  ;;  %v6265_v22 = vcombine.high %v8523_v20, %v8523_v20  ;;  %v7289_v23 = vld [vmem:[%s8337_s23 + $0x410] ss:$8 sps:$4 sm:$0xff]  }
  0x6e   : > { %5260 = vmatprep.subr.bf16.mxu1 %v7212_v24  ;;  %v7292_v24 = vld [vmem:[%s8337_s23 + $0x510] ss:$8 sps:$4 sm:$0xff]  }
  0x70   : > { %5220 = vmatpush1.bf16.msra.mxu0 %v7207_v25  ;;  %v7297_v25 = vld [vmem:[%s8337_s23 + $0x424] ss:$8 sps:$4 sm:$0xff]  }
  0x71   : > { %5261 = vmatpush1.bf16.msra.mxu1 %v7210_v26  ;;  %5221 = vmatprep.subr.bf16.mxu0 %v7215_v27  ;;  %v7300_v26 = vld [vmem:[%s8337_s23 + $0x524] ss:$8 sps:$4 sm:$0xff]   ;;  %v7295_v27 = vld [vmem:[%s8337_s23 + $0x420] ss:$8 sps:$4 sm:$0xff]  }
  0x72   : > { %5262 = vmatprep.subr.bf16.mxu1 %v7218_v28  ;;  %v7298_v28 = vld [vmem:[%s8337_s23 + $0x520] ss:$8 sps:$4 sm:$0xff]  }
  0x74   : > { %5222 = vmatpush1.bf16.msra.mxu0 %v7213_v29  ;;  %v7303_v29 = vld [vmem:[%s8337_s23 + $0x434] ss:$8 sps:$4 sm:$0xff]  }
  0x75   : > { %5263 = vmatpush1.bf16.msra.mxu1 %v7216_v30  ;;  %5223 = vmatprep.subr.bf16.mxu0 %v7221_v31  ;;  %v7306_v30 = vld [vmem:[%s8337_s23 + $0x534] ss:$8 sps:$4 sm:$0xff]   ;;  %v7301_v31 = vld [vmem:[%s8337_s23 + $0x430] ss:$8 sps:$4 sm:$0xff]  }
  0x76   : > { %5264 = vmatprep.subr.bf16.mxu1 %v7224_v32  ;;  %v7304_v32 = vld [vmem:[%s8337_s23 + $0x530] ss:$8 sps:$4 sm:$0xff]  }
  0x78   : > { %5224 = vmatpush1.bf16.msra.mxu0 %v7219_v35  ;;  %v7307_v35 = vld [vmem:[%s8337_s23 + $0x440] ss:$8 sps:$4 sm:$0xff]  }
  0x79   : > { %5265 = vmatpush1.bf16.msra.mxu1 %v7222_v36  ;;  %5225 = vmatprep.subr.bf16.mxu0 %v7227_v39  ;;  %v7310_v36 = vld [vmem:[%s8337_s23 + $0x540] ss:$8 sps:$4 sm:$0xff]   ;;  %v7313_v39 = vld [vmem:[%s8337_s23 + $0x450] ss:$8 sps:$4 sm:$0xff]  }
  0x7a   : > { %5266 = vmatprep.subr.bf16.mxu1 %v7230_v40  ;;  %v7316_v40 = vld [vmem:[%s8337_s23 + $0x550] ss:$8 sps:$4 sm:$0xff]  }
  0x7c   : > { %5226 = vmatpush1.bf16.msra.mxu0 %v7225_v41  ;;  %v7321_v41 = vld [vmem:[%s8337_s23 + $0x464] ss:$8 sps:$4 sm:$0xff]  }
  0x7d   : > { %5267 = vmatpush1.bf16.msra.mxu1 %v7228_v42  ;;  %5227 = vmatprep.subr.bf16.mxu0 %v7233_v43  ;;  %v7324_v42 = vld [vmem:[%s8337_s23 + $0x564] ss:$8 sps:$4 sm:$0xff]   ;;  %v7319_v43 = vld [vmem:[%s8337_s23 + $0x460] ss:$8 sps:$4 sm:$0xff]  }
  0x7e   : > { %5268 = vmatprep.subr.bf16.mxu1 %v7236_v44  ;;  %v7322_v44 = vld [vmem:[%s8337_s23 + $0x560] ss:$8 sps:$4 sm:$0xff]  }
  0x80   : > { %5228 = vmatpush1.bf16.msra.mxu0 %v7231_v45  ;;  %v7327_v45 = vld [vmem:[%s8337_s23 + $0x474] ss:$8 sps:$4 sm:$0xff]  }
  0x81   : > { %5269 = vmatpush1.bf16.msra.mxu1 %v7234_v46  ;;  %5229 = vmatprep.subr.bf16.mxu0 %v7239_v47  ;;  %v7330_v46 = vld [vmem:[%s8337_s23 + $0x574] ss:$8 sps:$4 sm:$0xff]   ;;  %v7325_v47 = vld [vmem:[%s8337_s23 + $0x470] ss:$8 sps:$4 sm:$0xff]  }
  0x82   : > { %5270 = vmatprep.subr.bf16.mxu1 %v7242_v48  ;;  %v7328_v48 = vld [vmem:[%s8337_s23 + $0x570] ss:$8 sps:$4 sm:$0xff]  }
  0x84   : > { %5230 = vmatpush1.bf16.msra.mxu0 %v7237_v49  ;;  %v7333_v49 = vld [vmem:[%s8337_s23 + $0x484] ss:$8 sps:$4 sm:$0xff]  }
  0x85   : > { %5271 = vmatpush1.bf16.msra.mxu1 %v7240_v50  ;;  %5231 = vmatprep.subr.bf16.mxu0 %v7245_v51  ;;  %v7336_v50 = vld [vmem:[%s8337_s23 + $0x584] ss:$8 sps:$4 sm:$0xff]   ;;  %v7331_v51 = vld [vmem:[%s8337_s23 + $0x480] ss:$8 sps:$4 sm:$0xff]  }
  0x86   : > { %5272 = vmatprep.subr.bf16.mxu1 %v7248_v52  ;;  %v7334_v52 = vld [vmem:[%s8337_s23 + $0x580] ss:$8 sps:$4 sm:$0xff]  }
  0x88   : > { %5232 = vmatpush1.bf16.msra.mxu0 %v7243_v53  ;;  %v7339_v53 = vld [vmem:[%s8337_s23 + $0x494] ss:$8 sps:$4 sm:$0xff]  }
  0x89   : > { %5273 = vmatpush1.bf16.msra.mxu1 %v7246_v54  ;;  %5233 = vmatprep.subr.bf16.mxu0 %v7251_v55  ;;  %v7342_v54 = vld [vmem:[%s8337_s23 + $0x594] ss:$8 sps:$4 sm:$0xff]   ;;  %v7337_v55 = vld [vmem:[%s8337_s23 + $0x490] ss:$8 sps:$4 sm:$0xff]  }
  0x8a   : > { %5274 = vmatprep.subr.bf16.mxu1 %v7254_v56  ;;  %v7340_v56 = vld [vmem:[%s8337_s23 + $0x590] ss:$8 sps:$4 sm:$0xff]  }
  0x8c   : > { %5234 = vmatpush1.bf16.msra.mxu0 %v7249_v57  ;;  %v7345_v57 = vld [vmem:[%s8337_s23 + $0x4a4] ss:$8 sps:$4 sm:$0xff]  }
  0x8d   : > { %5275 = vmatpush1.bf16.msra.mxu1 %v7252_v58  ;;  %5235 = vmatprep.subr.bf16.mxu0 %v7257_v59  ;;  %v7348_v58 = vld [vmem:[%s8337_s23 + $0x5a4] ss:$8 sps:$4 sm:$0xff]   ;;  %v7343_v59 = vld [vmem:[%s8337_s23 + $0x4a0] ss:$8 sps:$4 sm:$0xff]  }
  0x8e   : > { %5276 = vmatprep.subr.bf16.mxu1 %v7260_v60  ;;  %v7346_v60 = vld [vmem:[%s8337_s23 + $0x5a0] ss:$8 sps:$4 sm:$0xff]  }
  0x90   : > { %5236 = vmatpush1.bf16.msra.mxu0 %v7255_v61  ;;  %v7351_v61 = vld [vmem:[%s8337_s23 + $0x4b4] ss:$8 sps:$4 sm:$0xff]  }
  0x91   : > { %5277 = vmatpush1.bf16.msra.mxu1 %v7258_v62  ;;  %5237 = vmatprep.subr.bf16.mxu0 %v7263_v63  ;;  %v7354_v62 = vld [vmem:[%s8337_s23 + $0x5b4] ss:$8 sps:$4 sm:$0xff]   ;;  %v7349_v63 = vld [vmem:[%s8337_s23 + $0x4b0] ss:$8 sps:$4 sm:$0xff]  }
  0x92   : > { %5278 = vmatprep.subr.bf16.mxu1 %v7266_v0  ;;  %v7352_v0 = vld [vmem:[%s8337_s23 + $0x5b0] ss:$8 sps:$4 sm:$0xff]  }
  0x94   : > { %5238 = vmatpush1.bf16.msra.mxu0 %v7261_v1  ;;  %v7357_v1 = vld [vmem:[%s8337_s23 + $0x4c4] ss:$8 sps:$4 sm:$0xff]  }
  0x95   : > { %5279 = vmatpush1.bf16.msra.mxu1 %v7264_v2  ;;  %5239 = vmatprep.subr.bf16.mxu0 %v7269_v3  ;;  %v7360_v2 = vld [vmem:[%s8337_s23 + $0x5c4] ss:$8 sps:$4 sm:$0xff]   ;;  %v7355_v3 = vld [vmem:[%s8337_s23 + $0x4c0] ss:$8 sps:$4 sm:$0xff]  }
  0x96   : > { %5280 = vmatprep.subr.bf16.mxu1 %v7272_v4  ;;  %v7358_v4 = vld [vmem:[%s8337_s23 + $0x5c0] ss:$8 sps:$4 sm:$0xff]  }
  0x98   : > { %5240 = vmatpush1.bf16.msra.mxu0 %v7267_v5  ;;  %v7363_v5 = vld [vmem:[%s8337_s23 + $0x4d4] ss:$8 sps:$4 sm:$0xff]  }
  0x99   : > { %5281 = vmatpush1.bf16.msra.mxu1 %v7270_v6  ;;  %5241 = vmatprep.subr.bf16.mxu0 %v7275_v7  ;;  %v7366_v6 = vld [vmem:[%s8337_s23 + $0x5d4] ss:$8 sps:$4 sm:$0xff]   ;;  %v7361_v7 = vld [vmem:[%s8337_s23 + $0x4d0] ss:$8 sps:$4 sm:$0xff]  }
  0x9a   : > { %5282 = vmatprep.subr.bf16.mxu1 %v7278_v8  ;;  %v7364_v8 = vld [vmem:[%s8337_s23 + $0x5d0] ss:$8 sps:$4 sm:$0xff]  }
  0x9c   : > { %5242 = vmatpush1.bf16.msra.mxu0 %v7273_v9  ;;  %v7369_v9 = vld [vmem:[%s8337_s23 + $0x4e4] ss:$8 sps:$4 sm:$0xff]  }
  0x9d   : > { %5283 = vmatpush1.bf16.msra.mxu1 %v7276_v10  ;;  %5293 = vmatprep.subr.bf16.mxu0 %v7285_v11  ;;  %v7372_v10 = vld [vmem:[%s8337_s23 + $0x5e4] ss:$8 sps:$4 sm:$0xff]   ;;  %v7367_v11 = vld [vmem:[%s8337_s23 + $0x4e0] ss:$8 sps:$4 sm:$0xff]  }
  0x9e   : > { %5334 = vmatprep.subr.bf16.mxu1 %v7288_v12  ;;  %v7370_v12 = vld [vmem:[%s8337_s23 + $0x5e0] ss:$8 sps:$4 sm:$0xff]  }
  0x9f   : > { %5244 = vmatmul.mubr.bf16.vlgmr.msra.gmra.mrb[4].mxu0 %v6258_v13  ;;  %v7375_v13 = vld [vmem:[%s8337_s23 + $0x4f4] ss:$8 sps:$4 sm:$0xff]  }
  0xa0   : > { %5285 = vmatmul.mubr.bf16.vlgmr.msra.gmra.mrb[4].mxu1 %v6260_v14  ;;  %5294 = vmatpush1.bf16.msra.mxu0 %v7283_v15  ;;  %v7378_v14 = vld [vmem:[%s8337_s23 + $0x5f4] ss:$8 sps:$4 sm:$0xff]   ;;  %v7373_v15 = vld [vmem:[%s8337_s23 + $0x4f0] ss:$8 sps:$4 sm:$0xff]  }
  0xa1   : > { %5335 = vmatpush1.bf16.msra.mxu1 %v7286_v16  ;;  %5295 = vmatprep.subr.bf16.mxu0 %v7291_v17  ;;  %v7376_v16 = vld [vmem:[%s8337_s23 + $0x5f0] ss:$8 sps:$4 sm:$0xff]   ;;  %v7385_v17 = vld [vmem:[%s8337_s23 + $0x604] ss:$8 sps:$4 sm:$0xff]  }
  0xa2   : > { %5336 = vmatprep.subr.bf16.mxu1 %v7294_v18  ;;  %5325 = vmatprep.mubr.bf16.mxu0 %v6263_v21  ;;  %v7388_v18 = vld [vmem:[%s8337_s23 + $0x704] ss:$8 sps:$4 sm:$0xff]   ;;  %v7383_v21 = vld [vmem:[%s8337_s23 + $0x600] ss:$8 sps:$4 sm:$0xff]  }
  0xa3   : > { %5366 = vmatprep.mubr.bf16.mxu1 %v6265_v22  ;;  %v7386_v22 = vld [vmem:[%s8337_s23 + $0x700] ss:$8 sps:$4 sm:$0xff]  }
  0xa4   : > { %5296 = vmatpush1.bf16.msra.mxu0 %v7289_v23  ;;  %v6262_v23 = vcombine.low %v8520_v19, %v8520_v19 }
  0xa5   : > { %5337 = vmatpush1.bf16.msra.mxu1 %v7292_v24  ;;  %5297 = vmatprep.subr.bf16.mxu0 %v7297_v25  ;;  %v6264_v24 = vcombine.low %v8523_v20, %v8523_v20  ;;  %v8596_v25 = vld [vmem:[%s8332_s19 + $0x30] sm:$0xff] }
  0xa6   : > { %5338 = vmatprep.subr.bf16.mxu1 %v7300_v26  ;;  %v8599_v26 = vld [vmem:[%s8332_s19 + $0x38] sm:$0xff]  ;;  %v6267_v19 = vcombine.high %v8596_v25, %v8596_v25 }
  0xa7   : > { %v6269_v20 = vcombine.high %v8599_v26, %v8599_v26 }
  0xa8   : > { %5298 = vmatpush1.bf16.msra.mxu0 %v7295_v27  ;;  %v7391_v27 = vld [vmem:[%s8337_s23 + $0x614] ss:$8 sps:$4 sm:$0xff]  }
  0xa9   : > { %5339 = vmatpush1.bf16.msra.mxu1 %v7298_v28  ;;  %5299 = vmatprep.subr.bf16.mxu0 %v7303_v29  ;;  %v7394_v28 = vld [vmem:[%s8337_s23 + $0x714] ss:$8 sps:$4 sm:$0xff]   ;;  %v7389_v29 = vld [vmem:[%s8337_s23 + $0x610] ss:$8 sps:$4 sm:$0xff]  }
  0xaa   : > { %5340 = vmatprep.subr.bf16.mxu1 %v7306_v30  ;;  %v7392_v30 = vld [vmem:[%s8337_s23 + $0x710] ss:$8 sps:$4 sm:$0xff]  }
  0xac   : > { %5300 = vmatpush1.bf16.msra.mxu0 %v7301_v31  ;;  %v7397_v31 = vld [vmem:[%s8337_s23 + $0x624] ss:$8 sps:$4 sm:$0xff]  }
  0xad   : > { %5341 = vmatpush1.bf16.msra.mxu1 %v7304_v32  ;;  %5301 = vmatprep.subr.bf16.mxu0 %v7309_v33  ;;  %v7400_v32 = vld [vmem:[%s8337_s23 + $0x724] ss:$8 sps:$4 sm:$0xff]   ;;  %v7395_v33 = vld [vmem:[%s8337_s23 + $0x620] ss:$8 sps:$4 sm:$0xff]  }
  0xae   : > { %5342 = vmatprep.subr.bf16.mxu1 %v7312_v34  ;;  %v7398_v34 = vld [vmem:[%s8337_s23 + $0x720] ss:$8 sps:$4 sm:$0xff]  }
  0xb0   : > { %5302 = vmatpush1.bf16.msra.mxu0 %v7307_v35  ;;  %v7403_v35 = vld [vmem:[%s8337_s23 + $0x634] ss:$8 sps:$4 sm:$0xff]  }
  0xb1   : > { %5343 = vmatpush1.bf16.msra.mxu1 %v7310_v36  ;;  %5303 = vmatprep.subr.bf16.mxu0 %v7315_v37  ;;  %v7406_v36 = vld [vmem:[%s8337_s23 + $0x734] ss:$8 sps:$4 sm:$0xff]   ;;  %v7401_v37 = vld [vmem:[%s8337_s23 + $0x630] ss:$8 sps:$4 sm:$0xff]  }
  0xb2   : > { %5344 = vmatprep.subr.bf16.mxu1 %v7318_v38  ;;  %v7404_v38 = vld [vmem:[%s8337_s23 + $0x730] ss:$8 sps:$4 sm:$0xff]  }
  0xb4   : > { %5304 = vmatpush1.bf16.msra.mxu0 %v7313_v39  ;;  %v7409_v39 = vld [vmem:[%s8337_s23 + $0x644] ss:$8 sps:$4 sm:$0xff]  }
  0xb5   : > { %5345 = vmatpush1.bf16.msra.mxu1 %v7316_v40  ;;  %5305 = vmatprep.subr.bf16.mxu0 %v7321_v41  ;;  %v7412_v40 = vld [vmem:[%s8337_s23 + $0x744] ss:$8 sps:$4 sm:$0xff]   ;;  %v7407_v41 = vld [vmem:[%s8337_s23 + $0x640] ss:$8 sps:$4 sm:$0xff]  }
  0xb6   : > { %5346 = vmatprep.subr.bf16.mxu1 %v7324_v42  ;;  %v7410_v42 = vld [vmem:[%s8337_s23 + $0x740] ss:$8 sps:$4 sm:$0xff]  }
  0xb8   : > { %5306 = vmatpush1.bf16.msra.mxu0 %v7319_v43  ;;  %v7415_v43 = vld [vmem:[%s8337_s23 + $0x654] ss:$8 sps:$4 sm:$0xff]  }
  0xb9   : > { %5347 = vmatpush1.bf16.msra.mxu1 %v7322_v44  ;;  %5307 = vmatprep.subr.bf16.mxu0 %v7327_v45  ;;  %v7418_v44 = vld [vmem:[%s8337_s23 + $0x754] ss:$8 sps:$4 sm:$0xff]   ;;  %v7413_v45 = vld [vmem:[%s8337_s23 + $0x650] ss:$8 sps:$4 sm:$0xff]  }
  0xba   : > { %5348 = vmatprep.subr.bf16.mxu1 %v7330_v46  ;;  %v7416_v46 = vld [vmem:[%s8337_s23 + $0x750] ss:$8 sps:$4 sm:$0xff]  }
  0xbc   : > { %5308 = vmatpush1.bf16.msra.mxu0 %v7325_v47  ;;  %v7421_v47 = vld [vmem:[%s8337_s23 + $0x664] ss:$8 sps:$4 sm:$0xff]  }
  0xbd   : > { %5349 = vmatpush1.bf16.msra.mxu1 %v7328_v48  ;;  %5309 = vmatprep.subr.bf16.mxu0 %v7333_v49  ;;  %v7424_v48 = vld [vmem:[%s8337_s23 + $0x764] ss:$8 sps:$4 sm:$0xff]   ;;  %v7419_v49 = vld [vmem:[%s8337_s23 + $0x660] ss:$8 sps:$4 sm:$0xff]  }
  0xbe   : > { %5350 = vmatprep.subr.bf16.mxu1 %v7336_v50  ;;  %v7422_v50 = vld [vmem:[%s8337_s23 + $0x760] ss:$8 sps:$4 sm:$0xff]  }
  0xc0   : > { %5310 = vmatpush1.bf16.msra.mxu0 %v7331_v51  ;;  %v7427_v51 = vld [vmem:[%s8337_s23 + $0x674] ss:$8 sps:$4 sm:$0xff]  }
  0xc1   : > { %5351 = vmatpush1.bf16.msra.mxu1 %v7334_v52  ;;  %5311 = vmatprep.subr.bf16.mxu0 %v7339_v53  ;;  %v7430_v52 = vld [vmem:[%s8337_s23 + $0x774] ss:$8 sps:$4 sm:$0xff]   ;;  %v7425_v53 = vld [vmem:[%s8337_s23 + $0x670] ss:$8 sps:$4 sm:$0xff]  }
  0xc2   : > { %5352 = vmatprep.subr.bf16.mxu1 %v7342_v54  ;;  %v7428_v54 = vld [vmem:[%s8337_s23 + $0x770] ss:$8 sps:$4 sm:$0xff]  }
  0xc4   : > { %5312 = vmatpush1.bf16.msra.mxu0 %v7337_v55  ;;  %v7433_v55 = vld [vmem:[%s8337_s23 + $0x684] ss:$8 sps:$4 sm:$0xff]  }
  0xc5   : > { %5353 = vmatpush1.bf16.msra.mxu1 %v7340_v56  ;;  %5313 = vmatprep.subr.bf16.mxu0 %v7345_v57  ;;  %v7436_v56 = vld [vmem:[%s8337_s23 + $0x784] ss:$8 sps:$4 sm:$0xff]   ;;  %v7431_v57 = vld [vmem:[%s8337_s23 + $0x680] ss:$8 sps:$4 sm:$0xff]  }
  0xc6   : > { %5354 = vmatprep.subr.bf16.mxu1 %v7348_v58  ;;  %v7434_v58 = vld [vmem:[%s8337_s23 + $0x780] ss:$8 sps:$4 sm:$0xff]  }
  0xc8   : > { %5314 = vmatpush1.bf16.msra.mxu0 %v7343_v59  ;;  %v7439_v59 = vld [vmem:[%s8337_s23 + $0x694] ss:$8 sps:$4 sm:$0xff]  }
  0xc9   : > { %5355 = vmatpush1.bf16.msra.mxu1 %v7346_v60  ;;  %5315 = vmatprep.subr.bf16.mxu0 %v7351_v61  ;;  %v7442_v60 = vld [vmem:[%s8337_s23 + $0x794] ss:$8 sps:$4 sm:$0xff]   ;;  %v7437_v61 = vld [vmem:[%s8337_s23 + $0x690] ss:$8 sps:$4 sm:$0xff]  }
  0xca   : > { %5356 = vmatprep.subr.bf16.mxu1 %v7354_v62  ;;  %v7440_v62 = vld [vmem:[%s8337_s23 + $0x790] ss:$8 sps:$4 sm:$0xff]  }
  0xcc   : > { %5316 = vmatpush1.bf16.msra.mxu0 %v7349_v63  ;;  %v7445_v63 = vld [vmem:[%s8337_s23 + $0x6a4] ss:$8 sps:$4 sm:$0xff]  }
  0xcd   : > { %5357 = vmatpush1.bf16.msra.mxu1 %v7352_v0  ;;  %5317 = vmatprep.subr.bf16.mxu0 %v7357_v1  ;;  %v7448_v0 = vld [vmem:[%s8337_s23 + $0x7a4] ss:$8 sps:$4 sm:$0xff]   ;;  %v7443_v1 = vld [vmem:[%s8337_s23 + $0x6a0] ss:$8 sps:$4 sm:$0xff]  }
  0xce   : > { %5358 = vmatprep.subr.bf16.mxu1 %v7360_v2  ;;  %v7446_v2 = vld [vmem:[%s8337_s23 + $0x7a0] ss:$8 sps:$4 sm:$0xff]  }
  0xd0   : > { %5318 = vmatpush1.bf16.msra.mxu0 %v7355_v3  ;;  %v7451_v3 = vld [vmem:[%s8337_s23 + $0x6b4] ss:$8 sps:$4 sm:$0xff]  }
  0xd1   : > { %5359 = vmatpush1.bf16.msra.mxu1 %v7358_v4  ;;  %5319 = vmatprep.subr.bf16.mxu0 %v7363_v5  ;;  %v7454_v4 = vld [vmem:[%s8337_s23 + $0x7b4] ss:$8 sps:$4 sm:$0xff]   ;;  %v7449_v5 = vld [vmem:[%s8337_s23 + $0x6b0] ss:$8 sps:$4 sm:$0xff]  }
  0xd2   : > { %5360 = vmatprep.subr.bf16.mxu1 %v7366_v6  ;;  %v7452_v6 = vld [vmem:[%s8337_s23 + $0x7b0] ss:$8 sps:$4 sm:$0xff]  }
  0xd4   : > { %5320 = vmatpush1.bf16.msra.mxu0 %v7361_v7  ;;  %v7457_v7 = vld [vmem:[%s8337_s23 + $0x6c4] ss:$8 sps:$4 sm:$0xff]  }
  0xd5   : > { %5361 = vmatpush1.bf16.msra.mxu1 %v7364_v8  ;;  %5321 = vmatprep.subr.bf16.mxu0 %v7369_v9  ;;  %v7460_v8 = vld [vmem:[%s8337_s23 + $0x7c4] ss:$8 sps:$4 sm:$0xff]   ;;  %v7455_v9 = vld [vmem:[%s8337_s23 + $0x6c0] ss:$8 sps:$4 sm:$0xff]  }
  0xd6   : > { %5362 = vmatprep.subr.bf16.mxu1 %v7372_v10  ;;  %v7458_v10 = vld [vmem:[%s8337_s23 + $0x7c0] ss:$8 sps:$4 sm:$0xff]  }
  0xd8   : > { %5322 = vmatpush1.bf16.msra.mxu0 %v7367_v11  ;;  %v7463_v11 = vld [vmem:[%s8337_s23 + $0x6d4] ss:$8 sps:$4 sm:$0xff]  }
  0xd9   : > { %5363 = vmatpush1.bf16.msra.mxu1 %v7370_v12  ;;  %5323 = vmatprep.subr.bf16.mxu0 %v7375_v13  ;;  %v7466_v12 = vld [vmem:[%s8337_s23 + $0x7d4] ss:$8 sps:$4 sm:$0xff]   ;;  %v7461_v13 = vld [vmem:[%s8337_s23 + $0x6d0] ss:$8 sps:$4 sm:$0xff]  }
  0xda   : > { %5364 = vmatprep.subr.bf16.mxu1 %v7378_v14  ;;  %v7464_v14 = vld [vmem:[%s8337_s23 + $0x7d0] ss:$8 sps:$4 sm:$0xff]  }
  0xdc   : > { %5324 = vmatpush1.bf16.msra.mxu0 %v7373_v15  ;;  %v7469_v15 = vld [vmem:[%s8337_s23 + $0x6e4] ss:$8 sps:$4 sm:$0xff]  }
  0xdd   : > { %5365 = vmatpush1.bf16.msra.mxu1 %v7376_v16  ;;  %5375 = vmatprep.subr.bf16.mxu0 %v7385_v17  ;;  %v7472_v16 = vld [vmem:[%s8337_s23 + $0x7e4] ss:$8 sps:$4 sm:$0xff]   ;;  %v7467_v17 = vld [vmem:[%s8337_s23 + $0x6e0] ss:$8 sps:$4 sm:$0xff]  }
  0xde   : > { %5416 = vmatprep.subr.bf16.mxu1 %v7388_v18  ;;  %v7470_v18 = vld [vmem:[%s8337_s23 + $0x7e0] ss:$8 sps:$4 sm:$0xff]  }
  0xdf   : > { %5326 = vmatmul.mubr.bf16.vlgmr.msra.gmra.mrb[8].mxu0 %v6262_v23  ;;  %v7473_v23 = vld [vmem:[%s8337_s23 + $0x6f0] ss:$8 sps:$4 sm:$0xff]  }
  0xe0   : > { %5367 = vmatmul.mubr.bf16.vlgmr.msra.gmra.mrb[8].mxu1 %v6264_v24  ;;  %5376 = vmatpush1.bf16.msra.mxu0 %v7383_v21  ;;  %v7475_v21 = vld [vmem:[%s8337_s23 + $0x6f4] ss:$8 sps:$4 sm:$0xff]   ;;  %v7476_v24 = vld [vmem:[%s8337_s23 + $0x7f0] ss:$8 sps:$4 sm:$0xff]  }
  0xe1   : > { %5417 = vmatpush1.bf16.msra.mxu1 %v7386_v22  ;;  %5377 = vmatprep.subr.bf16.mxu0 %v7391_v27  ;;  %v7478_v22 = vld [vmem:[%s8337_s23 + $0x7f4] ss:$8 sps:$4 sm:$0xff]   ;;  %v7485_v27 = vld [vmem:[%s8337_s23 + $0x804] ss:$8 sps:$4 sm:$0xff]  }
  0xe2   : > { %5418 = vmatprep.subr.bf16.mxu1 %v7394_v28  ;;  %5407 = vmatprep.mubr.bf16.mxu0 %v6267_v19  ;;  %v7488_v28 = vld [vmem:[%s8337_s23 + $0x904] ss:$8 sps:$4 sm:$0xff]  }
  0xe3   : > { %5448 = vmatprep.mubr.bf16.mxu1 %v6269_v20  ;;  %v8668_v19 = vld [vmem:[%s8332_s19 + $0x40] sm:$0xff]  ;;  %v6266_v20 = vcombine.low %v8596_v25, %v8596_v25 }
  0xe4   : > { %5378 = vmatpush1.bf16.msra.mxu0 %v7389_v29  ;;  %v6268_v29 = vcombine.low %v8599_v26, %v8599_v26  ;;  %v6271_v25 = vcombine.high %v8668_v19, %v8668_v19 }
  0xe5   : > { %5419 = vmatpush1.bf16.msra.mxu1 %v7392_v30  ;;  %5379 = vmatprep.subr.bf16.mxu0 %v7397_v31  ;;  %v8675_v30 = vld [vmem:[%s8332_s19 + $0x48] sm:$0xff] }
  0xe6   : > { %5420 = vmatprep.subr.bf16.mxu1 %v7400_v32  ;;  %v7483_v31 = vld [vmem:[%s8337_s23 + $0x800] ss:$8 sps:$4 sm:$0xff]   ;;  %v6273_v26 = vcombine.high %v8675_v30, %v8675_v30 }
  0xe7   : > { %v7486_v32 = vld [vmem:[%s8337_s23 + $0x900] ss:$8 sps:$4 sm:$0xff]  }
  0xe8   : > { %5380 = vmatpush1.bf16.msra.mxu0 %v7395_v33  ;;  %v7491_v33 = vld [vmem:[%s8337_s23 + $0x814] ss:$8 sps:$4 sm:$0xff]  }
  0xe9   : > { %5421 = vmatpush1.bf16.msra.mxu1 %v7398_v34  ;;  %5381 = vmatprep.subr.bf16.mxu0 %v7403_v35  ;;  %v7494_v34 = vld [vmem:[%s8337_s23 + $0x914] ss:$8 sps:$4 sm:$0xff]   ;;  %v7489_v35 = vld [vmem:[%s8337_s23 + $0x810] ss:$8 sps:$4 sm:$0xff]  }
  0xea   : > { %5422 = vmatprep.subr.bf16.mxu1 %v7406_v36  ;;  %v7492_v36 = vld [vmem:[%s8337_s23 + $0x910] ss:$8 sps:$4 sm:$0xff]  }
  0xec   : > { %5382 = vmatpush1.bf16.msra.mxu0 %v7401_v37  ;;  %v7497_v37 = vld [vmem:[%s8337_s23 + $0x824] ss:$8 sps:$4 sm:$0xff]  }
  0xed   : > { %5423 = vmatpush1.bf16.msra.mxu1 %v7404_v38  ;;  %5383 = vmatprep.subr.bf16.mxu0 %v7409_v39  ;;  %v7500_v38 = vld [vmem:[%s8337_s23 + $0x924] ss:$8 sps:$4 sm:$0xff]   ;;  %v7495_v39 = vld [vmem:[%s8337_s23 + $0x820] ss:$8 sps:$4 sm:$0xff]  }
  0xee   : > { %5424 = vmatprep.subr.bf16.mxu1 %v7412_v40  ;;  %v7498_v40 = vld [vmem:[%s8337_s23 + $0x920] ss:$8 sps:$4 sm:$0xff]  }
  0xf0   : > { %5384 = vmatpush1.bf16.msra.mxu0 %v7407_v41  ;;  %v7503_v41 = vld [vmem:[%s8337_s23 + $0x834] ss:$8 sps:$4 sm:$0xff]  }
  0xf1   : > { %5425 = vmatpush1.bf16.msra.mxu1 %v7410_v42  ;;  %5385 = vmatprep.subr.bf16.mxu0 %v7415_v43  ;;  %v7506_v42 = vld [vmem:[%s8337_s23 + $0x934] ss:$8 sps:$4 sm:$0xff]   ;;  %v7501_v43 = vld [vmem:[%s8337_s23 + $0x830] ss:$8 sps:$4 sm:$0xff]  }
  0xf2   : > { %5426 = vmatprep.subr.bf16.mxu1 %v7418_v44  ;;  %v7504_v44 = vld [vmem:[%s8337_s23 + $0x930] ss:$8 sps:$4 sm:$0xff]  }
  0xf4   : > { %5386 = vmatpush1.bf16.msra.mxu0 %v7413_v45  ;;  %v7509_v45 = vld [vmem:[%s8337_s23 + $0x844] ss:$8 sps:$4 sm:$0xff]  }
  0xf5   : > { %5427 = vmatpush1.bf16.msra.mxu1 %v7416_v46  ;;  %5387 = vmatprep.subr.bf16.mxu0 %v7421_v47  ;;  %v7512_v46 = vld [vmem:[%s8337_s23 + $0x944] ss:$8 sps:$4 sm:$0xff]   ;;  %v7507_v47 = vld [vmem:[%s8337_s23 + $0x840] ss:$8 sps:$4 sm:$0xff]  }
  0xf6   : > { %5428 = vmatprep.subr.bf16.mxu1 %v7424_v48  ;;  %v7510_v48 = vld [vmem:[%s8337_s23 + $0x940] ss:$8 sps:$4 sm:$0xff]  }
  0xf8   : > { %5388 = vmatpush1.bf16.msra.mxu0 %v7419_v49  ;;  %v7515_v49 = vld [vmem:[%s8337_s23 + $0x854] ss:$8 sps:$4 sm:$0xff]  }
  0xf9   : > { %5429 = vmatpush1.bf16.msra.mxu1 %v7422_v50  ;;  %5389 = vmatprep.subr.bf16.mxu0 %v7427_v51  ;;  %v7518_v50 = vld [vmem:[%s8337_s23 + $0x954] ss:$8 sps:$4 sm:$0xff]   ;;  %v7513_v51 = vld [vmem:[%s8337_s23 + $0x850] ss:$8 sps:$4 sm:$0xff]  }
  0xfa   : > { %5430 = vmatprep.subr.bf16.mxu1 %v7430_v52  ;;  %v7516_v52 = vld [vmem:[%s8337_s23 + $0x950] ss:$8 sps:$4 sm:$0xff]  }
  0xfc   : > { %5390 = vmatpush1.bf16.msra.mxu0 %v7425_v53  ;;  %v7521_v53 = vld [vmem:[%s8337_s23 + $0x864] ss:$8 sps:$4 sm:$0xff]  }
  0xfd   : > { %5431 = vmatpush1.bf16.msra.mxu1 %v7428_v54  ;;  %5391 = vmatprep.subr.bf16.mxu0 %v7433_v55  ;;  %v7524_v54 = vld [vmem:[%s8337_s23 + $0x964] ss:$8 sps:$4 sm:$0xff]  }
  0xfe   : > { %5432 = vmatprep.subr.bf16.mxu1 %v7436_v56 }
 0x100   : > { %5392 = vmatpush1.bf16.msra.mxu0 %v7431_v57  ;;  %v7519_v57 = vld [vmem:[%s8337_s23 + $0x860] ss:$8 sps:$4 sm:$0xff]  }
 0x101   : > { %5433 = vmatpush1.bf16.msra.mxu1 %v7434_v58  ;;  %5393 = vmatprep.subr.bf16.mxu0 %v7439_v59  ;;  %v7522_v58 = vld [vmem:[%s8337_s23 + $0x960] ss:$8 sps:$4 sm:$0xff]  }
 0x102   : > { %5434 = vmatprep.subr.bf16.mxu1 %v7442_v60 }
 0x104   : > { %5394 = vmatpush1.bf16.msra.mxu0 %v7437_v61 }
 0x105   : > { %5435 = vmatpush1.bf16.msra.mxu1 %v7440_v62  ;;  %5395 = vmatprep.subr.bf16.mxu0 %v7445_v63 }
 0x106   : > { %5436 = vmatprep.subr.bf16.mxu1 %v7448_v0 }
 0x108   : > { %5396 = vmatpush1.bf16.msra.mxu0 %v7443_v1 }
 0x109   : > { %5437 = vmatpush1.bf16.msra.mxu1 %v7446_v2  ;;  %5397 = vmatprep.subr.bf16.mxu0 %v7451_v3  ;;  %v7527_v3 = vld [vmem:[%s8337_s23 + $0x874] ss:$8 sps:$4 sm:$0xff]  }
 0x10a   : > { %5438 = vmatprep.subr.bf16.mxu1 %v7454_v4  ;;  %v7530_v4 = vld [vmem:[%s8337_s23 + $0x974] ss:$8 sps:$4 sm:$0xff]  }
 0x10c   : > { %5398 = vmatpush1.bf16.msra.mxu0 %v7449_v5  ;;  %v7525_v5 = vld [vmem:[%s8337_s23 + $0x870] ss:$8 sps:$4 sm:$0xff]  }
 0x10d   : > { %5439 = vmatpush1.bf16.msra.mxu1 %v7452_v6  ;;  %5399 = vmatprep.subr.bf16.mxu0 %v7457_v7  ;;  %v7528_v6 = vld [vmem:[%s8337_s23 + $0x970] ss:$8 sps:$4 sm:$0xff]   ;;  %v7533_v7 = vld [vmem:[%s8337_s23 + $0x884] ss:$8 sps:$4 sm:$0xff]  }
 0x10e   : > { %5440 = vmatprep.subr.bf16.mxu1 %v7460_v8  ;;  %v7536_v8 = vld [vmem:[%s8337_s23 + $0x984] ss:$8 sps:$4 sm:$0xff]  }
 0x110   : > { %5400 = vmatpush1.bf16.msra.mxu0 %v7455_v9  ;;  %v7531_v9 = vld [vmem:[%s8337_s23 + $0x880] ss:$8 sps:$4 sm:$0xff]  }
 0x111   : > { %5441 = vmatpush1.bf16.msra.mxu1 %v7458_v10  ;;  %5401 = vmatprep.subr.bf16.mxu0 %v7463_v11  ;;  %v7534_v10 = vld [vmem:[%s8337_s23 + $0x980] ss:$8 sps:$4 sm:$0xff]   ;;  %v7539_v11 = vld [vmem:[%s8337_s23 + $0x894] ss:$8 sps:$4 sm:$0xff]  }
 0x112   : > { %5442 = vmatprep.subr.bf16.mxu1 %v7466_v12  ;;  %v7542_v12 = vld [vmem:[%s8337_s23 + $0x994] ss:$8 sps:$4 sm:$0xff]  }
 0x114   : > { %5402 = vmatpush1.bf16.msra.mxu0 %v7461_v13  ;;  %v7537_v13 = vld [vmem:[%s8337_s23 + $0x890] ss:$8 sps:$4 sm:$0xff]  }
 0x115   : > { %5443 = vmatpush1.bf16.msra.mxu1 %v7464_v14  ;;  %5403 = vmatprep.subr.bf16.mxu0 %v7469_v15  ;;  %v7540_v14 = vld [vmem:[%s8337_s23 + $0x990] ss:$8 sps:$4 sm:$0xff]   ;;  %v7545_v15 = vld [vmem:[%s8337_s23 + $0x8a4] ss:$8 sps:$4 sm:$0xff]  }
 0x116   : > { %5444 = vmatprep.subr.bf16.mxu1 %v7472_v16  ;;  %v7548_v16 = vld [vmem:[%s8337_s23 + $0x9a4] ss:$8 sps:$4 sm:$0xff]  }
 0x118   : > { %5404 = vmatpush1.bf16.msra.mxu0 %v7467_v17  ;;  %v7543_v17 = vld [vmem:[%s8337_s23 + $0x8a0] ss:$8 sps:$4 sm:$0xff]  }
 0x119   : > { %5445 = vmatpush1.bf16.msra.mxu1 %v7470_v18  ;;  %5405 = vmatprep.subr.bf16.mxu0 %v7475_v21  ;;  %v7546_v18 = vld [vmem:[%s8337_s23 + $0x9a0] ss:$8 sps:$4 sm:$0xff]   ;;  %v7551_v21 = vld [vmem:[%s8337_s23 + $0x8b4] ss:$8 sps:$4 sm:$0xff]  }
 0x11a   : > { %5446 = vmatprep.subr.bf16.mxu1 %v7478_v22  ;;  %v7554_v22 = vld [vmem:[%s8337_s23 + $0x9b4] ss:$8 sps:$4 sm:$0xff]  }
 0x11c   : > { %5406 = vmatpush1.bf16.msra.mxu0 %v7473_v23  ;;  %v7549_v23 = vld [vmem:[%s8337_s23 + $0x8b0] ss:$8 sps:$4 sm:$0xff]  }
 0x11d   : > { %5447 = vmatpush1.bf16.msra.mxu1 %v7476_v24  ;;  %5457 = vmatprep.subr.bf16.mxu0 %v7485_v27  ;;  %v7552_v24 = vld [vmem:[%s8337_s23 + $0x9b0] ss:$8 sps:$4 sm:$0xff]   ;;  %v7557_v27 = vld [vmem:[%s8337_s23 + $0x8c4] ss:$8 sps:$4 sm:$0xff]  }
 0x11e   : > { %5498 = vmatprep.subr.bf16.mxu1 %v7488_v28  ;;  %v7560_v28 = vld [vmem:[%s8337_s23 + $0x9c4] ss:$8 sps:$4 sm:$0xff]  }
 0x11f   : > { %5408 = vmatmul.mubr.bf16.vlgmr.msra.gmra.mrb[12].mxu0 %v6266_v20  ;;  %v7555_v20 = vld [vmem:[%s8337_s23 + $0x8c0] ss:$8 sps:$4 sm:$0xff]  }
 0x120   : > { %5449 = vmatmul.mubr.bf16.vlgmr.msra.gmra.mrb[12].mxu1 %v6268_v29  ;;  %5458 = vmatpush1.bf16.msra.mxu0 %v7483_v31  ;;  %v7558_v29 = vld [vmem:[%s8337_s23 + $0x9c0] ss:$8 sps:$4 sm:$0xff]   ;;  %v7563_v31 = vld [vmem:[%s8337_s23 + $0x8d4] ss:$8 sps:$4 sm:$0xff]  }
 0x121   : > { %5499 = vmatpush1.bf16.msra.mxu1 %v7486_v32  ;;  %5459 = vmatprep.subr.bf16.mxu0 %v7491_v33  ;;  %v7566_v32 = vld [vmem:[%s8337_s23 + $0x9d4] ss:$8 sps:$4 sm:$0xff]   ;;  %v7561_v33 = vld [vmem:[%s8337_s23 + $0x8d0] ss:$8 sps:$4 sm:$0xff]  }
 0x122   : > { %5500 = vmatprep.subr.bf16.mxu1 %v7494_v34  ;;  %5489 = vmatprep.mubr.bf16.mxu0 %v6271_v25  ;;  %v7564_v34 = vld [vmem:[%s8337_s23 + $0x9d0] ss:$8 sps:$4 sm:$0xff]   ;;  %v7569_v25 = vld [vmem:[%s8337_s23 + $0x8e4] ss:$8 sps:$4 sm:$0xff]  }
 0x123   : > { %5530 = vmatprep.mubr.bf16.mxu1 %v6273_v26  ;;  %v7572_v26 = vld [vmem:[%s8337_s23 + $0x9e4] ss:$8 sps:$4 sm:$0xff]  }
 0x124   : > { %5460 = vmatpush1.bf16.msra.mxu0 %v7489_v35  ;;  %v7567_v35 = vld [vmem:[%s8337_s23 + $0x8e0] ss:$8 sps:$4 sm:$0xff]  }
 0x125   : > { %5501 = vmatpush1.bf16.msra.mxu1 %v7492_v36  ;;  %5461 = vmatprep.subr.bf16.mxu0 %v7497_v37  ;;  %v7570_v36 = vld [vmem:[%s8337_s23 + $0x9e0] ss:$8 sps:$4 sm:$0xff]   ;;  %v7575_v37 = vld [vmem:[%s8337_s23 + $0x8f4] ss:$8 sps:$4 sm:$0xff]  }
 0x126   : > { %5502 = vmatprep.subr.bf16.mxu1 %v7500_v38  ;;  %v7578_v38 = vld [vmem:[%s8337_s23 + $0x9f4] ss:$8 sps:$4 sm:$0xff]  }
 0x128   : > { %5462 = vmatpush1.bf16.msra.mxu0 %v7495_v39  ;;  %v7573_v39 = vld [vmem:[%s8337_s23 + $0x8f0] ss:$8 sps:$4 sm:$0xff]  }
 0x129   : > { %5503 = vmatpush1.bf16.msra.mxu1 %v7498_v40  ;;  %5463 = vmatprep.subr.bf16.mxu0 %v7503_v41  ;;  %v7576_v40 = vld [vmem:[%s8337_s23 + $0x9f0] ss:$8 sps:$4 sm:$0xff]   ;;  %v7585_v41 = vld [vmem:[%s8337_s23 + $0xa04] ss:$8 sps:$4 sm:$0xff]  }
 0x12a   : > { %5504 = vmatprep.subr.bf16.mxu1 %v7506_v42  ;;  %v7588_v42 = vld [vmem:[%s8337_s23 + $0xb04] ss:$8 sps:$4 sm:$0xff]  }
 0x12c   : > { %5464 = vmatpush1.bf16.msra.mxu0 %v7501_v43  ;;  %v7583_v43 = vld [vmem:[%s8337_s23 + $0xa00] ss:$8 sps:$4 sm:$0xff]  }
 0x12d   : > { %5505 = vmatpush1.bf16.msra.mxu1 %v7504_v44  ;;  %5465 = vmatprep.subr.bf16.mxu0 %v7509_v45  ;;  %v7586_v44 = vld [vmem:[%s8337_s23 + $0xb00] ss:$8 sps:$4 sm:$0xff]   ;;  %v6270_v45 = vcombine.low %v8668_v19, %v8668_v19 }
 0x12e   : > { %5506 = vmatprep.subr.bf16.mxu1 %v7512_v46  ;;  %v6272_v46 = vcombine.low %v8675_v30, %v8675_v30 }
 0x130   : > { %5466 = vmatpush1.bf16.msra.mxu0 %v7507_v47  ;;  %v8756_v47 = vld [vmem:[%s8332_s19 + $0x50] sm:$0xff] }
 0x131   : > { %5507 = vmatpush1.bf16.msra.mxu1 %v7510_v48  ;;  %5467 = vmatprep.subr.bf16.mxu0 %v7515_v49  ;;  %v8759_v48 = vld [vmem:[%s8332_s19 + $0x58] sm:$0xff]  ;;  %v6275_v19 = vcombine.high %v8756_v47, %v8756_v47 }
 0x132   : > { %5508 = vmatprep.subr.bf16.mxu1 %v7518_v50  ;;  %v5163_v55 = vpop.f32.mrb[0].mxu0  ;;  %v7591_v49 = vld [vmem:[%s8337_s23 + $0xa14] ss:$8 sps:$4 sm:$0xff]   ;;  %v6277_v30 = vcombine.high %v8759_v48, %v8759_v48 }
 0x133   : > { %v5204_v56 = vpop.f32.mrb[0].mxu1  ;;  %v5165_v60 = vpop.f32.mrb[1].mxu0  ;;  %v7594_v50 = vld [vmem:[%s8337_s23 + $0xb14] ss:$8 sps:$4 sm:$0xff]  }
 0x134   : > { %v8707_v59 = vadd.f32 %v5204_v56, %v5163_v55  ;;  %v5206_v61 = vpop.f32.mrb[1].mxu1  ;;  %v5167_v63 = vpop.f32.mrb[2].mxu0  ;;  %5468 = vmatpush1.bf16.msra.mxu0 %v7513_v51  ;;  %v7589_v51 = vld [vmem:[%s8337_s23 + $0xa10] ss:$8 sps:$4 sm:$0xff]   ;;  %v7595_v55 = vld [vmem:[%s8337_s23 + $0xa20] ss:$8 sps:$4 sm:$0xff]  }
 0x135   : > { %v8709_v62 = vadd.f32 %v5206_v61, %v5165_v60  ;;  %v5208_v0 = vpop.f32.mrb[2].mxu1  ;;  %5509 = vmatpush1.bf16.msra.mxu1 %v7516_v52  ;;  %v5168_v1 = vpop.f32.mrb[3].mxu0  ;;  %5469 = vmatprep.subr.bf16.mxu0 %v7521_v53  ;;  %v7592_v52 = vld [vmem:[%s8337_s23 + $0xb10] ss:$8 sps:$4 sm:$0xff]   ;;  %v7597_v53 = vld [vmem:[%s8337_s23 + $0xa24] ss:$8 sps:$4 sm:$0xff]  }
 0x136   : > { %v5209_v2 = vpop.f32.mrb[3].mxu1  ;;  %5510 = vmatprep.subr.bf16.mxu1 %v7524_v54  ;;  %v7600_v54 = vld [vmem:[%s8337_s23 + $0xb24] ss:$8 sps:$4 sm:$0xff]   ;;  %v7598_v56 = vld [vmem:[%s8337_s23 + $0xb20] ss:$8 sps:$4 sm:$0xff]  }
 0x137   : > { %v7601_v60 = vld [vmem:[%s8337_s23 + $0xa30] ss:$8 sps:$4 sm:$0xff]   ;;  %v7609_v63 = vld [vmem:[%s8337_s23 + $0xa44] ss:$8 sps:$4 sm:$0xff]   ;;  %v7607_v1 = vld [vmem:[%s8337_s23 + $0xa40] ss:$8 sps:$4 sm:$0xff]  }
 0x138   : > { %5470 = vmatpush1.bf16.msra.mxu0 %v7519_v57  ;;  %v7603_v57 = vld [vmem:[%s8337_s23 + $0xa34] ss:$8 sps:$4 sm:$0xff]   ;;  %v7604_v61 = vld [vmem:[%s8337_s23 + $0xb30] ss:$8 sps:$4 sm:$0xff]   ;;  %v7612_v0 = vld [vmem:[%s8337_s23 + $0xb44] ss:$8 sps:$4 sm:$0xff]  }
 0x139   : > { %5511 = vmatpush1.bf16.msra.mxu1 %v7522_v58  ;;  %5471 = vmatprep.subr.bf16.mxu0 %v7527_v3  ;;  %v7606_v58 = vld [vmem:[%s8337_s23 + $0xb34] ss:$8 sps:$4 sm:$0xff]   ;;  %v7610_v2 = vld [vmem:[%s8337_s23 + $0xb40] ss:$8 sps:$4 sm:$0xff]  }
 0x13a   : > { %5512 = vmatprep.subr.bf16.mxu1 %v7530_v4  ;;  %v7615_v3 = vld [vmem:[%s8337_s23 + $0xa54] ss:$8 sps:$4 sm:$0xff]  }
 0x13b   : > { %v7618_v4 = vld [vmem:[%s8337_s23 + $0xb54] ss:$8 sps:$4 sm:$0xff]  }
 0x13c   : > { %5472 = vmatpush1.bf16.msra.mxu0 %v7525_v5  ;;  %v7613_v5 = vld [vmem:[%s8337_s23 + $0xa50] ss:$8 sps:$4 sm:$0xff]  }
 0x13d   : > { %5513 = vmatpush1.bf16.msra.mxu1 %v7528_v6  ;;  %5473 = vmatprep.subr.bf16.mxu0 %v7533_v7  ;;  %v7616_v6 = vld [vmem:[%s8337_s23 + $0xb50] ss:$8 sps:$4 sm:$0xff]   ;;  %v7621_v7 = vld [vmem:[%s8337_s23 + $0xa64] ss:$8 sps:$4 sm:$0xff]  }
 0x13e   : > { %5514 = vmatprep.subr.bf16.mxu1 %v7536_v8  ;;  %v7624_v8 = vld [vmem:[%s8337_s23 + $0xb64] ss:$8 sps:$4 sm:$0xff]  }
 0x140   : > { %5474 = vmatpush1.bf16.msra.mxu0 %v7531_v9 }
 0x141   : > { %5515 = vmatpush1.bf16.msra.mxu1 %v7534_v10  ;;  %5475 = vmatprep.subr.bf16.mxu0 %v7539_v11  ;;  %v7619_v11 = vld [vmem:[%s8337_s23 + $0xa60] ss:$8 sps:$4 sm:$0xff]  }
 0x142   : > { %5516 = vmatprep.subr.bf16.mxu1 %v7542_v12  ;;  %v7622_v12 = vld [vmem:[%s8337_s23 + $0xb60] ss:$8 sps:$4 sm:$0xff]  }
 0x144   : > { %5476 = vmatpush1.bf16.msra.mxu0 %v7537_v13 }
 0x145   : > { %5517 = vmatpush1.bf16.msra.mxu1 %v7540_v14  ;;  %5477 = vmatprep.subr.bf16.mxu0 %v7545_v15 }
 0x146   : > { %5518 = vmatprep.subr.bf16.mxu1 %v7548_v16 }
 0x148   : > { %5478 = vmatpush1.bf16.msra.mxu0 %v7543_v17 }
 0x149   : > { %5519 = vmatpush1.bf16.msra.mxu1 %v7546_v18  ;;  %5479 = vmatprep.subr.bf16.mxu0 %v7551_v21 }
 0x14a   : > { %5520 = vmatprep.subr.bf16.mxu1 %v7554_v22 }
 0x14c   : > { %5480 = vmatpush1.bf16.msra.mxu0 %v7549_v23 }
 0x14d   : > { %5521 = vmatpush1.bf16.msra.mxu1 %v7552_v24  ;;  %5481 = vmatprep.subr.bf16.mxu0 %v7557_v27  ;;  %v7630_v24 = vld [vmem:[%s8337_s23 + $0xb74] ss:$8 sps:$4 sm:$0xff]  }
 0x14e   : > { %5522 = vmatprep.subr.bf16.mxu1 %v7560_v28  ;;  %v7628_v28 = vld [vmem:[%s8337_s23 + $0xb70] ss:$8 sps:$4 sm:$0xff]  }
 0x150   : > { %5482 = vmatpush1.bf16.msra.mxu0 %v7555_v20  ;;  %v7633_v20 = vld [vmem:[%s8337_s23 + $0xa84] ss:$8 sps:$4 sm:$0xff]  }
 0x151   : > { %5523 = vmatpush1.bf16.msra.mxu1 %v7558_v29  ;;  %5483 = vmatprep.subr.bf16.mxu0 %v7563_v31  ;;  %v7636_v29 = vld [vmem:[%s8337_s23 + $0xb84] ss:$8 sps:$4 sm:$0xff]   ;;  %v7631_v31 = vld [vmem:[%s8337_s23 + $0xa80] ss:$8 sps:$4 sm:$0xff]  }
 0x152   : > { %5524 = vmatprep.subr.bf16.mxu1 %v7566_v32  ;;  %v7634_v32 = vld [vmem:[%s8337_s23 + $0xb80] ss:$8 sps:$4 sm:$0xff]  }
 0x154   : > { %5484 = vmatpush1.bf16.msra.mxu0 %v7561_v33  ;;  %v7639_v33 = vld [vmem:[%s8337_s23 + $0xa94] ss:$8 sps:$4 sm:$0xff]  }
 0x155   : > { %5525 = vmatpush1.bf16.msra.mxu1 %v7564_v34  ;;  %5485 = vmatprep.subr.bf16.mxu0 %v7569_v25  ;;  %v7642_v34 = vld [vmem:[%s8337_s23 + $0xb94] ss:$8 sps:$4 sm:$0xff]   ;;  %v7637_v25 = vld [vmem:[%s8337_s23 + $0xa90] ss:$8 sps:$4 sm:$0xff]  }
 0x156   : > { %5526 = vmatprep.subr.bf16.mxu1 %v7572_v26  ;;  %v7640_v26 = vld [vmem:[%s8337_s23 + $0xb90] ss:$8 sps:$4 sm:$0xff]  }
 0x158   : > { %5486 = vmatpush1.bf16.msra.mxu0 %v7567_v35  ;;  %v7645_v35 = vld [vmem:[%s8337_s23 + $0xaa4] ss:$8 sps:$4 sm:$0xff]  }
 0x159   : > { %5527 = vmatpush1.bf16.msra.mxu1 %v7570_v36  ;;  %5487 = vmatprep.subr.bf16.mxu0 %v7575_v37  ;;  %v7648_v36 = vld [vmem:[%s8337_s23 + $0xba4] ss:$8 sps:$4 sm:$0xff]   ;;  %v7643_v37 = vld [vmem:[%s8337_s23 + $0xaa0] ss:$8 sps:$4 sm:$0xff]  }
 0x15a   : > { %5528 = vmatprep.subr.bf16.mxu1 %v7578_v38  ;;  %v7646_v38 = vld [vmem:[%s8337_s23 + $0xba0] ss:$8 sps:$4 sm:$0xff]  }
 0x15c   : > { %5488 = vmatpush1.bf16.msra.mxu0 %v7573_v39  ;;  %v7651_v39 = vld [vmem:[%s8337_s23 + $0xab4] ss:$8 sps:$4 sm:$0xff]  }
 0x15d   : > { %5529 = vmatpush1.bf16.msra.mxu1 %v7576_v40  ;;  %5539 = vmatprep.subr.bf16.mxu0 %v7585_v41  ;;  %v7654_v40 = vld [vmem:[%s8337_s23 + $0xbb4] ss:$8 sps:$4 sm:$0xff]   ;;  %v7649_v41 = vld [vmem:[%s8337_s23 + $0xab0] ss:$8 sps:$4 sm:$0xff]  }
 0x15e   : > { %5580 = vmatprep.subr.bf16.mxu1 %v7588_v42  ;;  %v7652_v42 = vld [vmem:[%s8337_s23 + $0xbb0] ss:$8 sps:$4 sm:$0xff]  }
 0x15f   : > { %5490 = vmatmul.mubr.bf16.vlgmr.msra.gmra.mrb[16].mxu0 %v6270_v45  ;;  %v7655_v45 = vld [vmem:[%s8337_s23 + $0xac0] ss:$8 sps:$4 sm:$0xff]  }
 0x160   : > { %5531 = vmatmul.mubr.bf16.vlgmr.msra.gmra.mrb[16].mxu1 %v6272_v46  ;;  %5540 = vmatpush1.bf16.msra.mxu0 %v7583_v43  ;;  %v7657_v43 = vld [vmem:[%s8337_s23 + $0xac4] ss:$8 sps:$4 sm:$0xff]   ;;  %v7658_v46 = vld [vmem:[%s8337_s23 + $0xbc0] ss:$8 sps:$4 sm:$0xff]  }
 0x161   : > { %5581 = vmatpush1.bf16.msra.mxu1 %v7586_v44  ;;  %5541 = vmatprep.subr.bf16.mxu0 %v7591_v49  ;;  %v7660_v44 = vld [vmem:[%s8337_s23 + $0xbc4] ss:$8 sps:$4 sm:$0xff]   ;;  %v7663_v49 = vld [vmem:[%s8337_s23 + $0xad4] ss:$8 sps:$4 sm:$0xff]  }
 0x162   : > { %5582 = vmatprep.subr.bf16.mxu1 %v7594_v50  ;;  %5571 = vmatprep.mubr.bf16.mxu0 %v6275_v19  ;;  %v7666_v50 = vld [vmem:[%s8337_s23 + $0xbd4] ss:$8 sps:$4 sm:$0xff]   ;;  %v7661_v19 = vld [vmem:[%s8337_s23 + $0xad0] ss:$8 sps:$4 sm:$0xff]  }
 0x163   : > { %5612 = vmatprep.mubr.bf16.mxu1 %v6277_v30  ;;  %v7664_v30 = vld [vmem:[%s8337_s23 + $0xbd0] ss:$8 sps:$4 sm:$0xff]  }
 0x164   : > { %5542 = vmatpush1.bf16.msra.mxu0 %v7589_v51  ;;  %v7669_v51 = vld [vmem:[%s8337_s23 + $0xae4] ss:$8 sps:$4 sm:$0xff]  }
 0x165   : > { %5583 = vmatpush1.bf16.msra.mxu1 %v7592_v52  ;;  %5543 = vmatprep.subr.bf16.mxu0 %v7597_v53  ;;  %v7672_v52 = vld [vmem:[%s8337_s23 + $0xbe4] ss:$8 sps:$4 sm:$0xff]   ;;  %v7667_v53 = vld [vmem:[%s8337_s23 + $0xae0] ss:$8 sps:$4 sm:$0xff]  }
 0x166   : > { %5584 = vmatprep.subr.bf16.mxu1 %v7600_v54  ;;  %v7670_v54 = vld [vmem:[%s8337_s23 + $0xbe0] ss:$8 sps:$4 sm:$0xff]  }
 0x168   : > { %5544 = vmatpush1.bf16.msra.mxu0 %v7595_v55  ;;  %v7675_v55 = vld [vmem:[%s8337_s23 + $0xaf4] ss:$8 sps:$4 sm:$0xff]  }
 0x169   : > { %5585 = vmatpush1.bf16.msra.mxu1 %v7598_v56  ;;  %5545 = vmatprep.subr.bf16.mxu0 %v7603_v57  ;;  %v7678_v56 = vld [vmem:[%s8337_s23 + $0xbf4] ss:$8 sps:$4 sm:$0xff]   ;;  %v7673_v57 = vld [vmem:[%s8337_s23 + $0xaf0] ss:$8 sps:$4 sm:$0xff]  }
 0x16a   : > { %5586 = vmatprep.subr.bf16.mxu1 %v7606_v58  ;;  %v7676_v58 = vld [vmem:[%s8337_s23 + $0xbf0] ss:$8 sps:$4 sm:$0xff]  }
 0x16c   : > { %5546 = vmatpush1.bf16.msra.mxu0 %v7601_v60  ;;  %v7685_v60 = vld [vmem:[%s8337_s23 + $0xc04] ss:$8 sps:$4 sm:$0xff]  }
 0x16d   : > { %5587 = vmatpush1.bf16.msra.mxu1 %v7604_v61  ;;  %5547 = vmatprep.subr.bf16.mxu0 %v7609_v63  ;;  %v7688_v61 = vld [vmem:[%s8337_s23 + $0xd04] ss:$8 sps:$4 sm:$0xff]   ;;  %v7683_v63 = vld [vmem:[%s8337_s23 + $0xc00] ss:$8 sps:$4 sm:$0xff]  }
 0x16e   : > { %5588 = vmatprep.subr.bf16.mxu1 %v7612_v0  ;;  %v7686_v0 = vld [vmem:[%s8337_s23 + $0xd00] ss:$8 sps:$4 sm:$0xff]  }
 0x170   : > { %5548 = vmatpush1.bf16.msra.mxu0 %v7607_v1  ;;  %v6274_v1 = vcombine.low %v8756_v47, %v8756_v47 }
 0x171   : > { %5589 = vmatpush1.bf16.msra.mxu1 %v7610_v2  ;;  %5549 = vmatprep.subr.bf16.mxu0 %v7615_v3  ;;  %v6276_v2 = vcombine.low %v8759_v48, %v8759_v48  ;;  %v8840_v3 = vld [vmem:[%s8332_s19 + $0x60] sm:$0xff] }
 0x172   : > { %5590 = vmatprep.subr.bf16.mxu1 %v7618_v4  ;;  %v5245_v9 = vpop.f32.mrb[4].mxu0  ;;  %v8843_v4 = vld [vmem:[%s8332_s19 + $0x68] sm:$0xff]  ;;  %v6279_v47 = vcombine.high %v8840_v3, %v8840_v3 }
 0x173   : > { %v5286_v10 = vpop.f32.mrb[4].mxu1  ;;  %v5246_v13 = vadd.f32 %v5245_v9, %v8707_v59  ;;  %v5247_v14 = vpop.f32.mrb[5].mxu0  ;;  %v7627_v59 = vld [vmem:[%s8337_s23 + $0xa74] ss:$8 sps:$4 sm:$0xff]   ;;  %v6281_v48 = vcombine.high %v8843_v4, %v8843_v4  ;;  %v7697_v9 = vld [vmem:[%s8337_s23 + $0xc24] ss:$8 sps:$4 sm:$0xff]  }
 0x174   : > { %v5288_v15 = vpop.f32.mrb[5].mxu1  ;;  %v5248_v16 = vadd.f32 %v5247_v14, %v8709_v62  ;;  %v5249_v17 = vpop.f32.mrb[6].mxu0  ;;  %5550 = vmatpush1.bf16.msra.mxu0 %v7613_v5  ;;  %v7625_v62 = vld [vmem:[%s8337_s23 + $0xa70] ss:$8 sps:$4 sm:$0xff]   ;;  %v7691_v5 = vld [vmem:[%s8337_s23 + $0xc14] ss:$8 sps:$4 sm:$0xff]  }
 0x175   : > { %v5290_v18 = vpop.f32.mrb[6].mxu1  ;;  %5591 = vmatpush1.bf16.msra.mxu1 %v7616_v6  ;;  %v8791_v21 = vadd.f32 %v5286_v10, %v5246_v13  ;;  %v5250_v22 = vpop.f32.mrb[7].mxu0  ;;  %5551 = vmatprep.subr.bf16.mxu0 %v7621_v7  ;;  %v7694_v6 = vld [vmem:[%s8337_s23 + $0xd14] ss:$8 sps:$4 sm:$0xff]   ;;  %v7689_v7 = vld [vmem:[%s8337_s23 + $0xc10] ss:$8 sps:$4 sm:$0xff]  }
 0x176   : > { %v5291_v23 = vpop.f32.mrb[7].mxu1  ;;  %5592 = vmatprep.subr.bf16.mxu1 %v7624_v8  ;;  %v8795_v27 = vadd.f32 %v5288_v15, %v5248_v16  ;;  %v7692_v8 = vld [vmem:[%s8337_s23 + $0xd10] ss:$8 sps:$4 sm:$0xff]   ;;  %v7700_v10 = vld [vmem:[%s8337_s23 + $0xd24] ss:$8 sps:$4 sm:$0xff]  }
 0x177   : > { %v7703_v13 = vld [vmem:[%s8337_s23 + $0xc34] ss:$8 sps:$4 sm:$0xff]   ;;  %v7701_v15 = vld [vmem:[%s8337_s23 + $0xc30] ss:$8 sps:$4 sm:$0xff]   ;;  %v7709_v17 = vld [vmem:[%s8337_s23 + $0xc44] ss:$8 sps:$4 sm:$0xff]  }
 0x178   : > { %5552 = vmatpush1.bf16.msra.mxu0 %v7619_v11  ;;  %v7695_v11 = vld [vmem:[%s8337_s23 + $0xc20] ss:$8 sps:$4 sm:$0xff]   ;;  %v7706_v14 = vld [vmem:[%s8337_s23 + $0xd34] ss:$8 sps:$4 sm:$0xff]   ;;  %v7704_v16 = vld [vmem:[%s8337_s23 + $0xd30] ss:$8 sps:$4 sm:$0xff]  }
 0x179   : > { %5593 = vmatpush1.bf16.msra.mxu1 %v7622_v12  ;;  %5553 = vmatprep.subr.bf16.mxu0 %v7627_v59  ;;  %v7698_v12 = vld [vmem:[%s8337_s23 + $0xd20] ss:$8 sps:$4 sm:$0xff]   ;;  %v7712_v18 = vld [vmem:[%s8337_s23 + $0xd44] ss:$8 sps:$4 sm:$0xff]   ;;  %v7715_v59 = vld [vmem:[%s8337_s23 + $0xc54] ss:$8 sps:$4 sm:$0xff]  }
 0x17a   : > { %5594 = vmatprep.subr.bf16.mxu1 %v7630_v24  ;;  %v7707_v22 = vld [vmem:[%s8337_s23 + $0xc40] ss:$8 sps:$4 sm:$0xff]   ;;  %v7718_v24 = vld [vmem:[%s8337_s23 + $0xd54] ss:$8 sps:$4 sm:$0xff]  }
 0x17b   : > { %v7710_v23 = vld [vmem:[%s8337_s23 + $0xd40] ss:$8 sps:$4 sm:$0xff]  }
 0x17c   : > { %5554 = vmatpush1.bf16.msra.mxu0 %v7625_v62  ;;  %v7713_v62 = vld [vmem:[%s8337_s23 + $0xc50] ss:$8 sps:$4 sm:$0xff]  }
 0x17d   : > { %5595 = vmatpush1.bf16.msra.mxu1 %v7628_v28  ;;  %5555 = vmatprep.subr.bf16.mxu0 %v7633_v20  ;;  %v7716_v28 = vld [vmem:[%s8337_s23 + $0xd50] ss:$8 sps:$4 sm:$0xff]   ;;  %v7721_v20 = vld [vmem:[%s8337_s23 + $0xc64] ss:$8 sps:$4 sm:$0xff]  }
 0x17e   : > { %5596 = vmatprep.subr.bf16.mxu1 %v7636_v29  ;;  %v7724_v29 = vld [vmem:[%s8337_s23 + $0xd64] ss:$8 sps:$4 sm:$0xff]  }
 0x180   : > { %5556 = vmatpush1.bf16.msra.mxu0 %v7631_v31 }
 0x181   : > { %5597 = vmatpush1.bf16.msra.mxu1 %v7634_v32  ;;  %5557 = vmatprep.subr.bf16.mxu0 %v7639_v33  ;;  %v7719_v33 = vld [vmem:[%s8337_s23 + $0xc60] ss:$8 sps:$4 sm:$0xff]  }
 0x182   : > { %5598 = vmatprep.subr.bf16.mxu1 %v7642_v34  ;;  %v7722_v34 = vld [vmem:[%s8337_s23 + $0xd60] ss:$8 sps:$4 sm:$0xff]  }
 0x184   : > { %5558 = vmatpush1.bf16.msra.mxu0 %v7637_v25 }
 0x185   : > { %5599 = vmatpush1.bf16.msra.mxu1 %v7640_v26  ;;  %5559 = vmatprep.subr.bf16.mxu0 %v7645_v35 }
 0x186   : > { %5600 = vmatprep.subr.bf16.mxu1 %v7648_v36 }
 0x188   : > { %5560 = vmatpush1.bf16.msra.mxu0 %v7643_v37 }
 0x189   : > { %5601 = vmatpush1.bf16.msra.mxu1 %v7646_v38  ;;  %5561 = vmatprep.subr.bf16.mxu0 %v7651_v39 }
 0x18a   : > { %5602 = vmatprep.subr.bf16.mxu1 %v7654_v40 }
 0x18c   : > { %5562 = vmatpush1.bf16.msra.mxu0 %v7649_v41 }
 0x18d   : > { %5603 = vmatpush1.bf16.msra.mxu1 %v7652_v42  ;;  %5563 = vmatprep.subr.bf16.mxu0 %v7657_v43  ;;  %v7730_v42 = vld [vmem:[%s8337_s23 + $0xd74] ss:$8 sps:$4 sm:$0xff]  }
 0x18e   : > { %5604 = vmatprep.subr.bf16.mxu1 %v7660_v44  ;;  %v7728_v44 = vld [vmem:[%s8337_s23 + $0xd70] ss:$8 sps:$4 sm:$0xff]  }
 0x190   : > { %5564 = vmatpush1.bf16.msra.mxu0 %v7655_v45  ;;  %v7733_v45 = vld [vmem:[%s8337_s23 + $0xc84] ss:$8 sps:$4 sm:$0xff]  }
 0x191   : > { %5605 = vmatpush1.bf16.msra.mxu1 %v7658_v46  ;;  %5565 = vmatprep.subr.bf16.mxu0 %v7663_v49  ;;  %v7736_v46 = vld [vmem:[%s8337_s23 + $0xd84] ss:$8 sps:$4 sm:$0xff]   ;;  %v7731_v49 = vld [vmem:[%s8337_s23 + $0xc80] ss:$8 sps:$4 sm:$0xff]  }
 0x192   : > { %5606 = vmatprep.subr.bf16.mxu1 %v7666_v50  ;;  %v7734_v50 = vld [vmem:[%s8337_s23 + $0xd80] ss:$8 sps:$4 sm:$0xff]  }
 0x194   : > { %5566 = vmatpush1.bf16.msra.mxu0 %v7661_v19  ;;  %v7739_v19 = vld [vmem:[%s8337_s23 + $0xc94] ss:$8 sps:$4 sm:$0xff]  }
 0x195   : > { %5607 = vmatpush1.bf16.msra.mxu1 %v7664_v30  ;;  %5567 = vmatprep.subr.bf16.mxu0 %v7669_v51  ;;  %v7742_v30 = vld [vmem:[%s8337_s23 + $0xd94] ss:$8 sps:$4 sm:$0xff]   ;;  %v7737_v51 = vld [vmem:[%s8337_s23 + $0xc90] ss:$8 sps:$4 sm:$0xff]  }
 0x196   : > { %5608 = vmatprep.subr.bf16.mxu1 %v7672_v52  ;;  %v7740_v52 = vld [vmem:[%s8337_s23 + $0xd90] ss:$8 sps:$4 sm:$0xff]  }
 0x198   : > { %5568 = vmatpush1.bf16.msra.mxu0 %v7667_v53  ;;  %v7745_v53 = vld [vmem:[%s8337_s23 + $0xca4] ss:$8 sps:$4 sm:$0xff]  }
 0x199   : > { %5609 = vmatpush1.bf16.msra.mxu1 %v7670_v54  ;;  %5569 = vmatprep.subr.bf16.mxu0 %v7675_v55  ;;  %v7748_v54 = vld [vmem:[%s8337_s23 + $0xda4] ss:$8 sps:$4 sm:$0xff]   ;;  %v7743_v55 = vld [vmem:[%s8337_s23 + $0xca0] ss:$8 sps:$4 sm:$0xff]  }
 0x19a   : > { %5610 = vmatprep.subr.bf16.mxu1 %v7678_v56  ;;  %v7746_v56 = vld [vmem:[%s8337_s23 + $0xda0] ss:$8 sps:$4 sm:$0xff]  }
 0x19c   : > { %5570 = vmatpush1.bf16.msra.mxu0 %v7673_v57  ;;  %v7751_v57 = vld [vmem:[%s8337_s23 + $0xcb4] ss:$8 sps:$4 sm:$0xff]  }
 0x19d   : > { %5611 = vmatpush1.bf16.msra.mxu1 %v7676_v58  ;;  %5621 = vmatprep.subr.bf16.mxu0 %v7685_v60  ;;  %v7754_v58 = vld [vmem:[%s8337_s23 + $0xdb4] ss:$8 sps:$4 sm:$0xff]   ;;  %v7749_v60 = vld [vmem:[%s8337_s23 + $0xcb0] ss:$8 sps:$4 sm:$0xff]  }
 0x19e   : > { %5662 = vmatprep.subr.bf16.mxu1 %v7688_v61  ;;  %v7752_v61 = vld [vmem:[%s8337_s23 + $0xdb0] ss:$8 sps:$4 sm:$0xff]  }
 0x19f   : > { %5572 = vmatmul.mubr.bf16.vlgmr.msra.gmra.mrb[20].mxu0 %v6274_v1  ;;  %v7755_v1 = vld [vmem:[%s8337_s23 + $0xcc0] ss:$8 sps:$4 sm:$0xff]  }
 0x1a0   : > { %5613 = vmatmul.mubr.bf16.vlgmr.msra.gmra.mrb[20].mxu1 %v6276_v2  ;;  %5622 = vmatpush1.bf16.msra.mxu0 %v7683_v63  ;;  %v7757_v63 = vld [vmem:[%s8337_s23 + $0xcc4] ss:$8 sps:$4 sm:$0xff]   ;;  %v7758_v2 = vld [vmem:[%s8337_s23 + $0xdc0] ss:$8 sps:$4 sm:$0xff]  }
 0x1a1   : > { %5663 = vmatpush1.bf16.msra.mxu1 %v7686_v0  ;;  %5623 = vmatprep.subr.bf16.mxu0 %v7691_v5  ;;  %v7760_v0 = vld [vmem:[%s8337_s23 + $0xdc4] ss:$8 sps:$4 sm:$0xff]   ;;  %v7763_v5 = vld [vmem:[%s8337_s23 + $0xcd4] ss:$8 sps:$4 sm:$0xff]  }
 0x1a2   : > { %5664 = vmatprep.subr.bf16.mxu1 %v7694_v6  ;;  %5653 = vmatprep.mubr.bf16.mxu0 %v6279_v47  ;;  %v7766_v6 = vld [vmem:[%s8337_s23 + $0xdd4] ss:$8 sps:$4 sm:$0xff]   ;;  %v7761_v47 = vld [vmem:[%s8337_s23 + $0xcd0] ss:$8 sps:$4 sm:$0xff]  }
 0x1a3   : > { %5694 = vmatprep.mubr.bf16.mxu1 %v6281_v48  ;;  %v7764_v48 = vld [vmem:[%s8337_s23 + $0xdd0] ss:$8 sps:$4 sm:$0xff]  }
 0x1a4   : > { %5624 = vmatpush1.bf16.msra.mxu0 %v7689_v7  ;;  %v7769_v7 = vld [vmem:[%s8337_s23 + $0xce4] ss:$8 sps:$4 sm:$0xff]  }
 0x1a5   : > { %5665 = vmatpush1.bf16.msra.mxu1 %v7692_v8  ;;  %5625 = vmatprep.subr.bf16.mxu0 %v7697_v9  ;;  %v7772_v8 = vld [vmem:[%s8337_s23 + $0xde4] ss:$8 sps:$4 sm:$0xff]   ;;  %v7767_v9 = vld [vmem:[%s8337_s23 + $0xce0] ss:$8 sps:$4 sm:$0xff]  }
 0x1a6   : > { %5666 = vmatprep.subr.bf16.mxu1 %v7700_v10  ;;  %v7770_v10 = vld [vmem:[%s8337_s23 + $0xde0] ss:$8 sps:$4 sm:$0xff]  }
 0x1a8   : > { %5626 = vmatpush1.bf16.msra.mxu0 %v7695_v11  ;;  %v7775_v11 = vld [vmem:[%s8337_s23 + $0xcf4] ss:$8 sps:$4 sm:$0xff]  }
 0x1a9   : > { %5667 = vmatpush1.bf16.msra.mxu1 %v7698_v12  ;;  %5627 = vmatprep.subr.bf16.mxu0 %v7703_v13  ;;  %v7778_v12 = vld [vmem:[%s8337_s23 + $0xdf4] ss:$8 sps:$4 sm:$0xff]   ;;  %v7773_v13 = vld [vmem:[%s8337_s23 + $0xcf0] ss:$8 sps:$4 sm:$0xff]  }
 0x1aa   : > { %5668 = vmatprep.subr.bf16.mxu1 %v7706_v14  ;;  %v7776_v14 = vld [vmem:[%s8337_s23 + $0xdf0] ss:$8 sps:$4 sm:$0xff]  }
 0x1ac   : > { %5628 = vmatpush1.bf16.msra.mxu0 %v7701_v15  ;;  %v7785_v15 = vld [vmem:[%s8337_s23 + $0xe04] ss:$8 sps:$4 sm:$0xff]  }
 0x1ad   : > { %5669 = vmatpush1.bf16.msra.mxu1 %v7704_v16  ;;  %5629 = vmatprep.subr.bf16.mxu0 %v7709_v17  ;;  %v7788_v16 = vld [vmem:[%s8337_s23 + $0xf04] ss:$8 sps:$4 sm:$0xff]   ;;  %v7783_v17 = vld [vmem:[%s8337_s23 + $0xe00] ss:$8 sps:$4 sm:$0xff]  }
 0x1ae   : > { %5670 = vmatprep.subr.bf16.mxu1 %v7712_v18  ;;  %v7786_v18 = vld [vmem:[%s8337_s23 + $0xf00] ss:$8 sps:$4 sm:$0xff]  }
 0x1b0   : > { %5630 = vmatpush1.bf16.msra.mxu0 %v7707_v22  ;;  %v6278_v22 = vcombine.low %v8840_v3, %v8840_v3 }
 0x1b1   : > { %5671 = vmatpush1.bf16.msra.mxu1 %v7710_v23  ;;  %5631 = vmatprep.subr.bf16.mxu0 %v7715_v59  ;;  %v6280_v23 = vcombine.low %v8843_v4, %v8843_v4  ;;  %v8924_v59 = vld [vmem:[%s8332_s19 + $0x70] sm:$0xff] }
 0x1b2   : > { %5672 = vmatprep.subr.bf16.mxu1 %v7718_v24  ;;  %v5327_v31 = vpop.f32.mrb[8].mxu0  ;;  %v8927_v24 = vld [vmem:[%s8332_s19 + $0x78] sm:$0xff]  ;;  %v6283_v3 = vcombine.high %v8924_v59, %v8924_v59 }
 0x1b3   : > { %v5368_v32 = vpop.f32.mrb[8].mxu1  ;;  %v5328_v25 = vadd.f32 %v5327_v31, %v8791_v21  ;;  %v5329_v26 = vpop.f32.mrb[9].mxu0  ;;  %v7727_v21 = vld [vmem:[%s8337_s23 + $0xc74] ss:$8 sps:$4 sm:$0xff]   ;;  %v6285_v4 = vcombine.high %v8927_v24, %v8927_v24  ;;  %v7797_v31 = vld [vmem:[%s8337_s23 + $0xe24] ss:$8 sps:$4 sm:$0xff]  }
 0x1b4   : > { %v5370_v35 = vpop.f32.mrb[9].mxu1  ;;  %v5330_v36 = vadd.f32 %v5329_v26, %v8795_v27  ;;  %v5331_v37 = vpop.f32.mrb[10].mxu0  ;;  %5632 = vmatpush1.bf16.msra.mxu0 %v7713_v62  ;;  %v7725_v27 = vld [vmem:[%s8337_s23 + $0xc70] ss:$8 sps:$4 sm:$0xff]   ;;  %v7791_v62 = vld [vmem:[%s8337_s23 + $0xe14] ss:$8 sps:$4 sm:$0xff]  }
 0x1b5   : > { %v5372_v38 = vpop.f32.mrb[10].mxu1  ;;  %5673 = vmatpush1.bf16.msra.mxu1 %v7716_v28  ;;  %v8875_v39 = vadd.f32 %v5368_v32, %v5328_v25  ;;  %v5332_v40 = vpop.f32.mrb[11].mxu0  ;;  %5633 = vmatprep.subr.bf16.mxu0 %v7721_v20  ;;  %v7794_v28 = vld [vmem:[%s8337_s23 + $0xf14] ss:$8 sps:$4 sm:$0xff]   ;;  %v7789_v20 = vld [vmem:[%s8337_s23 + $0xe10] ss:$8 sps:$4 sm:$0xff]  }
 0x1b6   : > { %v5373_v41 = vpop.f32.mrb[11].mxu1  ;;  %5674 = vmatprep.subr.bf16.mxu1 %v7724_v29  ;;  %v8879_v43 = vadd.f32 %v5370_v35, %v5330_v36  ;;  %v7792_v29 = vld [vmem:[%s8337_s23 + $0xf10] ss:$8 sps:$4 sm:$0xff]   ;;  %v7800_v32 = vld [vmem:[%s8337_s23 + $0xf24] ss:$8 sps:$4 sm:$0xff]  }
 0x1b7   : > { %v7803_v25 = vld [vmem:[%s8337_s23 + $0xe34] ss:$8 sps:$4 sm:$0xff]   ;;  %v7801_v35 = vld [vmem:[%s8337_s23 + $0xe30] ss:$8 sps:$4 sm:$0xff]   ;;  %v7809_v37 = vld [vmem:[%s8337_s23 + $0xe44] ss:$8 sps:$4 sm:$0xff]  }
 0x1b8   : > { %5634 = vmatpush1.bf16.msra.mxu0 %v7719_v33  ;;  %v7795_v33 = vld [vmem:[%s8337_s23 + $0xe20] ss:$8 sps:$4 sm:$0xff]   ;;  %v7806_v26 = vld [vmem:[%s8337_s23 + $0xf34] ss:$8 sps:$4 sm:$0xff]   ;;  %v7804_v36 = vld [vmem:[%s8337_s23 + $0xf30] ss:$8 sps:$4 sm:$0xff]  }
 0x1b9   : > { %5675 = vmatpush1.bf16.msra.mxu1 %v7722_v34  ;;  %5635 = vmatprep.subr.bf16.mxu0 %v7727_v21  ;;  %v7798_v34 = vld [vmem:[%s8337_s23 + $0xf20] ss:$8 sps:$4 sm:$0xff]   ;;  %v7812_v38 = vld [vmem:[%s8337_s23 + $0xf44] ss:$8 sps:$4 sm:$0xff]   ;;  %v7815_v21 = vld [vmem:[%s8337_s23 + $0xe54] ss:$8 sps:$4 sm:$0xff]  }
 0x1ba   : > { %5676 = vmatprep.subr.bf16.mxu1 %v7730_v42  ;;  %v7807_v40 = vld [vmem:[%s8337_s23 + $0xe40] ss:$8 sps:$4 sm:$0xff]   ;;  %v7818_v42 = vld [vmem:[%s8337_s23 + $0xf54] ss:$8 sps:$4 sm:$0xff]  }
 0x1bb   : > { %v7810_v41 = vld [vmem:[%s8337_s23 + $0xf40] ss:$8 sps:$4 sm:$0xff]  }
 0x1bc   : > { %5636 = vmatpush1.bf16.msra.mxu0 %v7725_v27  ;;  %v7813_v27 = vld [vmem:[%s8337_s23 + $0xe50] ss:$8 sps:$4 sm:$0xff]  }
 0x1bd   : > { %5677 = vmatpush1.bf16.msra.mxu1 %v7728_v44  ;;  %5637 = vmatprep.subr.bf16.mxu0 %v7733_v45  ;;  %v7816_v44 = vld [vmem:[%s8337_s23 + $0xf50] ss:$8 sps:$4 sm:$0xff]   ;;  %v7821_v45 = vld [vmem:[%s8337_s23 + $0xe64] ss:$8 sps:$4 sm:$0xff]  }
 0x1be   : > { %5678 = vmatprep.subr.bf16.mxu1 %v7736_v46  ;;  %v7824_v46 = vld [vmem:[%s8337_s23 + $0xf64] ss:$8 sps:$4 sm:$0xff]  }
 0x1c0   : > { %5638 = vmatpush1.bf16.msra.mxu0 %v7731_v49 }
 0x1c1   : > { %5679 = vmatpush1.bf16.msra.mxu1 %v7734_v50  ;;  %5639 = vmatprep.subr.bf16.mxu0 %v7739_v19 }
 0x1c2   : > { %5680 = vmatprep.subr.bf16.mxu1 %v7742_v30 }
 0x1c4   : > { %5640 = vmatpush1.bf16.msra.mxu0 %v7737_v51 }
 0x1c5   : > { %5681 = vmatpush1.bf16.msra.mxu1 %v7740_v52  ;;  %5641 = vmatprep.subr.bf16.mxu0 %v7745_v53 }
 0x1c6   : > { %5682 = vmatprep.subr.bf16.mxu1 %v7748_v54 }
 0x1c8   : > { %5642 = vmatpush1.bf16.msra.mxu0 %v7743_v55  ;;  %v7819_v55 = vld [vmem:[%s8337_s23 + $0xe60] ss:$8 sps:$4 sm:$0xff]  }
 0x1c9   : > { %5683 = vmatpush1.bf16.msra.mxu1 %v7746_v56  ;;  %5643 = vmatprep.subr.bf16.mxu0 %v7751_v57  ;;  %v7822_v56 = vld [vmem:[%s8337_s23 + $0xf60] ss:$8 sps:$4 sm:$0xff]  }
 0x1ca   : > { %5684 = vmatprep.subr.bf16.mxu1 %v7754_v58 }
 0x1cc   : > { %5644 = vmatpush1.bf16.msra.mxu0 %v7749_v60 }
 0x1cd   : > { %5685 = vmatpush1.bf16.msra.mxu1 %v7752_v61  ;;  %5645 = vmatprep.subr.bf16.mxu0 %v7757_v63  ;;  %v7825_v63 = vld [vmem:[%s8337_s23 + $0xe70] ss:$8 sps:$4 sm:$0xff]  }
 0x1ce   : > { %5686 = vmatprep.subr.bf16.mxu1 %v7760_v0  ;;  %v7828_v0 = vld [vmem:[%s8337_s23 + $0xf70] ss:$8 sps:$4 sm:$0xff]  }
 0x1d0   : > { %5646 = vmatpush1.bf16.msra.mxu0 %v7755_v1  ;;  %v7833_v1 = vld [vmem:[%s8337_s23 + $0xe84] ss:$8 sps:$4 sm:$0xff]  }
 0x1d1   : > { %5687 = vmatpush1.bf16.msra.mxu1 %v7758_v2  ;;  %5647 = vmatprep.subr.bf16.mxu0 %v7763_v5  ;;  %v7836_v2 = vld [vmem:[%s8337_s23 + $0xf84] ss:$8 sps:$4 sm:$0xff]   ;;  %v7831_v5 = vld [vmem:[%s8337_s23 + $0xe80] ss:$8 sps:$4 sm:$0xff]  }
 0x1d2   : > { %5688 = vmatprep.subr.bf16.mxu1 %v7766_v6  ;;  %v7834_v6 = vld [vmem:[%s8337_s23 + $0xf80] ss:$8 sps:$4 sm:$0xff]  }
 0x1d4   : > { %5648 = vmatpush1.bf16.msra.mxu0 %v7761_v47  ;;  %v7839_v47 = vld [vmem:[%s8337_s23 + $0xe94] ss:$8 sps:$4 sm:$0xff]  }
 0x1d5   : > { %5689 = vmatpush1.bf16.msra.mxu1 %v7764_v48  ;;  %5649 = vmatprep.subr.bf16.mxu0 %v7769_v7  ;;  %v7842_v48 = vld [vmem:[%s8337_s23 + $0xf94] ss:$8 sps:$4 sm:$0xff]   ;;  %v7837_v7 = vld [vmem:[%s8337_s23 + $0xe90] ss:$8 sps:$4 sm:$0xff]  }
 0x1d6   : > { %5690 = vmatprep.subr.bf16.mxu1 %v7772_v8  ;;  %v7840_v8 = vld [vmem:[%s8337_s23 + $0xf90] ss:$8 sps:$4 sm:$0xff]  }
 0x1d8   : > { %5650 = vmatpush1.bf16.msra.mxu0 %v7767_v9  ;;  %v7845_v9 = vld [vmem:[%s8337_s23 + $0xea4] ss:$8 sps:$4 sm:$0xff]  }
 0x1d9   : > { %5691 = vmatpush1.bf16.msra.mxu1 %v7770_v10  ;;  %5651 = vmatprep.subr.bf16.mxu0 %v7775_v11  ;;  %v7848_v10 = vld [vmem:[%s8337_s23 + $0xfa4] ss:$8 sps:$4 sm:$0xff]   ;;  %v7843_v11 = vld [vmem:[%s8337_s23 + $0xea0] ss:$8 sps:$4 sm:$0xff]  }
 0x1da   : > { %5692 = vmatprep.subr.bf16.mxu1 %v7778_v12  ;;  %v7846_v12 = vld [vmem:[%s8337_s23 + $0xfa0] ss:$8 sps:$4 sm:$0xff]  }
 0x1dc   : > { %5652 = vmatpush1.bf16.msra.mxu0 %v7773_v13  ;;  %v7851_v13 = vld [vmem:[%s8337_s23 + $0xeb4] ss:$8 sps:$4 sm:$0xff]  }
 0x1dd   : > { %5693 = vmatpush1.bf16.msra.mxu1 %v7776_v14  ;;  %5703 = vmatprep.subr.bf16.mxu0 %v7785_v15  ;;  %v7854_v14 = vld [vmem:[%s8337_s23 + $0xfb4] ss:$8 sps:$4 sm:$0xff]   ;;  %v7849_v15 = vld [vmem:[%s8337_s23 + $0xeb0] ss:$8 sps:$4 sm:$0xff]  }
 0x1de   : > { %5744 = vmatprep.subr.bf16.mxu1 %v7788_v16  ;;  %v7852_v16 = vld [vmem:[%s8337_s23 + $0xfb0] ss:$8 sps:$4 sm:$0xff]  }
 0x1df   : > { %5654 = vmatmul.mubr.bf16.vlgmr.msra.gmra.mrb[24].mxu0 %v6278_v22  ;;  %v7855_v22 = vld [vmem:[%s8337_s23 + $0xec0] ss:$8 sps:$4 sm:$0xff]  }
 0x1e0   : > { %5695 = vmatmul.mubr.bf16.vlgmr.msra.gmra.mrb[24].mxu1 %v6280_v23  ;;  %5704 = vmatpush1.bf16.msra.mxu0 %v7783_v17  ;;  %v7857_v17 = vld [vmem:[%s8337_s23 + $0xec4] ss:$8 sps:$4 sm:$0xff]   ;;  %v7858_v23 = vld [vmem:[%s8337_s23 + $0xfc0] ss:$8 sps:$4 sm:$0xff]  }
 0x1e1   : > { %5745 = vmatpush1.bf16.msra.mxu1 %v7786_v18  ;;  %5705 = vmatprep.subr.bf16.mxu0 %v7791_v62  ;;  %v7860_v18 = vld [vmem:[%s8337_s23 + $0xfc4] ss:$8 sps:$4 sm:$0xff]   ;;  %v7863_v62 = vld [vmem:[%s8337_s23 + $0xed4] ss:$8 sps:$4 sm:$0xff]  }
 0x1e2   : > { %5746 = vmatprep.subr.bf16.mxu1 %v7794_v28  ;;  %5735 = vmatprep.mubr.bf16.mxu0 %v6283_v3  ;;  %v7866_v28 = vld [vmem:[%s8337_s23 + $0xfd4] ss:$8 sps:$4 sm:$0xff]   ;;  %v7861_v3 = vld [vmem:[%s8337_s23 + $0xed0] ss:$8 sps:$4 sm:$0xff]  }
 0x1e3   : > { %5776 = vmatprep.mubr.bf16.mxu1 %v6285_v4  ;;  %v7864_v4 = vld [vmem:[%s8337_s23 + $0xfd0] ss:$8 sps:$4 sm:$0xff]  }
 0x1e4   : > { %5706 = vmatpush1.bf16.msra.mxu0 %v7789_v20  ;;  %v7869_v20 = vld [vmem:[%s8337_s23 + $0xee4] ss:$8 sps:$4 sm:$0xff]  }
 0x1e5   : > { %5747 = vmatpush1.bf16.msra.mxu1 %v7792_v29  ;;  %5707 = vmatprep.subr.bf16.mxu0 %v7797_v31  ;;  %v7872_v29 = vld [vmem:[%s8337_s23 + $0xfe4] ss:$8 sps:$4 sm:$0xff]   ;;  %v7867_v31 = vld [vmem:[%s8337_s23 + $0xee0] ss:$8 sps:$4 sm:$0xff]  }
 0x1e6   : > { %5748 = vmatprep.subr.bf16.mxu1 %v7800_v32  ;;  %v7870_v32 = vld [vmem:[%s8337_s23 + $0xfe0] ss:$8 sps:$4 sm:$0xff]  }
 0x1e8   : > { %5708 = vmatpush1.bf16.msra.mxu0 %v7795_v33  ;;  %v7875_v33 = vld [vmem:[%s8337_s23 + $0xef4] ss:$8 sps:$4 sm:$0xff]  }
 0x1e9   : > { %5749 = vmatpush1.bf16.msra.mxu1 %v7798_v34  ;;  %5709 = vmatprep.subr.bf16.mxu0 %v7803_v25  ;;  %v7878_v34 = vld [vmem:[%s8337_s23 + $0xff4] ss:$8 sps:$4 sm:$0xff]   ;;  %v7873_v25 = vld [vmem:[%s8337_s23 + $0xef0] ss:$8 sps:$4 sm:$0xff]  }
 0x1ea   : > { %5750 = vmatprep.subr.bf16.mxu1 %v7806_v26  ;;  %v7876_v26 = vld [vmem:[%s8337_s23 + $0xff0] ss:$8 sps:$4 sm:$0xff]  }
 0x1ec   : > { %5710 = vmatpush1.bf16.msra.mxu0 %v7801_v35  ;;  %v7885_v35 = vld [vmem:[%s8337_s23 + $0x1004] ss:$8 sps:$4 sm:$0xff]  }
 0x1ed   : > { %5751 = vmatpush1.bf16.msra.mxu1 %v7804_v36  ;;  %5711 = vmatprep.subr.bf16.mxu0 %v7809_v37  ;;  %v7888_v36 = vld [vmem:[%s8337_s23 + $0x1104] ss:$8 sps:$4 sm:$0xff]   ;;  %v6282_v37 = vcombine.low %v8924_v59, %v8924_v59 }
 0x1ee   : > { %5752 = vmatprep.subr.bf16.mxu1 %v7812_v38  ;;  %v6284_v38 = vcombine.low %v8927_v24, %v8927_v24 }
 0x1f0   : > { %5712 = vmatpush1.bf16.msra.mxu0 %v7807_v40  ;;  %v9006_v40 = vld [vmem:[%s8332_s19 + $0x80] sm:$0xff] }
 0x1f1   : > { %5753 = vmatpush1.bf16.msra.mxu1 %v7810_v41  ;;  %5713 = vmatprep.subr.bf16.mxu0 %v7815_v21  ;;  %v9009_v41 = vld [vmem:[%s8332_s19 + $0x88] sm:$0xff]  ;;  %v6287_v59 = vcombine.high %v9006_v40, %v9006_v40 }
 0x1f2   : > { %5754 = vmatprep.subr.bf16.mxu1 %v7818_v42  ;;  %v5409_v49 = vpop.f32.mrb[12].mxu0  ;;  %v7883_v21 = vld [vmem:[%s8337_s23 + $0x1000] ss:$8 sps:$4 sm:$0xff]   ;;  %v6289_v24 = vcombine.high %v9009_v41, %v9009_v41 }
 0x1f3   : > { %v5450_v50 = vpop.f32.mrb[12].mxu1  ;;  %v5410_v19 = vadd.f32 %v5409_v49, %v8875_v39  ;;  %v5411_v30 = vpop.f32.mrb[13].mxu0  ;;  %v7827_v39 = vld [vmem:[%s8337_s23 + $0xe74] ss:$8 sps:$4 sm:$0xff]   ;;  %v7886_v42 = vld [vmem:[%s8337_s23 + $0x1100] ss:$8 sps:$4 sm:$0xff]  }
 0x1f4   : > { %v5452_v51 = vpop.f32.mrb[13].mxu1  ;;  %v5412_v52 = vadd.f32 %v5411_v30, %v8879_v43  ;;  %v5413_v53 = vpop.f32.mrb[14].mxu0  ;;  %5714 = vmatpush1.bf16.msra.mxu0 %v7813_v27  ;;  %v7830_v43 = vld [vmem:[%s8337_s23 + $0xf74] ss:$8 sps:$4 sm:$0xff]   ;;  %v7897_v49 = vld [vmem:[%s8337_s23 + $0x1024] ss:$8 sps:$4 sm:$0xff]  }
 0x1f5   : > { %v5454_v54 = vpop.f32.mrb[14].mxu1  ;;  %5755 = vmatpush1.bf16.msra.mxu1 %v7816_v44  ;;  %v8959_v57 = vadd.f32 %v5450_v50, %v5410_v19  ;;  %v5414_v58 = vpop.f32.mrb[15].mxu0  ;;  %5715 = vmatprep.subr.bf16.mxu0 %v7821_v45  ;;  %v7891_v27 = vld [vmem:[%s8337_s23 + $0x1014] ss:$8 sps:$4 sm:$0xff]   ;;  %v7889_v45 = vld [vmem:[%s8337_s23 + $0x1010] ss:$8 sps:$4 sm:$0xff]  }
 0x1f6   : > { %v5455_v60 = vpop.f32.mrb[15].mxu1  ;;  %5756 = vmatprep.subr.bf16.mxu1 %v7824_v46  ;;  %v8963_v61 = vadd.f32 %v5452_v51, %v5412_v52  ;;  %v7894_v44 = vld [vmem:[%s8337_s23 + $0x1114] ss:$8 sps:$4 sm:$0xff]   ;;  %v7892_v46 = vld [vmem:[%s8337_s23 + $0x1110] ss:$8 sps:$4 sm:$0xff]  }
 0x1f7   : > { %v7900_v50 = vld [vmem:[%s8337_s23 + $0x1124] ss:$8 sps:$4 sm:$0xff]   ;;  %v7895_v19 = vld [vmem:[%s8337_s23 + $0x1020] ss:$8 sps:$4 sm:$0xff]   ;;  %v7903_v51 = vld [vmem:[%s8337_s23 + $0x1034] ss:$8 sps:$4 sm:$0xff]  }
 0x1f8   : > { %5716 = vmatpush1.bf16.msra.mxu0 %v7819_v55  ;;  %v7898_v30 = vld [vmem:[%s8337_s23 + $0x1120] ss:$8 sps:$4 sm:$0xff]   ;;  %v7906_v52 = vld [vmem:[%s8337_s23 + $0x1134] ss:$8 sps:$4 sm:$0xff]   ;;  %v7901_v53 = vld [vmem:[%s8337_s23 + $0x1030] ss:$8 sps:$4 sm:$0xff]  }
 0x1f9   : > { %5757 = vmatpush1.bf16.msra.mxu1 %v7822_v56  ;;  %5717 = vmatprep.subr.bf16.mxu0 %v7827_v39  ;;  %v7904_v54 = vld [vmem:[%s8337_s23 + $0x1130] ss:$8 sps:$4 sm:$0xff]   ;;  %v7909_v55 = vld [vmem:[%s8337_s23 + $0x1044] ss:$8 sps:$4 sm:$0xff]   ;;  %v7907_v58 = vld [vmem:[%s8337_s23 + $0x1040] ss:$8 sps:$4 sm:$0xff]  }
 0x1fa   : > { %5758 = vmatprep.subr.bf16.mxu1 %v7830_v43  ;;  %v7912_v56 = vld [vmem:[%s8337_s23 + $0x1144] ss:$8 sps:$4 sm:$0xff]   ;;  %v7910_v60 = vld [vmem:[%s8337_s23 + $0x1140] ss:$8 sps:$4 sm:$0xff]   ;;  %v7915_v39 = vld [vmem:[%s8337_s23 + $0x1054] ss:$8 sps:$4 sm:$0xff]  }
 0x1fb   : > { %v7918_v43 = vld [vmem:[%s8337_s23 + $0x1154] ss:$8 sps:$4 sm:$0xff]  }
 0x1fc   : > { %5718 = vmatpush1.bf16.msra.mxu0 %v7825_v63  ;;  %v7913_v63 = vld [vmem:[%s8337_s23 + $0x1050] ss:$8 sps:$4 sm:$0xff]  }
 0x1fd   : > { %5759 = vmatpush1.bf16.msra.mxu1 %v7828_v0  ;;  %5719 = vmatprep.subr.bf16.mxu0 %v7833_v1  ;;  %v7916_v0 = vld [vmem:[%s8337_s23 + $0x1150] ss:$8 sps:$4 sm:$0xff]   ;;  %v7921_v1 = vld [vmem:[%s8337_s23 + $0x1064] ss:$8 sps:$4 sm:$0xff]  }
 0x1fe   : > { %5760 = vmatprep.subr.bf16.mxu1 %v7836_v2  ;;  %v7924_v2 = vld [vmem:[%s8337_s23 + $0x1164] ss:$8 sps:$4 sm:$0xff]  }
 0x200   : > { %5720 = vmatpush1.bf16.msra.mxu0 %v7831_v5 }
 0x201   : > { %5761 = vmatpush1.bf16.msra.mxu1 %v7834_v6  ;;  %5721 = vmatprep.subr.bf16.mxu0 %v7839_v47 }
 0x202   : > { %5762 = vmatprep.subr.bf16.mxu1 %v7842_v48 }
 0x204   : > { %5722 = vmatpush1.bf16.msra.mxu0 %v7837_v7 }
 0x205   : > { %5763 = vmatpush1.bf16.msra.mxu1 %v7840_v8  ;;  %5723 = vmatprep.subr.bf16.mxu0 %v7845_v9 }
 0x206   : > { %5764 = vmatprep.subr.bf16.mxu1 %v7848_v10 }
 0x208   : > { %5724 = vmatpush1.bf16.msra.mxu0 %v7843_v11  ;;  %v7919_v11 = vld [vmem:[%s8337_s23 + $0x1060] ss:$8 sps:$4 sm:$0xff]  }
 0x209   : > { %5765 = vmatpush1.bf16.msra.mxu1 %v7846_v12  ;;  %5725 = vmatprep.subr.bf16.mxu0 %v7851_v13  ;;  %v7922_v12 = vld [vmem:[%s8337_s23 + $0x1160] ss:$8 sps:$4 sm:$0xff]  }
 0x20a   : > { %5766 = vmatprep.subr.bf16.mxu1 %v7854_v14 }
 0x20c   : > { %5726 = vmatpush1.bf16.msra.mxu0 %v7849_v15 }
 0x20d   : > { %5767 = vmatpush1.bf16.msra.mxu1 %v7852_v16  ;;  %5727 = vmatprep.subr.bf16.mxu0 %v7857_v17  ;;  %v7925_v17 = vld [vmem:[%s8337_s23 + $0x1070] ss:$8 sps:$4 sm:$0xff]  }
 0x20e   : > { %5768 = vmatprep.subr.bf16.mxu1 %v7860_v18  ;;  %v7928_v18 = vld [vmem:[%s8337_s23 + $0x1170] ss:$8 sps:$4 sm:$0xff]  }
 0x210   : > { %5728 = vmatpush1.bf16.msra.mxu0 %v7855_v22  ;;  %v7933_v22 = vld [vmem:[%s8337_s23 + $0x1084] ss:$8 sps:$4 sm:$0xff]  }
 0x211   : > { %5769 = vmatpush1.bf16.msra.mxu1 %v7858_v23  ;;  %5729 = vmatprep.subr.bf16.mxu0 %v7863_v62  ;;  %v7936_v23 = vld [vmem:[%s8337_s23 + $0x1184] ss:$8 sps:$4 sm:$0xff]   ;;  %v7931_v62 = vld [vmem:[%s8337_s23 + $0x1080] ss:$8 sps:$4 sm:$0xff]  }
 0x212   : > { %5770 = vmatprep.subr.bf16.mxu1 %v7866_v28  ;;  %v7934_v28 = vld [vmem:[%s8337_s23 + $0x1180] ss:$8 sps:$4 sm:$0xff]  }
 0x214   : > { %5730 = vmatpush1.bf16.msra.mxu0 %v7861_v3  ;;  %v7939_v3 = vld [vmem:[%s8337_s23 + $0x1094] ss:$8 sps:$4 sm:$0xff]  }
 0x215   : > { %5771 = vmatpush1.bf16.msra.mxu1 %v7864_v4  ;;  %5731 = vmatprep.subr.bf16.mxu0 %v7869_v20  ;;  %v7942_v4 = vld [vmem:[%s8337_s23 + $0x1194] ss:$8 sps:$4 sm:$0xff]   ;;  %v7937_v20 = vld [vmem:[%s8337_s23 + $0x1090] ss:$8 sps:$4 sm:$0xff]  }
 0x216   : > { %5772 = vmatprep.subr.bf16.mxu1 %v7872_v29  ;;  %v7940_v29 = vld [vmem:[%s8337_s23 + $0x1190] ss:$8 sps:$4 sm:$0xff]  }
 0x218   : > { %5732 = vmatpush1.bf16.msra.mxu0 %v7867_v31  ;;  %v7945_v31 = vld [vmem:[%s8337_s23 + $0x10a4] ss:$8 sps:$4 sm:$0xff]  }
 0x219   : > { %5773 = vmatpush1.bf16.msra.mxu1 %v7870_v32  ;;  %5733 = vmatprep.subr.bf16.mxu0 %v7875_v33  ;;  %v7948_v32 = vld [vmem:[%s8337_s23 + $0x11a4] ss:$8 sps:$4 sm:$0xff]   ;;  %v7943_v33 = vld [vmem:[%s8337_s23 + $0x10a0] ss:$8 sps:$4 sm:$0xff]  }
 0x21a   : > { %5774 = vmatprep.subr.bf16.mxu1 %v7878_v34  ;;  %v7946_v34 = vld [vmem:[%s8337_s23 + $0x11a0] ss:$8 sps:$4 sm:$0xff]  }
 0x21c   : > { %5734 = vmatpush1.bf16.msra.mxu0 %v7873_v25  ;;  %v7951_v25 = vld [vmem:[%s8337_s23 + $0x10b4] ss:$8 sps:$4 sm:$0xff]  }
 0x21d   : > { %5775 = vmatpush1.bf16.msra.mxu1 %v7876_v26  ;;  %5785 = vmatprep.subr.bf16.mxu0 %v7885_v35  ;;  %v7954_v26 = vld [vmem:[%s8337_s23 + $0x11b4] ss:$8 sps:$4 sm:$0xff]   ;;  %v7949_v35 = vld [vmem:[%s8337_s23 + $0x10b0] ss:$8 sps:$4 sm:$0xff]  }
 0x21e   : > { %5826 = vmatprep.subr.bf16.mxu1 %v7888_v36  ;;  %v7952_v36 = vld [vmem:[%s8337_s23 + $0x11b0] ss:$8 sps:$4 sm:$0xff]  }
 0x21f   : > { %5736 = vmatmul.mubr.bf16.vlgmr.msra.gmra.mrb[28].mxu0 %v6282_v37  ;;  %v7957_v37 = vld [vmem:[%s8337_s23 + $0x10c4] ss:$8 sps:$4 sm:$0xff]  }
 0x220   : > { %5777 = vmatmul.mubr.bf16.vlgmr.msra.gmra.mrb[28].mxu1 %v6284_v38  ;;  %5786 = vmatpush1.bf16.msra.mxu0 %v7883_v21  ;;  %v7960_v38 = vld [vmem:[%s8337_s23 + $0x11c4] ss:$8 sps:$4 sm:$0xff]   ;;  %v7955_v21 = vld [vmem:[%s8337_s23 + $0x10c0] ss:$8 sps:$4 sm:$0xff]  }
 0x221   : > { %5827 = vmatpush1.bf16.msra.mxu1 %v7886_v42  ;;  %5787 = vmatprep.subr.bf16.mxu0 %v7891_v27  ;;  %v7958_v42 = vld [vmem:[%s8337_s23 + $0x11c0] ss:$8 sps:$4 sm:$0xff]   ;;  %v7963_v27 = vld [vmem:[%s8337_s23 + $0x10d4] ss:$8 sps:$4 sm:$0xff]  }
 0x222   : > { %5828 = vmatprep.subr.bf16.mxu1 %v7894_v44  ;;  %5817 = vmatprep.mubr.bf16.mxu0 %v6287_v59  ;;  %v7966_v44 = vld [vmem:[%s8337_s23 + $0x11d4] ss:$8 sps:$4 sm:$0xff]   ;;  %v7961_v59 = vld [vmem:[%s8337_s23 + $0x10d0] ss:$8 sps:$4 sm:$0xff]  }
 0x223   : > { %5858 = vmatprep.mubr.bf16.mxu1 %v6289_v24  ;;  %v7964_v24 = vld [vmem:[%s8337_s23 + $0x11d0] ss:$8 sps:$4 sm:$0xff]  }
 0x224   : > { %5788 = vmatpush1.bf16.msra.mxu0 %v7889_v45  ;;  %v7969_v45 = vld [vmem:[%s8337_s23 + $0x10e4] ss:$8 sps:$4 sm:$0xff]  }
 0x225   : > { %5829 = vmatpush1.bf16.msra.mxu1 %v7892_v46  ;;  %5789 = vmatprep.subr.bf16.mxu0 %v7897_v49  ;;  %v7972_v46 = vld [vmem:[%s8337_s23 + $0x11e4] ss:$8 sps:$4 sm:$0xff]   ;;  %v7967_v49 = vld [vmem:[%s8337_s23 + $0x10e0] ss:$8 sps:$4 sm:$0xff]  }
 0x226   : > { %5830 = vmatprep.subr.bf16.mxu1 %v7900_v50  ;;  %v7970_v50 = vld [vmem:[%s8337_s23 + $0x11e0] ss:$8 sps:$4 sm:$0xff]  }
 0x228   : > { %5790 = vmatpush1.bf16.msra.mxu0 %v7895_v19  ;;  %v7975_v19 = vld [vmem:[%s8337_s23 + $0x10f4] ss:$8 sps:$4 sm:$0xff]  }
 0x229   : > { %5831 = vmatpush1.bf16.msra.mxu1 %v7898_v30  ;;  %5791 = vmatprep.subr.bf16.mxu0 %v7903_v51  ;;  %v7978_v30 = vld [vmem:[%s8337_s23 + $0x11f4] ss:$8 sps:$4 sm:$0xff]   ;;  %v7973_v51 = vld [vmem:[%s8337_s23 + $0x10f0] ss:$8 sps:$4 sm:$0xff]  }
 0x22a   : > { %5832 = vmatprep.subr.bf16.mxu1 %v7906_v52  ;;  %v7976_v52 = vld [vmem:[%s8337_s23 + $0x11f0] ss:$8 sps:$4 sm:$0xff]  }
 0x22c   : > { %5792 = vmatpush1.bf16.msra.mxu0 %v7901_v53  ;;  %v7985_v53 = vld [vmem:[%s8337_s23 + $0x1204] ss:$8 sps:$4 sm:$0xff]  }
 0x22d   : > { %5833 = vmatpush1.bf16.msra.mxu1 %v7904_v54  ;;  %5793 = vmatprep.subr.bf16.mxu0 %v7909_v55  ;;  %v7988_v54 = vld [vmem:[%s8337_s23 + $0x1304] ss:$8 sps:$4 sm:$0xff]   ;;  %v6286_v55 = vcombine.low %v9006_v40, %v9006_v40 }
 0x22e   : > { %5834 = vmatprep.subr.bf16.mxu1 %v7912_v56  ;;  %v6288_v56 = vcombine.low %v9009_v41, %v9009_v41 }
 0x230   : > { %5794 = vmatpush1.bf16.msra.mxu0 %v7907_v58  ;;  %v9090_v58 = vld [vmem:[%s8332_s19 + $0x90] sm:$0xff] }
 0x231   : > { %5835 = vmatpush1.bf16.msra.mxu1 %v7910_v60  ;;  %5795 = vmatprep.subr.bf16.mxu0 %v7915_v39  ;;  %v9093_v60 = vld [vmem:[%s8332_s19 + $0x98] sm:$0xff]  ;;  %v7983_v39 = vld [vmem:[%s8337_s23 + $0x1200] ss:$8 sps:$4 sm:$0xff]   ;;  %v6291_v40 = vcombine.high %v9090_v58, %v9090_v58 }
 0x232   : > { %5836 = vmatprep.subr.bf16.mxu1 %v7918_v43  ;;  %v5491_v5 = vpop.f32.mrb[16].mxu0  ;;  %v7986_v43 = vld [vmem:[%s8337_s23 + $0x1300] ss:$8 sps:$4 sm:$0xff]   ;;  %v6293_v41 = vcombine.high %v9093_v60, %v9093_v60 }
 0x233   : > { %v5532_v6 = vpop.f32.mrb[16].mxu1  ;;  %v5492_v47 = vadd.f32 %v5491_v5, %v8959_v57  ;;  %v5493_v48 = vpop.f32.mrb[17].mxu0  ;;  %v7927_v57 = vld [vmem:[%s8337_s23 + $0x1074] ss:$8 sps:$4 sm:$0xff]   ;;  %v7997_v5 = vld [vmem:[%s8337_s23 + $0x1224] ss:$8 sps:$4 sm:$0xff]  }
 0x234   : > { %v5534_v7 = vpop.f32.mrb[17].mxu1  ;;  %v5494_v8 = vadd.f32 %v5493_v48, %v8963_v61  ;;  %v5495_v9 = vpop.f32.mrb[18].mxu0  ;;  %5796 = vmatpush1.bf16.msra.mxu0 %v7913_v63  ;;  %v7930_v61 = vld [vmem:[%s8337_s23 + $0x1174] ss:$8 sps:$4 sm:$0xff]   ;;  %v7998_v48 = vld [vmem:[%s8337_s23 + $0x1320] ss:$8 sps:$4 sm:$0xff]  }
 0x235   : > { %v5536_v10 = vpop.f32.mrb[18].mxu1  ;;  %5837 = vmatpush1.bf16.msra.mxu1 %v7916_v0  ;;  %v9043_v13 = vadd.f32 %v5532_v6, %v5492_v47  ;;  %v5496_v14 = vpop.f32.mrb[19].mxu0  ;;  %5797 = vmatprep.subr.bf16.mxu0 %v7921_v1  ;;  %v7991_v63 = vld [vmem:[%s8337_s23 + $0x1214] ss:$8 sps:$4 sm:$0xff]   ;;  %v7989_v1 = vld [vmem:[%s8337_s23 + $0x1210] ss:$8 sps:$4 sm:$0xff]  }
 0x236   : > { %v5537_v15 = vpop.f32.mrb[19].mxu1  ;;  %5838 = vmatprep.subr.bf16.mxu1 %v7924_v2  ;;  %v9047_v16 = vadd.f32 %v5534_v7, %v5494_v8  ;;  %v7994_v0 = vld [vmem:[%s8337_s23 + $0x1314] ss:$8 sps:$4 sm:$0xff]   ;;  %v7992_v2 = vld [vmem:[%s8337_s23 + $0x1310] ss:$8 sps:$4 sm:$0xff]  }
 0x237   : > { %v8000_v6 = vld [vmem:[%s8337_s23 + $0x1324] ss:$8 sps:$4 sm:$0xff]   ;;  %v7995_v47 = vld [vmem:[%s8337_s23 + $0x1220] ss:$8 sps:$4 sm:$0xff]   ;;  %v8003_v7 = vld [vmem:[%s8337_s23 + $0x1234] ss:$8 sps:$4 sm:$0xff]  }
 0x238   : > { %5798 = vmatpush1.bf16.msra.mxu0 %v7919_v11  ;;  %v8006_v8 = vld [vmem:[%s8337_s23 + $0x1334] ss:$8 sps:$4 sm:$0xff]   ;;  %v8001_v9 = vld [vmem:[%s8337_s23 + $0x1230] ss:$8 sps:$4 sm:$0xff]   ;;  %v8009_v11 = vld [vmem:[%s8337_s23 + $0x1244] ss:$8 sps:$4 sm:$0xff]  }
 0x239   : > { %5839 = vmatpush1.bf16.msra.mxu1 %v7922_v12  ;;  %5799 = vmatprep.subr.bf16.mxu0 %v7927_v57  ;;  %v8004_v10 = vld [vmem:[%s8337_s23 + $0x1330] ss:$8 sps:$4 sm:$0xff]   ;;  %v8012_v12 = vld [vmem:[%s8337_s23 + $0x1344] ss:$8 sps:$4 sm:$0xff]   ;;  %v8007_v14 = vld [vmem:[%s8337_s23 + $0x1240] ss:$8 sps:$4 sm:$0xff]  }
 0x23a   : > { %5840 = vmatprep.subr.bf16.mxu1 %v7930_v61  ;;  %v8010_v15 = vld [vmem:[%s8337_s23 + $0x1340] ss:$8 sps:$4 sm:$0xff]   ;;  %v8015_v57 = vld [vmem:[%s8337_s23 + $0x1254] ss:$8 sps:$4 sm:$0xff]  }
 0x23b   : > { %v8018_v61 = vld [vmem:[%s8337_s23 + $0x1354] ss:$8 sps:$4 sm:$0xff]  }
 0x23c   : > { %5800 = vmatpush1.bf16.msra.mxu0 %v7925_v17  ;;  %v8013_v17 = vld [vmem:[%s8337_s23 + $0x1250] ss:$8 sps:$4 sm:$0xff]  }
 0x23d   : > { %5841 = vmatpush1.bf16.msra.mxu1 %v7928_v18  ;;  %5801 = vmatprep.subr.bf16.mxu0 %v7933_v22  ;;  %v8016_v18 = vld [vmem:[%s8337_s23 + $0x1350] ss:$8 sps:$4 sm:$0xff]   ;;  %v8021_v22 = vld [vmem:[%s8337_s23 + $0x1264] ss:$8 sps:$4 sm:$0xff]  }
 0x23e   : > { %5842 = vmatprep.subr.bf16.mxu1 %v7936_v23  ;;  %v8024_v23 = vld [vmem:[%s8337_s23 + $0x1364] ss:$8 sps:$4 sm:$0xff]  }
 0x240   : > { %5802 = vmatpush1.bf16.msra.mxu0 %v7931_v62 }
 0x241   : > { %5843 = vmatpush1.bf16.msra.mxu1 %v7934_v28  ;;  %5803 = vmatprep.subr.bf16.mxu0 %v7939_v3 }
 0x242   : > { %5844 = vmatprep.subr.bf16.mxu1 %v7942_v4 }
 0x244   : > { %5804 = vmatpush1.bf16.msra.mxu0 %v7937_v20 }
 0x245   : > { %5845 = vmatpush1.bf16.msra.mxu1 %v7940_v29  ;;  %5805 = vmatprep.subr.bf16.mxu0 %v7945_v31 }
 0x246   : > { %5846 = vmatprep.subr.bf16.mxu1 %v7948_v32 }
 0x248   : > { %5806 = vmatpush1.bf16.msra.mxu0 %v7943_v33  ;;  %v8019_v33 = vld [vmem:[%s8337_s23 + $0x1260] ss:$8 sps:$4 sm:$0xff]  }
 0x249   : > { %5847 = vmatpush1.bf16.msra.mxu1 %v7946_v34  ;;  %5807 = vmatprep.subr.bf16.mxu0 %v7951_v25  ;;  %v8022_v34 = vld [vmem:[%s8337_s23 + $0x1360] ss:$8 sps:$4 sm:$0xff]  }
 0x24a   : > { %5848 = vmatprep.subr.bf16.mxu1 %v7954_v26 }
 0x24c   : > { %5808 = vmatpush1.bf16.msra.mxu0 %v7949_v35 }
 0x24d   : > { %5849 = vmatpush1.bf16.msra.mxu1 %v7952_v36  ;;  %5809 = vmatprep.subr.bf16.mxu0 %v7957_v37  ;;  %v8025_v37 = vld [vmem:[%s8337_s23 + $0x1270] ss:$8 sps:$4 sm:$0xff]  }
 0x24e   : > { %5850 = vmatprep.subr.bf16.mxu1 %v7960_v38  ;;  %v8028_v38 = vld [vmem:[%s8337_s23 + $0x1370] ss:$8 sps:$4 sm:$0xff]  }
 0x250   : > { %5810 = vmatpush1.bf16.msra.mxu0 %v7955_v21  ;;  %v8033_v21 = vld [vmem:[%s8337_s23 + $0x1284] ss:$8 sps:$4 sm:$0xff]  }
 0x251   : > { %5851 = vmatpush1.bf16.msra.mxu1 %v7958_v42  ;;  %5811 = vmatprep.subr.bf16.mxu0 %v7963_v27  ;;  %v8036_v42 = vld [vmem:[%s8337_s23 + $0x1384] ss:$8 sps:$4 sm:$0xff]   ;;  %v8031_v27 = vld [vmem:[%s8337_s23 + $0x1280] ss:$8 sps:$4 sm:$0xff]  }
 0x252   : > { %5852 = vmatprep.subr.bf16.mxu1 %v7966_v44  ;;  %v8034_v44 = vld [vmem:[%s8337_s23 + $0x1380] ss:$8 sps:$4 sm:$0xff]  }
 0x254   : > { %5812 = vmatpush1.bf16.msra.mxu0 %v7961_v59  ;;  %v8039_v59 = vld [vmem:[%s8337_s23 + $0x1294] ss:$8 sps:$4 sm:$0xff]  }
 0x255   : > { %5853 = vmatpush1.bf16.msra.mxu1 %v7964_v24  ;;  %5813 = vmatprep.subr.bf16.mxu0 %v7969_v45  ;;  %v8042_v24 = vld [vmem:[%s8337_s23 + $0x1394] ss:$8 sps:$4 sm:$0xff]   ;;  %v8037_v45 = vld [vmem:[%s8337_s23 + $0x1290] ss:$8 sps:$4 sm:$0xff]  }
 0x256   : > { %5854 = vmatprep.subr.bf16.mxu1 %v7972_v46  ;;  %v8040_v46 = vld [vmem:[%s8337_s23 + $0x1390] ss:$8 sps:$4 sm:$0xff]  }
 0x258   : > { %5814 = vmatpush1.bf16.msra.mxu0 %v7967_v49  ;;  %v8045_v49 = vld [vmem:[%s8337_s23 + $0x12a4] ss:$8 sps:$4 sm:$0xff]  }
 0x259   : > { %5855 = vmatpush1.bf16.msra.mxu1 %v7970_v50  ;;  %5815 = vmatprep.subr.bf16.mxu0 %v7975_v19  ;;  %v8048_v50 = vld [vmem:[%s8337_s23 + $0x13a4] ss:$8 sps:$4 sm:$0xff]   ;;  %v8043_v19 = vld [vmem:[%s8337_s23 + $0x12a0] ss:$8 sps:$4 sm:$0xff]  }
 0x25a   : > { %5856 = vmatprep.subr.bf16.mxu1 %v7978_v30  ;;  %v8046_v30 = vld [vmem:[%s8337_s23 + $0x13a0] ss:$8 sps:$4 sm:$0xff]  }
 0x25c   : > { %5816 = vmatpush1.bf16.msra.mxu0 %v7973_v51  ;;  %v8051_v51 = vld [vmem:[%s8337_s23 + $0x12b4] ss:$8 sps:$4 sm:$0xff]  }
 0x25d   : > { %5857 = vmatpush1.bf16.msra.mxu1 %v7976_v52  ;;  %5867 = vmatprep.subr.bf16.mxu0 %v7985_v53  ;;  %v8054_v52 = vld [vmem:[%s8337_s23 + $0x13b4] ss:$8 sps:$4 sm:$0xff]   ;;  %v8049_v53 = vld [vmem:[%s8337_s23 + $0x12b0] ss:$8 sps:$4 sm:$0xff]  }
 0x25e   : > { %5908 = vmatprep.subr.bf16.mxu1 %v7988_v54  ;;  %v8052_v54 = vld [vmem:[%s8337_s23 + $0x13b0] ss:$8 sps:$4 sm:$0xff]  }
 0x25f   : > { %5818 = vmatmul.mubr.bf16.vlgmr.msra.gmra.mrb[32].mxu0 %v6286_v55  ;;  %v8057_v55 = vld [vmem:[%s8337_s23 + $0x12c4] ss:$8 sps:$4 sm:$0xff]  }
 0x260   : > { %5859 = vmatmul.mubr.bf16.vlgmr.msra.gmra.mrb[32].mxu1 %v6288_v56  ;;  %5868 = vmatpush1.bf16.msra.mxu0 %v7983_v39  ;;  %v8060_v56 = vld [vmem:[%s8337_s23 + $0x13c4] ss:$8 sps:$4 sm:$0xff]   ;;  %v8055_v39 = vld [vmem:[%s8337_s23 + $0x12c0] ss:$8 sps:$4 sm:$0xff]  }
 0x261   : > { %5909 = vmatpush1.bf16.msra.mxu1 %v7986_v43  ;;  %5869 = vmatprep.subr.bf16.mxu0 %v7991_v63  ;;  %v8058_v43 = vld [vmem:[%s8337_s23 + $0x13c0] ss:$8 sps:$4 sm:$0xff]   ;;  %v8063_v63 = vld [vmem:[%s8337_s23 + $0x12d4] ss:$8 sps:$4 sm:$0xff]  }
 0x262   : > { %5910 = vmatprep.subr.bf16.mxu1 %v7994_v0  ;;  %5899 = vmatprep.mubr.bf16.mxu0 %v6291_v40  ;;  %v8066_v0 = vld [vmem:[%s8337_s23 + $0x13d4] ss:$8 sps:$4 sm:$0xff]   ;;  %v8061_v40 = vld [vmem:[%s8337_s23 + $0x12d0] ss:$8 sps:$4 sm:$0xff]  }
 0x263   : > { %5940 = vmatprep.mubr.bf16.mxu1 %v6293_v41  ;;  %v8064_v41 = vld [vmem:[%s8337_s23 + $0x13d0] ss:$8 sps:$4 sm:$0xff]  }
 0x264   : > { %5870 = vmatpush1.bf16.msra.mxu0 %v7989_v1  ;;  %v8069_v1 = vld [vmem:[%s8337_s23 + $0x12e4] ss:$8 sps:$4 sm:$0xff]  }
 0x265   : > { %5911 = vmatpush1.bf16.msra.mxu1 %v7992_v2  ;;  %5871 = vmatprep.subr.bf16.mxu0 %v7997_v5  ;;  %v8072_v2 = vld [vmem:[%s8337_s23 + $0x13e4] ss:$8 sps:$4 sm:$0xff]   ;;  %v8067_v5 = vld [vmem:[%s8337_s23 + $0x12e0] ss:$8 sps:$4 sm:$0xff]  }
 0x266   : > { %5912 = vmatprep.subr.bf16.mxu1 %v8000_v6  ;;  %v8070_v6 = vld [vmem:[%s8337_s23 + $0x13e0] ss:$8 sps:$4 sm:$0xff]  }
 0x268   : > { %5872 = vmatpush1.bf16.msra.mxu0 %v7995_v47  ;;  %v8075_v47 = vld [vmem:[%s8337_s23 + $0x12f4] ss:$8 sps:$4 sm:$0xff]  }
 0x269   : > { %5913 = vmatpush1.bf16.msra.mxu1 %v7998_v48  ;;  %5873 = vmatprep.subr.bf16.mxu0 %v8003_v7  ;;  %v8078_v48 = vld [vmem:[%s8337_s23 + $0x13f4] ss:$8 sps:$4 sm:$0xff]   ;;  %v8073_v7 = vld [vmem:[%s8337_s23 + $0x12f0] ss:$8 sps:$4 sm:$0xff]  }
 0x26a   : > { %5914 = vmatprep.subr.bf16.mxu1 %v8006_v8  ;;  %v8076_v8 = vld [vmem:[%s8337_s23 + $0x13f0] ss:$8 sps:$4 sm:$0xff]  }
 0x26c   : > { %5874 = vmatpush1.bf16.msra.mxu0 %v8001_v9  ;;  %v8085_v9 = vld [vmem:[%s8337_s23 + $0x1404] ss:$8 sps:$4 sm:$0xff]  }
 0x26d   : > { %5915 = vmatpush1.bf16.msra.mxu1 %v8004_v10  ;;  %5875 = vmatprep.subr.bf16.mxu0 %v8009_v11  ;;  %v8088_v10 = vld [vmem:[%s8337_s23 + $0x1504] ss:$8 sps:$4 sm:$0xff]   ;;  %v6290_v11 = vcombine.low %v9090_v58, %v9090_v58 }
 0x26e   : > { %5916 = vmatprep.subr.bf16.mxu1 %v8012_v12  ;;  %v6292_v12 = vcombine.low %v9093_v60, %v9093_v60 }
 0x270   : > { %5876 = vmatpush1.bf16.msra.mxu0 %v8007_v14  ;;  %v9174_v14 = vld [vmem:[%s8332_s19 + $0xa0] sm:$0xff] }
 0x271   : > { %5917 = vmatpush1.bf16.msra.mxu1 %v8010_v15  ;;  %5877 = vmatprep.subr.bf16.mxu0 %v8015_v57  ;;  %v9177_v15 = vld [vmem:[%s8332_s19 + $0xa8] sm:$0xff]  ;;  %v6295_v58 = vcombine.high %v9174_v14, %v9174_v14 }
 0x272   : > { %5918 = vmatprep.subr.bf16.mxu1 %v8018_v61  ;;  %v5573_v62 = vpop.f32.mrb[20].mxu0  ;;  %v8083_v57 = vld [vmem:[%s8337_s23 + $0x1400] ss:$8 sps:$4 sm:$0xff]   ;;  %v6297_v60 = vcombine.high %v9177_v15, %v9177_v15 }
 0x273   : > { %v5614_v28 = vpop.f32.mrb[20].mxu1  ;;  %v5574_v3 = vadd.f32 %v5573_v62, %v9043_v13  ;;  %v5575_v4 = vpop.f32.mrb[21].mxu0  ;;  %v8027_v13 = vld [vmem:[%s8337_s23 + $0x1274] ss:$8 sps:$4 sm:$0xff]   ;;  %v8086_v61 = vld [vmem:[%s8337_s23 + $0x1500] ss:$8 sps:$4 sm:$0xff]  }
 0x274   : > { %v5616_v20 = vpop.f32.mrb[21].mxu1  ;;  %v5576_v29 = vadd.f32 %v5575_v4, %v9047_v16  ;;  %v5577_v31 = vpop.f32.mrb[22].mxu0  ;;  %5878 = vmatpush1.bf16.msra.mxu0 %v8013_v17  ;;  %v8030_v16 = vld [vmem:[%s8337_s23 + $0x1374] ss:$8 sps:$4 sm:$0xff]   ;;  %v8097_v62 = vld [vmem:[%s8337_s23 + $0x1424] ss:$8 sps:$4 sm:$0xff]  }
 0x275   : > { %v5618_v32 = vpop.f32.mrb[22].mxu1  ;;  %5919 = vmatpush1.bf16.msra.mxu1 %v8016_v18  ;;  %v9127_v25 = vadd.f32 %v5614_v28, %v5574_v3  ;;  %v5578_v26 = vpop.f32.mrb[23].mxu0  ;;  %5879 = vmatprep.subr.bf16.mxu0 %v8021_v22  ;;  %v8091_v17 = vld [vmem:[%s8337_s23 + $0x1414] ss:$8 sps:$4 sm:$0xff]   ;;  %v8089_v22 = vld [vmem:[%s8337_s23 + $0x1410] ss:$8 sps:$4 sm:$0xff]  }
 0x276   : > { %v5619_v35 = vpop.f32.mrb[23].mxu1  ;;  %5920 = vmatprep.subr.bf16.mxu1 %v8024_v23  ;;  %v9131_v36 = vadd.f32 %v5616_v20, %v5576_v29  ;;  %v8094_v18 = vld [vmem:[%s8337_s23 + $0x1514] ss:$8 sps:$4 sm:$0xff]   ;;  %v8092_v23 = vld [vmem:[%s8337_s23 + $0x1510] ss:$8 sps:$4 sm:$0xff]  }
 0x277   : > { %v8100_v28 = vld [vmem:[%s8337_s23 + $0x1524] ss:$8 sps:$4 sm:$0xff]   ;;  %v8095_v3 = vld [vmem:[%s8337_s23 + $0x1420] ss:$8 sps:$4 sm:$0xff]   ;;  %v8103_v20 = vld [vmem:[%s8337_s23 + $0x1434] ss:$8 sps:$4 sm:$0xff]  }
 0x278   : > { %5880 = vmatpush1.bf16.msra.mxu0 %v8019_v33  ;;  %v8098_v4 = vld [vmem:[%s8337_s23 + $0x1520] ss:$8 sps:$4 sm:$0xff]   ;;  %v8106_v29 = vld [vmem:[%s8337_s23 + $0x1534] ss:$8 sps:$4 sm:$0xff]   ;;  %v8101_v31 = vld [vmem:[%s8337_s23 + $0x1430] ss:$8 sps:$4 sm:$0xff]  }
 0x279   : > { %5921 = vmatpush1.bf16.msra.mxu1 %v8022_v34  ;;  %5881 = vmatprep.subr.bf16.mxu0 %v8027_v13  ;;  %v8104_v32 = vld [vmem:[%s8337_s23 + $0x1530] ss:$8 sps:$4 sm:$0xff]   ;;  %v8109_v33 = vld [vmem:[%s8337_s23 + $0x1444] ss:$8 sps:$4 sm:$0xff]   ;;  %v8107_v26 = vld [vmem:[%s8337_s23 + $0x1440] ss:$8 sps:$4 sm:$0xff]  }
 0x27a   : > { %5922 = vmatprep.subr.bf16.mxu1 %v8030_v16  ;;  %v8112_v34 = vld [vmem:[%s8337_s23 + $0x1544] ss:$8 sps:$4 sm:$0xff]   ;;  %v8110_v35 = vld [vmem:[%s8337_s23 + $0x1540] ss:$8 sps:$4 sm:$0xff]   ;;  %v8115_v13 = vld [vmem:[%s8337_s23 + $0x1454] ss:$8 sps:$4 sm:$0xff]  }
 0x27b   : > { %v8118_v16 = vld [vmem:[%s8337_s23 + $0x1554] ss:$8 sps:$4 sm:$0xff]  }
 0x27c   : > { %5882 = vmatpush1.bf16.msra.mxu0 %v8025_v37  ;;  %v8113_v37 = vld [vmem:[%s8337_s23 + $0x1450] ss:$8 sps:$4 sm:$0xff]  }
 0x27d   : > { %5923 = vmatpush1.bf16.msra.mxu1 %v8028_v38  ;;  %5883 = vmatprep.subr.bf16.mxu0 %v8033_v21  ;;  %v8116_v38 = vld [vmem:[%s8337_s23 + $0x1550] ss:$8 sps:$4 sm:$0xff]   ;;  %v8121_v21 = vld [vmem:[%s8337_s23 + $0x1464] ss:$8 sps:$4 sm:$0xff]  }
 0x27e   : > { %5924 = vmatprep.subr.bf16.mxu1 %v8036_v42  ;;  %v8124_v42 = vld [vmem:[%s8337_s23 + $0x1564] ss:$8 sps:$4 sm:$0xff]  }
 0x280   : > { %5884 = vmatpush1.bf16.msra.mxu0 %v8031_v27 }
 0x281   : > { %5925 = vmatpush1.bf16.msra.mxu1 %v8034_v44  ;;  %5885 = vmatprep.subr.bf16.mxu0 %v8039_v59 }
 0x282   : > { %5926 = vmatprep.subr.bf16.mxu1 %v8042_v24 }
 0x284   : > { %5886 = vmatpush1.bf16.msra.mxu0 %v8037_v45 }
 0x285   : > { %5927 = vmatpush1.bf16.msra.mxu1 %v8040_v46  ;;  %5887 = vmatprep.subr.bf16.mxu0 %v8045_v49 }
 0x286   : > { %5928 = vmatprep.subr.bf16.mxu1 %v8048_v50 }
 0x288   : > { %5888 = vmatpush1.bf16.msra.mxu0 %v8043_v19  ;;  %v8119_v19 = vld [vmem:[%s8337_s23 + $0x1460] ss:$8 sps:$4 sm:$0xff]  }
 0x289   : > { %5929 = vmatpush1.bf16.msra.mxu1 %v8046_v30  ;;  %5889 = vmatprep.subr.bf16.mxu0 %v8051_v51  ;;  %v8122_v30 = vld [vmem:[%s8337_s23 + $0x1560] ss:$8 sps:$4 sm:$0xff]  }
 0x28a   : > { %5930 = vmatprep.subr.bf16.mxu1 %v8054_v52 }
 0x28c   : > { %5890 = vmatpush1.bf16.msra.mxu0 %v8049_v53 }
 0x28d   : > { %5931 = vmatpush1.bf16.msra.mxu1 %v8052_v54  ;;  %5891 = vmatprep.subr.bf16.mxu0 %v8057_v55  ;;  %v8125_v55 = vld [vmem:[%s8337_s23 + $0x1470] ss:$8 sps:$4 sm:$0xff]  }
 0x28e   : > { %5932 = vmatprep.subr.bf16.mxu1 %v8060_v56  ;;  %v8128_v56 = vld [vmem:[%s8337_s23 + $0x1570] ss:$8 sps:$4 sm:$0xff]  }
 0x290   : > { %5892 = vmatpush1.bf16.msra.mxu0 %v8055_v39  ;;  %v8133_v39 = vld [vmem:[%s8337_s23 + $0x1484] ss:$8 sps:$4 sm:$0xff]  }
 0x291   : > { %5933 = vmatpush1.bf16.msra.mxu1 %v8058_v43  ;;  %5893 = vmatprep.subr.bf16.mxu0 %v8063_v63  ;;  %v8136_v43 = vld [vmem:[%s8337_s23 + $0x1584] ss:$8 sps:$4 sm:$0xff]   ;;  %v8131_v63 = vld [vmem:[%s8337_s23 + $0x1480] ss:$8 sps:$4 sm:$0xff]  }
 0x292   : > { %5934 = vmatprep.subr.bf16.mxu1 %v8066_v0  ;;  %v8134_v0 = vld [vmem:[%s8337_s23 + $0x1580] ss:$8 sps:$4 sm:$0xff]  }
 0x294   : > { %5894 = vmatpush1.bf16.msra.mxu0 %v8061_v40  ;;  %v8139_v40 = vld [vmem:[%s8337_s23 + $0x1494] ss:$8 sps:$4 sm:$0xff]  }
 0x295   : > { %5935 = vmatpush1.bf16.msra.mxu1 %v8064_v41  ;;  %5895 = vmatprep.subr.bf16.mxu0 %v8069_v1  ;;  %v8142_v41 = vld [vmem:[%s8337_s23 + $0x1594] ss:$8 sps:$4 sm:$0xff]   ;;  %v8137_v1 = vld [vmem:[%s8337_s23 + $0x1490] ss:$8 sps:$4 sm:$0xff]  }
 0x296   : > { %5936 = vmatprep.subr.bf16.mxu1 %v8072_v2  ;;  %v8140_v2 = vld [vmem:[%s8337_s23 + $0x1590] ss:$8 sps:$4 sm:$0xff]  }
 0x298   : > { %5896 = vmatpush1.bf16.msra.mxu0 %v8067_v5  ;;  %v8145_v5 = vld [vmem:[%s8337_s23 + $0x14a4] ss:$8 sps:$4 sm:$0xff]  }
 0x299   : > { %5937 = vmatpush1.bf16.msra.mxu1 %v8070_v6  ;;  %5897 = vmatprep.subr.bf16.mxu0 %v8075_v47  ;;  %v8148_v6 = vld [vmem:[%s8337_s23 + $0x15a4] ss:$8 sps:$4 sm:$0xff]   ;;  %v8143_v47 = vld [vmem:[%s8337_s23 + $0x14a0] ss:$8 sps:$4 sm:$0xff]  }
 0x29a   : > { %5938 = vmatprep.subr.bf16.mxu1 %v8078_v48  ;;  %v8146_v48 = vld [vmem:[%s8337_s23 + $0x15a0] ss:$8 sps:$4 sm:$0xff]  }
 0x29c   : > { %5898 = vmatpush1.bf16.msra.mxu0 %v8073_v7  ;;  %v8151_v7 = vld [vmem:[%s8337_s23 + $0x14b4] ss:$8 sps:$4 sm:$0xff]  }
 0x29d   : > { %5939 = vmatpush1.bf16.msra.mxu1 %v8076_v8  ;;  %5949 = vmatprep.subr.bf16.mxu0 %v8085_v9  ;;  %v8154_v8 = vld [vmem:[%s8337_s23 + $0x15b4] ss:$8 sps:$4 sm:$0xff]   ;;  %v8149_v9 = vld [vmem:[%s8337_s23 + $0x14b0] ss:$8 sps:$4 sm:$0xff]  }
 0x29e   : > { %5990 = vmatprep.subr.bf16.mxu1 %v8088_v10  ;;  %v8152_v10 = vld [vmem:[%s8337_s23 + $0x15b0] ss:$8 sps:$4 sm:$0xff]  }
 0x29f   : > { %5900 = vmatmul.mubr.bf16.vlgmr.msra.gmra.mrb[36].mxu0 %v6290_v11  ;;  %v8157_v11 = vld [vmem:[%s8337_s23 + $0x14c4] ss:$8 sps:$4 sm:$0xff]  }
 0x2a0   : > { %5941 = vmatmul.mubr.bf16.vlgmr.msra.gmra.mrb[36].mxu1 %v6292_v12  ;;  %5950 = vmatpush1.bf16.msra.mxu0 %v8083_v57  ;;  %v8160_v12 = vld [vmem:[%s8337_s23 + $0x15c4] ss:$8 sps:$4 sm:$0xff]   ;;  %v8155_v57 = vld [vmem:[%s8337_s23 + $0x14c0] ss:$8 sps:$4 sm:$0xff]  }
 0x2a1   : > { %5991 = vmatpush1.bf16.msra.mxu1 %v8086_v61  ;;  %5951 = vmatprep.subr.bf16.mxu0 %v8091_v17  ;;  %v8158_v61 = vld [vmem:[%s8337_s23 + $0x15c0] ss:$8 sps:$4 sm:$0xff]   ;;  %v8163_v17 = vld [vmem:[%s8337_s23 + $0x14d4] ss:$8 sps:$4 sm:$0xff]  }
 0x2a2   : > { %5992 = vmatprep.subr.bf16.mxu1 %v8094_v18  ;;  %5981 = vmatprep.mubr.bf16.mxu0 %v6295_v58  ;;  %v8166_v18 = vld [vmem:[%s8337_s23 + $0x15d4] ss:$8 sps:$4 sm:$0xff]   ;;  %v8161_v58 = vld [vmem:[%s8337_s23 + $0x14d0] ss:$8 sps:$4 sm:$0xff]  }
 0x2a3   : > { %6022 = vmatprep.mubr.bf16.mxu1 %v6297_v60  ;;  %v8164_v60 = vld [vmem:[%s8337_s23 + $0x15d0] ss:$8 sps:$4 sm:$0xff]  }
 0x2a4   : > { %5952 = vmatpush1.bf16.msra.mxu0 %v8089_v22  ;;  %v8169_v22 = vld [vmem:[%s8337_s23 + $0x14e4] ss:$8 sps:$4 sm:$0xff]  }
 0x2a5   : > { %5993 = vmatpush1.bf16.msra.mxu1 %v8092_v23  ;;  %5953 = vmatprep.subr.bf16.mxu0 %v8097_v62  ;;  %v8172_v23 = vld [vmem:[%s8337_s23 + $0x15e4] ss:$8 sps:$4 sm:$0xff]   ;;  %v8167_v62 = vld [vmem:[%s8337_s23 + $0x14e0] ss:$8 sps:$4 sm:$0xff]  }
 0x2a6   : > { %5994 = vmatprep.subr.bf16.mxu1 %v8100_v28  ;;  %v8170_v28 = vld [vmem:[%s8337_s23 + $0x15e0] ss:$8 sps:$4 sm:$0xff]  }
 0x2a8   : > { %5954 = vmatpush1.bf16.msra.mxu0 %v8095_v3  ;;  %v8175_v3 = vld [vmem:[%s8337_s23 + $0x14f4] ss:$8 sps:$4 sm:$0xff]  }
 0x2a9   : > { %5995 = vmatpush1.bf16.msra.mxu1 %v8098_v4  ;;  %5955 = vmatprep.subr.bf16.mxu0 %v8103_v20  ;;  %v8178_v4 = vld [vmem:[%s8337_s23 + $0x15f4] ss:$8 sps:$4 sm:$0xff]   ;;  %v8173_v20 = vld [vmem:[%s8337_s23 + $0x14f0] ss:$8 sps:$4 sm:$0xff]  }
 0x2aa   : > { %5996 = vmatprep.subr.bf16.mxu1 %v8106_v29  ;;  %v8176_v29 = vld [vmem:[%s8337_s23 + $0x15f0] ss:$8 sps:$4 sm:$0xff]  }
 0x2ac   : > { %5956 = vmatpush1.bf16.msra.mxu0 %v8101_v31  ;;  %v8185_v31 = vld [vmem:[%s8337_s23 + $0x1604] ss:$8 sps:$4 sm:$0xff]  }
 0x2ad   : > { %5997 = vmatpush1.bf16.msra.mxu1 %v8104_v32  ;;  %5957 = vmatprep.subr.bf16.mxu0 %v8109_v33  ;;  %v8188_v32 = vld [vmem:[%s8337_s23 + $0x1704] ss:$8 sps:$4 sm:$0xff]   ;;  %v6294_v33 = vcombine.low %v9174_v14, %v9174_v14 }
 0x2ae   : > { %5998 = vmatprep.subr.bf16.mxu1 %v8112_v34  ;;  %v6296_v34 = vcombine.low %v9177_v15, %v9177_v15 }
 0x2b0   : > { %5958 = vmatpush1.bf16.msra.mxu0 %v8107_v26  ;;  %v9258_v26 = vld [vmem:[%s8332_s19 + $0xb0] sm:$0xff] }
 0x2b1   : > { %5999 = vmatpush1.bf16.msra.mxu1 %v8110_v35  ;;  %5959 = vmatprep.subr.bf16.mxu0 %v8115_v13  ;;  %v9261_v35 = vld [vmem:[%s8332_s19 + $0xb8] sm:$0xff]  ;;  %v8183_v13 = vld [vmem:[%s8337_s23 + $0x1600] ss:$8 sps:$4 sm:$0xff]   ;;  %v6299_v14 = vcombine.high %v9258_v26, %v9258_v26 }
 0x2b2   : > { %6000 = vmatprep.subr.bf16.mxu1 %v8118_v16  ;;  %v5655_v27 = vpop.f32.mrb[24].mxu0  ;;  %v8186_v16 = vld [vmem:[%s8337_s23 + $0x1700] ss:$8 sps:$4 sm:$0xff]   ;;  %v6301_v15 = vcombine.high %v9261_v35, %v9261_v35 }
 0x2b3   : > { %v5696_v44 = vpop.f32.mrb[24].mxu1  ;;  %v5656_v59 = vadd.f32 %v5655_v27, %v9127_v25  ;;  %v5657_v24 = vpop.f32.mrb[25].mxu0  ;;  %v8127_v25 = vld [vmem:[%s8337_s23 + $0x1474] ss:$8 sps:$4 sm:$0xff]   ;;  %v8197_v27 = vld [vmem:[%s8337_s23 + $0x1624] ss:$8 sps:$4 sm:$0xff]  }
 0x2b4   : > { %v5698_v45 = vpop.f32.mrb[25].mxu1  ;;  %v5658_v46 = vadd.f32 %v5657_v24, %v9131_v36  ;;  %v5659_v49 = vpop.f32.mrb[26].mxu0  ;;  %5960 = vmatpush1.bf16.msra.mxu0 %v8113_v37  ;;  %v8130_v36 = vld [vmem:[%s8337_s23 + $0x1574] ss:$8 sps:$4 sm:$0xff]   ;;  %v8198_v24 = vld [vmem:[%s8337_s23 + $0x1720] ss:$8 sps:$4 sm:$0xff]  }
 0x2b5   : > { %v5700_v50 = vpop.f32.mrb[26].mxu1  ;;  %6001 = vmatpush1.bf16.msra.mxu1 %v8116_v38  ;;  %v9211_v51 = vadd.f32 %v5696_v44, %v5656_v59  ;;  %v5660_v52 = vpop.f32.mrb[27].mxu0  ;;  %5961 = vmatprep.subr.bf16.mxu0 %v8121_v21  ;;  %v8191_v37 = vld [vmem:[%s8337_s23 + $0x1614] ss:$8 sps:$4 sm:$0xff]   ;;  %v8189_v21 = vld [vmem:[%s8337_s23 + $0x1610] ss:$8 sps:$4 sm:$0xff]  }
 0x2b6   : > { %v5701_v53 = vpop.f32.mrb[27].mxu1  ;;  %6002 = vmatprep.subr.bf16.mxu1 %v8124_v42  ;;  %v9215_v54 = vadd.f32 %v5698_v45, %v5658_v46  ;;  %v8194_v38 = vld [vmem:[%s8337_s23 + $0x1714] ss:$8 sps:$4 sm:$0xff]   ;;  %v8192_v42 = vld [vmem:[%s8337_s23 + $0x1710] ss:$8 sps:$4 sm:$0xff]  }
 0x2b7   : > { %v8200_v44 = vld [vmem:[%s8337_s23 + $0x1724] ss:$8 sps:$4 sm:$0xff]   ;;  %v8195_v59 = vld [vmem:[%s8337_s23 + $0x1620] ss:$8 sps:$4 sm:$0xff]   ;;  %v8203_v45 = vld [vmem:[%s8337_s23 + $0x1634] ss:$8 sps:$4 sm:$0xff]  }
 0x2b8   : > { %5962 = vmatpush1.bf16.msra.mxu0 %v8119_v19  ;;  %v8206_v46 = vld [vmem:[%s8337_s23 + $0x1734] ss:$8 sps:$4 sm:$0xff]   ;;  %v8201_v49 = vld [vmem:[%s8337_s23 + $0x1630] ss:$8 sps:$4 sm:$0xff]   ;;  %v8209_v19 = vld [vmem:[%s8337_s23 + $0x1644] ss:$8 sps:$4 sm:$0xff]  }
 0x2b9   : > { %6003 = vmatpush1.bf16.msra.mxu1 %v8122_v30  ;;  %5963 = vmatprep.subr.bf16.mxu0 %v8127_v25  ;;  %v8204_v50 = vld [vmem:[%s8337_s23 + $0x1730] ss:$8 sps:$4 sm:$0xff]   ;;  %v8212_v30 = vld [vmem:[%s8337_s23 + $0x1744] ss:$8 sps:$4 sm:$0xff]   ;;  %v8207_v52 = vld [vmem:[%s8337_s23 + $0x1640] ss:$8 sps:$4 sm:$0xff]  }
 0x2ba   : > { %6004 = vmatprep.subr.bf16.mxu1 %v8130_v36  ;;  %v8210_v53 = vld [vmem:[%s8337_s23 + $0x1740] ss:$8 sps:$4 sm:$0xff]   ;;  %v8215_v25 = vld [vmem:[%s8337_s23 + $0x1654] ss:$8 sps:$4 sm:$0xff]  }
 0x2bb   : > { %v8218_v36 = vld [vmem:[%s8337_s23 + $0x1754] ss:$8 sps:$4 sm:$0xff]  }
 0x2bc   : > { %5964 = vmatpush1.bf16.msra.mxu0 %v8125_v55  ;;  %v8213_v55 = vld [vmem:[%s8337_s23 + $0x1650] ss:$8 sps:$4 sm:$0xff]  }
 0x2bd   : > { %6005 = vmatpush1.bf16.msra.mxu1 %v8128_v56  ;;  %5965 = vmatprep.subr.bf16.mxu0 %v8133_v39  ;;  %v8216_v56 = vld [vmem:[%s8337_s23 + $0x1750] ss:$8 sps:$4 sm:$0xff]   ;;  %v8221_v39 = vld [vmem:[%s8337_s23 + $0x1664] ss:$8 sps:$4 sm:$0xff]  }
 0x2be   : > { %6006 = vmatprep.subr.bf16.mxu1 %v8136_v43  ;;  %v8224_v43 = vld [vmem:[%s8337_s23 + $0x1764] ss:$8 sps:$4 sm:$0xff]  }
 0x2c0   : > { %5966 = vmatpush1.bf16.msra.mxu0 %v8131_v63 }
 0x2c1   : > { %6007 = vmatpush1.bf16.msra.mxu1 %v8134_v0  ;;  %5967 = vmatprep.subr.bf16.mxu0 %v8139_v40 }
 0x2c2   : > { %6008 = vmatprep.subr.bf16.mxu1 %v8142_v41 }
 0x2c4   : > { %5968 = vmatpush1.bf16.msra.mxu0 %v8137_v1 }
 0x2c5   : > { %6009 = vmatpush1.bf16.msra.mxu1 %v8140_v2  ;;  %5969 = vmatprep.subr.bf16.mxu0 %v8145_v5 }
 0x2c6   : > { %6010 = vmatprep.subr.bf16.mxu1 %v8148_v6 }
 0x2c8   : > { %5970 = vmatpush1.bf16.msra.mxu0 %v8143_v47  ;;  %v8219_v47 = vld [vmem:[%s8337_s23 + $0x1660] ss:$8 sps:$4 sm:$0xff]  }
 0x2c9   : > { %6011 = vmatpush1.bf16.msra.mxu1 %v8146_v48  ;;  %5971 = vmatprep.subr.bf16.mxu0 %v8151_v7  ;;  %v8222_v48 = vld [vmem:[%s8337_s23 + $0x1760] ss:$8 sps:$4 sm:$0xff]  }
 0x2ca   : > { %6012 = vmatprep.subr.bf16.mxu1 %v8154_v8 }
 0x2cc   : > { %5972 = vmatpush1.bf16.msra.mxu0 %v8149_v9 }
 0x2cd   : > { %6013 = vmatpush1.bf16.msra.mxu1 %v8152_v10  ;;  %5973 = vmatprep.subr.bf16.mxu0 %v8157_v11  ;;  %v8225_v11 = vld [vmem:[%s8337_s23 + $0x1670] ss:$8 sps:$4 sm:$0xff]  }
 0x2ce   : > { %6014 = vmatprep.subr.bf16.mxu1 %v8160_v12  ;;  %v8228_v12 = vld [vmem:[%s8337_s23 + $0x1770] ss:$8 sps:$4 sm:$0xff]  }
 0x2d0   : > { %5974 = vmatpush1.bf16.msra.mxu0 %v8155_v57  ;;  %v8233_v57 = vld [vmem:[%s8337_s23 + $0x1684] ss:$8 sps:$4 sm:$0xff]  }
 0x2d1   : > { %6015 = vmatpush1.bf16.msra.mxu1 %v8158_v61  ;;  %5975 = vmatprep.subr.bf16.mxu0 %v8163_v17  ;;  %v8236_v61 = vld [vmem:[%s8337_s23 + $0x1784] ss:$8 sps:$4 sm:$0xff]   ;;  %v8231_v17 = vld [vmem:[%s8337_s23 + $0x1680] ss:$8 sps:$4 sm:$0xff]  }
 0x2d2   : > { %6016 = vmatprep.subr.bf16.mxu1 %v8166_v18  ;;  %v8234_v18 = vld [vmem:[%s8337_s23 + $0x1780] ss:$8 sps:$4 sm:$0xff]  }
 0x2d4   : > { %5976 = vmatpush1.bf16.msra.mxu0 %v8161_v58  ;;  %v8239_v58 = vld [vmem:[%s8337_s23 + $0x1694] ss:$8 sps:$4 sm:$0xff]  }
 0x2d5   : > { %6017 = vmatpush1.bf16.msra.mxu1 %v8164_v60  ;;  %5977 = vmatprep.subr.bf16.mxu0 %v8169_v22  ;;  %v8242_v60 = vld [vmem:[%s8337_s23 + $0x1794] ss:$8 sps:$4 sm:$0xff]   ;;  %v8237_v22 = vld [vmem:[%s8337_s23 + $0x1690] ss:$8 sps:$4 sm:$0xff]  }
 0x2d6   : > { %6018 = vmatprep.subr.bf16.mxu1 %v8172_v23  ;;  %v8240_v23 = vld [vmem:[%s8337_s23 + $0x1790] ss:$8 sps:$4 sm:$0xff]  }
 0x2d8   : > { %5978 = vmatpush1.bf16.msra.mxu0 %v8167_v62  ;;  %v8245_v62 = vld [vmem:[%s8337_s23 + $0x16a4] ss:$8 sps:$4 sm:$0xff]  }
 0x2d9   : > { %6019 = vmatpush1.bf16.msra.mxu1 %v8170_v28  ;;  %5979 = vmatprep.subr.bf16.mxu0 %v8175_v3  ;;  %v8248_v28 = vld [vmem:[%s8337_s23 + $0x17a4] ss:$8 sps:$4 sm:$0xff]   ;;  %v8243_v3 = vld [vmem:[%s8337_s23 + $0x16a0] ss:$8 sps:$4 sm:$0xff]  }
 0x2da   : > { %6020 = vmatprep.subr.bf16.mxu1 %v8178_v4  ;;  %v8246_v4 = vld [vmem:[%s8337_s23 + $0x17a0] ss:$8 sps:$4 sm:$0xff]  }
 0x2dc   : > { %5980 = vmatpush1.bf16.msra.mxu0 %v8173_v20  ;;  %v8251_v20 = vld [vmem:[%s8337_s23 + $0x16b4] ss:$8 sps:$4 sm:$0xff]  }
 0x2dd   : > { %6021 = vmatpush1.bf16.msra.mxu1 %v8176_v29  ;;  %6031 = vmatprep.subr.bf16.mxu0 %v8185_v31  ;;  %v8254_v29 = vld [vmem:[%s8337_s23 + $0x17b4] ss:$8 sps:$4 sm:$0xff]   ;;  %v8249_v31 = vld [vmem:[%s8337_s23 + $0x16b0] ss:$8 sps:$4 sm:$0xff]  }
 0x2de   : > { %6072 = vmatprep.subr.bf16.mxu1 %v8188_v32  ;;  %v8252_v32 = vld [vmem:[%s8337_s23 + $0x17b0] ss:$8 sps:$4 sm:$0xff]  }
 0x2df   : > { %5982 = vmatmul.mubr.bf16.vlgmr.msra.gmra.mrb[40].mxu0 %v6294_v33  ;;  %v8257_v33 = vld [vmem:[%s8337_s23 + $0x16c4] ss:$8 sps:$4 sm:$0xff]  }
 0x2e0   : > { %6023 = vmatmul.mubr.bf16.vlgmr.msra.gmra.mrb[40].mxu1 %v6296_v34  ;;  %6032 = vmatpush1.bf16.msra.mxu0 %v8183_v13  ;;  %v8260_v34 = vld [vmem:[%s8337_s23 + $0x17c4] ss:$8 sps:$4 sm:$0xff]   ;;  %v8255_v13 = vld [vmem:[%s8337_s23 + $0x16c0] ss:$8 sps:$4 sm:$0xff]  }
 0x2e1   : > { %6073 = vmatpush1.bf16.msra.mxu1 %v8186_v16  ;;  %6033 = vmatprep.subr.bf16.mxu0 %v8191_v37  ;;  %v8258_v16 = vld [vmem:[%s8337_s23 + $0x17c0] ss:$8 sps:$4 sm:$0xff]   ;;  %v8263_v37 = vld [vmem:[%s8337_s23 + $0x16d4] ss:$8 sps:$4 sm:$0xff]  }
 0x2e2   : > { %6074 = vmatprep.subr.bf16.mxu1 %v8194_v38  ;;  %6063 = vmatprep.mubr.bf16.mxu0 %v6299_v14  ;;  %v8266_v38 = vld [vmem:[%s8337_s23 + $0x17d4] ss:$8 sps:$4 sm:$0xff]   ;;  %v8261_v14 = vld [vmem:[%s8337_s23 + $0x16d0] ss:$8 sps:$4 sm:$0xff]  }
 0x2e3   : > { %6104 = vmatprep.mubr.bf16.mxu1 %v6301_v15  ;;  %v8264_v15 = vld [vmem:[%s8337_s23 + $0x17d0] ss:$8 sps:$4 sm:$0xff]  }
 0x2e4   : > { %6034 = vmatpush1.bf16.msra.mxu0 %v8189_v21  ;;  %v8269_v21 = vld [vmem:[%s8337_s23 + $0x16e4] ss:$8 sps:$4 sm:$0xff]  }
 0x2e5   : > { %6075 = vmatpush1.bf16.msra.mxu1 %v8192_v42  ;;  %6035 = vmatprep.subr.bf16.mxu0 %v8197_v27  ;;  %v8272_v42 = vld [vmem:[%s8337_s23 + $0x17e4] ss:$8 sps:$4 sm:$0xff]   ;;  %v8267_v27 = vld [vmem:[%s8337_s23 + $0x16e0] ss:$8 sps:$4 sm:$0xff]  }
 0x2e6   : > { %6076 = vmatprep.subr.bf16.mxu1 %v8200_v44  ;;  %v8270_v44 = vld [vmem:[%s8337_s23 + $0x17e0] ss:$8 sps:$4 sm:$0xff]  }
 0x2e8   : > { %6036 = vmatpush1.bf16.msra.mxu0 %v8195_v59  ;;  %v8275_v59 = vld [vmem:[%s8337_s23 + $0x16f4] ss:$8 sps:$4 sm:$0xff]  }
 0x2e9   : > { %6077 = vmatpush1.bf16.msra.mxu1 %v8198_v24  ;;  %6037 = vmatprep.subr.bf16.mxu0 %v8203_v45  ;;  %v8278_v24 = vld [vmem:[%s8337_s23 + $0x17f4] ss:$8 sps:$4 sm:$0xff]   ;;  %v8273_v45 = vld [vmem:[%s8337_s23 + $0x16f0] ss:$8 sps:$4 sm:$0xff]  }
 0x2ea   : > { %6078 = vmatprep.subr.bf16.mxu1 %v8206_v46  ;;  %v8276_v46 = vld [vmem:[%s8337_s23 + $0x17f0] ss:$8 sps:$4 sm:$0xff]  }
 0x2ec   : > { %6038 = vmatpush1.bf16.msra.mxu0 %v8201_v49  ;;  %v6298_v49 = vcombine.low %v9258_v26, %v9258_v26 }
 0x2ed   : > { %6079 = vmatpush1.bf16.msra.mxu1 %v8204_v50  ;;  %6039 = vmatprep.subr.bf16.mxu0 %v8209_v19  ;;  %v6300_v50 = vcombine.low %v9261_v35, %v9261_v35 }
 0x2ee   : > { %6080 = vmatprep.subr.bf16.mxu1 %v8212_v30 }
 0x2f0   : > { %6040 = vmatpush1.bf16.msra.mxu0 %v8207_v52 }
 0x2f1   : > { %6081 = vmatpush1.bf16.msra.mxu1 %v8210_v53  ;;  %6041 = vmatprep.subr.bf16.mxu0 %v8215_v25 }
 0x2f2   : > { %6082 = vmatprep.subr.bf16.mxu1 %v8218_v36  ;;  %v5737_v63 = vpop.f32.mrb[28].mxu0 }
 0x2f3   : > { %v5778_v0 = vpop.f32.mrb[28].mxu1  ;;  %v5738_v40 = vadd.f32 %v5737_v63, %v9211_v51  ;;  %v5739_v41 = vpop.f32.mrb[29].mxu0  ;;  %v8227_v51 = vld [vmem:[%s8337_s23 + $0x1674] ss:$8 sps:$4 sm:$0xff]  }
 0x2f4   : > { %v5780_v1 = vpop.f32.mrb[29].mxu1  ;;  %v5740_v2 = vadd.f32 %v5739_v41, %v9215_v54  ;;  %v5741_v5 = vpop.f32.mrb[30].mxu0  ;;  %6042 = vmatpush1.bf16.msra.mxu0 %v8213_v55  ;;  %v8230_v54 = vld [vmem:[%s8337_s23 + $0x1774] ss:$8 sps:$4 sm:$0xff]  }
 0x2f5   : > { %v5782_v6 = vpop.f32.mrb[30].mxu1  ;;  %6083 = vmatpush1.bf16.msra.mxu1 %v8216_v56  ;;  %v9295_v7 = vadd.f32 %v5778_v0, %v5738_v40  ;;  %v5742_v8 = vpop.f32.mrb[31].mxu0  ;;  %6043 = vmatprep.subr.bf16.mxu0 %v8221_v39 }
 0x2f6   : > { %v5783_v9 = vpop.f32.mrb[31].mxu1  ;;  %6084 = vmatprep.subr.bf16.mxu1 %v8224_v43  ;;  %v9299_v10 = vadd.f32 %v5780_v1, %v5740_v2 }
 0x2f8   : > { %6044 = vmatpush1.bf16.msra.mxu0 %v8219_v47 }
 0x2f9   : > { %6085 = vmatpush1.bf16.msra.mxu1 %v8222_v48  ;;  %6045 = vmatprep.subr.bf16.mxu0 %v8227_v51 }
 0x2fa   : > { %6086 = vmatprep.subr.bf16.mxu1 %v8230_v54 }
 0x2fc   : > { %6046 = vmatpush1.bf16.msra.mxu0 %v8225_v11 }
 0x2fd   : > { %6087 = vmatpush1.bf16.msra.mxu1 %v8228_v12  ;;  %6047 = vmatprep.subr.bf16.mxu0 %v8233_v57 }
 0x2fe   : > { %6088 = vmatprep.subr.bf16.mxu1 %v8236_v61 }
 0x300   : > { %6048 = vmatpush1.bf16.msra.mxu0 %v8231_v17 }
 0x301   : > { %6089 = vmatpush1.bf16.msra.mxu1 %v8234_v18  ;;  %6049 = vmatprep.subr.bf16.mxu0 %v8239_v58 }
 0x302   : > { %6090 = vmatprep.subr.bf16.mxu1 %v8242_v60 }
 0x304   : > { %6050 = vmatpush1.bf16.msra.mxu0 %v8237_v22 }
 0x305   : > { %6091 = vmatpush1.bf16.msra.mxu1 %v8240_v23  ;;  %6051 = vmatprep.subr.bf16.mxu0 %v8245_v62 }
 0x306   : > { %6092 = vmatprep.subr.bf16.mxu1 %v8248_v28 }
 0x308   : > { %6052 = vmatpush1.bf16.msra.mxu0 %v8243_v3 }
 0x309   : > { %6093 = vmatpush1.bf16.msra.mxu1 %v8246_v4  ;;  %6053 = vmatprep.subr.bf16.mxu0 %v8251_v20  ;;  %v327_v4 = vld [vmem:[#allocation2] sm:$0xff] }
 0x30a   : > { %6094 = vmatprep.subr.bf16.mxu1 %v8254_v29 }
 0x30c   : > { %6054 = vmatpush1.bf16.msra.mxu0 %v8249_v31 }
 0x30d   : > { %6095 = vmatpush1.bf16.msra.mxu1 %v8252_v32  ;;  %6055 = vmatprep.subr.bf16.mxu0 %v8257_v33  ;;  %v328_v33 = vld [vmem:[#allocation2 + $0x8] sm:$0xff] }
 0x30e   : > { %6096 = vmatprep.subr.bf16.mxu1 %v8260_v34 }
 0x310   : > { %6056 = vmatpush1.bf16.msra.mxu0 %v8255_v13 }
 0x311   : > { %6097 = vmatpush1.bf16.msra.mxu1 %v8258_v16  ;;  %6057 = vmatprep.subr.bf16.mxu0 %v8263_v37 }
 0x312   : > { %6098 = vmatprep.subr.bf16.mxu1 %v8266_v38 }
 0x314   : > { %6058 = vmatpush1.bf16.msra.mxu0 %v8261_v14  ;;  %v6124_v14 = vlaneseq (%p8365_p3) }
 0x315   : > { %6099 = vmatpush1.bf16.msra.mxu1 %v8264_v15  ;;  %6059 = vmatprep.subr.bf16.mxu0 %v8269_v21  ;;  %v6122_v21 = vld [vmem:[%s8358_s7] sm:$0x3] (%p8365_p3) }
 0x316   : > { %6100 = vmatprep.subr.bf16.mxu1 %v8272_v42  ;;  %v6125_v15 = vshrl.u32 (%p8365_p3), %v6124_v14, 7 }
 0x318   : > { %6060 = vmatpush1.bf16.msra.mxu0 %v8267_v27  ;;  %v6126_v42 = vsub.s32 (%p8365_p3), 0, %v6125_v15  ;;  %v6130_v27 = vsub.s32 (%p8365_p3), 1, %v6125_v15 }
 0x319   : > { %6101 = vmatpush1.bf16.msra.mxu1 %v8270_v44  ;;  %6061 = vmatprep.subr.bf16.mxu0 %v8275_v59 }
 0x31a   : > { %6102 = vmatprep.subr.bf16.mxu1 %v8278_v24  ;;  %v6127_v24 = vrot.slane (%p8365_p3), %v6122_v21, %v6126_v42 }
 0x31c   : > { %6062 = vmatpush1.bf16.msra.mxu0 %v8273_v45  ;;  %v6131_v45 = vrot.slane (%p8365_p3), %v6122_v21, %v6130_v27 }
 0x31d   : > { %6103 = vmatpush1.bf16.msra.mxu1 %v8276_v46 }
 0x31f   : > { %6064 = vmatmul.mubr.bf16.vlgmr.msra.gmra.mrb[44].mxu0 %v6298_v49 }
 0x320   : > { %6105 = vmatmul.mubr.bf16.vlgmr.msra.gmra.mrb[44].mxu1 %v6300_v50 }
 0x332   : > { %v5819_v19 = vpop.f32.mrb[32].mxu0 }
 0x333   : > { %v5860_v30 = vpop.f32.mrb[32].mxu1  ;;  %v5820_v52 = vadd.f32 %v5819_v19, %v9295_v7  ;;  %v5821_v53 = vpop.f32.mrb[33].mxu0 }
 0x334   : > { %v5862_v25 = vpop.f32.mrb[33].mxu1  ;;  %v5822_v36 = vadd.f32 %v5821_v53, %v9299_v10  ;;  %v5823_v55 = vpop.f32.mrb[34].mxu0 }
 0x335   : > { %v5864_v56 = vpop.f32.mrb[34].mxu1  ;;  %v5861_v39 = vadd.f32 %v5860_v30, %v5820_v52  ;;  %v5824_v43 = vpop.f32.mrb[35].mxu0 }
 0x336   : > { %v5865_v26 = vpop.f32.mrb[35].mxu1  ;;  %v5863_v63 = vadd.f32 %v5862_v25, %v5822_v36 }
 0x372   : > { %v5901_v0 = vpop.f32.mrb[36].mxu0 }
 0x373   : > { %v5942_v35 = vpop.f32.mrb[36].mxu1  ;;  %v5902_v40 = vadd.f32 %v5901_v0, %v5861_v39  ;;  %v5903_v41 = vpop.f32.mrb[37].mxu0 }
 0x374   : > { %v5944_v1 = vpop.f32.mrb[37].mxu1  ;;  %v5904_v2 = vadd.f32 %v5903_v41, %v5863_v63  ;;  %v5905_v5 = vpop.f32.mrb[38].mxu0 }
 0x375   : > { %v5946_v6 = vpop.f32.mrb[38].mxu1  ;;  %v5943_v47 = vadd.f32 %v5942_v35, %v5902_v40  ;;  %v5906_v48 = vpop.f32.mrb[39].mxu0 }
 0x376   : > { %v5947_v7 = vpop.f32.mrb[39].mxu1  ;;  %v5945_v8 = vadd.f32 %v5944_v1, %v5904_v2 }
 0x3b2   : > { %v5983_v9 = vpop.f32.mrb[40].mxu0 }
 0x3b3   : > { %v6024_v51 = vpop.f32.mrb[40].mxu1  ;;  %v5984_v54 = vadd.f32 %v5983_v9, %v5943_v47  ;;  %v5985_v10 = vpop.f32.mrb[41].mxu0 }
 0x3b4   : > { %v6026_v11 = vpop.f32.mrb[41].mxu1  ;;  %v5986_v12 = vadd.f32 %v5985_v10, %v5945_v8  ;;  %v5987_v57 = vpop.f32.mrb[42].mxu0 }
 0x3b5   : > { %v6028_v61 = vpop.f32.mrb[42].mxu1  ;;  %v6025_v17 = vadd.f32 %v6024_v51, %v5984_v54  ;;  %v5988_v18 = vpop.f32.mrb[43].mxu0 }
 0x3b6   : > { %v6029_v58 = vpop.f32.mrb[43].mxu1  ;;  %v6027_v60 = vadd.f32 %v6026_v11, %v5986_v12 }
 0x3f2   : > { %v6065_v22 = vpop.f32.mrb[44].mxu0 }
 0x3f3   : > { %v6106_v23 = vpop.f32.mrb[44].mxu1  ;;  %v6066_v62 = vadd.f32 %v6065_v22, %v6025_v17  ;;  %v6067_v28 = vpop.f32.mrb[45].mxu0 }
 0x3f4   : > { %v6108_v3 = vpop.f32.mrb[45].mxu1  ;;  %v6068_v20 = vadd.f32 %v6067_v28, %v6027_v60  ;;  %v6069_v29 = vpop.f32.mrb[46].mxu0  ;;  %6119 = sbr.rel (!%p8365_p3) target bundleno = 1031 (0x407), region = 40 }
 0x3f5   : > { %v6110_v31 = vpop.f32.mrb[46].mxu1  ;;  %v6107_v32 = vadd.f32 %v6106_v23, %v6066_v62  ;;  %v6070_v34 = vpop.f32.mrb[47].mxu0 }
 0x3f6   : > { %v6111_v13 = vpop.f32.mrb[47].mxu1  ;;  %v6109_v16 = vadd.f32 %v6108_v3, %v6068_v20 }
 0x3f7   : > { %v6113_v37 = vadd.f32 %v6107_v32, %v327_v4 }
 0x3f8   : > { %v6114_v38 = vadd.f32 %v6109_v16, %v328_v33 }
 0x3f9   : > { %6115 = vst [vmem:[#allocation2] sm:$0xff] %v6113_v37 }
 0x3fa   : > { %6116 = vst [vmem:[#allocation2 + $0x8] sm:$0xff] %v6114_v38 }
 0x400   : > { %v6120_v44 = vld [vmem:[#allocation2] sm:$0xff] }
 0x401   : > { %v6121_v59 = vld [vmem:[#allocation2 + $0x8] sm:$0xff]  ;;  %v6134_v46 = vadd.f32 %v6127_v24, %v6120_v44 }
 0x402   : > { %v6135_v49 = vadd.f32 %v6131_v45, %v6121_v59 }
 0x403   : > { %v6136_v50 = vmax.f32 %v6134_v46, 0.0 }
 0x404   : > { %v6137_v19 = vmax.f32 %v6135_v49, 0.0 }
 0x405   : > { %6138 = vst [vmem:[%s8363_s10] sm:$0xff] %v6136_v50 }
 0x406   : > { %6139 = vst [vmem:[%s8363_s10 + $0x8] sm:$0xff] %v6137_v19 }
 0x407 PF: > { %s13_s12 = sadd.s32 1, %s8289_s12  }
 0x408   : > { %p10_p4 = scmp.ge.s32.totalorder %s13_s12, 10  }
 0x40a   :  { %12 = sbr.rel (!%p10_p4) target bundleno = 1 (0x1), region = 76 }

// kernel: mscnn4_forward.19
= control target key start
LH: loop header
LB: loop body
LE: loop exit
PB: predicated region body
PF: predicated region fallthrough
CT: control target
= control target key end

     0   :  { %v206_v0 = vmov 0   ;;  %vm125_vm0 = vcmask 523264   ;;  %s272_s1 = inlined_call_operand.vmem [shape: bf16[192,128], index: 1, kind: input, shape index: {}]   ;;  %s273_s0 = inlined_call_operand.vmem [shape: bf16[8,192], index: 0, kind: input, shape index: {}]   ;;  %s274_s2 = inlined_call_operand.vmem [shape: f32[1,128], index: 2, kind: input, shape index: {}]   ;;  %s275_s3 = inlined_call_operand.vmem [shape: f32[8,128], index: 3, kind: output, shape index: {}]  }
   0x1   :  { %129 = vmatprep.subr.bf16.mxu0 %v206_v0  ;;  %v192_v1 = vld [vmem:[%s272_s1] sm:$0xff]   ;;  %v193_v2 = vld [vmem:[%s272_s1 + $0x8] sm:$0xff]   ;;  %v194_v3 = vld [vmem:[%s272_s1 + $0x10] sm:$0xff]  }
   0x2   :  { %130 = vmatpush1.bf16.msra.mxu0 %v192_v1  ;;  %v195_v4 = vld [vmem:[%s272_s1 + $0x18] sm:$0xff]   ;;  %v15_v5 = vld [vmem:[%s273_s0] sm:$0xff]  ;;  %v197_v8 = vld [vmem:[%s272_s1 + $0x28] sm:$0xff]  }
   0x3   :  { %131 = vmatprep.subr.bf16.mxu0 %v206_v0  ;;  %v177_v6 = vcombine.high %v15_v5, %v15_v5  ;;  %v196_v7 = vld [vmem:[%s272_s1 + $0x20] sm:$0xff]   ;;  %v198_v9 = vld [vmem:[%s272_s1 + $0x30] sm:$0xff]   ;;  %v199_v10 = vld [vmem:[%s272_s1 + $0x38] sm:$0xff]   ;;  %v176_v15 = vcombine.low %v15_v5, %v15_v5 }
   0x4   :  { %v200_v11 = vld [vmem:[%s272_s1 + $0x40] sm:$0xff]   ;;  %v201_v12 = vld [vmem:[%s272_s1 + $0x48] sm:$0xff]   ;;  %v202_v13 = vld [vmem:[%s272_s1 + $0x50] sm:$0xff]  }
   0x5   :  { %190 = vmatprep.mubr.msk.bf16.mxu0 %vm125_vm0, %v177_v6  ;;  %v203_v14 = vld [vmem:[%s272_s1 + $0x58] sm:$0xff]   ;;  %v175_v16 = vld [vmem:[%s274_s2] ss:$0 sm:$0xff] }
   0x6   :  { %132 = vmatpush1.bf16.msra.mxu0 %v193_v2 }
   0x7   :  { %133 = vmatprep.subr.bf16.mxu0 %v206_v0 }
   0xa   :  { %134 = vmatpush1.bf16.msra.mxu0 %v194_v3 }
   0xb   :  { %135 = vmatprep.subr.bf16.mxu0 %v206_v0 }
   0xe   :  { %136 = vmatpush1.bf16.msra.mxu0 %v195_v4 }
   0xf   :  { %137 = vmatprep.subr.bf16.mxu0 %v206_v0 }
  0x12   :  { %138 = vmatpush1.bf16.msra.mxu0 %v196_v7 }
  0x13   :  { %139 = vmatprep.subr.bf16.mxu0 %v206_v0 }
  0x16   :  { %140 = vmatpush1.bf16.msra.mxu0 %v197_v8 }
  0x17   :  { %141 = vmatprep.subr.bf16.mxu0 %v206_v0 }
  0x1a   :  { %142 = vmatpush1.bf16.msra.mxu0 %v198_v9 }
  0x1b   :  { %143 = vmatprep.subr.bf16.mxu0 %v206_v0 }
  0x1e   :  { %144 = vmatpush1.bf16.msra.mxu0 %v199_v10 }
  0x1f   :  { %145 = vmatprep.subr.bf16.mxu0 %v206_v0 }
  0x22   :  { %146 = vmatpush1.bf16.msra.mxu0 %v200_v11 }
  0x23   :  { %147 = vmatprep.subr.bf16.mxu0 %v206_v0 }
  0x26   :  { %148 = vmatpush1.bf16.msra.mxu0 %v201_v12 }
  0x27   :  { %149 = vmatprep.subr.bf16.mxu0 %v206_v0 }
  0x2a   :  { %150 = vmatpush1.bf16.msra.mxu0 %v202_v13 }
  0x2b   :  { %151 = vmatprep.subr.bf16.mxu0 %v206_v0 }
  0x2e   :  { %152 = vmatpush1.bf16.msra.mxu0 %v203_v14 }
  0x31   :  { %162 = vmatmul.mubr.bf16.vlgmr.msra.gmra.mrb[0].mxu0 %v176_v15 }
 0x104   :  { %v163_v17 = vpop.f32.mrb[0].mxu0 }
 0x105   :  { %v164_v18 = vadd.f32 %v175_v16, %v163_v17  ;;  %v165_v19 = vpop.f32.mrb[1].mxu0 }
 0x106   :  { %v166_v20 = vpop.f32.mrb[2].mxu0 }
 0x107   :  { %v169_v21 = vmax.f32 %v164_v18, 0.0  ;;  %v167_v22 = vpop.f32.mrb[3].mxu0 }
 0x109   :  { %170 = vst [vmem:[%s275_s3] sm:$0xff] %v169_v21 }

// kernel: mscnn4_forward.20
= control target key start
LH: loop header
LB: loop body
LE: loop exit
PB: predicated region body
PF: predicated region fallthrough
CT: control target
= control target key end

     0   :  { %v49_v35 = vlaneseq  ;;  %s487_s1 = inlined_call_operand.vmem [shape: bf16[256,256], index: 1, kind: input, shape index: {}]   ;;  %s488_s0 = inlined_call_operand.vmem [shape: bf16[8,256], index: 0, kind: input, shape index: {}]   ;;  %s489_s2 = inlined_call_operand.vmem [shape: f32[1,256], index: 2, kind: input, shape index: {}]   ;;  %s490_s3 = inlined_call_operand.vmem [shape: f32[8,256], index: 3, kind: output, shape index: {}]  }
   0x1   :  { %v309_v0 = vld [vmem:[%s487_s1 + $0x4] ss:$8 sps:$4 sm:$0xff]   ;;  %v311_v1 = vld [vmem:[%s487_s1] ss:$8 sps:$4 sm:$0xff]   ;;  %v312_v2 = vld [vmem:[%s487_s1 + $0x14] ss:$8 sps:$4 sm:$0xff]  }
   0x2   :  { %226 = vmatprep.subr.bf16.mxu0 %v309_v0  ;;  %v314_v3 = vld [vmem:[%s487_s1 + $0x10] ss:$8 sps:$4 sm:$0xff]   ;;  %v315_v4 = vld [vmem:[%s487_s1 + $0x24] ss:$8 sps:$4 sm:$0xff]   ;;  %v317_v5 = vld [vmem:[%s487_s1 + $0x20] ss:$8 sps:$4 sm:$0xff]  }
   0x3   :  { %227 = vmatpush1.bf16.msra.mxu0 %v311_v1  ;;  %v318_v6 = vld [vmem:[%s487_s1 + $0x34] ss:$8 sps:$4 sm:$0xff]   ;;  %v320_v7 = vld [vmem:[%s487_s1 + $0x30] ss:$8 sps:$4 sm:$0xff]   ;;  %v321_v8 = vld [vmem:[%s487_s1 + $0x44] ss:$8 sps:$4 sm:$0xff]  }
   0x4   :  { %228 = vmatprep.subr.bf16.mxu0 %v312_v2  ;;  %v323_v9 = vld [vmem:[%s487_s1 + $0x40] ss:$8 sps:$4 sm:$0xff]   ;;  %v324_v10 = vld [vmem:[%s487_s1 + $0x54] ss:$8 sps:$4 sm:$0xff]   ;;  %v326_v11 = vld [vmem:[%s487_s1 + $0x50] ss:$8 sps:$4 sm:$0xff]  }
   0x5   :  { %v327_v12 = vld [vmem:[%s487_s1 + $0x64] ss:$8 sps:$4 sm:$0xff]   ;;  %v329_v15 = vld [vmem:[%s487_s1 + $0x60] ss:$8 sps:$4 sm:$0xff]   ;;  %v330_v16 = vld [vmem:[%s487_s1 + $0x74] ss:$8 sps:$4 sm:$0xff]  }
   0x6   :  { %v14_v13 = vld [vmem:[%s488_s0] sm:$0xff]  ;;  %v332_v17 = vld [vmem:[%s487_s1 + $0x70] ss:$8 sps:$4 sm:$0xff]   ;;  %v336_v20 = vld [vmem:[%s487_s1 + $0x94] ss:$8 sps:$4 sm:$0xff]   ;;  %v50_v36 = vshrl.u32 %v49_v35, 7 }
   0x7   :  { %229 = vmatpush1.bf16.msra.mxu0 %v314_v3  ;;  %v276_v14 = vcombine.high %v14_v13, %v14_v13  ;;  %v333_v18 = vld [vmem:[%s487_s1 + $0x84] ss:$8 sps:$4 sm:$0xff]   ;;  %v335_v19 = vld [vmem:[%s487_s1 + $0x80] ss:$8 sps:$4 sm:$0xff]   ;;  %v338_v21 = vld [vmem:[%s487_s1 + $0x90] ss:$8 sps:$4 sm:$0xff]   ;;  %v275_v34 = vcombine.low %v14_v13, %v14_v13 }
   0x8   :  { %230 = vmatprep.subr.bf16.mxu0 %v315_v4  ;;  %v339_v22 = vld [vmem:[%s487_s1 + $0xa4] ss:$8 sps:$4 sm:$0xff]   ;;  %v341_v23 = vld [vmem:[%s487_s1 + $0xa0] ss:$8 sps:$4 sm:$0xff]   ;;  %v342_v24 = vld [vmem:[%s487_s1 + $0xb4] ss:$8 sps:$4 sm:$0xff]  }
   0x9   :  { %258 = vmatprep.mubr.bf16.mxu0 %v276_v14  ;;  %v344_v25 = vld [vmem:[%s487_s1 + $0xb0] ss:$8 sps:$4 sm:$0xff]   ;;  %v345_v26 = vld [vmem:[%s487_s1 + $0xc4] ss:$8 sps:$4 sm:$0xff]   ;;  %v347_v27 = vld [vmem:[%s487_s1 + $0xc0] ss:$8 sps:$4 sm:$0xff]  }
   0xa   :  { %v348_v28 = vld [vmem:[%s487_s1 + $0xd4] ss:$8 sps:$4 sm:$0xff]   ;;  %v350_v29 = vld [vmem:[%s487_s1 + $0xd0] ss:$8 sps:$4 sm:$0xff]   ;;  %v351_v30 = vld [vmem:[%s487_s1 + $0xe4] ss:$8 sps:$4 sm:$0xff]  }
   0xb   :  { %231 = vmatpush1.bf16.msra.mxu0 %v317_v5  ;;  %v353_v31 = vld [vmem:[%s487_s1 + $0xe0] ss:$8 sps:$4 sm:$0xff]   ;;  %v354_v32 = vld [vmem:[%s487_s1 + $0xf4] ss:$8 sps:$4 sm:$0xff]   ;;  %v356_v33 = vld [vmem:[%s487_s1 + $0xf0] ss:$8 sps:$4 sm:$0xff]  }
   0xc   :  { %232 = vmatprep.subr.bf16.mxu0 %v318_v6  ;;  %v51_v37 = vsub.s32 0, %v50_v36  ;;  %v47_v38 = vld [vmem:[%s489_s2] sm:$0x3]  ;;  %v55_v39 = vsub.s32 1, %v50_v36 }
   0xe   :  { %v52_v40 = vrot.slane %v47_v38, %v51_v37  ;;  %v56_v41 = vrot.slane %v47_v38, %v55_v39 }
   0xf   :  { %233 = vmatpush1.bf16.msra.mxu0 %v320_v7 }
  0x10   :  { %234 = vmatprep.subr.bf16.mxu0 %v321_v8 }
  0x13   :  { %235 = vmatpush1.bf16.msra.mxu0 %v323_v9 }
  0x14   :  { %236 = vmatprep.subr.bf16.mxu0 %v324_v10 }
  0x17   :  { %237 = vmatpush1.bf16.msra.mxu0 %v326_v11 }
  0x18   :  { %238 = vmatprep.subr.bf16.mxu0 %v327_v12 }
  0x1b   :  { %239 = vmatpush1.bf16.msra.mxu0 %v329_v15 }
  0x1c   :  { %240 = vmatprep.subr.bf16.mxu0 %v330_v16 }
  0x1f   :  { %241 = vmatpush1.bf16.msra.mxu0 %v332_v17 }
  0x20   :  { %242 = vmatprep.subr.bf16.mxu0 %v333_v18 }
  0x23   :  { %243 = vmatpush1.bf16.msra.mxu0 %v335_v19 }
  0x24   :  { %244 = vmatprep.subr.bf16.mxu0 %v336_v20 }
  0x27   :  { %245 = vmatpush1.bf16.msra.mxu0 %v338_v21 }
  0x28   :  { %246 = vmatprep.subr.bf16.mxu0 %v339_v22 }
  0x2b   :  { %247 = vmatpush1.bf16.msra.mxu0 %v341_v23 }
  0x2c   :  { %248 = vmatprep.subr.bf16.mxu0 %v342_v24 }
  0x2f   :  { %249 = vmatpush1.bf16.msra.mxu0 %v344_v25 }
  0x30   :  { %250 = vmatprep.subr.bf16.mxu0 %v345_v26 }
  0x33   :  { %251 = vmatpush1.bf16.msra.mxu0 %v347_v27 }
  0x34   :  { %252 = vmatprep.subr.bf16.mxu0 %v348_v28 }
  0x37   :  { %253 = vmatpush1.bf16.msra.mxu0 %v350_v29 }
  0x38   :  { %254 = vmatprep.subr.bf16.mxu0 %v351_v30 }
  0x3b   :  { %255 = vmatpush1.bf16.msra.mxu0 %v353_v31 }
  0x3c   :  { %256 = vmatprep.subr.bf16.mxu0 %v354_v32 }
  0x3f   :  { %257 = vmatpush1.bf16.msra.mxu0 %v356_v33 }
  0x42   :  { %259 = vmatmul.mubr.bf16.vlgmr.msra.gmra.mrb[0].mxu0 %v275_v34 }
 0x115   :  { %v260_v42 = vpop.f32.mrb[0].mxu0 }
 0x116   :  { %v261_v43 = vadd.f32 %v260_v42, %v52_v40  ;;  %v262_v44 = vpop.f32.mrb[1].mxu0 }
 0x117   :  { %v263_v45 = vadd.f32 %v262_v44, %v56_v41  ;;  %v264_v46 = vpop.f32.mrb[2].mxu0 }
 0x118   :  { %v267_v47 = vmax.f32 %v261_v43, 0.0  ;;  %v265_v48 = vpop.f32.mrb[3].mxu0 }
 0x119   :  { %v268_v49 = vmax.f32 %v263_v45, 0.0 }
 0x11a   :  { %269 = vst [vmem:[%s490_s3] sm:$0xff] %v267_v47 }
 0x11b   :  { %270 = vst [vmem:[%s490_s3 + $0x8] sm:$0xff] %v268_v49 }

// kernel: mscnn4_forward.21
= control target key start
LH: loop header
LB: loop body
LE: loop exit
PB: predicated region body
PF: predicated region fallthrough
CT: control target
= control target key end

     0   :  { %v1250_v43 = vmov 1983009808   ;;  %v31_v45 = vlaneseq  ;;  %vm131_vm0 = vcmask 1041408   ;;  %vm480_vm1 = vcmask 1041409   ;;  %s2002_s0 = inlined_call_operand.vmem [shape: f32[2,2,1280], index: 0, kind: input, shape index: {}]   ;;  %s2003_s1 = inlined_call_operand.vmem [shape: f32[1280,15], index: 1, kind: input, shape index: {}]   ;;  %s2004_s2 = inlined_call_operand.vmem [shape: f32[1,15], index: 2, kind: input, shape index: {}]   ;;  %s2005_s3 = inlined_call_operand.hbm [shape: f32[2,15], index: 3, kind: output, shape index: {}]  }
   0x1   :  { %v309_v0 = vld [vmem:[%s2003_s1 + $0x80] sm:$0xff]  ;;  %v310_v1 = vld [vmem:[%s2003_s1 + $0x88] sm:$0xff]  ;;  %v311_v11 = vld [vmem:[%s2003_s1 + $0x90] sm:$0xff]  ;;  %v29_v44 = vunpack.c.l.s4 %v1250_v43 }
   0x2   :  { %v293_v2 = vld [vmem:[%s2003_s1] sm:$0xff]  ;;  %v1056_v3 = vpack.c.bf16 %v310_v1, %v309_v0  ;;  %v294_v4 = vld [vmem:[%s2003_s1 + $0x8] sm:$0xff]  ;;  %v312_v13 = vld [vmem:[%s2003_s1 + $0x98] sm:$0xff]  ;;  %v32_v63 = vshrl.u32 %v31_v45, 7 }
   0x3   :  { %v341_v5 = vld [vmem:[%s2003_s1 + $0x180] sm:$0xff]  ;;  %v342_v6 = vld [vmem:[%s2003_s1 + $0x188] sm:$0xff]  ;;  %v1058_v7 = vpack.c.bf16 %v294_v4, %v293_v2  ;;  %v295_v14 = vld [vmem:[%s2003_s1 + $0x10] sm:$0xff]  ;;  %v1060_v16 = vpack.c.bf16 %v312_v13, %v311_v11  ;;  %v30_v62 = vunpack.c.0.s8 %v29_v44 }
   0x4   :  { %v1088_v8 = vpack.c.bf16 %v342_v6, %v341_v5  ;;  %v325_v9 = vld [vmem:[%s2003_s1 + $0x100] sm:$0xff]  ;;  %v326_v10 = vld [vmem:[%s2003_s1 + $0x108] sm:$0xff]  ;;  %1057 = vmatprep.subr.bf16.mxu0 %v1056_v3  ;;  %v296_v15 = vld [vmem:[%s2003_s1 + $0x18] sm:$0xff] }
   0x5   :  { %v1090_v12 = vpack.c.bf16 %v326_v10, %v325_v9  ;;  %1059 = vmatpush3.bf16.msra.mxu0 %v1058_v7  ;;  %v1062_v17 = vpack.c.bf16 %v296_v15, %v295_v14  ;;  %v343_v18 = vld [vmem:[%s2003_s1 + $0x190] sm:$0xff]  ;;  %v344_v19 = vld [vmem:[%s2003_s1 + $0x198] sm:$0xff]  ;;  %v313_v23 = vld [vmem:[%s2003_s1 + $0xa0] sm:$0xff] }
   0x6   :  { %1089 = vmatprep.subr.bf16.mxu1 %v1088_v8  ;;  %v327_v20 = vld [vmem:[%s2003_s1 + $0x110] sm:$0xff]  ;;  %v1092_v21 = vpack.c.bf16 %v344_v19, %v343_v18  ;;  %v328_v22 = vld [vmem:[%s2003_s1 + $0x118] sm:$0xff]  ;;  %v314_v24 = vld [vmem:[%s2003_s1 + $0xa8] sm:$0xff]  ;;  %1061 = vmatprep.subr.bf16.mxu0 %v1060_v16  ;;  %v1436_v16 = vsub.s32 %v30_v62, %v32_v63 }
   0x7   :  { %1091 = vmatpush3.bf16.msra.mxu1 %v1090_v12  ;;  %v1094_v25 = vpack.c.bf16 %v328_v22, %v327_v20  ;;  %v1064_v26 = vpack.c.bf16 %v314_v24, %v313_v23  ;;  %v297_v27 = vld [vmem:[%s2003_s1 + $0x20] sm:$0xff]  ;;  %v298_v28 = vld [vmem:[%s2003_s1 + $0x28] sm:$0xff]  ;;  %v315_v35 = vld [vmem:[%s2003_s1 + $0xb0] sm:$0xff] }
   0x8   :  { %v345_v29 = vld [vmem:[%s2003_s1 + $0x1a0] sm:$0xff]  ;;  %1093 = vmatprep.subr.bf16.mxu1 %v1092_v21  ;;  %v346_v30 = vld [vmem:[%s2003_s1 + $0x1a8] sm:$0xff]  ;;  %v1066_v33 = vpack.c.bf16 %v298_v28, %v297_v27  ;;  %v316_v36 = vld [vmem:[%s2003_s1 + $0xb8] sm:$0xff] }
   0x9   :  { %v329_v31 = vld [vmem:[%s2003_s1 + $0x120] sm:$0xff]  ;;  %v330_v32 = vld [vmem:[%s2003_s1 + $0x128] sm:$0xff]  ;;  %1063 = vmatpush3.bf16.msra.mxu0 %v1062_v17  ;;  %v1096_v34 = vpack.c.bf16 %v346_v30, %v345_v29  ;;  %v299_v37 = vld [vmem:[%s2003_s1 + $0x30] sm:$0xff]  ;;  %v1068_v39 = vpack.c.bf16 %v316_v36, %v315_v35 }
   0xa   :  { %1065 = vmatprep.subr.bf16.mxu0 %v1064_v26  ;;  %v1098_v38 = vpack.c.bf16 %v330_v32, %v329_v31  ;;  %v300_v40 = vld [vmem:[%s2003_s1 + $0x38] sm:$0xff]  ;;  %v347_v41 = vld [vmem:[%s2003_s1 + $0x1b0] sm:$0xff]  ;;  %v317_v49 = vld [vmem:[%s2003_s1 + $0xc0] sm:$0xff] }
   0xb   :  { %1095 = vmatpush3.bf16.msra.mxu1 %v1094_v25  ;;  %v348_v42 = vld [vmem:[%s2003_s1 + $0x1b8] sm:$0xff]  ;;  %v331_v47 = vld [vmem:[%s2003_s1 + $0x130] sm:$0xff]  ;;  %v318_v50 = vld [vmem:[%s2003_s1 + $0xc8] sm:$0xff]  ;;  %v1070_v53 = vpack.c.bf16 %v300_v40, %v299_v37 }
   0xc   :  { %1097 = vmatprep.subr.bf16.mxu1 %v1096_v34  ;;  %v1100_v46 = vpack.c.bf16 %v348_v42, %v347_v41  ;;  %v332_v48 = vld [vmem:[%s2003_s1 + $0x138] sm:$0xff]  ;;  %v301_v51 = vld [vmem:[%s2003_s1 + $0x40] sm:$0xff]  ;;  %v302_v52 = vld [vmem:[%s2003_s1 + $0x48] sm:$0xff]  ;;  %v1072_v58 = vpack.c.bf16 %v318_v50, %v317_v49 }
   0xd   :  { %1067 = vmatpush3.bf16.msra.mxu0 %v1066_v33  ;;  %v349_v54 = vld [vmem:[%s2003_s1 + $0x1c0] sm:$0xff]  ;;  %v350_v55 = vld [vmem:[%s2003_s1 + $0x1c8] sm:$0xff]  ;;  %v1102_v57 = vpack.c.bf16 %v332_v48, %v331_v47  ;;  %v319_v60 = vld [vmem:[%s2003_s1 + $0xd0] sm:$0xff]  ;;  %v1074_v7 = vpack.c.bf16 %v302_v52, %v301_v51 }
   0xe   :  { %v333_v56 = vld [vmem:[%s2003_s1 + $0x140] sm:$0xff]  ;;  %1069 = vmatprep.subr.bf16.mxu0 %v1068_v39  ;;  %v334_v59 = vld [vmem:[%s2003_s1 + $0x148] sm:$0xff]  ;;  %v320_v61 = vld [vmem:[%s2003_s1 + $0xd8] sm:$0xff]  ;;  %v1104_v0 = vpack.c.bf16 %v350_v55, %v349_v54 }
   0xf   :  { %1099 = vmatpush3.bf16.msra.mxu1 %v1098_v38  ;;  %v303_v1 = vld [vmem:[%s2003_s1 + $0x50] sm:$0xff]  ;;  %v304_v2 = vld [vmem:[%s2003_s1 + $0x58] sm:$0xff]  ;;  %v321_v8 = vld [vmem:[%s2003_s1 + $0xe0] sm:$0xff]  ;;  %v1106_v11 = vpack.c.bf16 %v334_v59, %v333_v56  ;;  %v1076_v12 = vpack.c.bf16 %v320_v61, %v319_v60 }
  0x10   :  { %1101 = vmatprep.subr.bf16.mxu1 %v1100_v46  ;;  %v351_v3 = vld [vmem:[%s2003_s1 + $0x1d0] sm:$0xff]  ;;  %v352_v4 = vld [vmem:[%s2003_s1 + $0x1d8] sm:$0xff]  ;;  %v322_v9 = vld [vmem:[%s2003_s1 + $0xe8] sm:$0xff]  ;;  %v1078_v21 = vpack.c.bf16 %v304_v2, %v303_v1 }
  0x11   :  { %v335_v5 = vld [vmem:[%s2003_s1 + $0x150] sm:$0xff]  ;;  %v336_v6 = vld [vmem:[%s2003_s1 + $0x158] sm:$0xff]  ;;  %1071 = vmatpush3.bf16.msra.mxu0 %v1070_v53  ;;  %v1425_v10 = vld [vmem:[%s2003_s1 + $0x60] sm:$0xff]  ;;  %v1108_v17 = vpack.c.bf16 %v352_v4, %v351_v3  ;;  %v1080_v26 = vpack.c.bf16 %v322_v9, %v321_v8 }
  0x12   :  { %1073 = vmatprep.subr.bf16.mxu0 %v1072_v58  ;;  %v306_v13 = vld [vmem:[%s2003_s1 + $0x68] sm:$0xff]  ;;  %v353_v14 = vld [vmem:[%s2003_s1 + $0x1e0] sm:$0xff]  ;;  %v323_v20 = vld [vmem:[%s2003_s1 + $0xf0] sm:$0xff]  ;;  %v1110_v22 = vpack.c.bf16 %v336_v6, %v335_v5 }
  0x13   :  { %1103 = vmatpush3.bf16.msra.mxu1 %v1102_v57  ;;  %v354_v15 = vld [vmem:[%s2003_s1 + $0x1e8] sm:$0xff]  ;;  %v337_v18 = vld [vmem:[%s2003_s1 + $0x160] sm:$0xff]  ;;  %v324_v23 = vld [vmem:[%s2003_s1 + $0xf8] sm:$0xff]  ;;  %v1082_v27 = vpack.c.bf16 %v306_v13, %v1425_v10 }
  0x14   :  { %1105 = vmatprep.subr.bf16.mxu1 %v1104_v0  ;;  %v338_v19 = vld [vmem:[%s2003_s1 + $0x168] sm:$0xff]  ;;  %v1453_v24 = vld [vmem:[%s2003_s1 + $0x70] sm:$0xff]  ;;  %v1458_v25 = vld [vmem:[%s2003_s1 + $0x78] sm:$0xff]  ;;  %v1112_v28 = vpack.c.bf16 %v354_v15, %v353_v14  ;;  %v1084_v33 = vpack.c.bf16 %v324_v23, %v323_v20 }
  0x15   :  { %1075 = vmatpush3.bf16.msra.mxu0 %v1074_v7  ;;  %v1114_v29 = vpack.c.bf16 %v338_v19, %v337_v18  ;;  %v355_v30 = vld [vmem:[%s2003_s1 + $0x1f0] sm:$0xff]  ;;  %v356_v31 = vld [vmem:[%s2003_s1 + $0x1f8] sm:$0xff]  ;;  %v15_v32 = vld [vmem:[%s2002_s0] sm:$0xff]  ;;  %v1086_v39 = vpack.c.bf16 %v1458_v25, %v1453_v24 }
  0x16   :  { %1077 = vmatprep.subr.bf16.mxu0 %v1076_v12  ;;  %v18_v34 = vld [vmem:[%s2002_s0 + $0x14] sm:$0xff]  ;;  %v34_v35 = vrot.slane %v15_v32, %v1436_v16  ;;  %v27_v38 = vcombine.high %v15_v32, %v15_v32  ;;  %v1116_v40 = vpack.c.bf16 %v356_v31, %v355_v30  ;;  %v373_v42 = vld [vmem:[%s2003_s1 + $0x280] sm:$0xff]  ;;  %v374_v43 = vld [vmem:[%s2003_s1 + $0x288] sm:$0xff] }
  0x17   :  { %1107 = vmatpush3.bf16.msra.mxu1 %v1106_v11  ;;  %v339_v36 = vld [vmem:[%s2003_s1 + $0x170] sm:$0xff]  ;;  %v340_v37 = vld [vmem:[%s2003_s1 + $0x178] sm:$0xff]  ;;  %v76_v41 = vrot.slane %v18_v34, %v1436_v16  ;;  %v69_v44 = vcombine.high %v18_v34, %v18_v34  ;;  %v1120_v55 = vpack.c.bf16 %v374_v43, %v373_v42  ;;  %v405_v34 = vld [vmem:[%s2003_s1 + $0x380] sm:$0xff] }
  0x18   :  { %1109 = vmatprep.subr.bf16.mxu1 %v1108_v17  ;;  %v42_v45 = vcombine.high %v34_v35, %v34_v35  ;;  %v1118_v46 = vpack.c.bf16 %v340_v37, %v339_v36  ;;  %v132_v47 = vsel %vm131_vm0, %v34_v35, 0.0  ;;  %v41_v48 = vrot.slane %v27_v38, %v1436_v16  ;;  %v406_v35 = vld [vmem:[%s2003_s1 + $0x388] sm:$0xff]  ;;  %v357_v43 = vld [vmem:[%s2003_s1 + $0x200] sm:$0xff] }
  0x19   :  { %1079 = vmatpush3.bf16.msra.mxu0 %v1078_v21  ;;  %v84_v49 = vcombine.high %v76_v41, %v76_v41  ;;  %v133_v50 = vrot.slane %v132_v47, 4  ;;  %v202_v51 = vsel %vm131_vm0, %v76_v41, 0.0  ;;  %v83_v52 = vrot.slane %v69_v44, %v1436_v16  ;;  %v358_v44 = vld [vmem:[%s2003_s1 + $0x208] sm:$0xff] }
  0x1a   :  { %1081 = vmatprep.subr.bf16.mxu0 %v1080_v26  ;;  %v139_v53 = vsel %vm131_vm0, %v42_v45, 0.0  ;;  %v203_v54 = vrot.slane %v202_v51, 4  ;;  %v43_v56 = vcombine.high %v41_v48, %v41_v48  ;;  %v146_v0 = vsel %vm131_vm0, %v41_v48, 0.0 }
  0x1b   :  { %1111 = vmatpush3.bf16.msra.mxu1 %v1110_v22  ;;  %v140_v57 = vrot.slane %v139_v53, 4  ;;  %v209_v58 = vsel %vm131_vm0, %v84_v49, 0.0  ;;  %v134_v59 = vadd.f32 %v133_v50, %v132_v47  ;;  %v85_v60 = vcombine.high %v83_v52, %v83_v52  ;;  %v375_v50 = vld [vmem:[%s2003_s1 + $0x290] sm:$0xff] }
  0x1c   :  { %1113 = vmatprep.subr.bf16.mxu1 %v1112_v28  ;;  %v210_v61 = vrot.slane %v209_v58, 4  ;;  %v204_v62 = vadd.f32 %v203_v54, %v202_v51  ;;  %v153_v63 = vsel %vm131_vm0, %v43_v56, 0.0  ;;  %v147_v8 = vrot.slane %v146_v0, 4  ;;  %v376_v51 = vld [vmem:[%s2003_s1 + $0x298] sm:$0xff]  ;;  %v1525_v56 = vld [vmem:[%s2003_s1 + $0x308] sm:$0xff] }
  0x1d   :  { %1083 = vmatpush3.bf16.msra.mxu0 %v1082_v27  ;;  %v141_v1 = vadd.f32 %v140_v57, %v139_v53  ;;  %v135_v2 = vrot.slane %v134_v59, 2  ;;  %v154_v3 = vrot.slane %v153_v63, 4  ;;  %v223_v4 = vsel %vm131_vm0, %v85_v60, 0.0  ;;  %v1530_v57 = vld [vmem:[%s2003_s1 + $0x210] sm:$0xff] }
  0x1e   :  { %1085 = vmatprep.subr.bf16.mxu0 %v1084_v33  ;;  %v211_v5 = vadd.f32 %v210_v61, %v209_v58  ;;  %v205_v6 = vrot.slane %v204_v62, 2  ;;  %v224_v7 = vrot.slane %v223_v4, 4  ;;  %v216_v12 = vsel %vm131_vm0, %v83_v52, 0.0  ;;  %v1535_v58 = vld [vmem:[%s2003_s1 + $0x218] sm:$0xff] }
  0x1f   :  { %1115 = vmatpush3.bf16.msra.mxu1 %v1114_v29  ;;  %v142_v9 = vrot.slane %v141_v1, 2  ;;  %v136_v10 = vadd.f32 %v135_v2, %v134_v59  ;;  %v155_v11 = vadd.f32 %v154_v3, %v153_v63  ;;  %v148_v17 = vadd.f32 %v147_v8, %v146_v0  ;;  %v1541_v63 = vld [vmem:[%s2003_s1 + $0x390] sm:$0xff]  ;;  %v1546_v0 = vld [vmem:[%s2003_s1 + $0x398] sm:$0xff]  ;;  %v1561_v3 = vld [vmem:[%s2003_s1 + $0x2a0] sm:$0xff] }
  0x20   :  { %1117 = vmatprep.subr.bf16.mxu1 %v1116_v40  ;;  %v212_v13 = vrot.slane %v211_v5, 2  ;;  %v206_v14 = vadd.f32 %v205_v6, %v204_v62  ;;  %v225_v15 = vadd.f32 %v224_v7, %v223_v4  ;;  %v217_v21 = vrot.slane %v216_v12, 4  ;;  %v1556_v2 = vld [vmem:[%s2003_s1 + $0x318] sm:$0xff]  ;;  %v1566_v4 = vld [vmem:[%s2003_s1 + $0x2a8] sm:$0xff] }
  0x21   :  { %1087 = vmatpush3.bf16.msra.mxu0 %v1086_v39  ;;  %v143_v18 = vadd.f32 %v142_v9, %v141_v1  ;;  %v137_v19 = vrot.slane %v136_v10, 1  ;;  %v156_v20 = vrot.slane %v155_v11, 2  ;;  %v149_v25 = vrot.slane %v148_v17, 2  ;;  %v1551_v1 = vld [vmem:[%s2003_s1 + $0x310] sm:$0xff]  ;;  %v1576_v6 = vld [vmem:[%s2003_s1 + $0x228] sm:$0xff] }
  0x22   :  { %v213_v22 = vadd.f32 %v212_v13, %v211_v5  ;;  %v207_v23 = vrot.slane %v206_v14, 1  ;;  %1121 = vmatprep.subr.bf16.mxu0 %v1120_v55  ;;  %v226_v24 = vrot.slane %v225_v15, 2  ;;  %v218_v29 = vadd.f32 %v217_v21, %v216_v12  ;;  %v1520_v55 = vld [vmem:[%s2003_s1 + $0x300] sm:$0xff]  ;;  %v1597_v13 = vld [vmem:[%s2003_s1 + $0x328] sm:$0xff]  ;;  %v1622_v21 = vld [vmem:[%s2003_s1 + $0x3b0] sm:$0xff] }
  0x23   :  { %1119 = vmatpush3.bf16.msra.mxu1 %v1118_v46  ;;  %v144_v26 = vrot.slane %v143_v18, 1  ;;  %v138_v27 = vadd.f32 %v137_v19, %v136_v10  ;;  %v157_v28 = vadd.f32 %v156_v20, %v155_v11  ;;  %v150_v33 = vadd.f32 %v149_v25, %v148_v17  ;;  %v1571_v5 = vld [vmem:[%s2003_s1 + $0x220] sm:$0xff]  ;;  %v1587_v11 = vld [vmem:[%s2003_s1 + $0x3a8] sm:$0xff]  ;;  %v1612_v19 = vld [vmem:[%s2003_s1 + $0x230] sm:$0xff] }
  0x24   :  { %v214_v30 = vrot.slane %v213_v22, 1  ;;  %v208_v31 = vadd.f32 %v207_v23, %v206_v14  ;;  %v227_v32 = vadd.f32 %v226_v24, %v225_v15  ;;  %v219_v39 = vrot.slane %v218_v29, 2  ;;  %v1582_v10 = vld [vmem:[%s2003_s1 + $0x3a0] sm:$0xff]  ;;  %v1602_v14 = vld [vmem:[%s2003_s1 + $0x2b0] sm:$0xff]  ;;  %v1607_v15 = vld [vmem:[%s2003_s1 + $0x2b8] sm:$0xff] }
  0x25   :  { %v145_v36 = vadd.f32 %v144_v26, %v143_v18  ;;  %v273_v37 = vmul.f32 0.5, %v138_v27  ;;  %v158_v38 = vrot.slane %v157_v28, 1  ;;  %v151_v45 = vrot.slane %v150_v33, 1  ;;  %v1592_v12 = vld [vmem:[%s2003_s1 + $0x320] sm:$0xff]  ;;  %v1617_v20 = vld [vmem:[%s2003_s1 + $0x238] sm:$0xff]  ;;  %v1632_v23 = vld [vmem:[%s2003_s1 + $0x330] sm:$0xff] }
  0x26   :  { %v215_v40 = vadd.f32 %v214_v30, %v213_v22  ;;  %v283_v41 = vmul.f32 0.5, %v208_v31  ;;  %v228_v42 = vrot.slane %v227_v32, 1  ;;  %v220_v48 = vadd.f32 %v219_v39, %v218_v29  ;;  %v1627_v22 = vld [vmem:[%s2003_s1 + $0x3b8] sm:$0xff]  ;;  %v1642_v25 = vld [vmem:[%s2003_s1 + $0x2c0] sm:$0xff]  ;;  %v1647_v26 = vld [vmem:[%s2003_s1 + $0x2c8] sm:$0xff] }
  0x27   :  { %v274_v46 = vmul.f32 0.5, %v145_v36  ;;  %v159_v47 = vadd.f32 %v158_v38, %v157_v28  ;;  %v1152_v49 = vpack.c.bf16 %v406_v35, %v405_v34  ;;  %v152_v54 = vadd.f32 %v151_v45, %v150_v33  ;;  %v1637_v24 = vld [vmem:[%s2003_s1 + $0x338] sm:$0xff]  ;;  %v1653_v28 = vld [vmem:[%s2003_s1 + $0x240] sm:$0xff]  ;;  %v1658_v29 = vld [vmem:[%s2003_s1 + $0x248] sm:$0xff] }
  0x28   :  { %v284_v52 = vmul.f32 0.5, %v215_v40  ;;  %v229_v53 = vadd.f32 %v228_v42, %v227_v32  ;;  %v481_v59 = vsel %vm480_vm1, %v283_v41, %v273_v37  ;;  %v1122_v61 = vpack.c.bf16 %v358_v44, %v357_v43  ;;  %v1663_v30 = vld [vmem:[%s2003_s1 + $0x3c0] sm:$0xff]  ;;  %v1668_v31 = vld [vmem:[%s2003_s1 + $0x3c8] sm:$0xff]  ;;  %v1687_v37 = vld [vmem:[%s2003_s1 + $0x2d0] sm:$0xff] }
  0x29   :  { %v276_v60 = vmul.f32 0.5, %v159_v47  ;;  %v221_v62 = vrot.slane %v220_v48, 1  ;;  %1153 = vmatprep.subr.bf16.mxu1 %v1152_v49  ;;  %v1124_v9 = vpack.c.bf16 %v376_v51, %v375_v50  ;;  %v275_v18 = vmul.f32 0.5, %v152_v54  ;;  %v1677_v35 = vld [vmem:[%s2003_s1 + $0x340] sm:$0xff]  ;;  %v1682_v36 = vld [vmem:[%s2003_s1 + $0x348] sm:$0xff]  ;;  %v1700_v42 = vld [vmem:[%s2003_s1 + $0x2d8] sm:$0xff] }
  0x2a   :  { %v482_v7 = vsel %vm480_vm1, %v284_v52, %v274_v46  ;;  %v286_v8 = vmul.f32 0.5, %v229_v53  ;;  %v1154_v33 = vpack.c.bf16 %v1525_v56, %v1520_v55  ;;  %v1126_v34 = vpack.c.bf16 %v1535_v58, %v1530_v57  ;;  %v1705_v43 = vld [vmem:[%s2003_s1 + $0x250] sm:$0xff]  ;;  %v1710_v44 = vld [vmem:[%s2003_s1 + $0x258] sm:$0xff]  ;;  %v16_v51 = vld [vmem:[%s2002_s0 + $0x8] sm:$0xff] }
  0x2b   :  { %565 = vmatprep.mubr.f32.mxu0 %v482_v7  ;;  %v222_v17 = vadd.f32 %v221_v62, %v220_v48  ;;  %v1156_v38 = vpack.c.bf16 %v1546_v0, %v1541_v63  ;;  %v1158_v39 = vpack.c.bf16 %v1556_v2, %v1551_v1  ;;  %v1128_v40 = vpack.c.bf16 %v1566_v4, %v1561_v3  ;;  %v1722_v49 = vld [vmem:[%s2003_s1 + $0x3d0] sm:$0xff]  ;;  %v1727_v50 = vld [vmem:[%s2003_s1 + $0x3d8] sm:$0xff]  ;;  %v1762_v62 = vld [vmem:[%s2003_s1 + $0x2e0] sm:$0xff] }
  0x2c   :  { %566 = vmatmul.mubr.f32.vlgmr.msra.gmra.mrb[0].mxu0 %v481_v59  ;;  %v484_v27 = vsel %vm480_vm1, %v286_v8, %v276_v60  ;;  %v1130_v41 = vpack.c.bf16 %v1576_v6, %v1571_v5  ;;  %v1160_v46 = vpack.c.bf16 %v1587_v11, %v1582_v10  ;;  %v1162_v47 = vpack.c.bf16 %v1597_v13, %v1592_v12  ;;  %v1743_v56 = vld [vmem:[%s2003_s1 + $0x350] sm:$0xff]  ;;  %v1748_v57 = vld [vmem:[%s2003_s1 + $0x358] sm:$0xff]  ;;  %v1767_v63 = vld [vmem:[%s2003_s1 + $0x2e8] sm:$0xff] }
  0x2d   :  { %635 = vmatprep.mubr.f32.mxu1 %v484_v27  ;;  %1123 = vmatpush3.bf16.msra.mxu0 %v1122_v61  ;;  %v285_v32 = vmul.f32 0.5, %v222_v17  ;;  %v1132_v48 = vpack.c.bf16 %v1607_v15, %v1602_v14  ;;  %v1134_v52 = vpack.c.bf16 %v1617_v20, %v1612_v19  ;;  %v1164_v53 = vpack.c.bf16 %v1627_v22, %v1622_v21  ;;  %v19_v58 = vld [vmem:[%s2002_s0 + $0x1c] sm:$0xff]  ;;  %v1786_v6 = vld [vmem:[%s2003_s1 + $0x268] sm:$0xff] }
  0x2e   :  { %1125 = vmatprep.subr.bf16.mxu0 %v1124_v9  ;;  %v1166_v54 = vpack.c.bf16 %v1637_v24, %v1632_v23  ;;  %v1136_v55 = vpack.c.bf16 %v1647_v26, %v1642_v25  ;;  %v1138_v59 = vpack.c.bf16 %v1658_v29, %v1653_v28  ;;  %v1168_v60 = vpack.c.bf16 %v1668_v31, %v1663_v30  ;;  %v1781_v5 = vld [vmem:[%s2003_s1 + $0x260] sm:$0xff] }
  0x2f   :  { %v483_v45 = vsel %vm480_vm1, %v285_v32, %v275_v18  ;;  %v1170_v61 = vpack.c.bf16 %v1682_v36, %v1677_v35  ;;  %v1140_v0 = vpack.c.bf16 %v1700_v42, %v1687_v37  ;;  %v1142_v1 = vpack.c.bf16 %v1710_v44, %v1705_v43 }
  0x30   :  { %636 = vmatmul.mubr.f32.vlgmr.msra.gmra.mrb[0].mxu1 %v483_v45  ;;  %v51_v2 = vrot.slane %v16_v51, %v1436_v16  ;;  %v1172_v3 = vpack.c.bf16 %v1727_v50, %v1722_v49  ;;  %v1174_v4 = vpack.c.bf16 %v1748_v57, %v1743_v56  ;;  %v93_v7 = vrot.slane %v19_v58, %v1436_v16 }
  0x31   :  { %1155 = vmatpush3.bf16.msra.mxu1 %v1154_v33  ;;  %1127 = vmatpush3.bf16.msra.mxu0 %v1126_v34  ;;  %v44_v8 = vcombine.high %v16_v51, %v16_v51  ;;  %v1144_v9 = vpack.c.bf16 %v1767_v63, %v1762_v62  ;;  %v86_v12 = vcombine.high %v19_v58, %v19_v58 }
  0x32   :  { %1157 = vmatprep.subr.bf16.mxu1 %v1156_v38  ;;  %1129 = vmatprep.subr.bf16.mxu0 %v1128_v40  ;;  %v59_v10 = vcombine.high %v51_v2, %v51_v2  ;;  %v160_v11 = vsel %vm131_vm0, %v51_v2, 0.0  ;;  %v101_v13 = vcombine.high %v93_v7, %v93_v7  ;;  %v230_v15 = vsel %vm131_vm0, %v93_v7, 0.0 }
  0x33   :  { %v161_v14 = vrot.slane %v160_v11, 4  ;;  %v58_v17 = vrot.slane %v44_v8, %v1436_v16  ;;  %v1146_v18 = vpack.c.bf16 %v1786_v6, %v1781_v5  ;;  %v231_v20 = vrot.slane %v230_v15, 4 }
  0x34   :  { %v167_v19 = vsel %vm131_vm0, %v59_v10, 0.0  ;;  %v100_v21 = vrot.slane %v86_v12, %v1436_v16  ;;  %v237_v25 = vsel %vm131_vm0, %v101_v13, 0.0 }
  0x35   :  { %1159 = vmatpush3.bf16.msra.mxu1 %v1158_v39  ;;  %1131 = vmatpush3.bf16.msra.mxu0 %v1130_v41  ;;  %v168_v22 = vrot.slane %v167_v19, 4  ;;  %v162_v26 = vadd.f32 %v161_v14, %v160_v11  ;;  %v60_v27 = vcombine.high %v58_v17, %v58_v17 }
  0x36   :  { %1161 = vmatprep.subr.bf16.mxu1 %v1160_v46  ;;  %1133 = vmatprep.subr.bf16.mxu0 %v1132_v48 }
  0x37   :  { %8 = vsyncpa [#allocation3], 0  ;;  %v238_v32 = vrot.slane %v237_v25, 4  ;;  %v232_v33 = vadd.f32 %v231_v20, %v230_v15  ;;  %v102_v34 = vcombine.high %v100_v21, %v100_v21  ;;  %v174_v37 = vsel %vm131_vm0, %v58_v17, 0.0  ;;  %v401_v24 = vld [vmem:[%s2003_s1 + $0x360] sm:$0xff]  ;;  %v387_v28 = vld [vmem:[%s2003_s1 + $0x2f0] sm:$0xff] }
  0x38   :  { %v169_v38 = vadd.f32 %v168_v22, %v167_v19  ;;  %v163_v39 = vrot.slane %v162_v26, 2  ;;  %v181_v40 = vsel %vm131_vm0, %v60_v27, 0.0  ;;  %v175_v41 = vrot.slane %v174_v37, 4  ;;  %v388_v29 = vld [vmem:[%s2003_s1 + $0x2f8] sm:$0xff]  ;;  %v438_v49 = vld [vmem:[%s2003_s1 + $0x488] sm:$0xff]  ;;  %v403_v62 = vld [vmem:[%s2003_s1 + $0x370] sm:$0xff] }
  0x39   :  { %1163 = vmatpush3.bf16.msra.mxu1 %v1162_v47  ;;  %1135 = vmatpush3.bf16.msra.mxu0 %v1134_v52  ;;  %v239_v16 = vadd.f32 %v238_v32, %v237_v25  ;;  %v233_v42 = vrot.slane %v232_v33, 2  ;;  %v182_v45 = vrot.slane %v181_v40, 4  ;;  %v251_v46 = vsel %vm131_vm0, %v102_v34, 0.0  ;;  %v1805_v47 = vld [vmem:[%s2003_s1 + $0x3e0] sm:$0xff]  ;;  %v1810_v52 = vld [vmem:[%s2003_s1 + $0x3e8] sm:$0xff]  ;;  %v420_v27 = vld [vmem:[%s2003_s1 + $0x3f8] sm:$0xff] }
  0x3a   :  { %1165 = vmatprep.subr.bf16.mxu1 %v1164_v53  ;;  %1137 = vmatprep.subr.bf16.mxu0 %v1136_v55  ;;  %v170_v48 = vrot.slane %v169_v38, 2  ;;  %v164_v51 = vadd.f32 %v163_v39, %v162_v26  ;;  %v252_v58 = vrot.slane %v251_v46, 4  ;;  %v176_v2 = vadd.f32 %v175_v41, %v174_v37  ;;  %v419_v26 = vld [vmem:[%s2003_s1 + $0x3f0] sm:$0xff]  ;;  %v437_v39 = vld [vmem:[%s2003_s1 + $0x480] sm:$0xff]  ;;  %v404_v63 = vld [vmem:[%s2003_s1 + $0x378] sm:$0xff] }
  0x3b   :  { %v240_v53 = vrot.slane %v239_v16, 2  ;;  %v234_v55 = vadd.f32 %v233_v42, %v232_v33  ;;  %v183_v7 = vadd.f32 %v182_v45, %v181_v40  ;;  %v244_v8 = vsel %vm131_vm0, %v100_v21, 0.0  ;;  %v439_v56 = vld [vmem:[%s2003_s1 + $0x490] sm:$0xff] }
  0x3c   :  { %v171_v10 = vadd.f32 %v170_v48, %v169_v38  ;;  %v165_v11 = vrot.slane %v164_v51, 1  ;;  %v253_v12 = vadd.f32 %v252_v58, %v251_v46  ;;  %v177_v13 = vrot.slane %v176_v2, 2  ;;  %v421_v46 = vld [vmem:[%s2003_s1 + $0x400] sm:$0xff]  ;;  %v422_v48 = vld [vmem:[%s2003_s1 + $0x408] sm:$0xff] }
  0x3d   :  { %1167 = vmatpush3.bf16.msra.mxu1 %v1166_v54  ;;  %1139 = vmatpush3.bf16.msra.mxu0 %v1138_v59  ;;  %v241_v14 = vadd.f32 %v240_v53, %v239_v16  ;;  %v235_v15 = vrot.slane %v234_v55, 1  ;;  %v184_v17 = vrot.slane %v183_v7, 2  ;;  %v245_v19 = vrot.slane %v244_v8, 4  ;;  %v402_v59 = vld [vmem:[%s2003_s1 + $0x368] sm:$0xff] }
  0x3e   :  { %1169 = vmatprep.subr.bf16.mxu1 %v1168_v60  ;;  %1141 = vmatprep.subr.bf16.mxu0 %v1140_v0  ;;  %v1176_v23 = vpack.c.bf16 %v1810_v52, %v1805_v47  ;;  %v172_v30 = vrot.slane %v171_v10, 1  ;;  %v254_v31 = vrot.slane %v253_v12, 2  ;;  %v178_v54 = vadd.f32 %v177_v13, %v176_v2  ;;  %v371_v60 = vld [vmem:[%s2003_s1 + $0x270] sm:$0xff]  ;;  %v372_v0 = vld [vmem:[%s2003_s1 + $0x278] sm:$0xff] }
  0x3f   :  { %v242_v20 = vrot.slane %v241_v14, 1  ;;  %v166_v21 = vadd.f32 %v165_v11, %v164_v51  ;;  %v185_v22 = vadd.f32 %v184_v17, %v183_v7  ;;  %v246_v25 = vadd.f32 %v245_v19, %v244_v8  ;;  %v440_v2 = vld [vmem:[%s2003_s1 + $0x498] sm:$0xff]  ;;  %v879_v47 = vld.sshfl [vmem:[%s2002_s0 + $0x24] sm:$0x33 pattern:$0x76325410] }
  0x40   :  { %v173_v32 = vadd.f32 %v172_v30, %v171_v10  ;;  %v236_v33 = vadd.f32 %v235_v15, %v234_v55  ;;  %v255_v34 = vadd.f32 %v254_v31, %v253_v12  ;;  %v179_v37 = vrot.slane %v178_v54, 1  ;;  %v423_v11 = vld [vmem:[%s2003_s1 + $0x410] sm:$0xff]  ;;  %v424_v12 = vld [vmem:[%s2003_s1 + $0x418] sm:$0xff] }
  0x41   :  { %1171 = vmatpush3.bf16.msra.mxu1 %v1170_v61  ;;  %1143 = vmatpush3.bf16.msra.mxu0 %v1142_v1  ;;  %v1148_v35 = vpack.c.bf16 %v388_v29, %v387_v28  ;;  %v243_v36 = vadd.f32 %v242_v20, %v241_v14  ;;  %v186_v43 = vrot.slane %v185_v22, 1  ;;  %v247_v44 = vrot.slane %v246_v25, 2 }
  0x42   :  { %1173 = vmatprep.subr.bf16.mxu1 %v1172_v3  ;;  %1145 = vmatprep.subr.bf16.mxu0 %v1144_v9  ;;  %v1178_v61 = vpack.c.bf16 %v402_v59, %v401_v24  ;;  %v1150_v1 = vpack.c.bf16 %v372_v0, %v371_v60  ;;  %v278_v38 = vmul.f32 0.5, %v173_v32  ;;  %v256_v50 = vrot.slane %v255_v34, 1  ;;  %v442_v24 = vld [vmem:[%s2003_s1 + $0x4a8] sm:$0xff]  ;;  %v443_v32 = vld [vmem:[%s2003_s1 + $0x4b0] sm:$0xff] }
  0x43   :  { %v1180_v3 = vpack.c.bf16 %v420_v27, %v419_v26  ;;  %v288_v40 = vmul.f32 0.5, %v243_v36  ;;  %v187_v9 = vadd.f32 %v186_v43, %v185_v22  ;;  %v248_v41 = vadd.f32 %v247_v44, %v246_v25  ;;  %v425_v25 = vld [vmem:[%s2003_s1 + $0x420] sm:$0xff]  ;;  %v426_v26 = vld [vmem:[%s2003_s1 + $0x428] sm:$0xff] }
  0x44   :  { %v277_v16 = vmul.f32 0.5, %v166_v21  ;;  %v287_v42 = vmul.f32 0.5, %v236_v33  ;;  %v257_v45 = vadd.f32 %v256_v50, %v255_v34  ;;  %v180_v51 = vadd.f32 %v179_v37, %v178_v54  ;;  %v444_v33 = vld [vmem:[%s2003_s1 + $0x4b8] sm:$0xff] }
  0x45   :  { %1175 = vmatpush3.bf16.msra.mxu1 %v1174_v4  ;;  %1147 = vmatpush3.bf16.msra.mxu0 %v1146_v18  ;;  %v486_v57 = vsel %vm480_vm1, %v288_v40, %v278_v38  ;;  %v1184_v4 = vpack.c.bf16 %v438_v49, %v437_v39  ;;  %v280_v5 = vmul.f32 0.5, %v187_v9  ;;  %v249_v6 = vrot.slane %v248_v41, 1  ;;  %v878_v18 = vld.sshfl [vmem:[%s2002_s0 + $0x10] sm:$0x33 pattern:$0x76325410] }
  0x46   :  { %1177 = vmatprep.subr.bf16.mxu1 %v1176_v23  ;;  %1149 = vmatprep.subr.bf16.mxu0 %v1148_v35  ;;  %v290_v58 = vmul.f32 0.5, %v257_v45  ;;  %v1182_v52 = vpack.c.bf16 %v404_v63, %v403_v62  ;;  %v1186_v53 = vpack.c.bf16 %v422_v48, %v421_v46  ;;  %v485_v7 = vsel %vm480_vm1, %v287_v42, %v277_v16  ;;  %v441_v23 = vld [vmem:[%s2003_s1 + $0x4a0] sm:$0xff]  ;;  %v427_v39 = vld [vmem:[%s2003_s1 + $0x430] sm:$0xff]  ;;  %v428_v49 = vld [vmem:[%s2003_s1 + $0x438] sm:$0xff] }
  0x47   :  { %705 = vmatprep.mubr.f32.mxu0 %v486_v57  ;;  %v250_v55 = vadd.f32 %v249_v6, %v248_v41  ;;  %v279_v10 = vmul.f32 0.5, %v180_v51  ;;  %v188_v13 = vsel %vm131_vm0, %v878_v18, 0.0  ;;  %v1188_v15 = vpack.c.bf16 %v440_v2, %v439_v56  ;;  %v446_v40 = vld [vmem:[%s2003_s1 + $0x4c8] sm:$0xff]  ;;  %v429_v51 = vld [vmem:[%s2003_s1 + $0x440] sm:$0xff] }
  0x48   :  { %v488_v8 = vsel %vm480_vm1, %v290_v58, %v280_v5  ;;  %v68_v17 = vcombine.high %v878_v18, %v878_v18  ;;  %v110_v19 = vcombine.high %v879_v47, %v879_v47  ;;  %v189_v28 = vrot.slane %v188_v13, 4  ;;  %v430_v56 = vld [vmem:[%s2003_s1 + $0x448] sm:$0xff]  ;;  %v448_v5 = vld [vmem:[%s2003_s1 + $0x4d8] sm:$0xff] }
  0x49   :  { %1179 = vmatpush3.bf16.msra.mxu1 %v1178_v61  ;;  %1151 = vmatpush3.bf16.msra.mxu0 %v1150_v1  ;;  %v289_v14 = vmul.f32 0.5, %v250_v55  ;;  %v258_v29 = vsel %vm131_vm0, %v879_v47, 0.0  ;;  %v1190_v30 = vpack.c.bf16 %v424_v12, %v423_v11  ;;  %v1192_v22 = vpack.c.bf16 %v442_v24, %v441_v23  ;;  %v449_v11 = vld [vmem:[%s2003_s1 + $0x4e0] sm:$0xff]  ;;  %v450_v12 = vld [vmem:[%s2003_s1 + $0x4e8] sm:$0xff]  ;;  %v451_v23 = vld [vmem:[%s2003_s1 + $0x4f0] sm:$0xff] }
  0x4a   :  { %1181 = vmatprep.subr.bf16.mxu1 %v1180_v3  ;;  %1185 = vmatprep.subr.bf16.mxu0 %v1184_v4  ;;  %v195_v31 = vsel %vm131_vm0, %v68_v17, 0.0  ;;  %v265_v54 = vsel %vm131_vm0, %v110_v19, 0.0  ;;  %v259_v59 = vrot.slane %v258_v29, 4  ;;  %v190_v21 = vadd.f32 %v189_v28, %v188_v13  ;;  %v445_v3 = vld [vmem:[%s2003_s1 + $0x4c0] sm:$0xff]  ;;  %v447_v4 = vld [vmem:[%s2003_s1 + $0x4d0] sm:$0xff]  ;;  %v434_v19 = vld [vmem:[%s2003_s1 + $0x468] sm:$0xff] }
  0x4b   :  { %775 = vmatprep.mubr.f32.mxu1 %v488_v8  ;;  %v487_v60 = vsel %vm480_vm1, %v289_v14, %v279_v10  ;;  %v196_v0 = vrot.slane %v195_v31, 4  ;;  %v266_v20 = vrot.slane %v265_v54, 4  ;;  %v1194_v43 = vpack.c.bf16 %v426_v26, %v425_v25  ;;  %v432_v8 = vld [vmem:[%s2003_s1 + $0x458] sm:$0xff]  ;;  %v433_v17 = vld [vmem:[%s2003_s1 + $0x460] sm:$0xff] }
  0x4c   :  { %706 = vmatmul.mubr.f32.vlgmr.msra.gmra.mrb[2].mxu0 %v485_v7  ;;  %v260_v27 = vadd.f32 %v259_v59, %v258_v29  ;;  %v191_v35 = vrot.slane %v190_v21, 2  ;;  %v1196_v38 = vpack.c.bf16 %v444_v33, %v443_v32  ;;  %v1198_v16 = vpack.c.bf16 %v428_v49, %v427_v39  ;;  %v431_v7 = vld [vmem:[%s2003_s1 + $0x450] sm:$0xff]  ;;  %v452_v24 = vld [vmem:[%s2003_s1 + $0x4f8] sm:$0xff] }
  0x4d   :  { %1183 = vmatpush3.bf16.msra.mxu1 %v1182_v52  ;;  %1187 = vmatpush3.bf16.msra.mxu0 %v1186_v53  ;;  %v197_v34 = vadd.f32 %v196_v0, %v195_v31  ;;  %v267_v37 = vadd.f32 %v266_v20, %v265_v54  ;;  %v1200_v48 = vpack.c.bf16 %v446_v40, %v445_v3  ;;  %v436_v31 = vld [vmem:[%s2003_s1 + $0x478] sm:$0xff]  ;;  %vm851_vm2 = vcmask 115712  }
  0x4e   :  { %1189 = vmatprep.subr.bf16.mxu0 %v1188_v15  ;;  %v261_v36 = vrot.slane %v260_v27, 2  ;;  %v192_v1 = vadd.f32 %v191_v35, %v190_v21  ;;  %v1202_v47 = vpack.c.bf16 %v430_v56, %v429_v51  ;;  %v1204_v55 = vpack.c.bf16 %v448_v5, %v447_v4 }
  0x4f   :  { %v198_v44 = vrot.slane %v197_v34, 2  ;;  %v268_v61 = vrot.slane %v267_v37, 2  ;;  %v1206_v14 = vpack.c.bf16 %v432_v8, %v431_v7  ;;  %v1208_v15 = vpack.c.bf16 %v450_v12, %v449_v11 }
  0x50   :  { %776 = vmatmul.mubr.f32.vlgmr.msra.gmra.mrb[2].mxu1 %v487_v60  ;;  %v262_v50 = vadd.f32 %v261_v36, %v260_v27  ;;  %v193_v9 = vrot.slane %v192_v1, 1  ;;  %v1210_v28 = vpack.c.bf16 %v434_v19, %v433_v17  ;;  %v1212_v29 = vpack.c.bf16 %v452_v24, %v451_v23  ;;  %v880_v60 = vld [vmem:[%s2004_s2] ss:$0 sm:$0xff] }
  0x51   :  { %1191 = vmatpush3.bf16.msra.mxu0 %v1190_v30  ;;  %v199_v62 = vadd.f32 %v198_v44, %v197_v34  ;;  %v269_v63 = vadd.f32 %v268_v61, %v267_v37  ;;  %v435_v30 = vld [vmem:[%s2003_s1 + $0x470] sm:$0xff]  ;;  %s1251_s1 = smov [#allocation2]  }
  0x52   :  { %1193 = vmatprep.subr.bf16.mxu0 %v1192_v22  ;;  %v263_v41 = vrot.slane %v262_v50, 1  ;;  %v194_v46 = vadd.f32 %v193_v9, %v192_v1  ;;  %v1214_v54 = vpack.c.bf16 %v436_v31, %v435_v30  ;;  %s870_s2 = sshll.u32 %s1251_s1, 4  ;;  %s871_s2 = int_to_ptr.vmem [resolvable:$true] %s870_s2 }
  0x53   :  { %v200_v42 = vrot.slane %v199_v62, 1  ;;  %v270_v45 = vrot.slane %v269_v63, 1  ;;  %s1226_s20 = scalar_lea.vmem %s871_s2, 32  ;;  %p1231_p1 = scmp.lt.s32.totalorder %s871_s2, %s871_s2 }
  0x54   :  { %v264_v57 = vadd.f32 %v263_v41, %v262_v50  ;;  %v281_v58 = vmul.f32 0.5, %v194_v46  ;;  %p1227_p0 = scmp.ne.s32.totalorder %s871_s2, %s1226_s20  ;;  %p1232_p2 = scmp.lt.s32.totalorder %s1226_s20, %s1226_s20 }
  0x55   :  { %1195 = vmatpush3.bf16.msra.mxu0 %v1194_v43  ;;  %v201_v6 = vadd.f32 %v200_v42, %v199_v62  ;;  %v271_v18 = vadd.f32 %v270_v45, %v269_v63 }
  0x56   :  { %1197 = vmatprep.subr.bf16.mxu0 %v1196_v38  ;;  %v291_v2 = vmul.f32 0.5, %v264_v57  ;;  %p1233_p3 = por %p1232_p2, %p1231_p1 }
  0x57   :  { %v282_v52 = vmul.f32 0.5, %v201_v6  ;;  %v292_v53 = vmul.f32 0.5, %v271_v18 }
  0x58   :  { %v489_v10 = vsel %vm480_vm1, %v291_v2, %v281_v58  ;;  %p1234_p4 = pnand %p1233_p3, %p1227_p0 }
  0x59   :  { %1199 = vmatpush3.bf16.msra.mxu0 %v1198_v16  ;;  %v490_v13 = vsel %vm480_vm1, %v292_v53, %v282_v52 }
  0x5a   :  { %1201 = vmatprep.subr.bf16.mxu0 %v1200_v48  ;;  %845 = vmatprep.mubr.f32.mxu0 %v490_v13 }
  0x5d   :  { %1203 = vmatpush3.bf16.msra.mxu0 %v1202_v47 }
  0x5e   :  { %1205 = vmatprep.subr.bf16.mxu0 %v1204_v55 }
  0x61   :  { %1207 = vmatpush3.bf16.msra.mxu0 %v1206_v14 }
  0x62   :  { %1209 = vmatprep.subr.bf16.mxu0 %v1208_v15 }
  0x65   :  { %1211 = vmatpush3.bf16.msra.mxu0 %v1210_v28 }
  0x66   :  { %1213 = vmatprep.subr.bf16.mxu0 %v1212_v29 }
  0x69   :  { %1215 = vmatpush3.bf16.msra.mxu0 %v1214_v54 }
  0x6c   :  { %846 = vmatmul.mubr.f32.vlgmr.msra.gmra.mrb[4].mxu0 %v489_v10 }
  0xff   :  { %v913_v59 = vpop.f32.mrb[0].mxu0 }
 0x100   :  { %v914_v0 = vpop.f32.mrb[1].mxu0 }
 0x101   :  { %v915_v20 = vadd.f32 %v914_v0, %v913_v59 }
 0x103   :  { %v568_v21 = vadd.f32 %v915_v20, %v880_v60  ;;  %v948_v22 = vpop.f32.mrb[0].mxu1 }
 0x104   :  { %v949_v25 = vpop.f32.mrb[1].mxu1 }
 0x105   :  { %v950_v26 = vadd.f32 %v949_v25, %v948_v22 }
 0x107   :  { %v638_v27 = vadd.f32 %v950_v26, %v568_v21 }
 0x11f   :  { %v983_v32 = vpop.f32.mrb[2].mxu0 }
 0x120   :  { %v984_v33 = vpop.f32.mrb[3].mxu0 }
 0x121   :  { %v985_v34 = vadd.f32 %v984_v33, %v983_v32 }
 0x123   :  { %v708_v37 = vadd.f32 %v985_v34, %v638_v27  ;;  %v1018_v35 = vpop.f32.mrb[2].mxu1 }
 0x124   :  { %v1019_v36 = vpop.f32.mrb[3].mxu1 }
 0x125   :  { %v1020_v43 = vadd.f32 %v1019_v36, %v1018_v35 }
 0x127   :  { %v778_v44 = vadd.f32 %v1020_v43, %v708_v37 }
 0x13f   :  { %v1053_v61 = vpop.f32.mrb[4].mxu0 }
 0x140   :  { %v1054_v1 = vpop.f32.mrb[5].mxu0 }
 0x141   :  { %v1055_v38 = vadd.f32 %v1054_v1, %v1053_v61 }
 0x143   :  { %v848_v39 = vadd.f32 %v1055_v38, %v778_v44 }
 0x145   :  { %v852_v49 = vsel %vm851_vm2, %v848_v39, -inf }
 0x146   :  { %853 = vmax.xlane.f32.xlu0 %v852_v49 }
 0x1d3   :  { %v854_v50 = vpop.xlane.xlu0 %853 }
 0x1d4   :  { %v855_v3 = vsub.f32 %v848_v39, %v854_v50 }
 0x1d6   :  { %v856_v40 = vmul.f32 1.442695, %v855_v3 }
 0x1d8   :  { %1222 = vpow2.f32 %v856_v40 }
 0x1e2   :  { %v1223_v62 = vpop.eup %1222 }
 0x1e3   :  { %v858_v63 = vsel %vm851_vm2, %v1223_v62, 0.0 }
 0x1e4   :  { %859 = vadd.xlane.f32.xlu0 %v858_v63 }
 0x271   :  { %v860_v9 = vpop.xlane.xlu0 %859 }
 0x272   :  { %1224 = vrcp.f32 %v860_v9 }
 0x27c   :  { %v1225_v41 = vpop.eup %1224 }
 0x27d   :  { %v862_v16 = vmul.f32 %v1225_v41, %v1223_v62 }
 0x27f   :  { %863 = vst.msk [vmem:[#allocation2] sm:$0x3] %vm851_vm2, %v862_v16 }
 0x280   :  { %1237 = shalt.err (!%p1234_p4)
}
 0x281   :  { %s1238_s23 = scalar_lea.hbm %s2005_s3, 32 }
 0x282   :  { %p1239_p5 = scmp.ne.s32.totalorder %s2005_s3, %s1238_s23  ;;  %p1242_p6 = scmp.lt.u32.totalorder %s1238_s23, %s2005_s3 }
 0x284   :  { %p1244_p7 = pnand %p1242_p6, %p1239_p5 }
 0x286   :  { %1247 = shalt.err (!%p1244_p7)
}
 0x287   :  { %873 = dma.vmem_to_hbm [thread:$0]  %s871_s2, 32, %s2005_s3, [#allocation3]  }
 0x288   :  { %1248 = dma.done.wait [#allocation3], 32  }
 0x289   :  { %1249 = vsyncadd [#allocation3], 4294967264 }
 0x28a   :  { %877 = vsyncpa [#allocation3], 1 }

</bundles_post_ra>
